<compile_context>
chip_gen: v5e
topology: v5e:2x2
jax: 0.10.0
libtpu: 0.0.40
codegen_flags: <defaults>
</compile_context>

<pallas_src>
import math
import functools

import jax
import jax.numpy as jnp
from jax.experimental import pallas as pl
from jax.experimental.pallas import tpu as pltpu

LEAK = 0.2                       # LeakyReLU negative slope
_TM = 512                        # im2col rows per matmul tile (multiple of 8)
_T_BLEND = 32768                 # lane tile for the blend kernel (mult of 128)
_VMEM_LIMIT = 48 * 1024 * 1024   # sized for v7x (64 MiB physical) w/ headroom


def _cparams():
    return pltpu.CompilerParams(dimension_semantics=("parallel",),
                                vmem_limit_bytes=_VMEM_LIMIT)


# --------------------------- Pallas kernels ---------------------------------

def _mm_bias_act_kernel(a_ref, w_ref, b_ref, o_ref, *, act):
    """o = leaky_relu(A @ W + b)  (bf16 operands, f32 accumulate/epilogue)."""
    acc = jnp.dot(a_ref[...], w_ref[...], preferred_element_type=jnp.float32)
    acc = acc + b_ref[...]
    if act:
        acc = jnp.where(acc >= 0, acc, acc * LEAK)
    o_ref[...] = acc.astype(o_ref.dtype)


def _mm_resconv_kernel(a_ref, w_ref, b_ref, beta_ref, r_ref, o_ref):
    """o = leaky_relu((A @ W + b) * beta + residual)   (ResConv)."""
    acc = jnp.dot(a_ref[...], w_ref[...], preferred_element_type=jnp.float32)
    acc = (acc + b_ref[...]) * beta_ref[...] + r_ref[...].astype(jnp.float32)
    acc = jnp.where(acc >= 0, acc, acc * LEAK)
    o_ref[...] = acc.astype(o_ref.dtype)


def _blend_kernel(w0_ref, w1_ref, m_ref, o_ref):
    """o = warped0 * sigmoid(mask) + warped1 * (1 - sigmoid(mask))."""
    t = jax.nn.sigmoid(m_ref[...])             # (N, 1, T) -> broadcast over C
    o_ref[...] = w0_ref[...] * t + w1_ref[...] * (1.0 - t)


# --------------------------- tiled matmul wrapper ----------------------------

def _matmul_conv(a, wm, b_row, *, act, out_dtype, beta_row=None, residual=None):
    """M-tiled A[M,K] @ W[K,Cout] + fused epilogue via pallas_call."""
    M, K = a.shape
    Kw, Cout = wm.shape
    assert Kw == K
    tm = M if M <= _TM else _TM            # full-dim block if M is small
    grid = (pl.cdiv(M, tm),)

    a_spec = pl.BlockSpec((tm, K), lambda i: (i, 0))
    w_spec = pl.BlockSpec((K, Cout), lambda i: (0, 0))      # VMEM-resident
    s_spec = pl.BlockSpec((1, Cout), lambda i: (0, 0))      # bias / beta rows
    o_spec = pl.BlockSpec((tm, Cout), lambda i: (i, 0))

    if residual is not None:
        return pl.pallas_call(
            _mm_resconv_kernel,
            grid=grid,
            in_specs=[a_spec, w_spec, s_spec, s_spec, o_spec],
            out_specs=o_spec,
            out_shape=jax.ShapeDtypeStruct((M, Cout), out_dtype),
            input_output_aliases={4: 0},       # reuse residual buffer as output
            compiler_params=_cparams(),
        )(a, wm, b_row, beta_row, residual)

    return pl.pallas_call(
        functools.partial(_mm_bias_act_kernel, act=act),
        grid=grid,
        in_specs=[a_spec, w_spec, s_spec],
        out_specs=o_spec,
        out_shape=jax.ShapeDtypeStruct((M, Cout), out_dtype),
        compiler_params=_cparams(),
    )(a, wm, b_row)


# --------------------------- conv wrappers (NHWC) ----------------------------

def conv2d_nhwc(x, wm, b_row, *, kh=3, kw=3, stride=1, padding=1, dilation=1,
                act=True, beta_row=None, residual=None, out_dtype=jnp.bfloat16):
    """Conv2d on NHWC input via im2col + tiled Pallas matmul.

    wm: pre-transposed weight (kh*kw*Cin, Cout) in bf16; b_row/beta_row: (1, Cout) f32.
    """
    # TODO(synk): im2col is still materialized in HBM (bf16); fully removing it
    # would require halo/overlapping BlockSpecs or manual DMA inside the kernel.
    N, H, W, C = x.shape
    x = x.astype(jnp.bfloat16)
    xp = jnp.pad(x, ((0, 0), (padding, padding), (padding, padding), (0, 0)))
    Hp, Wp = H + 2 * padding, W + 2 * padding
    Ho = (Hp - dilation * (kh - 1) - 1) // stride + 1
    Wo = (Wp - dilation * (kw - 1) - 1) // stride + 1

    cols = []
    for ki in range(kh):
        for kj in range(kw):
            cols.append(
                xp[:, ki * dilation: ki * dilation + stride * (Ho - 1) + 1: stride,
                      kj * dilation: kj * dilation + stride * (Wo - 1) + 1: stride, :])
    a = jnp.concatenate(cols, axis=-1).reshape(N * Ho * Wo, kh * kw * C)

    res_flat = None
    if residual is not None:
        res_flat = residual.reshape(N * Ho * Wo, -1).astype(out_dtype)

    out = _matmul_conv(a, wm, b_row, act=act, out_dtype=out_dtype,
                       beta_row=beta_row, residual=res_flat)
    return out.reshape(N, Ho, Wo, -1)


def pixel_shuffle(x, r):
    N, C, H, W = x.shape
    Co = C // (r * r)
    x = x.reshape(N, Co, r, r, H, W)
    x = jnp.transpose(x, (0, 1, 4, 2, 5, 3))
    return x.reshape(N, Co, H * r, W * r)


# --------------------------- resize / warp glue (plain JAX) ------------------

def resize_bilinear(x, out_h, out_w):
    """F.interpolate(mode='bilinear', align_corners=False) for NCHW."""
    N, C, H, W = x.shape
    if out_h == H and out_w == W:
        return x

    def src_idx(out_size, in_size):
        scale = in_size / out_size
        s = jnp.maximum((jnp.arange(out_size, dtype=jnp.float32) + 0.5) * scale - 0.5, 0.0)
        i0 = jnp.minimum(jnp.floor(s).astype(jnp.int32), in_size - 1)
        i1 = jnp.minimum(i0 + 1, in_size - 1)
        w1 = s - i0.astype(jnp.float32)
        return i0, i1, w1

    y0, y1, wy = src_idx(out_h, H)
    x0, x1, wx = src_idx(out_w, W)
    r0 = jnp.take(x, y0, axis=2)
    r1 = jnp.take(x, y1, axis=2)
    xr = r0 * (1.0 - wy)[None, None, :, None] + r1 * wy[None, None, :, None]
    c0 = jnp.take(xr, x0, axis=3)
    c1 = jnp.take(xr, x1, axis=3)
    return c0 * (1.0 - wx)[None, None, None, :] + c1 * wx[None, None, None, :]


def grid_sample_bilinear_border(img, grid):
    """grid_sample(mode='bilinear', padding_mode='border', align_corners=True)."""
    N, C, H, W = img.shape
    gx = jnp.clip((grid[..., 0] + 1.0) * 0.5 * (W - 1), 0.0, W - 1.0)
    gy = jnp.clip((grid[..., 1] + 1.0) * 0.5 * (H - 1), 0.0, H - 1.0)
    x0 = jnp.floor(gx)
    y0 = jnp.floor(gy)
    wx = (gx - x0)[:, None]
    wy = (gy - y0)[:, None]
    x0i = x0.astype(jnp.int32)
    y0i = y0.astype(jnp.int32)
    x1i = jnp.minimum(x0i + 1, W - 1)
    y1i = jnp.minimum(y0i + 1, H - 1)
    flat = img.reshape(N, C, H * W)

    def gather(yi, xi):
        idx = (yi * W + xi).reshape(N, 1, -1)
        return jnp.take_along_axis(flat, idx, axis=2).reshape(N, C, yi.shape[1], yi.shape[2])

    v00 = gather(y0i, x0i)
    v01 = gather(y0i, x1i)
    v10 = gather(y1i, x0i)
    v11 = gather(y1i, x1i)
    top = v00 * (1.0 - wx) + v01 * wx
    bot = v10 * (1.0 - wx) + v11 * wx
    return top * (1.0 - wy) + bot * wy


# TODO(synk): `warp` is referenced but not defined in the provided module; this is the
# standard RIFE 4.6 warp (normalized flow added to backWarp grid, then grid_sample).
def warp(ten_input, flow, ten_flow_div, back_warp):
    fx = flow[:, 0:1] / ten_flow_div[0]
    fy = flow[:, 1:2] / ten_flow_div[1]
    g = back_warp + jnp.concatenate([fx, fy], axis=1)
    g = jnp.transpose(g, (0, 2, 3, 1))
    return grid_sample_bilinear_border(ten_input, g)


# --------------------------- parameter init (PyTorch layout) -----------------

def _conv_param(key, cin, cout, k):
    kw_, kb_ = jax.random.split(key)
    std = 0.5 / math.sqrt(cin * k * k)
    w = jax.random.normal(kw_, (cout, cin, k, k), jnp.float32) * std
    b = jax.random.uniform(kb_, (cout,), jnp.float32, -std, std)
    return {"w": w, "b": b}


def init_ifblock_params(key, in_planes, c):
    ks = jax.random.split(key, 12)
    p = {
        "conv0_0": _conv_param(ks[0], in_planes, c // 2, 3),
        "conv0_1": _conv_param(ks[1], c // 2, c, 3),
        "res": [],
    }
    for i in range(8):
        rp = _conv_param(ks[2 + i], c, c, 3)
        rp["beta"] = jnp.ones((c,), jnp.float32)
        p["res"].append(rp)
    std = 0.5 / math.sqrt(c * 4 * 4)
    kw_, kb_ = jax.random.split(ks[10])
    p["last_w"] = jax.random.normal(kw_, (c, 4 * 6, 4, 4), jnp.float32) * std  # ConvT layout
    p["last_b"] = jax.random.uniform(kb_, (4 * 6,), jnp.float32, -std, std)
    return p


def init_ifnet_params(key):
    ks = jax.random.split(key, 4)
    return {
        "blocks": [
            init_ifblock_params(ks[0], 7, 192),
            init_ifblock_params(ks[1], 8 + 4, 128),
            init_ifblock_params(ks[2], 8 + 4, 96),
            init_ifblock_params(ks[3], 8 + 4, 64),
        ]
    }


# --------------------------- parameter prep (once, outside jit) --------------

def _prep_conv(w, b):
    """(Cout,Cin,kh,kw) -> matmul-ready (kh*kw*Cin, Cout) bf16 + (1,Cout) f32 bias."""
    cout, cin, kh, kw = w.shape
    wm = jnp.transpose(w, (2, 3, 1, 0)).reshape(kh * kw * cin, cout).astype(jnp.bfloat16)
    return wm, b.reshape(1, cout).astype(jnp.float32)


def _prep_lastconv(wt, bt):
    """ConvTranspose2d(c, 24, 4, 2, 1) -> equivalent 3x3 conv with 96 out channels.

    Sub-pixel decomposition: output phase (ry,rx) of the stride-2 transposed conv
    is a conv over a 3x3 neighborhood of the (1-padded) input with taps
    rows [w3,w1,0] (ry=0) / [0,w2,w0] (ry=1), same for columns.  Applying
    PixelShuffle(2) to the 96-channel result reproduces the ConvTranspose output.
    """
    cin, cout24 = wt.shape[0], wt.shape[1]
    we = jnp.pad(wt, ((0, 0), (0, 0), (0, 1), (0, 1)))       # index 4 == zero tap
    idx = jnp.array([[3, 1, 4], [4, 2, 0]], jnp.int32)       # [phase, window pos]
    wy = we[:, :, idx, :]                                    # (cin,24,2,3,5)
    wyx = wy[:, :, :, :, idx]                                # (cin,24,ry,dy,rx,dx)
    w3 = jnp.transpose(wyx, (1, 2, 4, 0, 3, 5)).reshape(cout24 * 4, cin, 3, 3)
    b3 = jnp.repeat(bt, 4)                                   # channel = co*4 + ry*2 + rx
    return _prep_conv(w3, b3)


def prepare_ifblock(raw):
    c00_w, c00_b = _prep_conv(raw["conv0_0"]["w"], raw["conv0_0"]["b"])
    c01_w, c01_b = _prep_conv(raw["conv0_1"]["w"], raw["conv0_1"]["b"])
    res = []
    for rp in raw["res"]:
        wm, br = _prep_conv(rp["w"], rp["b"])
        res.append((wm, br, rp["beta"].reshape(1, -1).astype(jnp.float32)))
    last_w, last_b = _prep_lastconv(raw["last_w"], raw["last_b"])
    return {"c00_w": c00_w, "c00_b": c00_b, "c01_w": c01_w, "c01_b": c01_b,
            "res": res, "last_w": last_w, "last_b": last_b}


def prepare_params(raw):
    return {"blocks": [prepare_ifblock(b) for b in raw["blocks"]]}


# --------------------------- IFBlock / IFNet forward -------------------------

def ifblock_forward(p, x_nchw, flow, scale):
    N, _, H, W = x_nchw.shape
    sh = int(math.floor(H * (1.0 / scale)))
    sw = int(math.floor(W * (1.0 / scale)))
    x = resize_bilinear(x_nchw, sh, sw)
    if flow is not None:
        flow_r = resize_bilinear(flow, sh, sw) * (1.0 / scale)
        x = jnp.concatenate([x, flow_r], axis=1)

    # single NCHW -> NHWC conversion per IFBlock; stay NHWC/bf16 through convs
    x = jnp.transpose(x, (0, 2, 3, 1)).astype(jnp.bfloat16)

    f = conv2d_nhwc(x, p["c00_w"], p["c00_b"], stride=2, padding=1, act=True)
    f = conv2d_nhwc(f, p["c01_w"], p["c01_b"], stride=2, padding=1, act=True)
    for wm, br, betar in p["res"]:
        f = conv2d_nhwc(f, wm, br, stride=1, padding=1, act=True,
                        beta_row=betar, residual=f)

    # lastconv: 3x3 conv (96 ch, f32 out) + PixelShuffle(2) == ConvTranspose2d,
    # then the network's own PixelShuffle(2).
    t = conv2d_nhwc(f, p["last_w"], p["last_b"], stride=1, padding=1,
                    act=False, out_dtype=jnp.float32)
    t = jnp.transpose(t, (0, 3, 1, 2))                        # NHWC -> NCHW
    t = pixel_shuffle(pixel_shuffle(t, 2), 2)

    th = int(math.floor(t.shape[2] * scale))
    tw = int(math.floor(t.shape[3] * scale))
    t = resize_bilinear(t, th, tw)
    flow_out = t[:, :4] * scale
    mask_out = t[:, 4:5]
    return flow_out, mask_out


def blend_masked(warped0, warped1, mask):
    """Fused sigmoid-mask blend, lane-tiled; mask broadcast over C inside VMEM."""
    N, C, H, W = warped0.shape
    HW = H * W
    w0 = warped0.reshape(N, C, HW).astype(jnp.float32)
    w1 = warped1.reshape(N, C, HW).astype(jnp.float32)
    m = mask.reshape(N, 1, HW).astype(jnp.float32)
    thw = HW if HW <= _T_BLEND else _T_BLEND
    grid = (pl.cdiv(HW, thw),)
    big = pl.BlockSpec((N, C, thw), lambda i: (0, 0, i))
    small = pl.BlockSpec((N, 1, thw), lambda i: (0, 0, i))
    out = pl.pallas_call(
        _blend_kernel,
        grid=grid,
        in_specs=[big, big, small],
        out_specs=big,
        out_shape=jax.ShapeDtypeStruct((N, C, HW), jnp.float32),
        compiler_params=_cparams(),
    )(w0, w1, m)
    return out.reshape(N, C, H, W)


def ifnet_forward(params, img0, img1, timestep, ten_flow, back_warp, *,
                  height, width, scale_list):
    warped0, warped1 = img0, img1
    flow = None
    mask = None
    for i, scale in enumerate(scale_list):
        bp = params["blocks"][i]
        if flow is None:
            x = jnp.concatenate([img0[:, :3], img1[:, :3], timestep], axis=1)
            flow, mask = ifblock_forward(bp, x, None, scale)
        else:
            x = jnp.concatenate([warped0[:, :3], warped1[:, :3], timestep, mask], axis=1)
            f0, m0 = ifblock_forward(bp, x, flow, scale)
            flow = flow + f0
            mask = mask + m0
        warped0 = warp(img0, flow[:, :2], ten_flow, back_warp)
        warped1 = warp(img1, flow[:, 2:4], ten_flow, back_warp)

    out = blend_masked(warped0, warped1, mask)
    return out[:, :, :height, :width]


def make_constants(width, height):
    tmp = max(32, int(32 / 1.0))
    pw = math.ceil(width / tmp) * tmp
    ph = math.ceil(height / tmp) * tmp
    ten_flow = jnp.array([(pw - 1.0) / 2.0, (ph - 1.0) / 2.0], jnp.float32)
    horiz = jnp.broadcast_to(jnp.linspace(-1.0, 1.0, pw).reshape(1, 1, 1, pw),
                             (1, 1, ph, pw)).astype(jnp.float32)
    vert = jnp.broadcast_to(jnp.linspace(-1.0, 1.0, ph).reshape(1, 1, ph, 1),
                            (1, 1, ph, pw)).astype(jnp.float32)
    back_warp = jnp.concatenate([horiz, vert], axis=1)
    return pw, ph, ten_flow, back_warp


# --------------------------- main --------------------------------------------

if __name__ == "__main__":
    width = height = 32          # small test size; pw == ph == 32 (multiple of 32)
    net_scale = 1.0
    scale_list = (8.0 / net_scale, 4.0 / net_scale, 2.0 / net_scale, 1.0 / net_scale)

    key = jax.random.PRNGKey(0)
    k0, k1, kp = jax.random.split(key, 3)

    pw, ph, ten_flow, back_warp = make_constants(width, height)
    img0 = jax.random.uniform(k0, (1, 3, ph, pw), jnp.float32)
    img1 = jax.random.uniform(k1, (1, 3, ph, pw), jnp.float32)
    timestep = jnp.full((1, 1, ph, pw), 0.5, jnp.float32)

    params = prepare_params(init_ifnet_params(kp))   # weight reformat done once

    fwd = jax.jit(functools.partial(ifnet_forward, height=height, width=width,
                                    scale_list=scale_list))
    out = fwd(params, img0, img1, timestep, ten_flow, back_warp)
    out = jax.block_until_ready(out)

    assert out.shape == (1, 3, height, width), out.shape
    assert bool(jnp.all(jnp.isfinite(out)))
    print("KERNEL_OK")
</pallas_src>

<mosaic_0001>
module attributes {stable_mosaic.version = 11 : i64} {
  func.func @_mm_bias_act_kernel(%arg0: i32, %arg1: memref<4x63xbf16, #tpu.memory_space<vmem>>, %arg2: memref<63x96xbf16, #tpu.memory_space<vmem>>, %arg3: memref<1x96xf32, #tpu.memory_space<vmem>>, %arg4: memref<4x96xbf16, #tpu.memory_space<vmem>>) attributes {dimension_semantics = [#tpu.dimension_semantics<parallel>], iteration_bounds = array<i64: 1>, scalar_prefetch = 0 : i64, scratch_operands = 0 : i64, tpu.core_type = #tpu.core_type<tc>, window_params = [{transform_indices = @transform_0, window_bounds = array<i64: 4, 63>}, {pipeline_mode = #tpu.pipeline_mode<synchronous>, transform_indices = @transform_1, window_bounds = array<i64: 63, 96>}, {pipeline_mode = #tpu.pipeline_mode<synchronous>, transform_indices = @transform_2, window_bounds = array<i64: 1, 96>}, {transform_indices = @transform_3, window_bounds = array<i64: 4, 96>}]} {
    %c0 = arith.constant 0 : index
    %c0_0 = arith.constant 0 : index
    %0 = vector.load %arg1[%c0, %c0_0] : memref<4x63xbf16, #tpu.memory_space<vmem>>, vector<4x63xbf16>
    %c0_1 = arith.constant 0 : index
    %c0_2 = arith.constant 0 : index
    %1 = vector.load %arg2[%c0_1, %c0_2] : memref<63x96xbf16, #tpu.memory_space<vmem>>, vector<63x96xbf16>
    %cst = arith.constant dense<0.000000e+00> : vector<4x96xf32>
    %2 = tpu.matmul %0, %1, %cst {dimension_numbers = #tpu.dot_dimension_numbers<[1], [0], [0], [1], [0, 0, 1, 1], [], []>} : vector<4x63xbf16>, vector<63x96xbf16>, vector<4x96xf32> -> vector<4x96xf32>
    %c0_3 = arith.constant 0 : index
    %c0_4 = arith.constant 0 : index
    %3 = vector.load %arg3[%c0_3, %c0_4] : memref<1x96xf32, #tpu.memory_space<vmem>>, vector<1x96xf32>
    %4 = vector.broadcast %3 : vector<1x96xf32> to vector<4x96xf32>
    %5 = arith.addf %2, %4 : vector<4x96xf32>
    %cst_5 = arith.constant 0.000000e+00 : f32
    %6 = vector.broadcast %cst_5 : f32 to vector<4x96xf32>
    %7 = arith.cmpf oge, %5, %6 : vector<4x96xf32>
    %cst_6 = arith.constant 2.000000e-01 : f32
    %8 = vector.broadcast %cst_6 : f32 to vector<4x96xf32>
    %9 = arith.mulf %5, %8 : vector<4x96xf32>
    %10 = arith.select %7, %5, %9 : vector<4x96xi1>, vector<4x96xf32>
    %11 = arith.truncf %10 : vector<4x96xf32> to vector<4x96xbf16>
    %c0_7 = arith.constant 0 : index
    %c0_8 = arith.constant 0 : index
    %12 = vector.load %arg4[%c0_7, %c0_8] : memref<4x96xbf16, #tpu.memory_space<vmem>>, vector<4x96xbf16>
    tpu.vector_store %arg4[%c0_7, %c0_8], %11 {strides = array<i32>} : memref<4x96xbf16, #tpu.memory_space<vmem>>, vector<4x96xbf16>,
    return
  }
  func.func @transform_0(%arg0: i32) -> (i32, i32) {
    %c0_i32 = arith.constant 0 : i32
    %c0_i32_0 = arith.constant 0 : i32
    return %arg0, %c0_i32 : i32, i32
  }
  func.func @transform_1(%arg0: i32) -> (i32, i32) {
    %c0_i32 = arith.constant 0 : i32
    %c0_i32_0 = arith.constant 0 : i32
    %c0_i32_1 = arith.constant 0 : i32
    return %c0_i32, %c0_i32_0 : i32, i32
  }
  func.func @transform_2(%arg0: i32) -> (i32, i32) {
    %c0_i32 = arith.constant 0 : i32
    %c0_i32_0 = arith.constant 0 : i32
    %c0_i32_1 = arith.constant 0 : i32
    return %c0_i32, %c0_i32_0 : i32, i32
  }
  func.func @transform_3(%arg0: i32) -> (i32, i32) {
    %c0_i32 = arith.constant 0 : i32
    %c0_i32_0 = arith.constant 0 : i32
    return %arg0, %c0_i32 : i32, i32
  }
}

module attributes {stable_mosaic.version = 11 : i64} {
  func.func @_mm_bias_act_kernel(%arg0: i32, %arg1: memref<1x864xbf16, #tpu.memory_space<vmem>>, %arg2: memref<864x192xbf16, #tpu.memory_space<vmem>>, %arg3: memref<1x192xf32, #tpu.memory_space<vmem>>, %arg4: memref<1x192xbf16, #tpu.memory_space<vmem>>) attributes {dimension_semantics = [#tpu.dimension_semantics<parallel>], iteration_bounds = array<i64: 1>, scalar_prefetch = 0 : i64, scratch_operands = 0 : i64, tpu.core_type = #tpu.core_type<tc>, window_params = [{transform_indices = @transform_0, window_bounds = array<i64: 1, 864>}, {pipeline_mode = #tpu.pipeline_mode<synchronous>, transform_indices = @transform_1, window_bounds = array<i64: 864, 192>}, {pipeline_mode = #tpu.pipeline_mode<synchronous>, transform_indices = @transform_2, window_bounds = array<i64: 1, 192>}, {transform_indices = @transform_3, window_bounds = array<i64: 1, 192>}]} {
    %c0 = arith.constant 0 : index
    %c0_0 = arith.constant 0 : index
    %0 = vector.load %arg1[%c0, %c0_0] : memref<1x864xbf16, #tpu.memory_space<vmem>>, vector<1x864xbf16>
    %c0_1 = arith.constant 0 : index
    %c0_2 = arith.constant 0 : index
    %1 = vector.load %arg2[%c0_1, %c0_2] : memref<864x192xbf16, #tpu.memory_space<vmem>>, vector<864x192xbf16>
    %cst = arith.constant dense<0.000000e+00> : vector<1x192xf32>
    %2 = tpu.matmul %0, %1, %cst {dimension_numbers = #tpu.dot_dimension_numbers<[1], [0], [0], [1], [0, 0, 1, 1], [], []>} : vector<1x864xbf16>, vector<864x192xbf16>, vector<1x192xf32> -> vector<1x192xf32>
    %c0_3 = arith.constant 0 : index
    %c0_4 = arith.constant 0 : index
    %3 = vector.load %arg3[%c0_3, %c0_4] : memref<1x192xf32, #tpu.memory_space<vmem>>, vector<1x192xf32>
    %4 = arith.addf %2, %3 : vector<1x192xf32>
    %cst_5 = arith.constant 0.000000e+00 : f32
    %5 = vector.broadcast %cst_5 : f32 to vector<1x192xf32>
    %6 = arith.cmpf oge, %4, %5 : vector<1x192xf32>
    %cst_6 = arith.constant 2.000000e-01 : f32
    %7 = vector.broadcast %cst_6 : f32 to vector<1x192xf32>
    %8 = arith.mulf %4, %7 : vector<1x192xf32>
    %9 = arith.select %6, %4, %8 : vector<1x192xi1>, vector<1x192xf32>
    %10 = arith.truncf %9 : vector<1x192xf32> to vector<1x192xbf16>
    %c0_7 = arith.constant 0 : index
    %c0_8 = arith.constant 0 : index
    %11 = vector.load %arg4[%c0_7, %c0_8] : memref<1x192xbf16, #tpu.memory_space<vmem>>, vector<1x192xbf16>
    tpu.vector_store %arg4[%c0_7, %c0_8], %10 {strides = array<i32>} : memref<1x192xbf16, #tpu.memory_space<vmem>>, vector<1x192xbf16>,
    return
  }
  func.func @transform_0(%arg0: i32) -> (i32, i32) {
    %c0_i32 = arith.constant 0 : i32
    %c0_i32_0 = arith.constant 0 : i32
    return %arg0, %c0_i32 : i32, i32
  }
  func.func @transform_1(%arg0: i32) -> (i32, i32) {
    %c0_i32 = arith.constant 0 : i32
    %c0_i32_0 = arith.constant 0 : i32
    %c0_i32_1 = arith.constant 0 : i32
    return %c0_i32, %c0_i32_0 : i32, i32
  }
  func.func @transform_2(%arg0: i32) -> (i32, i32) {
    %c0_i32 = arith.constant 0 : i32
    %c0_i32_0 = arith.constant 0 : i32
    %c0_i32_1 = arith.constant 0 : i32
    return %c0_i32, %c0_i32_0 : i32, i32
  }
  func.func @transform_3(%arg0: i32) -> (i32, i32) {
    %c0_i32 = arith.constant 0 : i32
    %c0_i32_0 = arith.constant 0 : i32
    return %arg0, %c0_i32 : i32, i32
  }
}

module attributes {stable_mosaic.version = 11 : i64} {
  func.func @_mm_resconv_kernel(%arg0: i32, %arg1: memref<1x1728xbf16, #tpu.memory_space<vmem>>, %arg2: memref<1728x192xbf16, #tpu.memory_space<vmem>>, %arg3: memref<1x192xf32, #tpu.memory_space<vmem>>, %arg4: memref<1x192xf32, #tpu.memory_space<vmem>>, %arg5: memref<1x192xbf16, #tpu.memory_space<vmem>>, %arg6: memref<1x192xbf16, #tpu.memory_space<vmem>>) attributes {dimension_semantics = [#tpu.dimension_semantics<parallel>], iteration_bounds = array<i64: 1>, scalar_prefetch = 0 : i64, scratch_operands = 0 : i64, tpu.core_type = #tpu.core_type<tc>, window_params = [{transform_indices = @transform_0, window_bounds = array<i64: 1, 1728>}, {pipeline_mode = #tpu.pipeline_mode<synchronous>, transform_indices = @transform_1, window_bounds = array<i64: 1728, 192>}, {pipeline_mode = #tpu.pipeline_mode<synchronous>, transform_indices = @transform_2, window_bounds = array<i64: 1, 192>}, {pipeline_mode = #tpu.pipeline_mode<synchronous>, transform_indices = @transform_3, window_bounds = array<i64: 1, 192>}, {transform_indices = @transform_4, window_bounds = array<i64: 1, 192>}, {transform_indices = @transform_5, window_bounds = array<i64: 1, 192>}]} {
    %c0 = arith.constant 0 : index
    %c0_0 = arith.constant 0 : index
    %0 = vector.load %arg1[%c0, %c0_0] : memref<1x1728xbf16, #tpu.memory_space<vmem>>, vector<1x1728xbf16>
    %c0_1 = arith.constant 0 : index
    %c0_2 = arith.constant 0 : index
    %1 = vector.load %arg2[%c0_1, %c0_2] : memref<1728x192xbf16, #tpu.memory_space<vmem>>, vector<1728x192xbf16>
    %cst = arith.constant dense<0.000000e+00> : vector<1x192xf32>
    %2 = tpu.matmul %0, %1, %cst {dimension_numbers = #tpu.dot_dimension_numbers<[1], [0], [0], [1], [0, 0, 1, 1], [], []>} : vector<1x1728xbf16>, vector<1728x192xbf16>, vector<1x192xf32> -> vector<1x192xf32>
    %c0_3 = arith.constant 0 : index
    %c0_4 = arith.constant 0 : index
    %3 = vector.load %arg3[%c0_3, %c0_4] : memref<1x192xf32, #tpu.memory_space<vmem>>, vector<1x192xf32>
    %4 = arith.addf %2, %3 : vector<1x192xf32>
    %c0_5 = arith.constant 0 : index
    %c0_6 = arith.constant 0 : index
    %5 = vector.load %arg4[%c0_5, %c0_6] : memref<1x192xf32, #tpu.memory_space<vmem>>, vector<1x192xf32>
    %6 = arith.mulf %4, %5 : vector<1x192xf32>
    %c0_7 = arith.constant 0 : index
    %c0_8 = arith.constant 0 : index
    %7 = vector.load %arg5[%c0_7, %c0_8] : memref<1x192xbf16, #tpu.memory_space<vmem>>, vector<1x192xbf16>
    %8 = arith.extf %7 : vector<1x192xbf16> to vector<1x192xf32>
    %9 = arith.addf %6, %8 : vector<1x192xf32>
    %cst_9 = arith.constant 0.000000e+00 : f32
    %10 = vector.broadcast %cst_9 : f32 to vector<1x192xf32>
    %11 = arith.cmpf oge, %9, %10 : vector<1x192xf32>
    %cst_10 = arith.constant 2.000000e-01 : f32
    %12 = vector.broadcast %cst_10 : f32 to vector<1x192xf32>
    %13 = arith.mulf %9, %12 : vector<1x192xf32>
    %14 = arith.select %11, %9, %13 : vector<1x192xi1>, vector<1x192xf32>
    %15 = arith.truncf %14 : vector<1x192xf32> to vector<1x192xbf16>
    %c0_11 = arith.constant 0 : index
    %c0_12 = arith.constant 0 : index
    %16 = vector.load %arg6[%c0_11, %c0_12] : memref<1x192xbf16, #tpu.memory_space<vmem>>, vector<1x192xbf16>
    tpu.vector_store %arg6[%c0_11, %c0_12], %15 {strides = array<i32>} : memref<1x192xbf16, #tpu.memory_space<vmem>>, vector<1x192xbf16>,
    return
  }
  func.func @transform_0(%arg0: i32) -> (i32, i32) {
    %c0_i32 = arith.constant 0 : i32
    %c0_i32_0 = arith.constant 0 : i32
    return %arg0, %c0_i32 : i32, i32
  }
  func.func @transform_1(%arg0: i32) -> (i32, i32) {
    %c0_i32 = arith.constant 0 : i32
    %c0_i32_0 = arith.constant 0 : i32
    %c0_i32_1 = arith.constant 0 : i32
    return %c0_i32, %c0_i32_0 : i32, i32
  }
  func.func @transform_2(%arg0: i32) -> (i32, i32) {
    %c0_i32 = arith.constant 0 : i32
    %c0_i32_0 = arith.constant 0 : i32
    %c0_i32_1 = arith.constant 0 : i32
    return %c0_i32, %c0_i32_0 : i32, i32
  }
  func.func @transform_3(%arg0: i32) -> (i32, i32) {
    %c0_i32 = arith.constant 0 : i32
    %c0_i32_0 = arith.constant 0 : i32
    %c0_i32_1 = arith.constant 0 : i32
    return %c0_i32, %c0_i32_0 : i32, i32
  }
  func.func @transform_4(%arg0: i32) -> (i32, i32) {
    %c0_i32 = arith.constant 0 : i32
    %c0_i32_0 = arith.constant 0 : i32
    return %arg0, %c0_i32 : i32, i32
  }
  func.func @transform_5(%arg0: i32) -> (i32, i32) {
    %c0_i32 = arith.constant 0 : i32
    %c0_i32_0 = arith.constant 0 : i32
    return %arg0, %c0_i32 : i32, i32
  }
}

module attributes {stable_mosaic.version = 11 : i64} {
  func.func @_mm_bias_act_kernel(%arg0: i32, %arg1: memref<1x1728xbf16, #tpu.memory_space<vmem>>, %arg2: memref<1728x96xbf16, #tpu.memory_space<vmem>>, %arg3: memref<1x96xf32, #tpu.memory_space<vmem>>, %arg4: memref<1x96xf32, #tpu.memory_space<vmem>>) attributes {dimension_semantics = [#tpu.dimension_semantics<parallel>], iteration_bounds = array<i64: 1>, scalar_prefetch = 0 : i64, scratch_operands = 0 : i64, tpu.core_type = #tpu.core_type<tc>, window_params = [{transform_indices = @transform_0, window_bounds = array<i64: 1, 1728>}, {pipeline_mode = #tpu.pipeline_mode<synchronous>, transform_indices = @transform_1, window_bounds = array<i64: 1728, 96>}, {pipeline_mode = #tpu.pipeline_mode<synchronous>, transform_indices = @transform_2, window_bounds = array<i64: 1, 96>}, {transform_indices = @transform_3, window_bounds = array<i64: 1, 96>}]} {
    %c0 = arith.constant 0 : index
    %c0_0 = arith.constant 0 : index
    %0 = vector.load %arg1[%c0, %c0_0] : memref<1x1728xbf16, #tpu.memory_space<vmem>>, vector<1x1728xbf16>
    %c0_1 = arith.constant 0 : index
    %c0_2 = arith.constant 0 : index
    %1 = vector.load %arg2[%c0_1, %c0_2] : memref<1728x96xbf16, #tpu.memory_space<vmem>>, vector<1728x96xbf16>
    %cst = arith.constant dense<0.000000e+00> : vector<1x96xf32>
    %2 = tpu.matmul %0, %1, %cst {dimension_numbers = #tpu.dot_dimension_numbers<[1], [0], [0], [1], [0, 0, 1, 1], [], []>} : vector<1x1728xbf16>, vector<1728x96xbf16>, vector<1x96xf32> -> vector<1x96xf32>
    %c0_3 = arith.constant 0 : index
    %c0_4 = arith.constant 0 : index
    %3 = vector.load %arg3[%c0_3, %c0_4] : memref<1x96xf32, #tpu.memory_space<vmem>>, vector<1x96xf32>
    %4 = arith.addf %2, %3 : vector<1x96xf32>
    %c0_5 = arith.constant 0 : index
    %c0_6 = arith.constant 0 : index
    %5 = vector.load %arg4[%c0_5, %c0_6] : memref<1x96xf32, #tpu.memory_space<vmem>>, vector<1x96xf32>
    tpu.vector_store %arg4[%c0_5, %c0_6], %4 {strides = array<i32>} : memref<1x96xf32, #tpu.memory_space<vmem>>, vector<1x96xf32>,
    return
  }
  func.func @transform_0(%arg0: i32) -> (i32, i32) {
    %c0_i32 = arith.constant 0 : i32
    %c0_i32_0 = arith.constant 0 : i32
    return %arg0, %c0_i32 : i32, i32
  }
  func.func @transform_1(%arg0: i32) -> (i32, i32) {
    %c0_i32 = arith.constant 0 : i32
    %c0_i32_0 = arith.constant 0 : i32
    %c0_i32_1 = arith.constant 0 : i32
    return %c0_i32, %c0_i32_0 : i32, i32
  }
  func.func @transform_2(%arg0: i32) -> (i32, i32) {
    %c0_i32 = arith.constant 0 : i32
    %c0_i32_0 = arith.constant 0 : i32
    %c0_i32_1 = arith.constant 0 : i32
    return %c0_i32, %c0_i32_0 : i32, i32
  }
  func.func @transform_3(%arg0: i32) -> (i32, i32) {
    %c0_i32 = arith.constant 0 : i32
    %c0_i32_0 = arith.constant 0 : i32
    return %arg0, %c0_i32 : i32, i32
  }
}

module attributes {stable_mosaic.version = 11 : i64} {
  func.func @_mm_bias_act_kernel(%arg0: i32, %arg1: memref<16x108xbf16, #tpu.memory_space<vmem>>, %arg2: memref<108x64xbf16, #tpu.memory_space<vmem>>, %arg3: memref<1x64xf32, #tpu.memory_space<vmem>>, %arg4: memref<16x64xbf16, #tpu.memory_space<vmem>>) attributes {dimension_semantics = [#tpu.dimension_semantics<parallel>], iteration_bounds = array<i64: 1>, scalar_prefetch = 0 : i64, scratch_operands = 0 : i64, tpu.core_type = #tpu.core_type<tc>, window_params = [{transform_indices = @transform_0, window_bounds = array<i64: 16, 108>}, {pipeline_mode = #tpu.pipeline_mode<synchronous>, transform_indices = @transform_1, window_bounds = array<i64: 108, 64>}, {pipeline_mode = #tpu.pipeline_mode<synchronous>, transform_indices = @transform_2, window_bounds = array<i64: 1, 64>}, {transform_indices = @transform_3, window_bounds = array<i64: 16, 64>}]} {
    %c0 = arith.constant 0 : index
    %c0_0 = arith.constant 0 : index
    %0 = vector.load %arg1[%c0, %c0_0] : memref<16x108xbf16, #tpu.memory_space<vmem>>, vector<16x108xbf16>
    %c0_1 = arith.constant 0 : index
    %c0_2 = arith.constant 0 : index
    %1 = vector.load %arg2[%c0_1, %c0_2] : memref<108x64xbf16, #tpu.memory_space<vmem>>, vector<108x64xbf16>
    %cst = arith.constant dense<0.000000e+00> : vector<16x64xf32>
    %2 = tpu.matmul %0, %1, %cst {dimension_numbers = #tpu.dot_dimension_numbers<[1], [0], [0], [1], [0, 0, 1, 1], [], []>} : vector<16x108xbf16>, vector<108x64xbf16>, vector<16x64xf32> -> vector<16x64xf32>
    %c0_3 = arith.constant 0 : index
    %c0_4 = arith.constant 0 : index
    %3 = vector.load %arg3[%c0_3, %c0_4] : memref<1x64xf32, #tpu.memory_space<vmem>>, vector<1x64xf32>
    %4 = vector.broadcast %3 : vector<1x64xf32> to vector<16x64xf32>
    %5 = arith.addf %2, %4 : vector<16x64xf32>
    %cst_5 = arith.constant 0.000000e+00 : f32
    %6 = vector.broadcast %cst_5 : f32 to vector<16x64xf32>
    %7 = arith.cmpf oge, %5, %6 : vector<16x64xf32>
    %cst_6 = arith.constant 2.000000e-01 : f32
    %8 = vector.broadcast %cst_6 : f32 to vector<16x64xf32>
    %9 = arith.mulf %5, %8 : vector<16x64xf32>
    %10 = arith.select %7, %5, %9 : vector<16x64xi1>, vector<16x64xf32>
    %11 = arith.truncf %10 : vector<16x64xf32> to vector<16x64xbf16>
    %c0_7 = arith.constant 0 : index
    %c0_8 = arith.constant 0 : index
    %12 = vector.load %arg4[%c0_7, %c0_8] : memref<16x64xbf16, #tpu.memory_space<vmem>>, vector<16x64xbf16>
    tpu.vector_store %arg4[%c0_7, %c0_8], %11 {strides = array<i32>} : memref<16x64xbf16, #tpu.memory_space<vmem>>, vector<16x64xbf16>,
    return
  }
  func.func @transform_0(%arg0: i32) -> (i32, i32) {
    %c0_i32 = arith.constant 0 : i32
    %c0_i32_0 = arith.constant 0 : i32
    return %arg0, %c0_i32 : i32, i32
  }
  func.func @transform_1(%arg0: i32) -> (i32, i32) {
    %c0_i32 = arith.constant 0 : i32
    %c0_i32_0 = arith.constant 0 : i32
    %c0_i32_1 = arith.constant 0 : i32
    return %c0_i32, %c0_i32_0 : i32, i32
  }
  func.func @transform_2(%arg0: i32) -> (i32, i32) {
    %c0_i32 = arith.constant 0 : i32
    %c0_i32_0 = arith.constant 0 : i32
    %c0_i32_1 = arith.constant 0 : i32
    return %c0_i32, %c0_i32_0 : i32, i32
  }
  func.func @transform_3(%arg0: i32) -> (i32, i32) {
    %c0_i32 = arith.constant 0 : i32
    %c0_i32_0 = arith.constant 0 : i32
    return %arg0, %c0_i32 : i32, i32
  }
}

module attributes {stable_mosaic.version = 11 : i64} {
  func.func @_mm_bias_act_kernel(%arg0: i32, %arg1: memref<4x576xbf16, #tpu.memory_space<vmem>>, %arg2: memref<576x128xbf16, #tpu.memory_space<vmem>>, %arg3: memref<1x128xf32, #tpu.memory_space<vmem>>, %arg4: memref<4x128xbf16, #tpu.memory_space<vmem>>) attributes {dimension_semantics = [#tpu.dimension_semantics<parallel>], iteration_bounds = array<i64: 1>, scalar_prefetch = 0 : i64, scratch_operands = 0 : i64, tpu.core_type = #tpu.core_type<tc>, window_params = [{transform_indices = @transform_0, window_bounds = array<i64: 4, 576>}, {pipeline_mode = #tpu.pipeline_mode<synchronous>, transform_indices = @transform_1, window_bounds = array<i64: 576, 128>}, {pipeline_mode = #tpu.pipeline_mode<synchronous>, transform_indices = @transform_2, window_bounds = array<i64: 1, 128>}, {transform_indices = @transform_3, window_bounds = array<i64: 4, 128>}]} {
    %c0 = arith.constant 0 : index
    %c0_0 = arith.constant 0 : index
    %0 = vector.load %arg1[%c0, %c0_0] : memref<4x576xbf16, #tpu.memory_space<vmem>>, vector<4x576xbf16>
    %c0_1 = arith.constant 0 : index
    %c0_2 = arith.constant 0 : index
    %1 = vector.load %arg2[%c0_1, %c0_2] : memref<576x128xbf16, #tpu.memory_space<vmem>>, vector<576x128xbf16>
    %cst = arith.constant dense<0.000000e+00> : vector<4x128xf32>
    %2 = tpu.matmul %0, %1, %cst {dimension_numbers = #tpu.dot_dimension_numbers<[1], [0], [0], [1], [0, 0, 1, 1], [], []>} : vector<4x576xbf16>, vector<576x128xbf16>, vector<4x128xf32> -> vector<4x128xf32>
    %c0_3 = arith.constant 0 : index
    %c0_4 = arith.constant 0 : index
    %3 = vector.load %arg3[%c0_3, %c0_4] : memref<1x128xf32, #tpu.memory_space<vmem>>, vector<1x128xf32>
    %4 = vector.broadcast %3 : vector<1x128xf32> to vector<4x128xf32>
    %5 = arith.addf %2, %4 : vector<4x128xf32>
    %cst_5 = arith.constant 0.000000e+00 : f32
    %6 = vector.broadcast %cst_5 : f32 to vector<4x128xf32>
    %7 = arith.cmpf oge, %5, %6 : vector<4x128xf32>
    %cst_6 = arith.constant 2.000000e-01 : f32
    %8 = vector.broadcast %cst_6 : f32 to vector<4x128xf32>
    %9 = arith.mulf %5, %8 : vector<4x128xf32>
    %10 = arith.select %7, %5, %9 : vector<4x128xi1>, vector<4x128xf32>
    %11 = arith.truncf %10 : vector<4x128xf32> to vector<4x128xbf16>
    %c0_7 = arith.constant 0 : index
    %c0_8 = arith.constant 0 : index
    %12 = vector.load %arg4[%c0_7, %c0_8] : memref<4x128xbf16, #tpu.memory_space<vmem>>, vector<4x128xbf16>
    tpu.vector_store %arg4[%c0_7, %c0_8], %11 {strides = array<i32>} : memref<4x128xbf16, #tpu.memory_space<vmem>>, vector<4x128xbf16>,
    return
  }
  func.func @transform_0(%arg0: i32) -> (i32, i32) {
    %c0_i32 = arith.constant 0 : i32
    %c0_i32_0 = arith.constant 0 : i32
    return %arg0, %c0_i32 : i32, i32
  }
  func.func @transform_1(%arg0: i32) -> (i32, i32) {
    %c0_i32 = arith.constant 0 : i32
    %c0_i32_0 = arith.constant 0 : i32
    %c0_i32_1 = arith.constant 0 : i32
    return %c0_i32, %c0_i32_0 : i32, i32
  }
  func.func @transform_2(%arg0: i32) -> (i32, i32) {
    %c0_i32 = arith.constant 0 : i32
    %c0_i32_0 = arith.constant 0 : i32
    %c0_i32_1 = arith.constant 0 : i32
    return %c0_i32, %c0_i32_0 : i32, i32
  }
  func.func @transform_3(%arg0: i32) -> (i32, i32) {
    %c0_i32 = arith.constant 0 : i32
    %c0_i32_0 = arith.constant 0 : i32
    return %arg0, %c0_i32 : i32, i32
  }
}

module attributes {stable_mosaic.version = 11 : i64} {
  func.func @_mm_resconv_kernel(%arg0: i32, %arg1: memref<4x1152xbf16, #tpu.memory_space<vmem>>, %arg2: memref<1152x128xbf16, #tpu.memory_space<vmem>>, %arg3: memref<1x128xf32, #tpu.memory_space<vmem>>, %arg4: memref<1x128xf32, #tpu.memory_space<vmem>>, %arg5: memref<4x128xbf16, #tpu.memory_space<vmem>>, %arg6: memref<4x128xbf16, #tpu.memory_space<vmem>>) attributes {dimension_semantics = [#tpu.dimension_semantics<parallel>], iteration_bounds = array<i64: 1>, scalar_prefetch = 0 : i64, scratch_operands = 0 : i64, tpu.core_type = #tpu.core_type<tc>, window_params = [{transform_indices = @transform_0, window_bounds = array<i64: 4, 1152>}, {pipeline_mode = #tpu.pipeline_mode<synchronous>, transform_indices = @transform_1, window_bounds = array<i64: 1152, 128>}, {pipeline_mode = #tpu.pipeline_mode<synchronous>, transform_indices = @transform_2, window_bounds = array<i64: 1, 128>}, {pipeline_mode = #tpu.pipeline_mode<synchronous>, transform_indices = @transform_3, window_bounds = array<i64: 1, 128>}, {transform_indices = @transform_4, window_bounds = array<i64: 4, 128>}, {transform_indices = @transform_5, window_bounds = array<i64: 4, 128>}]} {
    %c0 = arith.constant 0 : index
    %c0_0 = arith.constant 0 : index
    %0 = vector.load %arg1[%c0, %c0_0] : memref<4x1152xbf16, #tpu.memory_space<vmem>>, vector<4x1152xbf16>
    %c0_1 = arith.constant 0 : index
    %c0_2 = arith.constant 0 : index
    %1 = vector.load %arg2[%c0_1, %c0_2] : memref<1152x128xbf16, #tpu.memory_space<vmem>>, vector<1152x128xbf16>
    %cst = arith.constant dense<0.000000e+00> : vector<4x128xf32>
    %2 = tpu.matmul %0, %1, %cst {dimension_numbers = #tpu.dot_dimension_numbers<[1], [0], [0], [1], [0, 0, 1, 1], [], []>} : vector<4x1152xbf16>, vector<1152x128xbf16>, vector<4x128xf32> -> vector<4x128xf32>
    %c0_3 = arith.constant 0 : index
    %c0_4 = arith.constant 0 : index
    %3 = vector.load %arg3[%c0_3, %c0_4] : memref<1x128xf32, #tpu.memory_space<vmem>>, vector<1x128xf32>
    %4 = vector.broadcast %3 : vector<1x128xf32> to vector<4x128xf32>
    %5 = arith.addf %2, %4 : vector<4x128xf32>
    %c0_5 = arith.constant 0 : index
    %c0_6 = arith.constant 0 : index
    %6 = vector.load %arg4[%c0_5, %c0_6] : memref<1x128xf32, #tpu.memory_space<vmem>>, vector<1x128xf32>
    %7 = vector.broadcast %6 : vector<1x128xf32> to vector<4x128xf32>
    %8 = arith.mulf %5, %7 : vector<4x128xf32>
    %c0_7 = arith.constant 0 : index
    %c0_8 = arith.constant 0 : index
    %9 = vector.load %arg5[%c0_7, %c0_8] : memref<4x128xbf16, #tpu.memory_space<vmem>>, vector<4x128xbf16>
    %10 = arith.extf %9 : vector<4x128xbf16> to vector<4x128xf32>
    %11 = arith.addf %8, %10 : vector<4x128xf32>
    %cst_9 = arith.constant 0.000000e+00 : f32
    %12 = vector.broadcast %cst_9 : f32 to vector<4x128xf32>
    %13 = arith.cmpf oge, %11, %12 : vector<4x128xf32>
    %cst_10 = arith.constant 2.000000e-01 : f32
    %14 = vector.broadcast %cst_10 : f32 to vector<4x128xf32>
    %15 = arith.mulf %11, %14 : vector<4x128xf32>
    %16 = arith.select %13, %11, %15 : vector<4x128xi1>, vector<4x128xf32>
    %17 = arith.truncf %16 : vector<4x128xf32> to vector<4x128xbf16>
    %c0_11 = arith.constant 0 : index
    %c0_12 = arith.constant 0 : index
    %18 = vector.load %arg6[%c0_11, %c0_12] : memref<4x128xbf16, #tpu.memory_space<vmem>>, vector<4x128xbf16>
    tpu.vector_store %arg6[%c0_11, %c0_12], %17 {strides = array<i32>} : memref<4x128xbf16, #tpu.memory_space<vmem>>, vector<4x128xbf16>,
    return
  }
  func.func @transform_0(%arg0: i32) -> (i32, i32) {
    %c0_i32 = arith.constant 0 : i32
    %c0_i32_0 = arith.constant 0 : i32
    return %arg0, %c0_i32 : i32, i32
  }
  func.func @transform_1(%arg0: i32) -> (i32, i32) {
    %c0_i32 = arith.constant 0 : i32
    %c0_i32_0 = arith.constant 0 : i32
    %c0_i32_1 = arith.constant 0 : i32
    return %c0_i32, %c0_i32_0 : i32, i32
  }
  func.func @transform_2(%arg0: i32) -> (i32, i32) {
    %c0_i32 = arith.constant 0 : i32
    %c0_i32_0 = arith.constant 0 : i32
    %c0_i32_1 = arith.constant 0 : i32
    return %c0_i32, %c0_i32_0 : i32, i32
  }
  func.func @transform_3(%arg0: i32) -> (i32, i32) {
    %c0_i32 = arith.constant 0 : i32
    %c0_i32_0 = arith.constant 0 : i32
    %c0_i32_1 = arith.constant 0 : i32
    return %c0_i32, %c0_i32_0 : i32, i32
  }
  func.func @transform_4(%arg0: i32) -> (i32, i32) {
    %c0_i32 = arith.constant 0 : i32
    %c0_i32_0 = arith.constant 0 : i32
    return %arg0, %c0_i32 : i32, i32
  }
  func.func @transform_5(%arg0: i32) -> (i32, i32) {
    %c0_i32 = arith.constant 0 : i32
    %c0_i32_0 = arith.constant 0 : i32
    return %arg0, %c0_i32 : i32, i32
  }
}

module attributes {stable_mosaic.version = 11 : i64} {
  func.func @_mm_bias_act_kernel(%arg0: i32, %arg1: memref<4x1152xbf16, #tpu.memory_space<vmem>>, %arg2: memref<1152x96xbf16, #tpu.memory_space<vmem>>, %arg3: memref<1x96xf32, #tpu.memory_space<vmem>>, %arg4: memref<4x96xf32, #tpu.memory_space<vmem>>) attributes {dimension_semantics = [#tpu.dimension_semantics<parallel>], iteration_bounds = array<i64: 1>, scalar_prefetch = 0 : i64, scratch_operands = 0 : i64, tpu.core_type = #tpu.core_type<tc>, window_params = [{transform_indices = @transform_0, window_bounds = array<i64: 4, 1152>}, {pipeline_mode = #tpu.pipeline_mode<synchronous>, transform_indices = @transform_1, window_bounds = array<i64: 1152, 96>}, {pipeline_mode = #tpu.pipeline_mode<synchronous>, transform_indices = @transform_2, window_bounds = array<i64: 1, 96>}, {transform_indices = @transform_3, window_bounds = array<i64: 4, 96>}]} {
    %c0 = arith.constant 0 : index
    %c0_0 = arith.constant 0 : index
    %0 = vector.load %arg1[%c0, %c0_0] : memref<4x1152xbf16, #tpu.memory_space<vmem>>, vector<4x1152xbf16>
    %c0_1 = arith.constant 0 : index
    %c0_2 = arith.constant 0 : index
    %1 = vector.load %arg2[%c0_1, %c0_2] : memref<1152x96xbf16, #tpu.memory_space<vmem>>, vector<1152x96xbf16>
    %cst = arith.constant dense<0.000000e+00> : vector<4x96xf32>
    %2 = tpu.matmul %0, %1, %cst {dimension_numbers = #tpu.dot_dimension_numbers<[1], [0], [0], [1], [0, 0, 1, 1], [], []>} : vector<4x1152xbf16>, vector<1152x96xbf16>, vector<4x96xf32> -> vector<4x96xf32>
    %c0_3 = arith.constant 0 : index
    %c0_4 = arith.constant 0 : index
    %3 = vector.load %arg3[%c0_3, %c0_4] : memref<1x96xf32, #tpu.memory_space<vmem>>, vector<1x96xf32>
    %4 = vector.broadcast %3 : vector<1x96xf32> to vector<4x96xf32>
    %5 = arith.addf %2, %4 : vector<4x96xf32>
    %c0_5 = arith.constant 0 : index
    %c0_6 = arith.constant 0 : index
    %6 = vector.load %arg4[%c0_5, %c0_6] : memref<4x96xf32, #tpu.memory_space<vmem>>, vector<4x96xf32>
    tpu.vector_store %arg4[%c0_5, %c0_6], %5 {strides = array<i32>} : memref<4x96xf32, #tpu.memory_space<vmem>>, vector<4x96xf32>,
    return
  }
  func.func @transform_0(%arg0: i32) -> (i32, i32) {
    %c0_i32 = arith.constant 0 : i32
    %c0_i32_0 = arith.constant 0 : i32
    return %arg0, %c0_i32 : i32, i32
  }
  func.func @transform_1(%arg0: i32) -> (i32, i32) {
    %c0_i32 = arith.constant 0 : i32
    %c0_i32_0 = arith.constant 0 : i32
    %c0_i32_1 = arith.constant 0 : i32
    return %c0_i32, %c0_i32_0 : i32, i32
  }
  func.func @transform_2(%arg0: i32) -> (i32, i32) {
    %c0_i32 = arith.constant 0 : i32
    %c0_i32_0 = arith.constant 0 : i32
    %c0_i32_1 = arith.constant 0 : i32
    return %c0_i32, %c0_i32_0 : i32, i32
  }
  func.func @transform_3(%arg0: i32) -> (i32, i32) {
    %c0_i32 = arith.constant 0 : i32
    %c0_i32_0 = arith.constant 0 : i32
    return %arg0, %c0_i32 : i32, i32
  }
}

module attributes {stable_mosaic.version = 11 : i64} {
  func.func @_mm_bias_act_kernel(%arg0: i32, %arg1: memref<64x108xbf16, #tpu.memory_space<vmem>>, %arg2: memref<108x48xbf16, #tpu.memory_space<vmem>>, %arg3: memref<1x48xf32, #tpu.memory_space<vmem>>, %arg4: memref<64x48xbf16, #tpu.memory_space<vmem>>) attributes {dimension_semantics = [#tpu.dimension_semantics<parallel>], iteration_bounds = array<i64: 1>, scalar_prefetch = 0 : i64, scratch_operands = 0 : i64, tpu.core_type = #tpu.core_type<tc>, window_params = [{transform_indices = @transform_0, window_bounds = array<i64: 64, 108>}, {pipeline_mode = #tpu.pipeline_mode<synchronous>, transform_indices = @transform_1, window_bounds = array<i64: 108, 48>}, {pipeline_mode = #tpu.pipeline_mode<synchronous>, transform_indices = @transform_2, window_bounds = array<i64: 1, 48>}, {transform_indices = @transform_3, window_bounds = array<i64: 64, 48>}]} {
    %c0 = arith.constant 0 : index
    %c0_0 = arith.constant 0 : index
    %0 = vector.load %arg1[%c0, %c0_0] : memref<64x108xbf16, #tpu.memory_space<vmem>>, vector<64x108xbf16>
    %c0_1 = arith.constant 0 : index
    %c0_2 = arith.constant 0 : index
    %1 = vector.load %arg2[%c0_1, %c0_2] : memref<108x48xbf16, #tpu.memory_space<vmem>>, vector<108x48xbf16>
    %cst = arith.constant dense<0.000000e+00> : vector<64x48xf32>
    %2 = tpu.matmul %0, %1, %cst {dimension_numbers = #tpu.dot_dimension_numbers<[1], [0], [0], [1], [0, 0, 1, 1], [], []>} : vector<64x108xbf16>, vector<108x48xbf16>, vector<64x48xf32> -> vector<64x48xf32>
    %c0_3 = arith.constant 0 : index
    %c0_4 = arith.constant 0 : index
    %3 = vector.load %arg3[%c0_3, %c0_4] : memref<1x48xf32, #tpu.memory_space<vmem>>, vector<1x48xf32>
    %4 = vector.broadcast %3 : vector<1x48xf32> to vector<64x48xf32>
    %5 = arith.addf %2, %4 : vector<64x48xf32>
    %cst_5 = arith.constant 0.000000e+00 : f32
    %6 = vector.broadcast %cst_5 : f32 to vector<64x48xf32>
    %7 = arith.cmpf oge, %5, %6 : vector<64x48xf32>
    %cst_6 = arith.constant 2.000000e-01 : f32
    %8 = vector.broadcast %cst_6 : f32 to vector<64x48xf32>
    %9 = arith.mulf %5, %8 : vector<64x48xf32>
    %10 = arith.select %7, %5, %9 : vector<64x48xi1>, vector<64x48xf32>
    %11 = arith.truncf %10 : vector<64x48xf32> to vector<64x48xbf16>
    %c0_7 = arith.constant 0 : index
    %c0_8 = arith.constant 0 : index
    %12 = vector.load %arg4[%c0_7, %c0_8] : memref<64x48xbf16, #tpu.memory_space<vmem>>, vector<64x48xbf16>
    tpu.vector_store %arg4[%c0_7, %c0_8], %11 {strides = array<i32>} : memref<64x48xbf16, #tpu.memory_space<vmem>>, vector<64x48xbf16>,
    return
  }
  func.func @transform_0(%arg0: i32) -> (i32, i32) {
    %c0_i32 = arith.constant 0 : i32
    %c0_i32_0 = arith.constant 0 : i32
    return %arg0, %c0_i32 : i32, i32
  }
  func.func @transform_1(%arg0: i32) -> (i32, i32) {
    %c0_i32 = arith.constant 0 : i32
    %c0_i32_0 = arith.constant 0 : i32
    %c0_i32_1 = arith.constant 0 : i32
    return %c0_i32, %c0_i32_0 : i32, i32
  }
  func.func @transform_2(%arg0: i32) -> (i32, i32) {
    %c0_i32 = arith.constant 0 : i32
    %c0_i32_0 = arith.constant 0 : i32
    %c0_i32_1 = arith.constant 0 : i32
    return %c0_i32, %c0_i32_0 : i32, i32
  }
  func.func @transform_3(%arg0: i32) -> (i32, i32) {
    %c0_i32 = arith.constant 0 : i32
    %c0_i32_0 = arith.constant 0 : i32
    return %arg0, %c0_i32 : i32, i32
  }
}

module attributes {stable_mosaic.version = 11 : i64} {
  func.func @_mm_bias_act_kernel(%arg0: i32, %arg1: memref<16x432xbf16, #tpu.memory_space<vmem>>, %arg2: memref<432x96xbf16, #tpu.memory_space<vmem>>, %arg3: memref<1x96xf32, #tpu.memory_space<vmem>>, %arg4: memref<16x96xbf16, #tpu.memory_space<vmem>>) attributes {dimension_semantics = [#tpu.dimension_semantics<parallel>], iteration_bounds = array<i64: 1>, scalar_prefetch = 0 : i64, scratch_operands = 0 : i64, tpu.core_type = #tpu.core_type<tc>, window_params = [{transform_indices = @transform_0, window_bounds = array<i64: 16, 432>}, {pipeline_mode = #tpu.pipeline_mode<synchronous>, transform_indices = @transform_1, window_bounds = array<i64: 432, 96>}, {pipeline_mode = #tpu.pipeline_mode<synchronous>, transform_indices = @transform_2, window_bounds = array<i64: 1, 96>}, {transform_indices = @transform_3, window_bounds = array<i64: 16, 96>}]} {
    %c0 = arith.constant 0 : index
    %c0_0 = arith.constant 0 : index
    %0 = vector.load %arg1[%c0, %c0_0] : memref<16x432xbf16, #tpu.memory_space<vmem>>, vector<16x432xbf16>
    %c0_1 = arith.constant 0 : index
    %c0_2 = arith.constant 0 : index
    %1 = vector.load %arg2[%c0_1, %c0_2] : memref<432x96xbf16, #tpu.memory_space<vmem>>, vector<432x96xbf16>
    %cst = arith.constant dense<0.000000e+00> : vector<16x96xf32>
    %2 = tpu.matmul %0, %1, %cst {dimension_numbers = #tpu.dot_dimension_numbers<[1], [0], [0], [1], [0, 0, 1, 1], [], []>} : vector<16x432xbf16>, vector<432x96xbf16>, vector<16x96xf32> -> vector<16x96xf32>
    %c0_3 = arith.constant 0 : index
    %c0_4 = arith.constant 0 : index
    %3 = vector.load %arg3[%c0_3, %c0_4] : memref<1x96xf32, #tpu.memory_space<vmem>>, vector<1x96xf32>
    %4 = vector.broadcast %3 : vector<1x96xf32> to vector<16x96xf32>
    %5 = arith.addf %2, %4 : vector<16x96xf32>
    %cst_5 = arith.constant 0.000000e+00 : f32
    %6 = vector.broadcast %cst_5 : f32 to vector<16x96xf32>
    %7 = arith.cmpf oge, %5, %6 : vector<16x96xf32>
    %cst_6 = arith.constant 2.000000e-01 : f32
    %8 = vector.broadcast %cst_6 : f32 to vector<16x96xf32>
    %9 = arith.mulf %5, %8 : vector<16x96xf32>
    %10 = arith.select %7, %5, %9 : vector<16x96xi1>, vector<16x96xf32>
    %11 = arith.truncf %10 : vector<16x96xf32> to vector<16x96xbf16>
    %c0_7 = arith.constant 0 : index
    %c0_8 = arith.constant 0 : index
    %12 = vector.load %arg4[%c0_7, %c0_8] : memref<16x96xbf16, #tpu.memory_space<vmem>>, vector<16x96xbf16>
    tpu.vector_store %arg4[%c0_7, %c0_8], %11 {strides = array<i32>} : memref<16x96xbf16, #tpu.memory_space<vmem>>, vector<16x96xbf16>,
    return
  }
  func.func @transform_0(%arg0: i32) -> (i32, i32) {
    %c0_i32 = arith.constant 0 : i32
    %c0_i32_0 = arith.constant 0 : i32
    return %arg0, %c0_i32 : i32, i32
  }
  func.func @transform_1(%arg0: i32) -> (i32, i32) {
    %c0_i32 = arith.constant 0 : i32
    %c0_i32_0 = arith.constant 0 : i32
    %c0_i32_1 = arith.constant 0 : i32
    return %c0_i32, %c0_i32_0 : i32, i32
  }
  func.func @transform_2(%arg0: i32) -> (i32, i32) {
    %c0_i32 = arith.constant 0 : i32
    %c0_i32_0 = arith.constant 0 : i32
    %c0_i32_1 = arith.constant 0 : i32
    return %c0_i32, %c0_i32_0 : i32, i32
  }
  func.func @transform_3(%arg0: i32) -> (i32, i32) {
    %c0_i32 = arith.constant 0 : i32
    %c0_i32_0 = arith.constant 0 : i32
    return %arg0, %c0_i32 : i32, i32
  }
}

module attributes {stable_mosaic.version = 11 : i64} {
  func.func @_mm_bias_act_kernel(%arg0: i32, %arg1: memref<16x864xbf16, #tpu.memory_space<vmem>>, %arg2: memref<864x96xbf16, #tpu.memory_space<vmem>>, %arg3: memref<1x96xf32, #tpu.memory_space<vmem>>, %arg4: memref<16x96xf32, #tpu.memory_space<vmem>>) attributes {dimension_semantics = [#tpu.dimension_semantics<parallel>], iteration_bounds = array<i64: 1>, scalar_prefetch = 0 : i64, scratch_operands = 0 : i64, tpu.core_type = #tpu.core_type<tc>, window_params = [{transform_indices = @transform_0, window_bounds = array<i64: 16, 864>}, {pipeline_mode = #tpu.pipeline_mode<synchronous>, transform_indices = @transform_1, window_bounds = array<i64: 864, 96>}, {pipeline_mode = #tpu.pipeline_mode<synchronous>, transform_indices = @transform_2, window_bounds = array<i64: 1, 96>}, {transform_indices = @transform_3, window_bounds = array<i64: 16, 96>}]} {
    %c0 = arith.constant 0 : index
    %c0_0 = arith.constant 0 : index
    %0 = vector.load %arg1[%c0, %c0_0] : memref<16x864xbf16, #tpu.memory_space<vmem>>, vector<16x864xbf16>
    %c0_1 = arith.constant 0 : index
    %c0_2 = arith.constant 0 : index
    %1 = vector.load %arg2[%c0_1, %c0_2] : memref<864x96xbf16, #tpu.memory_space<vmem>>, vector<864x96xbf16>
    %cst = arith.constant dense<0.000000e+00> : vector<16x96xf32>
    %2 = tpu.matmul %0, %1, %cst {dimension_numbers = #tpu.dot_dimension_numbers<[1], [0], [0], [1], [0, 0, 1, 1], [], []>} : vector<16x864xbf16>, vector<864x96xbf16>, vector<16x96xf32> -> vector<16x96xf32>
    %c0_3 = arith.constant 0 : index
    %c0_4 = arith.constant 0 : index
    %3 = vector.load %arg3[%c0_3, %c0_4] : memref<1x96xf32, #tpu.memory_space<vmem>>, vector<1x96xf32>
    %4 = vector.broadcast %3 : vector<1x96xf32> to vector<16x96xf32>
    %5 = arith.addf %2, %4 : vector<16x96xf32>
    %c0_5 = arith.constant 0 : index
    %c0_6 = arith.constant 0 : index
    %6 = vector.load %arg4[%c0_5, %c0_6] : memref<16x96xf32, #tpu.memory_space<vmem>>, vector<16x96xf32>
    tpu.vector_store %arg4[%c0_5, %c0_6], %5 {strides = array<i32>} : memref<16x96xf32, #tpu.memory_space<vmem>>, vector<16x96xf32>,
    return
  }
  func.func @transform_0(%arg0: i32) -> (i32, i32) {
    %c0_i32 = arith.constant 0 : i32
    %c0_i32_0 = arith.constant 0 : i32
    return %arg0, %c0_i32 : i32, i32
  }
  func.func @transform_1(%arg0: i32) -> (i32, i32) {
    %c0_i32 = arith.constant 0 : i32
    %c0_i32_0 = arith.constant 0 : i32
    %c0_i32_1 = arith.constant 0 : i32
    return %c0_i32, %c0_i32_0 : i32, i32
  }
  func.func @transform_2(%arg0: i32) -> (i32, i32) {
    %c0_i32 = arith.constant 0 : i32
    %c0_i32_0 = arith.constant 0 : i32
    %c0_i32_1 = arith.constant 0 : i32
    return %c0_i32, %c0_i32_0 : i32, i32
  }
  func.func @transform_3(%arg0: i32) -> (i32, i32) {
    %c0_i32 = arith.constant 0 : i32
    %c0_i32_0 = arith.constant 0 : i32
    return %arg0, %c0_i32 : i32, i32
  }
}

module attributes {stable_mosaic.version = 11 : i64} {
  func.func @_mm_resconv_kernel(%arg0: i32, %arg1: memref<16x864xbf16, #tpu.memory_space<vmem>>, %arg2: memref<864x96xbf16, #tpu.memory_space<vmem>>, %arg3: memref<1x96xf32, #tpu.memory_space<vmem>>, %arg4: memref<1x96xf32, #tpu.memory_space<vmem>>, %arg5: memref<16x96xbf16, #tpu.memory_space<vmem>>, %arg6: memref<16x96xbf16, #tpu.memory_space<vmem>>) attributes {dimension_semantics = [#tpu.dimension_semantics<parallel>], iteration_bounds = array<i64: 1>, scalar_prefetch = 0 : i64, scratch_operands = 0 : i64, tpu.core_type = #tpu.core_type<tc>, window_params = [{transform_indices = @transform_0, window_bounds = array<i64: 16, 864>}, {pipeline_mode = #tpu.pipeline_mode<synchronous>, transform_indices = @transform_1, window_bounds = array<i64: 864, 96>}, {pipeline_mode = #tpu.pipeline_mode<synchronous>, transform_indices = @transform_2, window_bounds = array<i64: 1, 96>}, {pipeline_mode = #tpu.pipeline_mode<synchronous>, transform_indices = @transform_3, window_bounds = array<i64: 1, 96>}, {transform_indices = @transform_4, window_bounds = array<i64: 16, 96>}, {transform_indices = @transform_5, window_bounds = array<i64: 16, 96>}]} {
    %c0 = arith.constant 0 : index
    %c0_0 = arith.constant 0 : index
    %0 = vector.load %arg1[%c0, %c0_0] : memref<16x864xbf16, #tpu.memory_space<vmem>>, vector<16x864xbf16>
    %c0_1 = arith.constant 0 : index
    %c0_2 = arith.constant 0 : index
    %1 = vector.load %arg2[%c0_1, %c0_2] : memref<864x96xbf16, #tpu.memory_space<vmem>>, vector<864x96xbf16>
    %cst = arith.constant dense<0.000000e+00> : vector<16x96xf32>
    %2 = tpu.matmul %0, %1, %cst {dimension_numbers = #tpu.dot_dimension_numbers<[1], [0], [0], [1], [0, 0, 1, 1], [], []>} : vector<16x864xbf16>, vector<864x96xbf16>, vector<16x96xf32> -> vector<16x96xf32>
    %c0_3 = arith.constant 0 : index
    %c0_4 = arith.constant 0 : index
    %3 = vector.load %arg3[%c0_3, %c0_4] : memref<1x96xf32, #tpu.memory_space<vmem>>, vector<1x96xf32>
    %4 = vector.broadcast %3 : vector<1x96xf32> to vector<16x96xf32>
    %5 = arith.addf %2, %4 : vector<16x96xf32>
    %c0_5 = arith.constant 0 : index
    %c0_6 = arith.constant 0 : index
    %6 = vector.load %arg4[%c0_5, %c0_6] : memref<1x96xf32, #tpu.memory_space<vmem>>, vector<1x96xf32>
    %7 = vector.broadcast %6 : vector<1x96xf32> to vector<16x96xf32>
    %8 = arith.mulf %5, %7 : vector<16x96xf32>
    %c0_7 = arith.constant 0 : index
    %c0_8 = arith.constant 0 : index
    %9 = vector.load %arg5[%c0_7, %c0_8] : memref<16x96xbf16, #tpu.memory_space<vmem>>, vector<16x96xbf16>
    %10 = arith.extf %9 : vector<16x96xbf16> to vector<16x96xf32>
    %11 = arith.addf %8, %10 : vector<16x96xf32>
    %cst_9 = arith.constant 0.000000e+00 : f32
    %12 = vector.broadcast %cst_9 : f32 to vector<16x96xf32>
    %13 = arith.cmpf oge, %11, %12 : vector<16x96xf32>
    %cst_10 = arith.constant 2.000000e-01 : f32
    %14 = vector.broadcast %cst_10 : f32 to vector<16x96xf32>
    %15 = arith.mulf %11, %14 : vector<16x96xf32>
    %16 = arith.select %13, %11, %15 : vector<16x96xi1>, vector<16x96xf32>
    %17 = arith.truncf %16 : vector<16x96xf32> to vector<16x96xbf16>
    %c0_11 = arith.constant 0 : index
    %c0_12 = arith.constant 0 : index
    %18 = vector.load %arg6[%c0_11, %c0_12] : memref<16x96xbf16, #tpu.memory_space<vmem>>, vector<16x96xbf16>
    tpu.vector_store %arg6[%c0_11, %c0_12], %17 {strides = array<i32>} : memref<16x96xbf16, #tpu.memory_space<vmem>>, vector<16x96xbf16>,
    return
  }
  func.func @transform_0(%arg0: i32) -> (i32, i32) {
    %c0_i32 = arith.constant 0 : i32
    %c0_i32_0 = arith.constant 0 : i32
    return %arg0, %c0_i32 : i32, i32
  }
  func.func @transform_1(%arg0: i32) -> (i32, i32) {
    %c0_i32 = arith.constant 0 : i32
    %c0_i32_0 = arith.constant 0 : i32
    %c0_i32_1 = arith.constant 0 : i32
    return %c0_i32, %c0_i32_0 : i32, i32
  }
  func.func @transform_2(%arg0: i32) -> (i32, i32) {
    %c0_i32 = arith.constant 0 : i32
    %c0_i32_0 = arith.constant 0 : i32
    %c0_i32_1 = arith.constant 0 : i32
    return %c0_i32, %c0_i32_0 : i32, i32
  }
  func.func @transform_3(%arg0: i32) -> (i32, i32) {
    %c0_i32 = arith.constant 0 : i32
    %c0_i32_0 = arith.constant 0 : i32
    %c0_i32_1 = arith.constant 0 : i32
    return %c0_i32, %c0_i32_0 : i32, i32
  }
  func.func @transform_4(%arg0: i32) -> (i32, i32) {
    %c0_i32 = arith.constant 0 : i32
    %c0_i32_0 = arith.constant 0 : i32
    return %arg0, %c0_i32 : i32, i32
  }
  func.func @transform_5(%arg0: i32) -> (i32, i32) {
    %c0_i32 = arith.constant 0 : i32
    %c0_i32_0 = arith.constant 0 : i32
    return %arg0, %c0_i32 : i32, i32
  }
}

module attributes {stable_mosaic.version = 11 : i64} {
  func.func @_mm_bias_act_kernel(%arg0: i32, %arg1: memref<256x108xbf16, #tpu.memory_space<vmem>>, %arg2: memref<108x32xbf16, #tpu.memory_space<vmem>>, %arg3: memref<1x32xf32, #tpu.memory_space<vmem>>, %arg4: memref<256x32xbf16, #tpu.memory_space<vmem>>) attributes {dimension_semantics = [#tpu.dimension_semantics<parallel>], iteration_bounds = array<i64: 1>, scalar_prefetch = 0 : i64, scratch_operands = 0 : i64, tpu.core_type = #tpu.core_type<tc>, window_params = [{transform_indices = @transform_0, window_bounds = array<i64: 256, 108>}, {pipeline_mode = #tpu.pipeline_mode<synchronous>, transform_indices = @transform_1, window_bounds = array<i64: 108, 32>}, {pipeline_mode = #tpu.pipeline_mode<synchronous>, transform_indices = @transform_2, window_bounds = array<i64: 1, 32>}, {transform_indices = @transform_3, window_bounds = array<i64: 256, 32>}]} {
    %c0 = arith.constant 0 : index
    %c0_0 = arith.constant 0 : index
    %0 = vector.load %arg1[%c0, %c0_0] : memref<256x108xbf16, #tpu.memory_space<vmem>>, vector<256x108xbf16>
    %c0_1 = arith.constant 0 : index
    %c0_2 = arith.constant 0 : index
    %1 = vector.load %arg2[%c0_1, %c0_2] : memref<108x32xbf16, #tpu.memory_space<vmem>>, vector<108x32xbf16>
    %cst = arith.constant dense<0.000000e+00> : vector<256x32xf32>
    %2 = tpu.matmul %0, %1, %cst {dimension_numbers = #tpu.dot_dimension_numbers<[1], [0], [0], [1], [0, 0, 1, 1], [], []>} : vector<256x108xbf16>, vector<108x32xbf16>, vector<256x32xf32> -> vector<256x32xf32>
    %c0_3 = arith.constant 0 : index
    %c0_4 = arith.constant 0 : index
    %3 = vector.load %arg3[%c0_3, %c0_4] : memref<1x32xf32, #tpu.memory_space<vmem>>, vector<1x32xf32>
    %4 = vector.broadcast %3 : vector<1x32xf32> to vector<256x32xf32>
    %5 = arith.addf %2, %4 : vector<256x32xf32>
    %cst_5 = arith.constant 0.000000e+00 : f32
    %6 = vector.broadcast %cst_5 : f32 to vector<256x32xf32>
    %7 = arith.cmpf oge, %5, %6 : vector<256x32xf32>
    %cst_6 = arith.constant 2.000000e-01 : f32
    %8 = vector.broadcast %cst_6 : f32 to vector<256x32xf32>
    %9 = arith.mulf %5, %8 : vector<256x32xf32>
    %10 = arith.select %7, %5, %9 : vector<256x32xi1>, vector<256x32xf32>
    %11 = arith.truncf %10 : vector<256x32xf32> to vector<256x32xbf16>
    %c0_7 = arith.constant 0 : index
    %c0_8 = arith.constant 0 : index
    %12 = vector.load %arg4[%c0_7, %c0_8] : memref<256x32xbf16, #tpu.memory_space<vmem>>, vector<256x32xbf16>
    tpu.vector_store %arg4[%c0_7, %c0_8], %11 {strides = array<i32>} : memref<256x32xbf16, #tpu.memory_space<vmem>>, vector<256x32xbf16>,
    return
  }
  func.func @transform_0(%arg0: i32) -> (i32, i32) {
    %c0_i32 = arith.constant 0 : i32
    %c0_i32_0 = arith.constant 0 : i32
    return %arg0, %c0_i32 : i32, i32
  }
  func.func @transform_1(%arg0: i32) -> (i32, i32) {
    %c0_i32 = arith.constant 0 : i32
    %c0_i32_0 = arith.constant 0 : i32
    %c0_i32_1 = arith.constant 0 : i32
    return %c0_i32, %c0_i32_0 : i32, i32
  }
  func.func @transform_2(%arg0: i32) -> (i32, i32) {
    %c0_i32 = arith.constant 0 : i32
    %c0_i32_0 = arith.constant 0 : i32
    %c0_i32_1 = arith.constant 0 : i32
    return %c0_i32, %c0_i32_0 : i32, i32
  }
  func.func @transform_3(%arg0: i32) -> (i32, i32) {
    %c0_i32 = arith.constant 0 : i32
    %c0_i32_0 = arith.constant 0 : i32
    return %arg0, %c0_i32 : i32, i32
  }
}

module attributes {stable_mosaic.version = 11 : i64} {
  func.func @_mm_bias_act_kernel(%arg0: i32, %arg1: memref<64x288xbf16, #tpu.memory_space<vmem>>, %arg2: memref<288x64xbf16, #tpu.memory_space<vmem>>, %arg3: memref<1x64xf32, #tpu.memory_space<vmem>>, %arg4: memref<64x64xbf16, #tpu.memory_space<vmem>>) attributes {dimension_semantics = [#tpu.dimension_semantics<parallel>], iteration_bounds = array<i64: 1>, scalar_prefetch = 0 : i64, scratch_operands = 0 : i64, tpu.core_type = #tpu.core_type<tc>, window_params = [{transform_indices = @transform_0, window_bounds = array<i64: 64, 288>}, {pipeline_mode = #tpu.pipeline_mode<synchronous>, transform_indices = @transform_1, window_bounds = array<i64: 288, 64>}, {pipeline_mode = #tpu.pipeline_mode<synchronous>, transform_indices = @transform_2, window_bounds = array<i64: 1, 64>}, {transform_indices = @transform_3, window_bounds = array<i64: 64, 64>}]} {
    %c0 = arith.constant 0 : index
    %c0_0 = arith.constant 0 : index
    %0 = vector.load %arg1[%c0, %c0_0] : memref<64x288xbf16, #tpu.memory_space<vmem>>, vector<64x288xbf16>
    %c0_1 = arith.constant 0 : index
    %c0_2 = arith.constant 0 : index
    %1 = vector.load %arg2[%c0_1, %c0_2] : memref<288x64xbf16, #tpu.memory_space<vmem>>, vector<288x64xbf16>
    %cst = arith.constant dense<0.000000e+00> : vector<64x64xf32>
    %2 = tpu.matmul %0, %1, %cst {dimension_numbers = #tpu.dot_dimension_numbers<[1], [0], [0], [1], [0, 0, 1, 1], [], []>} : vector<64x288xbf16>, vector<288x64xbf16>, vector<64x64xf32> -> vector<64x64xf32>
    %c0_3 = arith.constant 0 : index
    %c0_4 = arith.constant 0 : index
    %3 = vector.load %arg3[%c0_3, %c0_4] : memref<1x64xf32, #tpu.memory_space<vmem>>, vector<1x64xf32>
    %4 = vector.broadcast %3 : vector<1x64xf32> to vector<64x64xf32>
    %5 = arith.addf %2, %4 : vector<64x64xf32>
    %cst_5 = arith.constant 0.000000e+00 : f32
    %6 = vector.broadcast %cst_5 : f32 to vector<64x64xf32>
    %7 = arith.cmpf oge, %5, %6 : vector<64x64xf32>
    %cst_6 = arith.constant 2.000000e-01 : f32
    %8 = vector.broadcast %cst_6 : f32 to vector<64x64xf32>
    %9 = arith.mulf %5, %8 : vector<64x64xf32>
    %10 = arith.select %7, %5, %9 : vector<64x64xi1>, vector<64x64xf32>
    %11 = arith.truncf %10 : vector<64x64xf32> to vector<64x64xbf16>
    %c0_7 = arith.constant 0 : index
    %c0_8 = arith.constant 0 : index
    %12 = vector.load %arg4[%c0_7, %c0_8] : memref<64x64xbf16, #tpu.memory_space<vmem>>, vector<64x64xbf16>
    tpu.vector_store %arg4[%c0_7, %c0_8], %11 {strides = array<i32>} : memref<64x64xbf16, #tpu.memory_space<vmem>>, vector<64x64xbf16>,
    return
  }
  func.func @transform_0(%arg0: i32) -> (i32, i32) {
    %c0_i32 = arith.constant 0 : i32
    %c0_i32_0 = arith.constant 0 : i32
    return %arg0, %c0_i32 : i32, i32
  }
  func.func @transform_1(%arg0: i32) -> (i32, i32) {
    %c0_i32 = arith.constant 0 : i32
    %c0_i32_0 = arith.constant 0 : i32
    %c0_i32_1 = arith.constant 0 : i32
    return %c0_i32, %c0_i32_0 : i32, i32
  }
  func.func @transform_2(%arg0: i32) -> (i32, i32) {
    %c0_i32 = arith.constant 0 : i32
    %c0_i32_0 = arith.constant 0 : i32
    %c0_i32_1 = arith.constant 0 : i32
    return %c0_i32, %c0_i32_0 : i32, i32
  }
  func.func @transform_3(%arg0: i32) -> (i32, i32) {
    %c0_i32 = arith.constant 0 : i32
    %c0_i32_0 = arith.constant 0 : i32
    return %arg0, %c0_i32 : i32, i32
  }
}

module attributes {stable_mosaic.version = 11 : i64} {
  func.func @_mm_resconv_kernel(%arg0: i32, %arg1: memref<64x576xbf16, #tpu.memory_space<vmem>>, %arg2: memref<576x64xbf16, #tpu.memory_space<vmem>>, %arg3: memref<1x64xf32, #tpu.memory_space<vmem>>, %arg4: memref<1x64xf32, #tpu.memory_space<vmem>>, %arg5: memref<64x64xbf16, #tpu.memory_space<vmem>>, %arg6: memref<64x64xbf16, #tpu.memory_space<vmem>>) attributes {dimension_semantics = [#tpu.dimension_semantics<parallel>], iteration_bounds = array<i64: 1>, scalar_prefetch = 0 : i64, scratch_operands = 0 : i64, tpu.core_type = #tpu.core_type<tc>, window_params = [{transform_indices = @transform_0, window_bounds = array<i64: 64, 576>}, {pipeline_mode = #tpu.pipeline_mode<synchronous>, transform_indices = @transform_1, window_bounds = array<i64: 576, 64>}, {pipeline_mode = #tpu.pipeline_mode<synchronous>, transform_indices = @transform_2, window_bounds = array<i64: 1, 64>}, {pipeline_mode = #tpu.pipeline_mode<synchronous>, transform_indices = @transform_3, window_bounds = array<i64: 1, 64>}, {transform_indices = @transform_4, window_bounds = array<i64: 64, 64>}, {transform_indices = @transform_5, window_bounds = array<i64: 64, 64>}]} {
    %c0 = arith.constant 0 : index
    %c0_0 = arith.constant 0 : index
    %0 = vector.load %arg1[%c0, %c0_0] : memref<64x576xbf16, #tpu.memory_space<vmem>>, vector<64x576xbf16>
    %c0_1 = arith.constant 0 : index
    %c0_2 = arith.constant 0 : index
    %1 = vector.load %arg2[%c0_1, %c0_2] : memref<576x64xbf16, #tpu.memory_space<vmem>>, vector<576x64xbf16>
    %cst = arith.constant dense<0.000000e+00> : vector<64x64xf32>
    %2 = tpu.matmul %0, %1, %cst {dimension_numbers = #tpu.dot_dimension_numbers<[1], [0], [0], [1], [0, 0, 1, 1], [], []>} : vector<64x576xbf16>, vector<576x64xbf16>, vector<64x64xf32> -> vector<64x64xf32>
    %c0_3 = arith.constant 0 : index
    %c0_4 = arith.constant 0 : index
    %3 = vector.load %arg3[%c0_3, %c0_4] : memref<1x64xf32, #tpu.memory_space<vmem>>, vector<1x64xf32>
    %4 = vector.broadcast %3 : vector<1x64xf32> to vector<64x64xf32>
    %5 = arith.addf %2, %4 : vector<64x64xf32>
    %c0_5 = arith.constant 0 : index
    %c0_6 = arith.constant 0 : index
    %6 = vector.load %arg4[%c0_5, %c0_6] : memref<1x64xf32, #tpu.memory_space<vmem>>, vector<1x64xf32>
    %7 = vector.broadcast %6 : vector<1x64xf32> to vector<64x64xf32>
    %8 = arith.mulf %5, %7 : vector<64x64xf32>
    %c0_7 = arith.constant 0 : index
    %c0_8 = arith.constant 0 : index
    %9 = vector.load %arg5[%c0_7, %c0_8] : memref<64x64xbf16, #tpu.memory_space<vmem>>, vector<64x64xbf16>
    %10 = arith.extf %9 : vector<64x64xbf16> to vector<64x64xf32>
    %11 = arith.addf %8, %10 : vector<64x64xf32>
    %cst_9 = arith.constant 0.000000e+00 : f32
    %12 = vector.broadcast %cst_9 : f32 to vector<64x64xf32>
    %13 = arith.cmpf oge, %11, %12 : vector<64x64xf32>
    %cst_10 = arith.constant 2.000000e-01 : f32
    %14 = vector.broadcast %cst_10 : f32 to vector<64x64xf32>
    %15 = arith.mulf %11, %14 : vector<64x64xf32>
    %16 = arith.select %13, %11, %15 : vector<64x64xi1>, vector<64x64xf32>
    %17 = arith.truncf %16 : vector<64x64xf32> to vector<64x64xbf16>
    %c0_11 = arith.constant 0 : index
    %c0_12 = arith.constant 0 : index
    %18 = vector.load %arg6[%c0_11, %c0_12] : memref<64x64xbf16, #tpu.memory_space<vmem>>, vector<64x64xbf16>
    tpu.vector_store %arg6[%c0_11, %c0_12], %17 {strides = array<i32>} : memref<64x64xbf16, #tpu.memory_space<vmem>>, vector<64x64xbf16>,
    return
  }
  func.func @transform_0(%arg0: i32) -> (i32, i32) {
    %c0_i32 = arith.constant 0 : i32
    %c0_i32_0 = arith.constant 0 : i32
    return %arg0, %c0_i32 : i32, i32
  }
  func.func @transform_1(%arg0: i32) -> (i32, i32) {
    %c0_i32 = arith.constant 0 : i32
    %c0_i32_0 = arith.constant 0 : i32
    %c0_i32_1 = arith.constant 0 : i32
    return %c0_i32, %c0_i32_0 : i32, i32
  }
  func.func @transform_2(%arg0: i32) -> (i32, i32) {
    %c0_i32 = arith.constant 0 : i32
    %c0_i32_0 = arith.constant 0 : i32
    %c0_i32_1 = arith.constant 0 : i32
    return %c0_i32, %c0_i32_0 : i32, i32
  }
  func.func @transform_3(%arg0: i32) -> (i32, i32) {
    %c0_i32 = arith.constant 0 : i32
    %c0_i32_0 = arith.constant 0 : i32
    %c0_i32_1 = arith.constant 0 : i32
    return %c0_i32, %c0_i32_0 : i32, i32
  }
  func.func @transform_4(%arg0: i32) -> (i32, i32) {
    %c0_i32 = arith.constant 0 : i32
    %c0_i32_0 = arith.constant 0 : i32
    return %arg0, %c0_i32 : i32, i32
  }
  func.func @transform_5(%arg0: i32) -> (i32, i32) {
    %c0_i32 = arith.constant 0 : i32
    %c0_i32_0 = arith.constant 0 : i32
    return %arg0, %c0_i32 : i32, i32
  }
}

module attributes {stable_mosaic.version = 11 : i64} {
  func.func @_mm_bias_act_kernel(%arg0: i32, %arg1: memref<64x576xbf16, #tpu.memory_space<vmem>>, %arg2: memref<576x96xbf16, #tpu.memory_space<vmem>>, %arg3: memref<1x96xf32, #tpu.memory_space<vmem>>, %arg4: memref<64x96xf32, #tpu.memory_space<vmem>>) attributes {dimension_semantics = [#tpu.dimension_semantics<parallel>], iteration_bounds = array<i64: 1>, scalar_prefetch = 0 : i64, scratch_operands = 0 : i64, tpu.core_type = #tpu.core_type<tc>, window_params = [{transform_indices = @transform_0, window_bounds = array<i64: 64, 576>}, {pipeline_mode = #tpu.pipeline_mode<synchronous>, transform_indices = @transform_1, window_bounds = array<i64: 576, 96>}, {pipeline_mode = #tpu.pipeline_mode<synchronous>, transform_indices = @transform_2, window_bounds = array<i64: 1, 96>}, {transform_indices = @transform_3, window_bounds = array<i64: 64, 96>}]} {
    %c0 = arith.constant 0 : index
    %c0_0 = arith.constant 0 : index
    %0 = vector.load %arg1[%c0, %c0_0] : memref<64x576xbf16, #tpu.memory_space<vmem>>, vector<64x576xbf16>
    %c0_1 = arith.constant 0 : index
    %c0_2 = arith.constant 0 : index
    %1 = vector.load %arg2[%c0_1, %c0_2] : memref<576x96xbf16, #tpu.memory_space<vmem>>, vector<576x96xbf16>
    %cst = arith.constant dense<0.000000e+00> : vector<64x96xf32>
    %2 = tpu.matmul %0, %1, %cst {dimension_numbers = #tpu.dot_dimension_numbers<[1], [0], [0], [1], [0, 0, 1, 1], [], []>} : vector<64x576xbf16>, vector<576x96xbf16>, vector<64x96xf32> -> vector<64x96xf32>
    %c0_3 = arith.constant 0 : index
    %c0_4 = arith.constant 0 : index
    %3 = vector.load %arg3[%c0_3, %c0_4] : memref<1x96xf32, #tpu.memory_space<vmem>>, vector<1x96xf32>
    %4 = vector.broadcast %3 : vector<1x96xf32> to vector<64x96xf32>
    %5 = arith.addf %2, %4 : vector<64x96xf32>
    %c0_5 = arith.constant 0 : index
    %c0_6 = arith.constant 0 : index
    %6 = vector.load %arg4[%c0_5, %c0_6] : memref<64x96xf32, #tpu.memory_space<vmem>>, vector<64x96xf32>
    tpu.vector_store %arg4[%c0_5, %c0_6], %5 {strides = array<i32>} : memref<64x96xf32, #tpu.memory_space<vmem>>, vector<64x96xf32>,
    return
  }
  func.func @transform_0(%arg0: i32) -> (i32, i32) {
    %c0_i32 = arith.constant 0 : i32
    %c0_i32_0 = arith.constant 0 : i32
    return %arg0, %c0_i32 : i32, i32
  }
  func.func @transform_1(%arg0: i32) -> (i32, i32) {
    %c0_i32 = arith.constant 0 : i32
    %c0_i32_0 = arith.constant 0 : i32
    %c0_i32_1 = arith.constant 0 : i32
    return %c0_i32, %c0_i32_0 : i32, i32
  }
  func.func @transform_2(%arg0: i32) -> (i32, i32) {
    %c0_i32 = arith.constant 0 : i32
    %c0_i32_0 = arith.constant 0 : i32
    %c0_i32_1 = arith.constant 0 : i32
    return %c0_i32, %c0_i32_0 : i32, i32
  }
  func.func @transform_3(%arg0: i32) -> (i32, i32) {
    %c0_i32 = arith.constant 0 : i32
    %c0_i32_0 = arith.constant 0 : i32
    return %arg0, %c0_i32 : i32, i32
  }
}

module attributes {stable_mosaic.version = 11 : i64} {
  func.func @_blend_kernel(%arg0: i32, %arg1: memref<1x3x1024xf32, #tpu.memory_space<vmem>>, %arg2: memref<1x3x1024xf32, #tpu.memory_space<vmem>>, %arg3: memref<1x1x1024xf32, #tpu.memory_space<vmem>>, %arg4: memref<1x3x1024xf32, #tpu.memory_space<vmem>>) attributes {dimension_semantics = [#tpu.dimension_semantics<parallel>], iteration_bounds = array<i64: 1>, scalar_prefetch = 0 : i64, scratch_operands = 0 : i64, tpu.core_type = #tpu.core_type<tc>, window_params = [{transform_indices = @transform_0, window_bounds = array<i64: 1, 3, 1024>}, {transform_indices = @transform_1, window_bounds = array<i64: 1, 3, 1024>}, {transform_indices = @transform_2, window_bounds = array<i64: 1, 1, 1024>}, {transform_indices = @transform_3, window_bounds = array<i64: 1, 3, 1024>}]} {
    %c0 = arith.constant 0 : index
    %c0_0 = arith.constant 0 : index
    %c0_1 = arith.constant 0 : index
    %0 = vector.load %arg3[%c0, %c0_0, %c0_1] : memref<1x1x1024xf32, #tpu.memory_space<vmem>>, vector<1x1x1024xf32>
    %1 = arith.negf %0 : vector<1x1x1024xf32>
    %2 = math.exp %1 : vector<1x1x1024xf32>
    %cst = arith.constant 1.000000e+00 : f32
    %3 = vector.broadcast %cst : f32 to vector<1x1x1024xf32>
    %4 = arith.addf %3, %2 : vector<1x1x1024xf32>
    %5 = arith.divf %3, %4 : vector<1x1x1024xf32>
    %c0_2 = arith.constant 0 : index
    %c0_3 = arith.constant 0 : index
    %c0_4 = arith.constant 0 : index
    %6 = vector.load %arg1[%c0_2, %c0_3, %c0_4] : memref<1x3x1024xf32, #tpu.memory_space<vmem>>, vector<1x3x1024xf32>
    %7 = vector.broadcast %5 : vector<1x1x1024xf32> to vector<1x3x1024xf32>
    %8 = arith.mulf %6, %7 : vector<1x3x1024xf32>
    %c0_5 = arith.constant 0 : index
    %c0_6 = arith.constant 0 : index
    %c0_7 = arith.constant 0 : index
    %9 = vector.load %arg2[%c0_5, %c0_6, %c0_7] : memref<1x3x1024xf32, #tpu.memory_space<vmem>>, vector<1x3x1024xf32>
    %cst_8 = arith.constant 1.000000e+00 : f32
    %10 = vector.broadcast %cst_8 : f32 to vector<1x1x1024xf32>
    %11 = arith.subf %10, %5 : vector<1x1x1024xf32>
    %12 = vector.broadcast %11 : vector<1x1x1024xf32> to vector<1x3x1024xf32>
    %13 = arith.mulf %9, %12 : vector<1x3x1024xf32>
    %14 = arith.addf %8, %13 : vector<1x3x1024xf32>
    %c0_9 = arith.constant 0 : index
    %c0_10 = arith.constant 0 : index
    %c0_11 = arith.constant 0 : index
    %15 = vector.load %arg4[%c0_9, %c0_10, %c0_11] : memref<1x3x1024xf32, #tpu.memory_space<vmem>>, vector<1x3x1024xf32>
    tpu.vector_store %arg4[%c0_9, %c0_10, %c0_11], %14 {strides = array<i32>} : memref<1x3x1024xf32, #tpu.memory_space<vmem>>, vector<1x3x1024xf32>,
    return
  }
  func.func @transform_0(%arg0: i32) -> (i32, i32, i32) {
    %c0_i32 = arith.constant 0 : i32
    %c0_i32_0 = arith.constant 0 : i32
    %c0_i32_1 = arith.constant 0 : i32
    return %c0_i32, %c0_i32_0, %arg0 : i32, i32, i32
  }
  func.func @transform_1(%arg0: i32) -> (i32, i32, i32) {
    %c0_i32 = arith.constant 0 : i32
    %c0_i32_0 = arith.constant 0 : i32
    %c0_i32_1 = arith.constant 0 : i32
    return %c0_i32, %c0_i32_0, %arg0 : i32, i32, i32
  }
  func.func @transform_2(%arg0: i32) -> (i32, i32, i32) {
    %c0_i32 = arith.constant 0 : i32
    %c0_i32_0 = arith.constant 0 : i32
    %c0_i32_1 = arith.constant 0 : i32
    return %c0_i32, %c0_i32_0, %arg0 : i32, i32, i32
  }
  func.func @transform_3(%arg0: i32) -> (i32, i32, i32) {
    %c0_i32 = arith.constant 0 : i32
    %c0_i32_0 = arith.constant 0 : i32
    %c0_i32_1 = arith.constant 0 : i32
    return %c0_i32, %c0_i32_0, %arg0 : i32, i32, i32
  }
}

</mosaic_0001>

<bundles_post_ra>
// kernel: ifnet_forward.45
= control target key start
LH: loop header
LB: loop body
LE: loop exit
PB: predicated region body
PF: predicated region fallthrough
CT: control target
= control target key end

     0   :  { %8 = vsyncpa [#allocation3], 0  ;;  %s233_s0 = inlined_call_operand.vmem [shape: bf16[4,63], index: 0, kind: input, shape index: {}]   ;;  %s234_s1 = inlined_call_operand.hbm [shape: bf16[63,96], index: 1, kind: input, shape index: {}]   ;;  %s235_s2 = inlined_call_operand.hbm [shape: f32[1,96], index: 2, kind: input, shape index: {}]   ;;  %s236_s3 = inlined_call_operand.vmem [shape: bf16[4,96], index: 3, kind: output, shape index: {}]  }
   0x1   :  { %s16_s14 = sshll.u32 %s234_s1, 4  ;;  %s17_s14 = int_to_ptr.hbm [resolvable:$true] %s16_s14 }
   0x2   :  { %9 = vsyncpa [#allocation5], 0  ;;  %s196_s15 = smov [#allocation2]   ;;  %s30_s19 = sshll.u32 %s235_s2, 4  ;;  %s31_s19 = int_to_ptr.hbm [resolvable:$true] %s30_s19 }
   0x3   :  { %s18_s16 = sshll.u32 %s196_s15, 4  ;;  %s197_s20 = smov 64   ;;  %s19_s16 = int_to_ptr.vmem [resolvable:$true] %s18_s16 }
   0x4   :  { %s198_s21 = smov 4   ;;  %s199_s22 = smov [#allocation4]  }
   0x5   :  { %24 = dma.hbm_to_vmem [thread:$0]  %s17_s14, 512, %s19_s16, [#allocation3], %s197_s20, %s197_s20, %s198_s21  }
   0x6   :  { %s32_s23 = sshll.u32 %s199_s22, 4  ;;  %s33_s23 = int_to_ptr.vmem [resolvable:$true] %s32_s23 }
   0x7   :  { %35 = dma.hbm_to_vmem [thread:$0]  %s31_s19, 16, %s33_s23, [#allocation5]  }
   0x8   :  { %192 = dma.done.wait [#allocation3], 512  }
   0x9   :  { %193 = vsyncadd [#allocation3], 4294966784 }
   0xa   :  { %194 = dma.done.wait [#allocation5], 16  }
   0xb   :  { %195 = vsyncadd [#allocation5], 4294967280  ;;  %vm85_vm0 = vcmask 1046528   ;;  %vm86_vm1 = vcmask 1047552   ;;  %v200_v0 = vmov 65535   ;;  %v137_v3 = vld [vmem:[#allocation2 + $0x18] sm:$0xff] }
   0xc   :  { %v87_v1 = vsel %vm85_vm0, 4294967295, %v200_v0  ;;  %v136_v5 = vld [vmem:[#allocation2 + $0x10] sm:$0xff]  ;;  %v135_v6 = vld [vmem:[#allocation2 + $0x8] sm:$0xff]  ;;  %v134_v7 = vld [vmem:[#allocation2] sm:$0xff]  ;;  %vm81_vm2 = vcmask 515072   ;;  %vm109_vm4 = vcmask 779264  }
   0xd   :  { %v88_v2 = vsel %vm86_vm1, %v87_v1, 0  ;;  %v45_v8 = vld [vmem:[%s233_s0] sm:$0x3] }
   0xe   :  { %v90_v4 = vand.u32 %v137_v3, %v88_v2  ;;  %v143_v9 = vld [vmem:[#allocation4] ss:$0 sm:$0xff] }
  0x10   :  { %96 = vmatpush.bf16.msra.mxu0 %v90_v4 }
  0x14   :  { %97 = vmatpush.bf16.msra.mxu0 %v136_v5 }
  0x18   :  { %98 = vmatpush.bf16.msra.mxu0 %v135_v6 }
  0x1c   :  { %99 = vmatpush.bf16.msra.mxu0 %v134_v7 }
  0x1f   :  { %133 = vmatmul.msk.bf16.vlgmr.msra.gmra.mxu0 %vm81_vm2, %v45_v8 }
  0x9c   :  { %v101_v10 = vpop.f32.mrf.mxu0 }
  0x9d   :  { %v102_v11 = vadd.f32 %v143_v9, %v101_v10 }
  0x9f   :  { %vm105_vm3 = vcmp.ge.f32.partialorder %v102_v11, 0.0  ;;  %v106_v12 = vmul.f32 0.2, %v102_v11 }
  0xa1   :  { %v107_v13 = vsel %vm105_vm3, %v102_v11, %v106_v12 }
  0xa2   :  { %v108_v14 = vpack.c.bf16 %v107_v13, %v107_v13 }
  0xa4   :  { %110 = vst.msk [vmem:[%s236_s3] sm:$0x3] %vm109_vm4, %v108_v14  ;;  %v103_v15 = vpop.f32.mrf.mxu0 }
  0xa5   :  { %115 = vsyncpa [#allocation3], 1 }
  0xa6   :  { %116 = vsyncpa [#allocation5], 1 }

// kernel: ifnet_forward.46
= control target key start
LH: loop header
LB: loop body
LE: loop exit
PB: predicated region body
PF: predicated region fallthrough
CT: control target
= control target key end

     0   :  { %vm685_vm0 = vcmask 785408   ;;  %vm879_vm1 = vcmask 1040384   ;;  %vm885_vm2 = vsmask.f32 256  ;;  %vm887_vm4 = vcmask 517121   ;;  %s2152_s1 = inlined_call_operand.vmem [shape: bf16[864,192], index: 1, kind: input, shape index: {}]   ;;  %s2153_s0 = inlined_call_operand.vmem [shape: bf16[1,864], index: 0, kind: input, shape index: {}]   ;;  %s2154_s2 = inlined_call_operand.vmem [shape: f32[1,192], index: 2, kind: input, shape index: {}]   ;;  %s2155_s3 = inlined_call_operand.vmem [shape: bf16[1,192], index: 3, kind: output, shape index: {}]  }
   0x1   :  { %v956_v0 = vld [vmem:[%s2152_s1 + $0x70] sm:$0xf]  ;;  %v1347_v1 = vld [vmem:[%s2152_s1 + $0x74] sm:$0xf0]  ;;  %v948_v9 = vld [vmem:[%s2152_s1 + $0x60] sm:$0xf] }
   0x2   :  { %v1084_v2 = vld [vmem:[%s2152_s1 + $0x170] sm:$0xf]  ;;  %v957_v3 = vor.u32 %v1347_v1, %v956_v0  ;;  %v1379_v4 = vld [vmem:[%s2152_s1 + $0x174] sm:$0xf0]  ;;  %v1345_v10 = vld [vmem:[%s2152_s1 + $0x64] sm:$0xf0] }
   0x3   :  { %v1020_v5 = vld [vmem:[%s2152_s1 + $0xf0] sm:$0xf]  ;;  %v1363_v6 = vld [vmem:[%s2152_s1 + $0xf4] sm:$0xf0]  ;;  %v1085_v7 = vor.u32 %v1379_v4, %v1084_v2  ;;  %v1076_v11 = vld [vmem:[%s2152_s1 + $0x160] sm:$0xf]  ;;  %v949_v12 = vor.u32 %v1345_v10, %v948_v9 }
   0x4   :  { %v1021_v8 = vor.u32 %v1363_v6, %v1020_v5  ;;  %688 = vmatpush.bf16.msra.mxu0 %v957_v3  ;;  %v1377_v13 = vld [vmem:[%s2152_s1 + $0x164] sm:$0xf0]  ;;  %v1012_v14 = vld [vmem:[%s2152_s1 + $0xe0] sm:$0xf]  ;;  %v940_v18 = vld [vmem:[%s2152_s1 + $0x50] sm:$0xf] }
   0x5   :  { %v1361_v15 = vld [vmem:[%s2152_s1 + $0xe4] sm:$0xf0]  ;;  %714 = vmatpush.bf16.msra.mxu2 %v1085_v7  ;;  %v1077_v16 = vor.u32 %v1377_v13, %v1076_v11  ;;  %v1343_v19 = vld [vmem:[%s2152_s1 + $0x54] sm:$0xf0]  ;;  %v1068_v20 = vld [vmem:[%s2152_s1 + $0x150] sm:$0xf] }
   0x6   :  { %701 = vmatpush.bf16.msra.mxu1 %v1021_v8  ;;  %v1013_v17 = vor.u32 %v1361_v15, %v1012_v14  ;;  %v1375_v21 = vld [vmem:[%s2152_s1 + $0x154] sm:$0xf0]  ;;  %v1004_v22 = vld [vmem:[%s2152_s1 + $0xd0] sm:$0xf]  ;;  %v941_v26 = vor.u32 %v1343_v19, %v940_v18  ;;  %v932_v28 = vld [vmem:[%s2152_s1 + $0x40] sm:$0xf] }
   0x7   :  { %v1359_v23 = vld [vmem:[%s2152_s1 + $0xd4] sm:$0xf0]  ;;  %v1148_v24 = vld [vmem:[%s2152_s1 + $0x1f0] sm:$0xf]  ;;  %v1341_v29 = vld [vmem:[%s2152_s1 + $0x44] sm:$0xf0]  ;;  %v1069_v30 = vor.u32 %v1375_v21, %v1068_v20 }
   0x8   :  { %v1395_v25 = vld [vmem:[%s2152_s1 + $0x1f4] sm:$0xf0]  ;;  %689 = vmatpush.bf16.msra.mxu0 %v949_v12  ;;  %v1005_v31 = vor.u32 %v1359_v23, %v1004_v22  ;;  %v1060_v32 = vld [vmem:[%s2152_s1 + $0x140] sm:$0xf]  ;;  %v1373_v33 = vld [vmem:[%s2152_s1 + $0x144] sm:$0xf0]  ;;  %v933_v39 = vor.u32 %v1341_v29, %v932_v28 }
   0x9   :  { %v1149_v27 = vor.u32 %v1395_v25, %v1148_v24  ;;  %715 = vmatpush.bf16.msra.mxu2 %v1077_v16  ;;  %v1140_v34 = vld [vmem:[%s2152_s1 + $0x1e0] sm:$0xf]  ;;  %v1357_v36 = vld [vmem:[%s2152_s1 + $0xc4] sm:$0xf0]  ;;  %v1132_v40 = vld [vmem:[%s2152_s1 + $0x1d0] sm:$0xf]  ;;  %v1061_v42 = vor.u32 %v1373_v33, %v1060_v32 }
   0xa   :  { %702 = vmatpush.bf16.msra.mxu1 %v1013_v17  ;;  %v996_v35 = vld [vmem:[%s2152_s1 + $0xc0] sm:$0xf]  ;;  %v1393_v37 = vld [vmem:[%s2152_s1 + $0x1e4] sm:$0xf0]  ;;  %v1391_v41 = vld [vmem:[%s2152_s1 + $0x1d4] sm:$0xf0] }
   0xb   :  { %727 = vmatpush.bf16.msra.mxu3 %v1149_v27  ;;  %v1141_v38 = vor.u32 %v1393_v37, %v1140_v34  ;;  %v997_v43 = vor.u32 %v1357_v36, %v996_v35  ;;  %v924_v44 = vld [vmem:[%s2152_s1 + $0x30] sm:$0xf]  ;;  %v1339_v45 = vld [vmem:[%s2152_s1 + $0x34] sm:$0xf0]  ;;  %v1133_v50 = vor.u32 %v1391_v41, %v1132_v40  ;;  %v1124_v51 = vld [vmem:[%s2152_s1 + $0x1c0] sm:$0xf] }
   0xc   :  { %690 = vmatpush.bf16.msra.mxu0 %v941_v26  ;;  %v1052_v46 = vld [vmem:[%s2152_s1 + $0x130] sm:$0xf]  ;;  %v1371_v47 = vld [vmem:[%s2152_s1 + $0x134] sm:$0xf0]  ;;  %v1389_v52 = vld [vmem:[%s2152_s1 + $0x1c4] sm:$0xf0]  ;;  %v925_v53 = vor.u32 %v1339_v45, %v924_v44 }
   0xd   :  { %716 = vmatpush.bf16.msra.mxu2 %v1069_v30  ;;  %v988_v48 = vld [vmem:[%s2152_s1 + $0xb0] sm:$0xf]  ;;  %v1355_v49 = vld [vmem:[%s2152_s1 + $0xb4] sm:$0xf0]  ;;  %v1053_v54 = vor.u32 %v1371_v47, %v1052_v46  ;;  %v916_v56 = vld [vmem:[%s2152_s1 + $0x20] sm:$0xf]  ;;  %v1125_v62 = vor.u32 %v1389_v52, %v1124_v51 }
   0xe   :  { %703 = vmatpush.bf16.msra.mxu1 %v1005_v31  ;;  %v989_v55 = vor.u32 %v1355_v49, %v988_v48  ;;  %v1337_v57 = vld [vmem:[%s2152_s1 + $0x24] sm:$0xf0]  ;;  %v1044_v58 = vld [vmem:[%s2152_s1 + $0x120] sm:$0xf]  ;;  %v1116_v63 = vld [vmem:[%s2152_s1 + $0x1b0] sm:$0xf] }
   0xf   :  { %728 = vmatpush.bf16.msra.mxu3 %v1141_v38  ;;  %v1369_v59 = vld [vmem:[%s2152_s1 + $0x124] sm:$0xf0]  ;;  %v980_v60 = vld [vmem:[%s2152_s1 + $0xa0] sm:$0xf]  ;;  %v1387_v0 = vld [vmem:[%s2152_s1 + $0x1b4] sm:$0xf0]  ;;  %v917_v1 = vor.u32 %v1337_v57, %v916_v56 }
  0x10   :  { %691 = vmatpush.bf16.msra.mxu0 %v933_v39  ;;  %v1353_v61 = vld [vmem:[%s2152_s1 + $0xa4] sm:$0xf0]  ;;  %v1045_v2 = vor.u32 %v1369_v59, %v1044_v58  ;;  %v908_v4 = vld [vmem:[%s2152_s1 + $0x10] sm:$0xf]  ;;  %v1335_v5 = vld [vmem:[%s2152_s1 + $0x14] sm:$0xf0]  ;;  %v1117_v10 = vor.u32 %v1387_v0, %v1116_v63 }
  0x11   :  { %717 = vmatpush.bf16.msra.mxu2 %v1061_v42  ;;  %v981_v3 = vor.u32 %v1353_v61, %v980_v60  ;;  %v1036_v6 = vld [vmem:[%s2152_s1 + $0x110] sm:$0xf]  ;;  %v1367_v7 = vld [vmem:[%s2152_s1 + $0x114] sm:$0xf0]  ;;  %v1108_v11 = vld [vmem:[%s2152_s1 + $0x1a0] sm:$0xf]  ;;  %v909_v13 = vor.u32 %v1335_v5, %v908_v4 }
  0x12   :  { %704 = vmatpush.bf16.msra.mxu1 %v997_v43  ;;  %v972_v8 = vld [vmem:[%s2152_s1 + $0x90] sm:$0xf]  ;;  %v1351_v9 = vld [vmem:[%s2152_s1 + $0x94] sm:$0xf0]  ;;  %v1385_v12 = vld [vmem:[%s2152_s1 + $0x1a4] sm:$0xf0]  ;;  %v1037_v16 = vor.u32 %v1367_v7, %v1036_v6 }
  0x13   :  { %729 = vmatpush.bf16.msra.mxu3 %v1133_v50  ;;  %v900_v14 = vld [vmem:[%s2152_s1] sm:$0xf]  ;;  %v1333_v15 = vld [vmem:[%s2152_s1 + $0x4] sm:$0xf0]  ;;  %v973_v17 = vor.u32 %v1351_v9, %v972_v8  ;;  %v1212_v20 = vld [vmem:[%s2152_s1 + $0x270] sm:$0xf]  ;;  %v1109_v24 = vor.u32 %v1385_v12, %v1108_v11 }
  0x14   :  { %692 = vmatpush.bf16.msra.mxu0 %v925_v53  ;;  %v1028_v18 = vld [vmem:[%s2152_s1 + $0x100] sm:$0xf]  ;;  %v1365_v19 = vld [vmem:[%s2152_s1 + $0x104] sm:$0xf0]  ;;  %v1411_v21 = vld [vmem:[%s2152_s1 + $0x274] sm:$0xf0]  ;;  %v901_v28 = vor.u32 %v1333_v15, %v900_v14 }
  0x15   :  { %718 = vmatpush.bf16.msra.mxu2 %v1053_v54  ;;  %v1324_v22 = vld [vmem:[%s2152_s1 + $0x350] sm:$0xf]  ;;  %v1439_v23 = vld [vmem:[%s2152_s1 + $0x354] sm:$0xf0]  ;;  %v964_v25 = vld [vmem:[%s2152_s1 + $0x80] sm:$0xf]  ;;  %v1029_v32 = vor.u32 %v1365_v19, %v1028_v18  ;;  %v1213_v33 = vor.u32 %v1411_v21, %v1212_v20 }
  0x16   :  { %705 = vmatpush.bf16.msra.mxu1 %v989_v55  ;;  %v1349_v26 = vld [vmem:[%s2152_s1 + $0x84] sm:$0xf0]  ;;  %v1276_v27 = vld [vmem:[%s2152_s1 + $0x2f0] sm:$0xf]  ;;  %v1427_v29 = vld [vmem:[%s2152_s1 + $0x2f4] sm:$0xf0]  ;;  %v1325_v35 = vor.u32 %v1439_v23, %v1324_v22 }
  0x17   :  { %730 = vmatpush.bf16.msra.mxu3 %v1125_v62  ;;  %v1100_v30 = vld [vmem:[%s2152_s1 + $0x190] sm:$0xf]  ;;  %v1383_v31 = vld [vmem:[%s2152_s1 + $0x194] sm:$0xf0]  ;;  %v1204_v34 = vld [vmem:[%s2152_s1 + $0x260] sm:$0xf]  ;;  %v965_v36 = vor.u32 %v1349_v26, %v964_v25  ;;  %v1277_v40 = vor.u32 %v1427_v29, %v1276_v27 }
  0x18   :  { %693 = vmatpush.bf16.msra.mxu0 %v917_v1  ;;  %v1409_v37 = vld [vmem:[%s2152_s1 + $0x264] sm:$0xf0]  ;;  %v1316_v38 = vld [vmem:[%s2152_s1 + $0x340] sm:$0xf]  ;;  %v1101_v42 = vor.u32 %v1383_v31, %v1100_v30  ;;  %v1346_v48 = vld [vmem:[%s2152_s1 + $0x74] sm:$0xf] }
  0x19   :  { %719 = vmatpush.bf16.msra.mxu2 %v1045_v2  ;;  %v15_v39 = vld [vmem:[%s2153_s0] sm:$0x7f]  ;;  %v1437_v41 = vld [vmem:[%s2152_s1 + $0x344] sm:$0xf0]  ;;  %v1205_v47 = vor.u32 %v1409_v37, %v1204_v34  ;;  %v958_v49 = vld [vmem:[%s2152_s1 + $0x78] sm:$0xf0] }
  0x1a   :  { %706 = vmatpush.bf16.msra.mxu1 %v981_v3  ;;  %v1268_v43 = vld [vmem:[%s2152_s1 + $0x2e0] sm:$0xf]  ;;  %126 = vst [vmem:[#allocation1] ss:$9 sm:$0xff] %v15_v39  ;;  %v1425_v44 = vld [vmem:[%s2152_s1 + $0x2e4] sm:$0xf0]  ;;  %v1317_v50 = vor.u32 %v1437_v41, %v1316_v38  ;;  %v961_v59 = vor.u32 %v1346_v48, %v958_v49  ;;  %vm886_vm7 = vmand %vm879_vm1, %vm885_vm2 }
  0x1b   :  { %731 = vmatpush.bf16.msra.mxu3 %v1117_v10  ;;  %v1092_v45 = vld [vmem:[%s2152_s1 + $0x180] sm:$0xf]  ;;  %v1381_v46 = vld [vmem:[%s2152_s1 + $0x184] sm:$0xf0]  ;;  %v1196_v51 = vld [vmem:[%s2152_s1 + $0x250] sm:$0xf]  ;;  %v1269_v53 = vor.u32 %v1425_v44, %v1268_v43 }
  0x1c   :  { %694 = vmatpush.bf16.msra.mxu0 %v909_v13  ;;  %v1407_v52 = vld [vmem:[%s2152_s1 + $0x254] sm:$0xf0]  ;;  %v1308_v54 = vld [vmem:[%s2152_s1 + $0x330] sm:$0xf]  ;;  %v1093_v56 = vor.u32 %v1381_v46, %v1092_v45  ;;  %v1188_v61 = vld [vmem:[%s2152_s1 + $0x240] sm:$0xf] }
  0x1d   :  { %720 = vmatpush.bf16.msra.mxu2 %v1037_v16  ;;  %v1435_v55 = vld [vmem:[%s2152_s1 + $0x334] sm:$0xf0]  ;;  %v1260_v57 = vld [vmem:[%s2152_s1 + $0x2d0] sm:$0xf]  ;;  %v1197_v60 = vor.u32 %v1407_v52, %v1196_v51  ;;  %v1344_v62 = vld [vmem:[%s2152_s1 + $0x64] sm:$0xf] }
  0x1e   :  { %707 = vmatpush.bf16.msra.mxu1 %v973_v17  ;;  %v1423_v58 = vld [vmem:[%s2152_s1 + $0x2d4] sm:$0xf0]  ;;  %v950_v63 = vld [vmem:[%s2152_s1 + $0x68] sm:$0xf0]  ;;  %v1309_v0 = vor.u32 %v1435_v55, %v1308_v54  ;;  %v1405_v1 = vld [vmem:[%s2152_s1 + $0x244] sm:$0xf0] }
  0x1f   :  { %732 = vmatpush.bf16.msra.mxu3 %v1109_v24  ;;  %v1261_v4 = vor.u32 %v1423_v58, %v1260_v57  ;;  %v1300_v5 = vld [vmem:[%s2152_s1 + $0x320] sm:$0xf]  ;;  %v1433_v6 = vld [vmem:[%s2152_s1 + $0x324] sm:$0xf0]  ;;  %v953_v10 = vor.u32 %v1344_v62, %v950_v63  ;;  %v1189_v12 = vor.u32 %v1405_v1, %v1188_v61  ;;  %v1342_v13 = vld [vmem:[%s2152_s1 + $0x54] sm:$0xf] }
  0x20   :  { %695 = vmatpush.bf16.msra.mxu0 %v901_v28  ;;  %v1252_v8 = vld [vmem:[%s2152_s1 + $0x2c0] sm:$0xf]  ;;  %v1421_v9 = vld [vmem:[%s2152_s1 + $0x2c4] sm:$0xf0]  ;;  %v942_v14 = vld [vmem:[%s2152_s1 + $0x58] sm:$0xf0]  ;;  %v1301_v15 = vor.u32 %v1433_v6, %v1300_v5 }
  0x21   :  { %721 = vmatpush.bf16.msra.mxu2 %v1029_v32  ;;  %v1727_v2 = vld [vmem:[#allocation1 + $0x12] sm:$0xff]  ;;  %v1729_v3 = vld [vmem:[#allocation1 + $0x9] sm:$0xff]  ;;  %v1737_v7 = vld [vmem:[#allocation1] sm:$0xff]  ;;  %v1253_v18 = vor.u32 %v1421_v9, %v1252_v8  ;;  %v945_v23 = vor.u32 %v1342_v13, %v942_v14  ;;  %vm888_vm5 = vsmask.f32 1280 }
  0x22   :  { %708 = vmatpush.bf16.msra.mxu1 %v965_v36  ;;  %v1746_v11 = vld [vmem:[#allocation1 + $0x1b] sm:$0xff]  ;;  %v1180_v16 = vld [vmem:[%s2152_s1 + $0x230] sm:$0xf]  ;;  %v1340_v25 = vld [vmem:[%s2152_s1 + $0x44] sm:$0xf] }
  0x23   :  { %733 = vmatpush.bf16.msra.mxu3 %v1101_v42  ;;  %696 = vmatmul.bf16.vlgmr.msra.gmra.mxu0 %v1737_v7  ;;  %v1403_v17 = vld [vmem:[%s2152_s1 + $0x234] sm:$0xf0]  ;;  %v1292_v19 = vld [vmem:[%s2152_s1 + $0x310] sm:$0xf]  ;;  %v934_v26 = vld [vmem:[%s2152_s1 + $0x48] sm:$0xf0] }
  0x24   :  { %740 = vmatpush.bf16.msrb.mxu0 %v1213_v33  ;;  %722 = vmatmul.bf16.vlgmr.msra.gmra.mxu2 %v1727_v2  ;;  %v1431_v20 = vld [vmem:[%s2152_s1 + $0x314] sm:$0xf0]  ;;  %v1244_v21 = vld [vmem:[%s2152_s1 + $0x2b0] sm:$0xf]  ;;  %v1181_v24 = vor.u32 %v1403_v17, %v1180_v16  ;;  %v1172_v28 = vld [vmem:[%s2152_s1 + $0x220] sm:$0xf]  ;;  %v937_v37 = vor.u32 %v1340_v25, %v934_v26 }
  0x25   :  { %768 = vmatpush.bf16.msrb.mxu2 %v1325_v35  ;;  %709 = vmatmul.bf16.vlgmr.msra.gmra.mxu1 %v1729_v3  ;;  %v1419_v22 = vld [vmem:[%s2152_s1 + $0x2b4] sm:$0xf0]  ;;  %v1293_v27 = vor.u32 %v1431_v20, %v1292_v19  ;;  %v1401_v29 = vld [vmem:[%s2152_s1 + $0x224] sm:$0xf0]  ;;  %v1284_v31 = vld [vmem:[%s2152_s1 + $0x300] sm:$0xf] }
  0x26   :  { %753 = vmatpush.bf16.msrb.mxu1 %v1277_v40  ;;  %v1245_v30 = vor.u32 %v1419_v22, %v1244_v21  ;;  %v1429_v32 = vld [vmem:[%s2152_s1 + $0x304] sm:$0xf0]  ;;  %v1362_v33 = vld [vmem:[%s2152_s1 + $0xf4] sm:$0xf]  ;;  %v1022_v34 = vld [vmem:[%s2152_s1 + $0xf8] sm:$0xf0]  ;;  %v1173_v38 = vor.u32 %v1401_v29, %v1172_v28 }
  0x27   :  { %734 = vmatpush.bf16.msra.mxu3 %v1093_v56  ;;  %v1236_v35 = vld [vmem:[%s2152_s1 + $0x2a0] sm:$0xf]  ;;  %v1417_v36 = vld [vmem:[%s2152_s1 + $0x2a4] sm:$0xf0]  ;;  %v1338_v39 = vld [vmem:[%s2152_s1 + $0x34] sm:$0xf]  ;;  %v1285_v41 = vor.u32 %v1429_v32, %v1284_v31  ;;  %v1025_v44 = vor.u32 %v1362_v33, %v1022_v34 }
  0x28   :  { %741 = vmatpush.bf16.msrb.mxu0 %v1205_v47  ;;  %v926_v40 = vld [vmem:[%s2152_s1 + $0x38] sm:$0xf0]  ;;  %v1164_v42 = vld [vmem:[%s2152_s1 + $0x210] sm:$0xf]  ;;  %v1399_v43 = vld [vmem:[%s2152_s1 + $0x214] sm:$0xf0]  ;;  %v1237_v45 = vor.u32 %v1417_v36, %v1236_v35 }
  0x29   :  { %769 = vmatpush.bf16.msrb.mxu2 %v1317_v50  ;;  %v1360_v46 = vld [vmem:[%s2152_s1 + $0xe4] sm:$0xf]  ;;  %v1014_v47 = vld [vmem:[%s2152_s1 + $0xe8] sm:$0xf0]  ;;  %v1228_v48 = vld [vmem:[%s2152_s1 + $0x290] sm:$0xf]  ;;  %v929_v50 = vor.u32 %v1338_v39, %v926_v40  ;;  %v1165_v51 = vor.u32 %v1399_v43, %v1164_v42 }
  0x2a   :  { %754 = vmatpush.bf16.msrb.mxu1 %v1269_v53  ;;  %735 = vmatmul.bf16.vlgmr.msra.gmra.mxu3 %v1746_v11  ;;  %v1415_v49 = vld [vmem:[%s2152_s1 + $0x294] sm:$0xf0]  ;;  %v1336_v52 = vld [vmem:[%s2152_s1 + $0x24] sm:$0xf]  ;;  %v918_v53 = vld [vmem:[%s2152_s1 + $0x28] sm:$0xf0]  ;;  %v1017_v57 = vor.u32 %v1360_v46, %v1014_v47 }
  0x2b   :  { %779 = vmatpush.bf16.msrb.mxu3 %v961_v59  ;;  %v1156_v54 = vld [vmem:[%s2152_s1 + $0x200] sm:$0xf]  ;;  %v1397_v55 = vld [vmem:[%s2152_s1 + $0x204] sm:$0xf0]  ;;  %v1841_v56 = vld [vmem:[#allocation1 + $0x36] sm:$0xff]  ;;  %v1229_v58 = vor.u32 %v1415_v49, %v1228_v48  ;;  %v921_v1 = vor.u32 %v1336_v52, %v918_v53 }
  0x2c   :  { %742 = vmatpush.bf16.msrb.mxu0 %v1197_v60  ;;  %v1358_v59 = vld [vmem:[%s2152_s1 + $0xd4] sm:$0xf]  ;;  %v1086_v61 = vld [vmem:[%s2152_s1 + $0x178] sm:$0xf0]  ;;  %v1220_v63 = vld [vmem:[%s2152_s1 + $0x280] sm:$0xf] }
  0x2d   :  { %770 = vmatpush.bf16.msrb.mxu2 %v1309_v0  ;;  %v1378_v60 = vld [vmem:[%s2152_s1 + $0x174] sm:$0xf]  ;;  %v1006_v62 = vld [vmem:[%s2152_s1 + $0xd8] sm:$0xf0]  ;;  %v1413_v0 = vld [vmem:[%s2152_s1 + $0x284] sm:$0xf0] }
  0x2e   :  { %755 = vmatpush.bf16.msrb.mxu1 %v1261_v4  ;;  %v1157_v4 = vor.u32 %v1397_v55, %v1156_v54  ;;  %v1334_v5 = vld [vmem:[%s2152_s1 + $0x14] sm:$0xf]  ;;  %v910_v6 = vld [vmem:[%s2152_s1 + $0x18] sm:$0xf0]  ;;  %v1089_v8 = vor.u32 %v1378_v60, %v1086_v61  ;;  %v1221_v13 = vor.u32 %v1413_v0, %v1220_v63  ;;  %v1376_v14 = vld [vmem:[%s2152_s1 + $0x164] sm:$0xf] }
  0x2f   :  { %780 = vmatpush.bf16.msrb.mxu3 %v953_v10  ;;  %v1394_v9 = vld [vmem:[%s2152_s1 + $0x1f4] sm:$0xf]  ;;  %v1150_v10 = vld [vmem:[%s2152_s1 + $0x1f8] sm:$0xf0]  ;;  %v1881_v16 = vld [vmem:[#allocation1 + $0x24] sm:$0xff]  ;;  %v913_v19 = vor.u32 %v1334_v5, %v910_v6 }
  0x30   :  { %743 = vmatpush.bf16.msrb.mxu0 %v1189_v12  ;;  %v1009_v12 = vor.u32 %v1358_v59, %v1006_v62  ;;  %v1356_v17 = vld [vmem:[%s2152_s1 + $0xc4] sm:$0xf]  ;;  %v902_v21 = vld [vmem:[%s2152_s1 + $0x8] sm:$0xf0]  ;;  %v1410_v22 = vld [vmem:[%s2152_s1 + $0x274] sm:$0xf] }
  0x31   :  { %771 = vmatpush.bf16.msrb.mxu2 %v1301_v15  ;;  %v1078_v15 = vld [vmem:[%s2152_s1 + $0x168] sm:$0xf0]  ;;  %v1332_v20 = vld [vmem:[%s2152_s1 + $0x4] sm:$0xf]  ;;  %v1214_v25 = vld [vmem:[%s2152_s1 + $0x278] sm:$0xf0] }
  0x32   :  { %756 = vmatpush.bf16.msrb.mxu1 %v1253_v18  ;;  %v998_v18 = vld [vmem:[%s2152_s1 + $0xc8] sm:$0xf0]  ;;  %v1392_v26 = vld [vmem:[%s2152_s1 + $0x1e4] sm:$0xf]  ;;  %v1070_v31 = vld [vmem:[%s2152_s1 + $0x158] sm:$0xf0]  ;;  %v905_v34 = vor.u32 %v1332_v20, %v902_v21  ;;  %v1217_v35 = vor.u32 %v1410_v22, %v1214_v25 }
  0x33   :  { %781 = vmatpush.bf16.msrb.mxu3 %v945_v23  ;;  %v1153_v23 = vor.u32 %v1394_v9, %v1150_v10  ;;  %v1907_v28 = vld [vmem:[#allocation1 + $0x2d] sm:$0xff]  ;;  %v1001_v29 = vor.u32 %v1356_v17, %v998_v18  ;;  %v990_v33 = vld [vmem:[%s2152_s1 + $0xb8] sm:$0xf0]  ;;  %v1408_v36 = vld [vmem:[%s2152_s1 + $0x264] sm:$0xf] }
  0x34   :  { %744 = vmatpush.bf16.msrb.mxu0 %v1181_v24  ;;  %v1081_v24 = vor.u32 %v1376_v14, %v1078_v15  ;;  %v1354_v32 = vld [vmem:[%s2152_s1 + $0xb4] sm:$0xf]  ;;  %v1206_v39 = vld [vmem:[%s2152_s1 + $0x268] sm:$0xf0]  ;;  %v1372_v43 = vld [vmem:[%s2152_s1 + $0x144] sm:$0xf] }
  0x35   :  { %772 = vmatpush.bf16.msrb.mxu2 %v1293_v27  ;;  %v1142_v27 = vld [vmem:[%s2152_s1 + $0x1e8] sm:$0xf0]  ;;  %v1390_v40 = vld [vmem:[%s2152_s1 + $0x1d4] sm:$0xf]  ;;  %v993_v42 = vor.u32 %v1354_v32, %v990_v33  ;;  %v1209_v47 = vor.u32 %v1408_v36, %v1206_v39  ;;  %v1388_v52 = vld [vmem:[%s2152_s1 + $0x1c4] sm:$0xf] }
  0x36   :  { %757 = vmatpush.bf16.msrb.mxu1 %v1245_v30  ;;  %v1374_v30 = vld [vmem:[%s2152_s1 + $0x154] sm:$0xf]  ;;  %v982_v46 = vld [vmem:[%s2152_s1 + $0xa8] sm:$0xf0]  ;;  %v974_v59 = vld [vmem:[%s2152_s1 + $0x98] sm:$0xf0] }
  0x37   :  { %782 = vmatpush.bf16.msrb.mxu3 %v937_v37  ;;  %v1145_v37 = vor.u32 %v1392_v26, %v1142_v27  ;;  %v1406_v48 = vld [vmem:[%s2152_s1 + $0x254] sm:$0xf]  ;;  %v1126_v53 = vld [vmem:[%s2152_s1 + $0x1c8] sm:$0xf0]  ;;  %v1404_v61 = vld [vmem:[%s2152_s1 + $0x244] sm:$0xf] }
  0x38   :  { %745 = vmatpush.bf16.msrb.mxu0 %v1173_v38  ;;  %v1073_v38 = vor.u32 %v1374_v30, %v1070_v31  ;;  %v1370_v55 = vld [vmem:[%s2152_s1 + $0x134] sm:$0xf]  ;;  %v1129_v62 = vor.u32 %v1388_v52, %v1126_v53  ;;  %v1368_v5 = vld [vmem:[%s2152_s1 + $0x124] sm:$0xf]  ;;  %v1046_v6 = vld [vmem:[%s2152_s1 + $0x128] sm:$0xf0] }
  0x39   :  { %773 = vmatpush.bf16.msrb.mxu2 %v1285_v41  ;;  %v1134_v41 = vld [vmem:[%s2152_s1 + $0x1d8] sm:$0xf0]  ;;  %v1386_v0 = vld [vmem:[%s2152_s1 + $0x1b4] sm:$0xf]  ;;  %v966_v9 = vld [vmem:[%s2152_s1 + $0x88] sm:$0xf0]  ;;  %v1049_v17 = vor.u32 %v1368_v5, %v1046_v6 }
  0x3a   :  { %758 = vmatpush.bf16.msrb.mxu1 %v1237_v45  ;;  %v1352_v45 = vld [vmem:[%s2152_s1 + $0xa4] sm:$0xf]  ;;  %v1137_v49 = vor.u32 %v1390_v40, %v1134_v41  ;;  %v1426_v10 = vld [vmem:[%s2152_s1 + $0x2f4] sm:$0xf]  ;;  %v1182_v18 = vld [vmem:[%s2152_s1 + $0x238] sm:$0xf0] }
  0x3b   :  { %783 = vmatpush.bf16.msrb.mxu3 %v929_v50  ;;  %v985_v54 = vor.u32 %v1352_v45, %v982_v46  ;;  %v1402_v14 = vld [vmem:[%s2152_s1 + $0x234] sm:$0xf]  ;;  %v1110_v20 = vld [vmem:[%s2152_s1 + $0x1a8] sm:$0xf0]  ;;  %v1424_v25 = vld [vmem:[%s2152_s1 + $0x2e4] sm:$0xf] }
  0x3c   :  { %746 = vmatpush.bf16.msrb.mxu0 %v1165_v51  ;;  %1330 = vmatmul.msk.bf16.vlgmr.msrb.gmra.mxu2 %vm685_vm0, %v1841_v56  ;;  %v1198_v51 = vld [vmem:[%s2152_s1 + $0x258] sm:$0xf0]  ;;  %v1366_v22 = vld [vmem:[%s2152_s1 + $0x114] sm:$0xf]  ;;  %v1270_v26 = vld [vmem:[%s2152_s1 + $0x2e8] sm:$0xf0]  ;;  %v1185_v27 = vor.u32 %v1402_v14, %v1182_v18 }
  0x3d   :  { %792 = vmatpush.bf16.msra.mxu2 %v1025_v44  ;;  %v1062_v44 = vld [vmem:[%s2152_s1 + $0x148] sm:$0xf0]  ;;  %v1201_v60 = vor.u32 %v1406_v48, %v1198_v51  ;;  %v1382_v33 = vld [vmem:[%s2152_s1 + $0x194] sm:$0xf]  ;;  %v1326_v39 = vld [vmem:[%s2152_s1 + $0x358] sm:$0xf0] }
  0x3e   :  { %759 = vmatpush.bf16.msrb.mxu1 %v1229_v58  ;;  %v1065_v50 = vor.u32 %v1372_v43, %v1062_v44  ;;  %v1350_v58 = vld [vmem:[%s2152_s1 + $0x94] sm:$0xf]  ;;  %v1174_v32 = vld [vmem:[%s2152_s1 + $0x228] sm:$0xf0]  ;;  %v1262_v41 = vld [vmem:[%s2152_s1 + $0x2d8] sm:$0xf0] }
  0x3f   :  { %784 = vmatpush.bf16.msrb.mxu3 %v921_v1  ;;  %v1118_v1 = vld [vmem:[%s2152_s1 + $0x1b8] sm:$0xf0]  ;;  %v1030_v36 = vld [vmem:[%s2152_s1 + $0x108] sm:$0xf0]  ;;  %v1422_v40 = vld [vmem:[%s2152_s1 + $0x2d4] sm:$0xf] }
  0x40   :  { %747 = vmatpush.bf16.msrb.mxu0 %v1157_v4  ;;  %v977_v4 = vor.u32 %v1350_v58, %v974_v59  ;;  %v1121_v15 = vor.u32 %v1386_v0, %v1118_v1  ;;  %v1398_v45 = vld [vmem:[%s2152_s1 + $0x214] sm:$0xf]  ;;  %v1166_v46 = vld [vmem:[%s2152_s1 + $0x218] sm:$0xf0]  ;;  %v1380_v48 = vld [vmem:[%s2152_s1 + $0x184] sm:$0xf] }
  0x41   :  { %793 = vmatpush.bf16.msra.mxu2 %v1017_v57  ;;  %v1054_v57 = vld [vmem:[%s2152_s1 + $0x138] sm:$0xf0]  ;;  %v1318_v51 = vld [vmem:[%s2152_s1 + $0x348] sm:$0xf0]  ;;  %v1420_v52 = vld [vmem:[%s2152_s1 + $0x2c4] sm:$0xf] }
  0x42   :  { %760 = vmatpush.bf16.msrb.mxu1 %v1221_v13  ;;  %v1057_v63 = vor.u32 %v1370_v55, %v1054_v57  ;;  %v1254_v53 = vld [vmem:[%s2152_s1 + $0x2c8] sm:$0xf0]  ;;  %v1396_v55 = vld [vmem:[%s2152_s1 + $0x204] sm:$0xf]  ;;  %v1414_v14 = vld [vmem:[%s2152_s1 + $0x294] sm:$0xf] }
  0x43   :  { %748 = vmatmul.bf16.vlgmr.msrb.gmra.mxu0 %v1881_v16  ;;  %785 = vmatpush.bf16.msrb.mxu3 %v913_v19  ;;  %v1384_v19 = vld [vmem:[%s2152_s1 + $0x1a4] sm:$0xf]  ;;  %v1158_v57 = vld [vmem:[%s2152_s1 + $0x208] sm:$0xf0]  ;;  %vm889_vm8 = vmand %vm887_vm4, %vm888_vm5 }
  0x44   :  { %805 = vmatpush.bf16.msra.mxu0 %v1089_v8  ;;  %v1348_v8 = vld [vmem:[%s2152_s1 + $0x84] sm:$0xf]  ;;  %v1113_v30 = vor.u32 %v1384_v19, %v1110_v20  ;;  %v1161_v0 = vor.u32 %v1396_v55, %v1158_v57  ;;  %v1286_v18 = vld [vmem:[%s2152_s1 + $0x308] sm:$0xf0]  ;;  %vm890_vm9 = vmor %vm889_vm8, %vm886_vm7 }
  0x45   :  { %794 = vmatpush.bf16.msra.mxu2 %v1009_v12  ;;  %761 = vmatmul.bf16.vlgmr.msrb.gmra.mxu1 %v1907_v28  ;;  %v1278_v12 = vld [vmem:[%s2152_s1 + $0x2f8] sm:$0xf0]  ;;  %v969_v21 = vor.u32 %v1348_v8, %v966_v9  ;;  %v1432_v5 = vld [vmem:[%s2152_s1 + $0x324] sm:$0xf]  ;;  %v1238_v8 = vld [vmem:[%s2152_s1 + $0x2a8] sm:$0xf0] }
  0x46   :  { %818 = vmatpush.bf16.msra.mxu1 %v1153_v23  ;;  %v1038_v23 = vld [vmem:[%s2152_s1 + $0x118] sm:$0xf0]  ;;  %v1416_v6 = vld [vmem:[%s2152_s1 + $0x2a4] sm:$0xf]  ;;  %v1222_v20 = vld [vmem:[%s2152_s1 + $0x288] sm:$0xf0] }
  0x47   :  { %786 = vmatpush.bf16.msrb.mxu3 %v905_v34  ;;  %v1041_v31 = vor.u32 %v1366_v22, %v1038_v23  ;;  %v1102_v34 = vld [vmem:[%s2152_s1 + $0x198] sm:$0xf0]  ;;  %v1412_v19 = vld [vmem:[%s2152_s1 + $0x284] sm:$0xf]  ;;  %v124_v23 = vld [vmem:[%s2154_s2] sm:$0x3] }
  0x48   :  { %806 = vmatpush.bf16.msra.mxu0 %v1081_v24  ;;  %v1281_v24 = vor.u32 %v1426_v10, %v1278_v12  ;;  %v1105_v43 = vor.u32 %v1382_v33, %v1102_v34  ;;  %v1241_v10 = vor.u32 %v1416_v6, %v1238_v8  ;;  %v1430_v12 = vld [vmem:[%s2152_s1 + $0x314] sm:$0xf]  ;;  %v1225_v22 = vor.u32 %v1412_v19, %v1222_v20 }
  0x49   :  { %795 = vmatpush.bf16.msra.mxu2 %v1001_v29  ;;  %v1400_v29 = vld [vmem:[%s2152_s1 + $0x224] sm:$0xf] }
  0x4a   :  { %819 = vmatpush.bf16.msra.mxu1 %v1145_v37  ;;  %787 = vmatmul.bf16.vlgmr.msrb.gmra.mxu3 %v1737_v7  ;;  %v1190_v7 = vld [vmem:[%s2152_s1 + $0x248] sm:$0xf0]  ;;  %v1273_v37 = vor.u32 %v1424_v25, %v1270_v26 }
  0x4b   :  { %831 = vmatpush.bf16.msra.mxu3 %v1217_v35  ;;  %v1193_v13 = vor.u32 %v1404_v61, %v1190_v7  ;;  %v1364_v35 = vld [vmem:[%s2152_s1 + $0x104] sm:$0xf]  ;;  %v1434_v61 = vld [vmem:[%s2152_s1 + $0x334] sm:$0xf]  ;;  %v1246_v7 = vld [vmem:[%s2152_s1 + $0x2b8] sm:$0xf0] }
  0x4c   :  { %807 = vmatpush.bf16.msra.mxu0 %v1073_v38  ;;  %v1438_v38 = vld [vmem:[%s2152_s1 + $0x354] sm:$0xf]  ;;  %v1033_v44 = vor.u32 %v1364_v35, %v1030_v36 }
  0x4d   :  { %796 = vmatpush.bf16.msra.mxu2 %v993_v42  ;;  %v1177_v42 = vor.u32 %v1400_v29, %v1174_v32 }
  0x4e   :  { %820 = vmatpush.bf16.msra.mxu1 %v1137_v49  ;;  %v1094_v49 = vld [vmem:[%s2152_s1 + $0x188] sm:$0xf0] }
  0x4f   :  { %832 = vmatpush.bf16.msra.mxu3 %v1209_v47  ;;  %v1329_v47 = vor.u32 %v1438_v38, %v1326_v39  ;;  %v1097_v58 = vor.u32 %v1380_v48, %v1094_v49 }
  0x50   :  { %808 = vmatpush.bf16.msra.mxu0 %v1065_v50  ;;  %v1436_v50 = vld [vmem:[%s2152_s1 + $0x344] sm:$0xf] }
  0x51   :  { %797 = vmatpush.bf16.msra.mxu2 %v985_v54  ;;  %v1169_v54 = vor.u32 %v1398_v45, %v1166_v46  ;;  %v1321_v59 = vor.u32 %v1436_v50, %v1318_v51 }
  0x52   :  { %821 = vmatpush.bf16.msra.mxu1 %v1129_v62  ;;  %v1310_v62 = vld [vmem:[%s2152_s1 + $0x338] sm:$0xf0] }
  0x53   :  { %833 = vmatpush.bf16.msra.mxu3 %v1201_v60  ;;  %v1257_v60 = vor.u32 %v1420_v52, %v1254_v53  ;;  %v1313_v1 = vor.u32 %v1434_v61, %v1310_v62 }
  0x54   :  { %809 = vmatpush.bf16.msra.mxu0 %v1057_v63  ;;  %v1418_v63 = vld [vmem:[%s2152_s1 + $0x2b4] sm:$0xf] }
  0x55   :  { %798 = vmatpush.bf16.msra.mxu2 %v977_v4  ;;  %v1249_v4 = vor.u32 %v1418_v63, %v1246_v7 }
  0x56   :  { %822 = vmatpush.bf16.msra.mxu1 %v1121_v15 }
  0x57   :  { %834 = vmatpush.bf16.msra.mxu3 %v1193_v13  ;;  %v1294_v13 = vld [vmem:[%s2152_s1 + $0x318] sm:$0xf0] }
  0x58   :  { %810 = vmatpush.bf16.msra.mxu0 %v1049_v17  ;;  %v1297_v15 = vor.u32 %v1430_v12, %v1294_v13  ;;  %v1428_v17 = vld [vmem:[%s2152_s1 + $0x304] sm:$0xf] }
  0x59   :  { %799 = vmatpush.bf16.msra.mxu2 %v969_v21  ;;  %v1289_v21 = vor.u32 %v1428_v17, %v1286_v18 }
  0x5a   :  { %823 = vmatpush.bf16.msra.mxu1 %v1113_v30 }
  0x5b   :  { %835 = vmatpush.bf16.msra.mxu3 %v1185_v27 }
  0x5c   :  { %811 = vmatpush.bf16.msra.mxu0 %v1041_v31  ;;  %800 = vmatmul.bf16.vlgmr.msra.gmra.mxu2 %v1729_v3  ;;  %v1265_v3 = vor.u32 %v1422_v40, %v1262_v41 }
  0x5d   :  { %844 = vmatpush.bf16.msrb.mxu2 %v1281_v24  ;;  %v681_v24 = vperm.slane %v124_v23, 0 }
  0x5e   :  { %824 = vmatpush.bf16.msra.mxu1 %v1105_v43 }
  0x5f   :  { %836 = vmatpush.bf16.msra.mxu3 %v1177_v42 }
  0x60   :  { %812 = vmatpush.bf16.msra.mxu0 %v1033_v44 }
  0x61   :  { %845 = vmatpush.bf16.msrb.mxu2 %v1273_v37 }
  0x62   :  { %825 = vmatpush.bf16.msra.mxu1 %v1097_v58 }
  0x63   :  { %837 = vmatpush.bf16.msra.mxu3 %v1169_v54  ;;  %813 = vmatmul.bf16.vlgmr.msra.gmra.mxu0 %v1727_v2  ;;  %v1302_v2 = vld [vmem:[%s2152_s1 + $0x328] sm:$0xf0] }
  0x64   :  { %859 = vmatpush.bf16.msrb.mxu0 %v1329_v47  ;;  %v1305_v9 = vor.u32 %v1432_v5, %v1302_v2  ;;  %v682_v47 = vperm.slane %v124_v23, 1 }
  0x65   :  { %846 = vmatpush.bf16.msrb.mxu2 %v1265_v3  ;;  %826 = vmatmul.bf16.vlgmr.msra.gmra.mxu1 %v1746_v11  ;;  %v1230_v11 = vld [vmem:[%s2152_s1 + $0x298] sm:$0xf0] }
  0x67   :  { %838 = vmatpush.bf16.msra.mxu3 %v1161_v0 }
  0x68   :  { %860 = vmatpush.bf16.msrb.mxu0 %v1321_v59 }
  0x69   :  { %847 = vmatpush.bf16.msrb.mxu2 %v1257_v60 }
  0x6a   :  { %839 = vmatmul.bf16.vlgmr.msra.gmra.mxu3 %v1881_v16  ;;  %v1233_v16 = vor.u32 %v1414_v14, %v1230_v11 }
  0x6c   :  { %861 = vmatpush.bf16.msrb.mxu0 %v1313_v1 }
  0x6d   :  { %848 = vmatpush.bf16.msrb.mxu2 %v1249_v4 }
  0x70   :  { %862 = vmatpush.bf16.msrb.mxu0 %v1305_v9 }
  0x71   :  { %849 = vmatpush.bf16.msrb.mxu2 %v1241_v10  ;;  %v891_v10 = vld [vmem:[%s2155_s3] sm:$0x3] }
  0x74   :  { %863 = vmatpush.bf16.msrb.mxu0 %v1297_v15 }
  0x75   :  { %850 = vmatpush.bf16.msrb.mxu2 %v1233_v16 }
  0x78   :  { %864 = vmatpush.bf16.msrb.mxu0 %v1289_v21 }
  0x79   :  { %851 = vmatpush.bf16.msrb.mxu2 %v1225_v22 }
  0x7b   :  { %1331 = vmatmul.msk.bf16.vlgmr.msrb.gmra.mxu0 %vm685_vm0, %v1841_v56 }
  0x7c   :  { %852 = vmatmul.bf16.vlgmr.msrb.gmra.mxu2 %v1907_v28 }
  0xa0   :  { %v697_v26 = vpop.f32.mrf.mxu0 }
  0xa1   :  { %v698_v27 = vadd.f32 %v697_v26, %v681_v24 }
  0xa2   :  { %v710_v25 = vpop.f32.mrf.mxu1 }
  0xa3   :  { %v711_v29 = vadd.f32 %v710_v25, %v698_v27 }
  0xa7   :  { %v723_v30 = vpop.f32.mrf.mxu2 }
  0xa8   :  { %v724_v31 = vadd.f32 %v723_v30, %v711_v29  ;;  %v699_v34 = vpop.f32.mrf.mxu0 }
  0xaa   :  { %v712_v32 = vpop.f32.mrf.mxu1 }
  0xad   :  { %v736_v33 = vpop.f32.mrf.mxu3 }
  0xae   :  { %v737_v35 = vadd.f32 %v736_v33, %v724_v31 }
  0xaf   :  { %v725_v36 = vpop.f32.mrf.mxu2 }
  0xb5   :  { %v738_v37 = vpop.f32.mrf.mxu3 }
  0xbf   :  { %v775_v56 = vpop.f32.mrf.mxu2 }
  0xc0   :  { %v749_v38 = vpop.f32.mrf.mxu0 }
  0xc1   :  { %v750_v53 = vadd.f32 %v749_v38, %v737_v35 }
  0xc2   :  { %v762_v28 = vpop.f32.mrf.mxu1 }
  0xc3   :  { %v763_v58 = vadd.f32 %v762_v28, %v750_v53 }
  0xc5   :  { %v776_v60 = vadd.f32 %v775_v56, %v763_v58 }
  0xc7   :  { %v777_v39 = vpop.f32.mrf.mxu2  ;;  %v872_v0 = vmul.f32 0.2, %v776_v60  ;;  %vm870_vm3 = vcmp.ge.f32.partialorder %v776_v60, 0.0 }
  0xc8   :  { %v751_v40 = vpop.f32.mrf.mxu0 }
  0xc9   :  { %v874_v5 = vsel %vm870_vm3, %v776_v60, %v872_v0 }
  0xca   :  { %v764_v41 = vpop.f32.mrf.mxu1 }
  0xcd   :  { %v788_v42 = vpop.f32.mrf.mxu3 }
  0xce   :  { %v789_v3 = vadd.f32 %v788_v42, %v682_v47 }
  0xd5   :  { %v790_v43 = vpop.f32.mrf.mxu3 }
  0xdf   :  { %v801_v44 = vpop.f32.mrf.mxu2 }
  0xe0   :  { %v814_v45 = vpop.f32.mrf.mxu0  ;;  %v802_v52 = vadd.f32 %v801_v44, %v789_v3 }
  0xe2   :  { %v827_v46 = vpop.f32.mrf.mxu1  ;;  %v815_v54 = vadd.f32 %v814_v45, %v802_v52 }
  0xe4   :  { %v828_v59 = vadd.f32 %v827_v46, %v815_v54 }
  0xe7   :  { %v803_v48 = vpop.f32.mrf.mxu2 }
  0xe8   :  { %v816_v49 = vpop.f32.mrf.mxu0 }
  0xea   :  { %v829_v50 = vpop.f32.mrf.mxu1 }
  0xed   :  { %v840_v51 = vpop.f32.mrf.mxu3 }
  0xee   :  { %v841_v61 = vadd.f32 %v840_v51, %v828_v59 }
  0xf5   :  { %v842_v57 = vpop.f32.mrf.mxu3 }
  0xf8   :  { %v866_v55 = vpop.f32.mrf.mxu0 }
  0xff   :  { %v853_v62 = vpop.f32.mrf.mxu2 }
 0x100   :  { %v854_v63 = vadd.f32 %v853_v62, %v841_v61  ;;  %v868_v7 = vpop.f32.mrf.mxu0 }
 0x102   :  { %v867_v1 = vadd.f32 %v866_v55, %v854_v63 }
 0x104   :  { %vm871_vm6 = vcmp.ge.f32.partialorder %v867_v1, 0.0  ;;  %v873_v4 = vmul.f32 0.2, %v867_v1 }
 0x106   :  { %v875_v2 = vsel %vm871_vm6, %v867_v1, %v873_v4 }
 0x107   :  { %v876_v6 = vpack.c.bf16 %v875_v2, %v874_v5  ;;  %v855_v8 = vpop.f32.mrf.mxu2 }
 0x109   :  { %v878_v9 = vrot.slane %v876_v6, 3 }
 0x10b   :  { %v882_v12 = vsel %vm879_vm1, %v876_v6, %v878_v9 }
 0x10c   :  { %v892_v13 = vsel %vm890_vm9, %v882_v12, %v891_v10 }
 0x10d   :  { %893 = vst [vmem:[%s2155_s3] sm:$0x3] %v892_v13 }

// kernel: ifnet_forward.47
= control target key start
LH: loop header
LB: loop body
LE: loop exit
PB: predicated region body
PF: predicated region fallthrough
CT: control target
= control target key end

     0   :  { %vm1356_vm0 = vcmask 523264   ;;  %vm1749_vm1 = vcmask 1040384   ;;  %vm1755_vm2 = vsmask.f32 256  ;;  %vm1757_vm4 = vcmask 517121   ;;  %s4261_s1 = inlined_call_operand.vmem [shape: bf16[1728,192], index: 1, kind: input, shape index: {}]   ;;  %s4262_s0 = inlined_call_operand.vmem [shape: bf16[1,1728], index: 0, kind: input, shape index: {}]   ;;  %s4263_s2 = inlined_call_operand.vmem [shape: f32[1,192], index: 2, kind: input, shape index: {}]   ;;  %s4264_s3 = inlined_call_operand.vmem [shape: f32[1,192], index: 3, kind: input, shape index: {}]   ;;  %s4265_s4 = inlined_call_operand.vmem [shape: bf16[1,192], index: 4, kind: input, shape index: {}, may-alias: {4,5}]   ;;  %s4266_s5 = inlined_call_operand.vmem [shape: bf16[1,192], index: 5, kind: output, shape index: {}, may-alias: {4,5}]  }
   0x1   :  { %v1826_v0 = vld [vmem:[%s4261_s1 + $0x70] sm:$0xf]  ;;  %v2649_v1 = vld [vmem:[%s4261_s1 + $0x74] sm:$0xf0]  ;;  %v1818_v11 = vld [vmem:[%s4261_s1 + $0x60] sm:$0xf] }
   0x2   :  { %v1890_v2 = vld [vmem:[%s4261_s1 + $0xf0] sm:$0xf]  ;;  %v1827_v3 = vor.u32 %v2649_v1, %v1826_v0  ;;  %v2665_v4 = vld [vmem:[%s4261_s1 + $0xf4] sm:$0xf0]  ;;  %v2647_v13 = vld [vmem:[%s4261_s1 + $0x64] sm:$0xf0] }
   0x3   :  { %v1954_v5 = vld [vmem:[%s4261_s1 + $0x170] sm:$0xf]  ;;  %v2681_v6 = vld [vmem:[%s4261_s1 + $0x174] sm:$0xf0]  ;;  %v1891_v7 = vor.u32 %v2665_v4, %v1890_v2  ;;  %v1882_v14 = vld [vmem:[%s4261_s1 + $0xe0] sm:$0xf]  ;;  %v1819_v16 = vor.u32 %v2647_v13, %v1818_v11 }
   0x4   :  { %v1955_v8 = vor.u32 %v2681_v6, %v1954_v5  ;;  %v2018_v9 = vld [vmem:[%s4261_s1 + $0x1f0] sm:$0xf]  ;;  %v2697_v10 = vld [vmem:[%s4261_s1 + $0x1f4] sm:$0xf0]  ;;  %1359 = vmatpush.bf16.msra.mxu0 %v1827_v3  ;;  %v2663_v15 = vld [vmem:[%s4261_s1 + $0xe4] sm:$0xf0] }
   0x5   :  { %v2019_v12 = vor.u32 %v2697_v10, %v2018_v9  ;;  %1372 = vmatpush.bf16.msra.mxu1 %v1891_v7  ;;  %v1883_v17 = vor.u32 %v2663_v15, %v1882_v14  ;;  %v1946_v18 = vld [vmem:[%s4261_s1 + $0x160] sm:$0xf]  ;;  %v2679_v19 = vld [vmem:[%s4261_s1 + $0x164] sm:$0xf0]  ;;  %v1810_v23 = vld [vmem:[%s4261_s1 + $0x50] sm:$0xf] }
   0x6   :  { %1385 = vmatpush.bf16.msra.mxu2 %v1955_v8  ;;  %v2010_v20 = vld [vmem:[%s4261_s1 + $0x1e0] sm:$0xf]  ;;  %v1947_v21 = vor.u32 %v2679_v19, %v1946_v18  ;;  %v2695_v22 = vld [vmem:[%s4261_s1 + $0x1e4] sm:$0xf0]  ;;  %v2645_v24 = vld [vmem:[%s4261_s1 + $0x54] sm:$0xf0] }
   0x7   :  { %1398 = vmatpush.bf16.msra.mxu3 %v2019_v12  ;;  %v2011_v25 = vor.u32 %v2695_v22, %v2010_v20  ;;  %v1874_v26 = vld [vmem:[%s4261_s1 + $0xd0] sm:$0xf]  ;;  %v2661_v27 = vld [vmem:[%s4261_s1 + $0xd4] sm:$0xf0]  ;;  %v1811_v29 = vor.u32 %v2645_v24, %v1810_v23  ;;  %v1802_v35 = vld [vmem:[%s4261_s1 + $0x40] sm:$0xf] }
   0x8   :  { %v1938_v28 = vld [vmem:[%s4261_s1 + $0x150] sm:$0xf]  ;;  %1360 = vmatpush.bf16.msra.mxu0 %v1819_v16  ;;  %v2677_v30 = vld [vmem:[%s4261_s1 + $0x154] sm:$0xf0]  ;;  %v1875_v33 = vor.u32 %v2661_v27, %v1874_v26  ;;  %v2643_v36 = vld [vmem:[%s4261_s1 + $0x44] sm:$0xf0] }
   0x9   :  { %v2002_v31 = vld [vmem:[%s4261_s1 + $0x1d0] sm:$0xf]  ;;  %v2693_v32 = vld [vmem:[%s4261_s1 + $0x1d4] sm:$0xf0]  ;;  %1373 = vmatpush.bf16.msra.mxu1 %v1883_v17  ;;  %v1939_v34 = vor.u32 %v2677_v30, %v1938_v28  ;;  %v1866_v37 = vld [vmem:[%s4261_s1 + $0xc0] sm:$0xf]  ;;  %v1803_v44 = vor.u32 %v2643_v36, %v1802_v35 }
   0xa   :  { %1386 = vmatpush.bf16.msra.mxu2 %v1947_v21  ;;  %v2003_v38 = vor.u32 %v2693_v32, %v2002_v31  ;;  %v2659_v39 = vld [vmem:[%s4261_s1 + $0xc4] sm:$0xf0]  ;;  %v1930_v40 = vld [vmem:[%s4261_s1 + $0x140] sm:$0xf]  ;;  %v1794_v47 = vld [vmem:[%s4261_s1 + $0x30] sm:$0xf] }
   0xb   :  { %1399 = vmatpush.bf16.msra.mxu3 %v2011_v25  ;;  %v2675_v41 = vld [vmem:[%s4261_s1 + $0x144] sm:$0xf0]  ;;  %v1994_v42 = vld [vmem:[%s4261_s1 + $0x1c0] sm:$0xf]  ;;  %v1867_v45 = vor.u32 %v2659_v39, %v1866_v37  ;;  %v2641_v48 = vld [vmem:[%s4261_s1 + $0x34] sm:$0xf0] }
   0xc   :  { %v2691_v43 = vld [vmem:[%s4261_s1 + $0x1c4] sm:$0xf0]  ;;  %1361 = vmatpush.bf16.msra.mxu0 %v1811_v29  ;;  %v1931_v46 = vor.u32 %v2675_v41, %v1930_v40  ;;  %v1858_v49 = vld [vmem:[%s4261_s1 + $0xb0] sm:$0xf]  ;;  %v2657_v51 = vld [vmem:[%s4261_s1 + $0xb4] sm:$0xf0]  ;;  %v1795_v56 = vor.u32 %v2641_v48, %v1794_v47 }
   0xd   :  { %1374 = vmatpush.bf16.msra.mxu1 %v1875_v33  ;;  %v1995_v50 = vor.u32 %v2691_v43, %v1994_v42  ;;  %v1922_v52 = vld [vmem:[%s4261_s1 + $0x130] sm:$0xf]  ;;  %v2673_v53 = vld [vmem:[%s4261_s1 + $0x134] sm:$0xf0]  ;;  %v1859_v57 = vor.u32 %v2657_v51, %v1858_v49  ;;  %v1786_v59 = vld [vmem:[%s4261_s1 + $0x20] sm:$0xf] }
   0xe   :  { %1387 = vmatpush.bf16.msra.mxu2 %v1939_v34  ;;  %v1986_v54 = vld [vmem:[%s4261_s1 + $0x1b0] sm:$0xf]  ;;  %v2689_v55 = vld [vmem:[%s4261_s1 + $0x1b4] sm:$0xf0]  ;;  %v1923_v58 = vor.u32 %v2673_v53, %v1922_v52  ;;  %v2639_v60 = vld [vmem:[%s4261_s1 + $0x24] sm:$0xf0] }
   0xf   :  { %1400 = vmatpush.bf16.msra.mxu3 %v2003_v38  ;;  %v1850_v61 = vld [vmem:[%s4261_s1 + $0xa0] sm:$0xf]  ;;  %v1987_v62 = vor.u32 %v2689_v55, %v1986_v54  ;;  %v2655_v63 = vld [vmem:[%s4261_s1 + $0xa4] sm:$0xf0]  ;;  %v1787_v4 = vor.u32 %v2639_v60, %v1786_v59  ;;  %v1778_v7 = vld [vmem:[%s4261_s1 + $0x10] sm:$0xf] }
  0x10   :  { %1362 = vmatpush.bf16.msra.mxu0 %v1803_v44  ;;  %v1914_v0 = vld [vmem:[%s4261_s1 + $0x120] sm:$0xf]  ;;  %v2671_v1 = vld [vmem:[%s4261_s1 + $0x124] sm:$0xf0]  ;;  %v1851_v5 = vor.u32 %v2655_v63, %v1850_v61  ;;  %v2637_v8 = vld [vmem:[%s4261_s1 + $0x14] sm:$0xf0] }
  0x11   :  { %1375 = vmatpush.bf16.msra.mxu1 %v1867_v45  ;;  %v1978_v2 = vld [vmem:[%s4261_s1 + $0x1a0] sm:$0xf]  ;;  %v2687_v3 = vld [vmem:[%s4261_s1 + $0x1a4] sm:$0xf0]  ;;  %v1915_v6 = vor.u32 %v2671_v1, %v1914_v0  ;;  %v1842_v9 = vld [vmem:[%s4261_s1 + $0x90] sm:$0xf]  ;;  %v1779_v16 = vor.u32 %v2637_v8, %v1778_v7 }
  0x12   :  { %1388 = vmatpush.bf16.msra.mxu2 %v1931_v46  ;;  %v1979_v10 = vor.u32 %v2687_v3, %v1978_v2  ;;  %v2653_v11 = vld [vmem:[%s4261_s1 + $0x94] sm:$0xf0]  ;;  %v1906_v12 = vld [vmem:[%s4261_s1 + $0x110] sm:$0xf]  ;;  %v1770_v17 = vld [vmem:[%s4261_s1] sm:$0xf] }
  0x13   :  { %1401 = vmatpush.bf16.msra.mxu3 %v1995_v50  ;;  %v2669_v13 = vld [vmem:[%s4261_s1 + $0x114] sm:$0xf0]  ;;  %v1970_v14 = vld [vmem:[%s4261_s1 + $0x190] sm:$0xf]  ;;  %v2635_v18 = vld [vmem:[%s4261_s1 + $0x4] sm:$0xf0]  ;;  %v1843_v19 = vor.u32 %v2653_v11, %v1842_v9 }
  0x14   :  { %1363 = vmatpush.bf16.msra.mxu0 %v1795_v56  ;;  %v2685_v15 = vld [vmem:[%s4261_s1 + $0x194] sm:$0xf0]  ;;  %v1907_v20 = vor.u32 %v2669_v13, %v1906_v12  ;;  %v1834_v21 = vld [vmem:[%s4261_s1 + $0x80] sm:$0xf]  ;;  %v2651_v22 = vld [vmem:[%s4261_s1 + $0x84] sm:$0xf0]  ;;  %v1771_v31 = vor.u32 %v2635_v18, %v1770_v17 }
  0x15   :  { %1376 = vmatpush.bf16.msra.mxu1 %v1859_v57  ;;  %v1898_v23 = vld [vmem:[%s4261_s1 + $0x100] sm:$0xf]  ;;  %v1971_v24 = vor.u32 %v2685_v15, %v1970_v14  ;;  %v2667_v25 = vld [vmem:[%s4261_s1 + $0x104] sm:$0xf0]  ;;  %v2082_v26 = vld [vmem:[%s4261_s1 + $0x270] sm:$0xf]  ;;  %v1835_v35 = vor.u32 %v2651_v22, %v1834_v21 }
  0x16   :  { %1389 = vmatpush.bf16.msra.mxu2 %v1923_v58  ;;  %v2713_v27 = vld [vmem:[%s4261_s1 + $0x274] sm:$0xf0]  ;;  %v2146_v28 = vld [vmem:[%s4261_s1 + $0x2f0] sm:$0xf]  ;;  %v1962_v33 = vld [vmem:[%s4261_s1 + $0x180] sm:$0xf]  ;;  %v1899_v36 = vor.u32 %v2667_v25, %v1898_v23 }
  0x17   :  { %1402 = vmatpush.bf16.msra.mxu3 %v1987_v62  ;;  %v2729_v29 = vld [vmem:[%s4261_s1 + $0x2f4] sm:$0xf0]  ;;  %v2210_v30 = vld [vmem:[%s4261_s1 + $0x370] sm:$0xf]  ;;  %v2683_v34 = vld [vmem:[%s4261_s1 + $0x184] sm:$0xf0]  ;;  %v2083_v39 = vor.u32 %v2713_v27, %v2082_v26 }
  0x18   :  { %1364 = vmatpush.bf16.msra.mxu0 %v1787_v4  ;;  %v2745_v32 = vld [vmem:[%s4261_s1 + $0x374] sm:$0xf0]  ;;  %v2274_v37 = vld [vmem:[%s4261_s1 + $0x3f0] sm:$0xf]  ;;  %v2147_v40 = vor.u32 %v2729_v29, %v2146_v28  ;;  %v2074_v41 = vld [vmem:[%s4261_s1 + $0x260] sm:$0xf]  ;;  %v1963_v43 = vor.u32 %v2683_v34, %v1962_v33 }
  0x19   :  { %1377 = vmatpush.bf16.msra.mxu1 %v1851_v5  ;;  %v2761_v38 = vld [vmem:[%s4261_s1 + $0x3f4] sm:$0xf0]  ;;  %v2211_v42 = vor.u32 %v2745_v32, %v2210_v30  ;;  %v2711_v44 = vld [vmem:[%s4261_s1 + $0x264] sm:$0xf0]  ;;  %v2138_v45 = vld [vmem:[%s4261_s1 + $0x2e0] sm:$0xf] }
  0x1a   :  { %1390 = vmatpush.bf16.msra.mxu2 %v1915_v6  ;;  %v2727_v46 = vld [vmem:[%s4261_s1 + $0x2e4] sm:$0xf0]  ;;  %v2275_v47 = vor.u32 %v2761_v38, %v2274_v37  ;;  %v2202_v48 = vld [vmem:[%s4261_s1 + $0x360] sm:$0xf]  ;;  %v2075_v52 = vor.u32 %v2711_v44, %v2074_v41  ;;  %v2066_v54 = vld [vmem:[%s4261_s1 + $0x250] sm:$0xf] }
  0x1b   :  { %1403 = vmatpush.bf16.msra.mxu3 %v1979_v10  ;;  %v2743_v49 = vld [vmem:[%s4261_s1 + $0x364] sm:$0xf0]  ;;  %v2266_v50 = vld [vmem:[%s4261_s1 + $0x3e0] sm:$0xf]  ;;  %v2139_v53 = vor.u32 %v2727_v46, %v2138_v45  ;;  %v2709_v56 = vld [vmem:[%s4261_s1 + $0x254] sm:$0xf0] }
  0x1c   :  { %1365 = vmatpush.bf16.msra.mxu0 %v1779_v16  ;;  %v2759_v51 = vld [vmem:[%s4261_s1 + $0x3e4] sm:$0xf0]  ;;  %v2203_v55 = vor.u32 %v2743_v49, %v2202_v48  ;;  %v2130_v57 = vld [vmem:[%s4261_s1 + $0x2d0] sm:$0xf]  ;;  %v2725_v58 = vld [vmem:[%s4261_s1 + $0x2d4] sm:$0xf0]  ;;  %v2067_v1 = vor.u32 %v2709_v56, %v2066_v54 }
  0x1d   :  { %1378 = vmatpush.bf16.msra.mxu1 %v1843_v19  ;;  %v2267_v59 = vor.u32 %v2759_v51, %v2266_v50  ;;  %v2194_v60 = vld [vmem:[%s4261_s1 + $0x350] sm:$0xf]  ;;  %v2741_v61 = vld [vmem:[%s4261_s1 + $0x354] sm:$0xf0]  ;;  %v21_v0 = vld [vmem:[%s4262_s0] sm:$0xff]  ;;  %v2131_v2 = vor.u32 %v2725_v58, %v2130_v57 }
  0x1e   :  { %1391 = vmatpush.bf16.msra.mxu2 %v1907_v20  ;;  %v2258_v62 = vld [vmem:[%s4261_s1 + $0x3d0] sm:$0xf]  ;;  %v2757_v63 = vld [vmem:[%s4261_s1 + $0x3d4] sm:$0xf0]  ;;  %v2058_v3 = vld [vmem:[%s4261_s1 + $0x240] sm:$0xf]  ;;  %v2195_v4 = vor.u32 %v2741_v61, %v2194_v60 }
  0x1f   :  { %1404 = vmatpush.bf16.msra.mxu3 %v1971_v24  ;;  %241 = vst [vmem:[#allocation1] ss:$9 sm:$0xff] %v21_v0  ;;  %v2707_v5 = vld [vmem:[%s4261_s1 + $0x244] sm:$0xf0]  ;;  %v2122_v6 = vld [vmem:[%s4261_s1 + $0x2c0] sm:$0xf]  ;;  %v2259_v8 = vor.u32 %v2757_v63, %v2258_v62  ;;  %vm1756_vm7 = vmand %vm1749_vm1, %vm1755_vm2 }
  0x20   :  { %1366 = vmatpush.bf16.msra.mxu0 %v1771_v31  ;;  %v2723_v7 = vld [vmem:[%s4261_s1 + $0x2c4] sm:$0xf0]  ;;  %v2186_v9 = vld [vmem:[%s4261_s1 + $0x340] sm:$0xf]  ;;  %v2059_v13 = vor.u32 %v2707_v5, %v2058_v3  ;;  %v2050_v15 = vld [vmem:[%s4261_s1 + $0x230] sm:$0xf] }
  0x21   :  { %1379 = vmatpush.bf16.msra.mxu1 %v1835_v35  ;;  %v2739_v10 = vld [vmem:[%s4261_s1 + $0x344] sm:$0xf0]  ;;  %v2250_v11 = vld [vmem:[%s4261_s1 + $0x3c0] sm:$0xf]  ;;  %v2123_v14 = vor.u32 %v2723_v7, %v2122_v6  ;;  %v2705_v17 = vld [vmem:[%s4261_s1 + $0x234] sm:$0xf0] }
  0x22   :  { %1392 = vmatpush.bf16.msra.mxu2 %v1899_v36  ;;  %v2755_v12 = vld [vmem:[%s4261_s1 + $0x3c4] sm:$0xf0]  ;;  %v2187_v16 = vor.u32 %v2739_v10, %v2186_v9  ;;  %v2114_v18 = vld [vmem:[%s4261_s1 + $0x2b0] sm:$0xf]  ;;  %v2721_v19 = vld [vmem:[%s4261_s1 + $0x2b4] sm:$0xf0]  ;;  %v2051_v27 = vor.u32 %v2705_v17, %v2050_v15 }
  0x23   :  { %1405 = vmatpush.bf16.msra.mxu3 %v1963_v43  ;;  %v2251_v20 = vor.u32 %v2755_v12, %v2250_v11  ;;  %v2178_v21 = vld [vmem:[%s4261_s1 + $0x330] sm:$0xf]  ;;  %v2737_v22 = vld [vmem:[%s4261_s1 + $0x334] sm:$0xf0]  ;;  %v2115_v28 = vor.u32 %v2721_v19, %v2114_v18  ;;  %v2042_v29 = vld [vmem:[%s4261_s1 + $0x220] sm:$0xf] }
  0x24   :  { %1411 = vmatpush.bf16.msrb.mxu0 %v2083_v39  ;;  %v2242_v23 = vld [vmem:[%s4261_s1 + $0x3b0] sm:$0xf]  ;;  %v2753_v24 = vld [vmem:[%s4261_s1 + $0x3b4] sm:$0xf0]  ;;  %v2179_v32 = vor.u32 %v2737_v22, %v2178_v21  ;;  %v2703_v33 = vld [vmem:[%s4261_s1 + $0x224] sm:$0xf0] }
  0x25   :  { %1424 = vmatpush.bf16.msrb.mxu1 %v2147_v40  ;;  %v2106_v34 = vld [vmem:[%s4261_s1 + $0x2a0] sm:$0xf]  ;;  %v2719_v35 = vld [vmem:[%s4261_s1 + $0x2a4] sm:$0xf0]  ;;  %v2243_v36 = vor.u32 %v2753_v24, %v2242_v23  ;;  %v2043_v41 = vor.u32 %v2703_v33, %v2042_v29  ;;  %v2034_v43 = vld [vmem:[%s4261_s1 + $0x210] sm:$0xf] }
  0x26   :  { %1437 = vmatpush.bf16.msrb.mxu2 %v2211_v42  ;;  %v3195_v25 = vld [vmem:[#allocation1 + $0x12] sm:$0xff]  ;;  %v3197_v26 = vld [vmem:[#allocation1] sm:$0xff]  ;;  %v3204_v31 = vld [vmem:[#allocation1 + $0x9] sm:$0xff]  ;;  %v2107_v42 = vor.u32 %v2719_v35, %v2106_v34  ;;  %vm1758_vm5 = vsmask.f32 1280 }
  0x27   :  { %1450 = vmatpush.bf16.msrb.mxu3 %v2275_v47  ;;  %v3202_v30 = vld [vmem:[#allocation1 + $0x1b] sm:$0xff]  ;;  %1367 = vmatmul.bf16.vlgmr.msra.gmra.mxu0 %v3197_v26  ;;  %v2735_v38 = vld [vmem:[%s4261_s1 + $0x324] sm:$0xf0]  ;;  %v2098_v47 = vld [vmem:[%s4261_s1 + $0x290] sm:$0xf] }
  0x28   :  { %1412 = vmatpush.bf16.msrb.mxu0 %v2075_v52  ;;  %v2170_v37 = vld [vmem:[%s4261_s1 + $0x320] sm:$0xf]  ;;  %1393 = vmatmul.bf16.vlgmr.msra.gmra.mxu2 %v3195_v25  ;;  %v2751_v40 = vld [vmem:[%s4261_s1 + $0x3a4] sm:$0xf0]  ;;  %v2701_v44 = vld [vmem:[%s4261_s1 + $0x214] sm:$0xf0] }
  0x29   :  { %1425 = vmatpush.bf16.msrb.mxu1 %v2139_v53  ;;  %v2234_v39 = vld [vmem:[%s4261_s1 + $0x3a0] sm:$0xf]  ;;  %1406 = vmatmul.bf16.vlgmr.msra.gmra.mxu3 %v3202_v30  ;;  %v2171_v45 = vor.u32 %v2735_v38, %v2170_v37  ;;  %v22_v46 = vld [vmem:[%s4262_s0 + $0x8] sm:$0x3f]  ;;  %v2717_v48 = vld [vmem:[%s4261_s1 + $0x294] sm:$0xf0]  ;;  %v2035_v58 = vor.u32 %v2701_v44, %v2034_v43 }
  0x2a   :  { %1438 = vmatpush.bf16.msrb.mxu2 %v2203_v55  ;;  %1380 = vmatmul.bf16.vlgmr.msra.gmra.mxu1 %v3204_v31  ;;  %v2162_v49 = vld [vmem:[%s4261_s1 + $0x310] sm:$0xf]  ;;  %v2235_v50 = vor.u32 %v2751_v40, %v2234_v39  ;;  %v2733_v51 = vld [vmem:[%s4261_s1 + $0x314] sm:$0xf0]  ;;  %v2026_v54 = vld [vmem:[%s4261_s1 + $0x200] sm:$0xf] }
  0x2b   :  { %1451 = vmatpush.bf16.msrb.mxu3 %v2267_v59  ;;  %v2226_v52 = vld [vmem:[%s4261_s1 + $0x390] sm:$0xf]  ;;  %v2749_v53 = vld [vmem:[%s4261_s1 + $0x394] sm:$0xf0]  ;;  %v2699_v55 = vld [vmem:[%s4261_s1 + $0x204] sm:$0xf0]  ;;  %v2099_v59 = vor.u32 %v2717_v48, %v2098_v47  ;;  %v2163_v0 = vor.u32 %v2733_v51, %v2162_v49 }
  0x2c   :  { %1413 = vmatpush.bf16.msrb.mxu0 %v2067_v1  ;;  %v2090_v56 = vld [vmem:[%s4261_s1 + $0x280] sm:$0xf]  ;;  %v2715_v57 = vld [vmem:[%s4261_s1 + $0x284] sm:$0xf0]  ;;  %v2338_v62 = vld [vmem:[%s4261_s1 + $0x470] sm:$0xf]  ;;  %v2027_v10 = vor.u32 %v2699_v55, %v2026_v54 }
  0x2d   :  { %1426 = vmatpush.bf16.msrb.mxu1 %v2131_v2  ;;  %v2154_v60 = vld [vmem:[%s4261_s1 + $0x300] sm:$0xf]  ;;  %v2731_v61 = vld [vmem:[%s4261_s1 + $0x304] sm:$0xf0]  ;;  %v3279_v63 = vld [vmem:[#allocation1 + $0x36] sm:$0xff]  ;;  %v2091_v11 = vor.u32 %v2715_v57, %v2090_v56 }
  0x2e   :  { %1439 = vmatpush.bf16.msrb.mxu2 %v2195_v4  ;;  %v3281_v1 = vld [vmem:[#allocation1 + $0x24] sm:$0xff]  ;;  %v3285_v3 = vld [vmem:[#allocation1 + $0x2d] sm:$0xff]  ;;  %v2227_v4 = vor.u32 %v2749_v53, %v2226_v52  ;;  %v2777_v5 = vld [vmem:[%s4261_s1 + $0x474] sm:$0xf0] }
  0x2f   :  { %1452 = vmatpush.bf16.msrb.mxu3 %v2259_v8  ;;  %v3283_v2 = vld [vmem:[#allocation1 + $0x3f] sm:$0xff]  ;;  %v2402_v6 = vld [vmem:[%s4261_s1 + $0x4f0] sm:$0xf]  ;;  %v2793_v7 = vld [vmem:[%s4261_s1 + $0x4f4] sm:$0xf0]  ;;  %v2339_v15 = vor.u32 %v2777_v5, %v2338_v62 }
  0x30   :  { %1414 = vmatpush.bf16.msrb.mxu0 %v2059_v13  ;;  %251 = vst [vmem:[#allocation1] ss:$9 sm:$0xff] %v22_v46  ;;  %v2466_v8 = vld [vmem:[%s4261_s1 + $0x570] sm:$0xf]  ;;  %v2809_v9 = vld [vmem:[%s4261_s1 + $0x574] sm:$0xf0]  ;;  %v2403_v18 = vor.u32 %v2793_v7, %v2402_v6  ;;  %vm1759_vm8 = vmand %vm1757_vm4, %vm1758_vm5 }
  0x31   :  { %1427 = vmatpush.bf16.msrb.mxu1 %v2123_v14  ;;  %v2218_v12 = vld [vmem:[%s4261_s1 + $0x380] sm:$0xf]  ;;  %v2747_v13 = vld [vmem:[%s4261_s1 + $0x384] sm:$0xf0]  ;;  %v2155_v14 = vor.u32 %v2731_v61, %v2154_v60  ;;  %v2825_v17 = vld [vmem:[%s4261_s1 + $0x5f4] sm:$0xf0]  ;;  %v2467_v19 = vor.u32 %v2809_v9, %v2466_v8 }
  0x32   :  { %1440 = vmatpush.bf16.msrb.mxu2 %v2187_v16  ;;  %v2530_v16 = vld [vmem:[%s4261_s1 + $0x5f0] sm:$0xf]  ;;  %v2775_v21 = vld [vmem:[%s4261_s1 + $0x464] sm:$0xf0]  ;;  %v2394_v22 = vld [vmem:[%s4261_s1 + $0x4e0] sm:$0xf]  ;;  %v2219_v23 = vor.u32 %v2747_v13, %v2218_v12 }
  0x33   :  { %1453 = vmatpush.bf16.msrb.mxu3 %v2251_v20  ;;  %v2330_v20 = vld [vmem:[%s4261_s1 + $0x460] sm:$0xf]  ;;  %v2791_v24 = vld [vmem:[%s4261_s1 + $0x4e4] sm:$0xf0]  ;;  %v2531_v29 = vor.u32 %v2825_v17, %v2530_v16  ;;  %v2322_v37 = vld [vmem:[%s4261_s1 + $0x450] sm:$0xf] }
  0x34   :  { %1415 = vmatpush.bf16.msrb.mxu0 %v2051_v27  ;;  %v2458_v27 = vld [vmem:[%s4261_s1 + $0x560] sm:$0xf]  ;;  %v2823_v34 = vld [vmem:[%s4261_s1 + $0x5e4] sm:$0xf0]  ;;  %v2395_v35 = vor.u32 %v2791_v24, %v2394_v22  ;;  %v2773_v38 = vld [vmem:[%s4261_s1 + $0x454] sm:$0xf0] }
  0x35   :  { %1428 = vmatpush.bf16.msrb.mxu1 %v2115_v28  ;;  %v2807_v28 = vld [vmem:[%s4261_s1 + $0x564] sm:$0xf0]  ;;  %v2522_v33 = vld [vmem:[%s4261_s1 + $0x5e0] sm:$0xf]  ;;  %v2386_v39 = vld [vmem:[%s4261_s1 + $0x4d0] sm:$0xf]  ;;  %v2323_v44 = vor.u32 %v2773_v38, %v2322_v37 }
  0x36   :  { %1441 = vmatpush.bf16.msrb.mxu2 %v2179_v32  ;;  %v2331_v32 = vor.u32 %v2775_v21, %v2330_v20  ;;  %v2789_v40 = vld [vmem:[%s4261_s1 + $0x4d4] sm:$0xf0]  ;;  %v2523_v43 = vor.u32 %v2823_v34, %v2522_v33  ;;  %v2314_v49 = vld [vmem:[%s4261_s1 + $0x440] sm:$0xf]  ;;  %v2787_v52 = vld [vmem:[%s4261_s1 + $0x4c4] sm:$0xf0] }
  0x37   :  { %1454 = vmatpush.bf16.msrb.mxu3 %v2243_v36  ;;  %v2459_v36 = vor.u32 %v2807_v28, %v2458_v27  ;;  %v2821_v46 = vld [vmem:[%s4261_s1 + $0x5d4] sm:$0xf0]  ;;  %v2387_v47 = vor.u32 %v2789_v40, %v2386_v39  ;;  %v2378_v51 = vld [vmem:[%s4261_s1 + $0x4c0] sm:$0xf]  ;;  %v2803_v54 = vld [vmem:[%s4261_s1 + $0x544] sm:$0xf0] }
  0x38   :  { %1416 = vmatpush.bf16.msrb.mxu0 %v2043_v41  ;;  %v2450_v41 = vld [vmem:[%s4261_s1 + $0x550] sm:$0xf]  ;;  %v2442_v53 = vld [vmem:[%s4261_s1 + $0x540] sm:$0xf]  ;;  %v2769_v62 = vld [vmem:[%s4261_s1 + $0x434] sm:$0xf0] }
  0x39   :  { %1429 = vmatpush.bf16.msrb.mxu1 %v2107_v42  ;;  %v2805_v42 = vld [vmem:[%s4261_s1 + $0x554] sm:$0xf0]  ;;  %v2506_v57 = vld [vmem:[%s4261_s1 + $0x5c0] sm:$0xf]  ;;  %v2443_v60 = vor.u32 %v2803_v54, %v2442_v53  ;;  %v2306_v61 = vld [vmem:[%s4261_s1 + $0x430] sm:$0xf] }
  0x3a   :  { %1442 = vmatpush.bf16.msrb.mxu2 %v2171_v45  ;;  %v2514_v45 = vld [vmem:[%s4261_s1 + $0x5d0] sm:$0xf]  ;;  %v2451_v48 = vor.u32 %v2805_v42, %v2450_v41  ;;  %v2801_v6 = vld [vmem:[%s4261_s1 + $0x534] sm:$0xf0]  ;;  %v2307_v8 = vor.u32 %v2769_v62, %v2306_v61  ;;  %v2298_v13 = vld [vmem:[%s4261_s1 + $0x420] sm:$0xf] }
  0x3b   :  { %1455 = vmatpush.bf16.msrb.mxu3 %v2235_v50  ;;  %v2771_v50 = vld [vmem:[%s4261_s1 + $0x444] sm:$0xf0]  ;;  %v2515_v55 = vor.u32 %v2821_v46, %v2514_v45  ;;  %v2434_v5 = vld [vmem:[%s4261_s1 + $0x530] sm:$0xf]  ;;  %v2426_v17 = vld [vmem:[%s4261_s1 + $0x520] sm:$0xf] }
  0x3c   :  { %1417 = vmatpush.bf16.msrb.mxu0 %v2035_v58  ;;  %v2315_v56 = vor.u32 %v2771_v50, %v2314_v49  ;;  %v2819_v58 = vld [vmem:[%s4261_s1 + $0x5c4] sm:$0xf0]  ;;  %v2498_v9 = vld [vmem:[%s4261_s1 + $0x5b0] sm:$0xf]  ;;  %v2435_v12 = vor.u32 %v2801_v6, %v2434_v5  ;;  %v2490_v21 = vld [vmem:[%s4261_s1 + $0x5a0] sm:$0xf] }
  0x3d   :  { %1430 = vmatpush.bf16.msrb.mxu1 %v2099_v59  ;;  %v2379_v59 = vor.u32 %v2787_v52, %v2378_v51  ;;  %v2507_v7 = vor.u32 %v2819_v58, %v2506_v57  ;;  %v2783_v16 = vld [vmem:[%s4261_s1 + $0x4a4] sm:$0xf0]  ;;  %v2290_v27 = vld [vmem:[%s4261_s1 + $0x410] sm:$0xf]  ;;  %v2765_v28 = vld [vmem:[%s4261_s1 + $0x414] sm:$0xf0] }
  0x3e   :  { %1443 = vmatpush.bf16.msrb.mxu2 %v2163_v0  ;;  %v2370_v0 = vld [vmem:[%s4261_s1 + $0x4b0] sm:$0xf]  ;;  %v2815_v22 = vld [vmem:[%s4261_s1 + $0x5a4] sm:$0xf0]  ;;  %v2797_v34 = vld [vmem:[%s4261_s1 + $0x514] sm:$0xf0]  ;;  %v2291_v37 = vor.u32 %v2765_v28, %v2290_v27 }
  0x3f   :  { %1456 = vmatpush.bf16.msrb.mxu3 %v2227_v4  ;;  %v2785_v4 = vld [vmem:[%s4261_s1 + $0x4b4] sm:$0xf0]  ;;  %v2418_v33 = vld [vmem:[%s4261_s1 + $0x510] sm:$0xf]  ;;  %v2282_v39 = vld [vmem:[%s4261_s1 + $0x400] sm:$0xf] }
  0x40   :  { %1418 = vmatpush.bf16.msrb.mxu0 %v2027_v10  ;;  %v2817_v10 = vld [vmem:[%s4261_s1 + $0x5b4] sm:$0xf0]  ;;  %v2763_v40 = vld [vmem:[%s4261_s1 + $0x404] sm:$0xf0]  ;;  %v2419_v42 = vor.u32 %v2797_v34, %v2418_v33  ;;  %v2410_v45 = vld [vmem:[%s4261_s1 + $0x500] sm:$0xf] }
  0x41   :  { %1431 = vmatpush.bf16.msrb.mxu1 %v2091_v11  ;;  %v2371_v11 = vor.u32 %v2785_v4, %v2370_v0  ;;  %v2813_v38 = vld [vmem:[%s4261_s1 + $0x594] sm:$0xf0]  ;;  %v2795_v46 = vld [vmem:[%s4261_s1 + $0x504] sm:$0xf0]  ;;  %v2626_v50 = vld [vmem:[%s4261_s1 + $0x6b0] sm:$0xf]  ;;  %v2283_v53 = vor.u32 %v2763_v40, %v2282_v39 }
  0x42   :  { %1444 = vmatpush.bf16.msrb.mxu2 %v2155_v14  ;;  %v2767_v14 = vld [vmem:[%s4261_s1 + $0x424] sm:$0xf0]  ;;  %v2849_v51 = vld [vmem:[%s4261_s1 + $0x6b4] sm:$0xf0]  ;;  %v2648_v52 = vld [vmem:[%s4261_s1 + $0x74] sm:$0xf]  ;;  %v2411_v58 = vor.u32 %v2795_v46, %v2410_v45 }
  0x43   :  { %1457 = vmatpush.bf16.msrb.mxu3 %v2219_v23  ;;  %1419 = vmatmul.bf16.vlgmr.msrb.gmra.mxu0 %v3281_v1  ;;  %v2299_v20 = vor.u32 %v2767_v14, %v2298_v13  ;;  %v1828_v54 = vld [vmem:[%s4261_s1 + $0x78] sm:$0xf0]  ;;  %v2664_v61 = vld [vmem:[%s4261_s1 + $0xf4] sm:$0xf]  ;;  %v2586_v5 = vld [vmem:[%s4261_s1 + $0x660] sm:$0xf] }
  0x44   :  { %1463 = vmatpush.bf16.msra.mxu0 %v2339_v15  ;;  %1432 = vmatmul.bf16.vlgmr.msrb.gmra.mxu1 %v3285_v3  ;;  %v2362_v15 = vld [vmem:[%s4261_s1 + $0x4a0] sm:$0xf]  ;;  %v1892_v62 = vld [vmem:[%s4261_s1 + $0xf8] sm:$0xf0]  ;;  %v1831_v0 = vor.u32 %v2648_v52, %v1828_v54  ;;  %v2839_v6 = vld [vmem:[%s4261_s1 + $0x664] sm:$0xf0] }
  0x45   :  { %1476 = vmatpush.bf16.msra.mxu1 %v2403_v18  ;;  %1445 = vmatmul.bf16.vlgmr.msrb.gmra.mxu2 %v3279_v63  ;;  %v2799_v18 = vld [vmem:[%s4261_s1 + $0x524] sm:$0xf0]  ;;  %v2363_v23 = vor.u32 %v2783_v16, %v2362_v15  ;;  %v1895_v13 = vor.u32 %v2664_v61, %v1892_v62  ;;  %v3534_v15 = vld [vmem:[#allocation1 + $0x1b] sm:$0xff]  ;;  %v2587_v16 = vor.u32 %v2839_v6, %v2586_v5  ;;  %v2644_v27 = vld [vmem:[%s4261_s1 + $0x54] sm:$0xf] }
  0x46   :  { %1489 = vmatpush.bf16.msra.mxu2 %v2467_v19  ;;  %1458 = vmatmul.bf16.vlgmr.msrb.gmra.mxu3 %v3283_v2  ;;  %v2499_v19 = vor.u32 %v2817_v10, %v2498_v9  ;;  %v2427_v24 = vor.u32 %v2799_v18, %v2426_v17  ;;  %v2646_v9 = vld [vmem:[%s4261_s1 + $0x64] sm:$0xf]  ;;  %v1820_v10 = vld [vmem:[%s4261_s1 + $0x68] sm:$0xf0]  ;;  %v1812_v28 = vld [vmem:[%s4261_s1 + $0x58] sm:$0xf0] }
  0x47   :  { %1502 = vmatpush.bf16.msra.mxu3 %v2531_v29  ;;  %v2354_v29 = vld [vmem:[%s4261_s1 + $0x490] sm:$0xf]  ;;  %v2662_v17 = vld [vmem:[%s4261_s1 + $0xe4] sm:$0xf]  ;;  %v1884_v18 = vld [vmem:[%s4261_s1 + $0xe8] sm:$0xf0] }
  0x48   :  { %1464 = vmatpush.bf16.msra.mxu0 %v2331_v32  ;;  %v2781_v32 = vld [vmem:[%s4261_s1 + $0x494] sm:$0xf0]  ;;  %v3532_v14 = vld [vmem:[#allocation1 + $0x9] sm:$0xff]  ;;  %v2660_v33 = vld [vmem:[%s4261_s1 + $0xd4] sm:$0xf] }
  0x49   :  { %1477 = vmatpush.bf16.msra.mxu1 %v2395_v35  ;;  %v2491_v35 = vor.u32 %v2815_v22, %v2490_v21  ;;  %v2355_v41 = vor.u32 %v2781_v32, %v2354_v29  ;;  %v2578_v21 = vld [vmem:[%s4261_s1 + $0x650] sm:$0xf]  ;;  %v2837_v22 = vld [vmem:[%s4261_s1 + $0x654] sm:$0xf0]  ;;  %v1887_v29 = vor.u32 %v2662_v17, %v1884_v18  ;;  %v1876_v34 = vld [vmem:[%s4261_s1 + $0xd8] sm:$0xf0] }
  0x4a   :  { %1490 = vmatpush.bf16.msra.mxu2 %v2459_v36  ;;  %v2482_v36 = vld [vmem:[%s4261_s1 + $0x590] sm:$0xf]  ;;  %v2579_v32 = vor.u32 %v2837_v22, %v2578_v21  ;;  %v2602_v39 = vld [vmem:[%s4261_s1 + $0x680] sm:$0xf]  ;;  %v2843_v40 = vld [vmem:[%s4261_s1 + $0x684] sm:$0xf0] }
  0x4b   :  { %1503 = vmatpush.bf16.msra.mxu3 %v2523_v43  ;;  %v2346_v43 = vld [vmem:[%s4261_s1 + $0x480] sm:$0xf]  ;;  %v2483_v49 = vor.u32 %v2813_v38, %v2482_v36  ;;  %v1815_v36 = vor.u32 %v2644_v27, %v1812_v28  ;;  %v2835_v38 = vld [vmem:[%s4261_s1 + $0x644] sm:$0xf0]  ;;  %v1956_v45 = vld [vmem:[%s4261_s1 + $0x178] sm:$0xf0] }
  0x4c   :  { %1465 = vmatpush.bf16.msra.mxu0 %v2323_v44  ;;  %v2779_v44 = vld [vmem:[%s4261_s1 + $0x484] sm:$0xf0]  ;;  %v2833_v52 = vld [vmem:[%s4261_s1 + $0x634] sm:$0xf0]  ;;  %v2640_v54 = vld [vmem:[%s4261_s1 + $0x34] sm:$0xf] }
  0x4d   :  { %1478 = vmatpush.bf16.msra.mxu1 %v2387_v47  ;;  %v2594_v47 = vld [vmem:[%s4261_s1 + $0x670] sm:$0xf]  ;;  %v2347_v57 = vor.u32 %v2779_v44, %v2346_v43  ;;  %v1879_v43 = vor.u32 %v2660_v33, %v1876_v34  ;;  %v2680_v44 = vld [vmem:[%s4261_s1 + $0x174] sm:$0xf]  ;;  %v1860_v61 = vld [vmem:[%s4261_s1 + $0xb8] sm:$0xf0] }
  0x4e   :  { %1491 = vmatpush.bf16.msra.mxu2 %v2451_v48  ;;  %v2841_v48 = vld [vmem:[%s4261_s1 + $0x674] sm:$0xf0]  ;;  %v2638_v6 = vld [vmem:[%s4261_s1 + $0x24] sm:$0xf]  ;;  %v1852_v17 = vld [vmem:[%s4261_s1 + $0xa8] sm:$0xf0] }
  0x4f   :  { %1504 = vmatpush.bf16.msra.mxu3 %v2515_v55  ;;  %v2474_v55 = vld [vmem:[%s4261_s1 + $0x580] sm:$0xf]  ;;  %v3648_v18 = vld [vmem:[#allocation1 + $0x2d] sm:$0xff]  ;;  %v2829_v21 = vld [vmem:[%s4261_s1 + $0x614] sm:$0xf0] }
  0x50   :  { %1466 = vmatpush.bf16.msra.mxu0 %v2315_v56  ;;  %v2811_v56 = vld [vmem:[%s4261_s1 + $0x584] sm:$0xf0]  ;;  %v2674_v28 = vld [vmem:[%s4261_s1 + $0x144] sm:$0xf]  ;;  %v2652_v33 = vld [vmem:[%s4261_s1 + $0x94] sm:$0xf] }
  0x51   :  { %1479 = vmatpush.bf16.msra.mxu1 %v2379_v59  ;;  %v2595_v59 = vor.u32 %v2841_v48, %v2594_v47  ;;  %v2475_v4 = vor.u32 %v2811_v56, %v2474_v55  ;;  %v2658_v47 = vld [vmem:[%s4261_s1 + $0xc4] sm:$0xf]  ;;  %v1868_v48 = vld [vmem:[%s4261_s1 + $0xc8] sm:$0xf0]  ;;  %v1796_v55 = vld [vmem:[%s4261_s1 + $0x38] sm:$0xf0] }
  0x52   :  { %1492 = vmatpush.bf16.msra.mxu2 %v2443_v60  ;;  %v2627_v60 = vor.u32 %v2849_v51, %v2626_v50  ;;  %v2562_v51 = vld [vmem:[%s4261_s1 + $0x630] sm:$0xf]  ;;  %v1871_v56 = vor.u32 %v2658_v47, %v1868_v48  ;;  %v1799_v62 = vor.u32 %v2640_v54, %v1796_v55  ;;  %v1844_v34 = vld [vmem:[%s4261_s1 + $0x98] sm:$0xf0]  ;;  %vm1760_vm9 = vmor %vm1759_vm8, %vm1756_vm7 }
  0x53   :  { %1505 = vmatpush.bf16.msra.mxu3 %v2507_v7  ;;  %v2618_v7 = vld [vmem:[%s4261_s1 + $0x6a0] sm:$0xf]  ;;  %v2084_v47 = vld [vmem:[%s4261_s1 + $0x278] sm:$0xf0] }
  0x54   :  { %1467 = vmatpush.bf16.msra.mxu0 %v2307_v8  ;;  %v2847_v8 = vld [vmem:[%s4261_s1 + $0x6a4] sm:$0xf0]  ;;  %v2148_v54 = vld [vmem:[%s4261_s1 + $0x2f8] sm:$0xf0] }
  0x55   :  { %1480 = vmatpush.bf16.msra.mxu1 %v2371_v11  ;;  %v3528_v11 = vld [vmem:[#allocation1] sm:$0xff] }
  0x56   :  { %1493 = vmatpush.bf16.msra.mxu2 %v2435_v12  ;;  %v3530_v12 = vld [vmem:[#allocation1 + $0x12] sm:$0xff] }
  0x57   :  { %1506 = vmatpush.bf16.msra.mxu3 %v2499_v19  ;;  %v2619_v19 = vor.u32 %v2847_v8, %v2618_v7  ;;  %v1788_v7 = vld [vmem:[%s4261_s1 + $0x28] sm:$0xf0] }
  0x58   :  { %1468 = vmatpush.bf16.msra.mxu0 %v2299_v20  ;;  %v1823_v20 = vor.u32 %v2646_v9, %v1820_v10  ;;  %v2676_v9 = vld [vmem:[%s4261_s1 + $0x154] sm:$0xf]  ;;  %v1940_v10 = vld [vmem:[%s4261_s1 + $0x158] sm:$0xf0] }
  0x59   :  { %1481 = vmatpush.bf16.msra.mxu1 %v2363_v23  ;;  %v2610_v23 = vld [vmem:[%s4261_s1 + $0x690] sm:$0xf]  ;;  %v1943_v22 = vor.u32 %v2676_v9, %v1940_v10 }
  0x5a   :  { %1494 = vmatpush.bf16.msra.mxu2 %v2427_v24  ;;  %v2845_v24 = vld [vmem:[%s4261_s1 + $0x694] sm:$0xf0] }
  0x5b   :  { %1507 = vmatpush.bf16.msra.mxu3 %v2491_v35  ;;  %v2611_v35 = vor.u32 %v2845_v24, %v2610_v23  ;;  %v2636_v23 = vld [vmem:[%s4261_s1 + $0x14] sm:$0xf]  ;;  %v1780_v24 = vld [vmem:[%s4261_s1 + $0x18] sm:$0xf0] }
  0x5c   :  { %1469 = vmatpush.bf16.msra.mxu0 %v2291_v37  ;;  %v2570_v37 = vld [vmem:[%s4261_s1 + $0x640] sm:$0xf] }
  0x5d   :  { %1482 = vmatpush.bf16.msra.mxu1 %v2355_v41  ;;  %v2642_v41 = vld [vmem:[%s4261_s1 + $0x44] sm:$0xf]  ;;  %v2571_v46 = vor.u32 %v2835_v38, %v2570_v37  ;;  %v2827_v37 = vld [vmem:[%s4261_s1 + $0x604] sm:$0xf0] }
  0x5e   :  { %1495 = vmatpush.bf16.msra.mxu2 %v2419_v42  ;;  %v1804_v42 = vld [vmem:[%s4261_s1 + $0x48] sm:$0xf0]  ;;  %v2634_v38 = vld [vmem:[%s4261_s1 + $0x4] sm:$0xf] }
  0x5f   :  { %1508 = vmatpush.bf16.msra.mxu3 %v2483_v49  ;;  %v2603_v49 = vor.u32 %v2843_v40, %v2602_v39  ;;  %v1807_v50 = vor.u32 %v2642_v41, %v1804_v42  ;;  %v1772_v39 = vld [vmem:[%s4261_s1 + $0x8] sm:$0xf0]  ;;  %v2672_v41 = vld [vmem:[%s4261_s1 + $0x134] sm:$0xf] }
  0x60   :  { %1470 = vmatpush.bf16.msra.mxu0 %v2283_v53  ;;  %v1959_v53 = vor.u32 %v2680_v44, %v1956_v45  ;;  %v2696_v42 = vld [vmem:[%s4261_s1 + $0x1f4] sm:$0xf]  ;;  %v1847_v44 = vor.u32 %v2652_v33, %v1844_v34  ;;  %v1924_v45 = vld [vmem:[%s4261_s1 + $0x138] sm:$0xf0]  ;;  %v1996_v33 = vld [vmem:[%s4261_s1 + $0x1c8] sm:$0xf0] }
  0x61   :  { %1483 = vmatpush.bf16.msra.mxu1 %v2347_v57  ;;  %v2678_v57 = vld [vmem:[%s4261_s1 + $0x164] sm:$0xf]  ;;  %v1927_v55 = vor.u32 %v2672_v41, %v1924_v45  ;;  %v1900_v34 = vld [vmem:[%s4261_s1 + $0x108] sm:$0xf0]  ;;  %v1988_v45 = vld [vmem:[%s4261_s1 + $0x1b8] sm:$0xf0] }
  0x62   :  { %1496 = vmatpush.bf16.msra.mxu2 %v2411_v58  ;;  %v1948_v58 = vld [vmem:[%s4261_s1 + $0x168] sm:$0xf0]  ;;  %v2722_v41 = vld [vmem:[%s4261_s1 + $0x2c4] sm:$0xf] }
  0x63   :  { %1509 = vmatpush.bf16.msra.mxu3 %v2475_v4  ;;  %1471 = vmatmul.bf16.vlgmr.msra.gmra.mxu0 %v3528_v11  ;;  %v2831_v4 = vld [vmem:[%s4261_s1 + $0x624] sm:$0xf0]  ;;  %v1951_v5 = vor.u32 %v2678_v57, %v1948_v58  ;;  %v2670_v57 = vld [vmem:[%s4261_s1 + $0x124] sm:$0xf] }
  0x64   :  { %1515 = vmatpush.bf16.msrb.mxu0 %v2595_v59  ;;  %1484 = vmatmul.bf16.vlgmr.msra.gmra.mxu1 %v3532_v14  ;;  %v2563_v59 = vor.u32 %v2833_v52, %v2562_v51  ;;  %v1775_v51 = vor.u32 %v2634_v38, %v1772_v39  ;;  %v2694_v58 = vld [vmem:[%s4261_s1 + $0x1e4] sm:$0xf]  ;;  %v2744_v38 = vld [vmem:[%s4261_s1 + $0x374] sm:$0xf]  ;;  %v2212_v39 = vld [vmem:[%s4261_s1 + $0x378] sm:$0xf0] }
  0x65   :  { %1532 = vmatpush.bf16.msrb.mxu1 %v2627_v60  ;;  %1497 = vmatmul.bf16.vlgmr.msra.gmra.mxu2 %v3530_v12  ;;  %v2656_v60 = vld [vmem:[%s4261_s1 + $0xb4] sm:$0xf] }
  0x66   :  { %1541 = vmatpush.bf16.msrb.mxu2 %v1831_v0  ;;  %1510 = vmatmul.bf16.vlgmr.msra.gmra.mxu3 %v3534_v15  ;;  %v2554_v0 = vld [vmem:[%s4261_s1 + $0x620] sm:$0xf]  ;;  %v1863_v8 = vor.u32 %v2656_v60, %v1860_v61  ;;  %v1916_v61 = vld [vmem:[%s4261_s1 + $0x128] sm:$0xf0] }
  0x67   :  { %1554 = vmatpush.bf16.msrb.mxu3 %v1895_v13  ;;  %v2555_v13 = vor.u32 %v2831_v4, %v2554_v0  ;;  %v2076_v0 = vld [vmem:[%s4261_s1 + $0x268] sm:$0xf0]  ;;  %v3736_v4 = vld [vmem:[#allocation1 + $0x24] sm:$0xff]  ;;  %v1919_v9 = vor.u32 %v2670_v57, %v1916_v61 }
  0x68   :  { %1516 = vmatpush.bf16.msrb.mxu0 %v2587_v16  ;;  %v2654_v16 = vld [vmem:[%s4261_s1 + $0xa4] sm:$0xf]  ;;  %v1980_v57 = vld [vmem:[%s4261_s1 + $0x1a8] sm:$0xf0] }
  0x69   :  { %1533 = vmatpush.bf16.msrb.mxu1 %v2619_v19  ;;  %v1791_v19 = vor.u32 %v2638_v6, %v1788_v7  ;;  %v1855_v27 = vor.u32 %v2654_v16, %v1852_v17  ;;  %v2726_v7 = vld [vmem:[%s4261_s1 + $0x2e4] sm:$0xf]  ;;  %v2692_v16 = vld [vmem:[%s4261_s1 + $0x1d4] sm:$0xf]  ;;  %v2004_v17 = vld [vmem:[%s4261_s1 + $0x1d8] sm:$0xf0] }
  0x6a   :  { %1542 = vmatpush.bf16.msrb.mxu2 %v1823_v20  ;;  %v2546_v20 = vld [vmem:[%s4261_s1 + $0x610] sm:$0xf] }
  0x6b   :  { %1555 = vmatpush.bf16.msrb.mxu3 %v1887_v29  ;;  %v1932_v29 = vld [vmem:[%s4261_s1 + $0x148] sm:$0xf0] }
  0x6c   :  { %1517 = vmatpush.bf16.msrb.mxu0 %v2579_v32  ;;  %v2547_v32 = vor.u32 %v2829_v21, %v2546_v20  ;;  %v1935_v40 = vor.u32 %v2674_v28, %v1932_v29  ;;  %v2708_v20 = vld [vmem:[%s4261_s1 + $0x254] sm:$0xf]  ;;  %v2068_v21 = vld [vmem:[%s4261_s1 + $0x258] sm:$0xf0] }
  0x6d   :  { %1534 = vmatpush.bf16.msrb.mxu1 %v2611_v35  ;;  %v2538_v35 = vld [vmem:[%s4261_s1 + $0x600] sm:$0xf]  ;;  %v2071_v29 = vor.u32 %v2708_v20, %v2068_v21  ;;  %v2188_v20 = vld [vmem:[%s4261_s1 + $0x348] sm:$0xf0] }
  0x6e   :  { %1543 = vmatpush.bf16.msrb.mxu2 %v1815_v36  ;;  %v1783_v36 = vor.u32 %v2636_v23, %v1780_v24  ;;  %v2539_v48 = vor.u32 %v2827_v37, %v2538_v35  ;;  %v2007_v23 = vor.u32 %v2692_v16, %v2004_v17  ;;  %v2724_v24 = vld [vmem:[%s4261_s1 + $0x2d4] sm:$0xf]  ;;  %v2706_v35 = vld [vmem:[%s4261_s1 + $0x244] sm:$0xf] }
  0x6f   :  { %1556 = vmatpush.bf16.msrb.mxu3 %v1879_v43  ;;  %v2020_v43 = vld [vmem:[%s4261_s1 + $0x1f8] sm:$0xf0]  ;;  %v2700_v16 = vld [vmem:[%s4261_s1 + $0x214] sm:$0xf] }
  0x70   :  { %1518 = vmatpush.bf16.msrb.mxu0 %v2571_v46  ;;  %v2712_v46 = vld [vmem:[%s4261_s1 + $0x274] sm:$0xf]  ;;  %v2023_v52 = vor.u32 %v2696_v42, %v2020_v43 }
  0x71   :  { %1535 = vmatpush.bf16.msrb.mxu1 %v2603_v49  ;;  %v2650_v49 = vld [vmem:[%s4261_s1 + $0x84] sm:$0xf] }
  0x72   :  { %1544 = vmatpush.bf16.msrb.mxu2 %v1807_v50  ;;  %v1836_v50 = vld [vmem:[%s4261_s1 + $0x88] sm:$0xf0] }
  0x73   :  { %1557 = vmatpush.bf16.msrb.mxu3 %v1871_v56  ;;  %v2087_v56 = vor.u32 %v2712_v46, %v2084_v47  ;;  %v1839_v60 = vor.u32 %v2650_v49, %v1836_v50  ;;  %v2215_v46 = vor.u32 %v2744_v38, %v2212_v39  ;;  %v2704_v47 = vld [vmem:[%s4261_s1 + $0x234] sm:$0xf]  ;;  %v2742_v50 = vld [vmem:[%s4261_s1 + $0x364] sm:$0xf]  ;;  %v2340_v39 = vld [vmem:[%s4261_s1 + $0x478] sm:$0xf0] }
  0x74   :  { %1519 = vmatpush.bf16.msrb.mxu0 %v2563_v59  ;;  %2632 = vmatmul.msk.bf16.vlgmr.msrb.gmra.mxu1 %vm1356_vm0, %v3648_v18  ;;  %v2012_v59 = vld [vmem:[%s4261_s1 + $0x1e8] sm:$0xf0]  ;;  %v2776_v38 = vld [vmem:[%s4261_s1 + $0x474] sm:$0xf] }
  0x75   :  { %1567 = vmatpush.bf16.msra.mxu1 %v1959_v53  ;;  %v2728_v53 = vld [vmem:[%s4261_s1 + $0x2f4] sm:$0xf]  ;;  %v2015_v6 = vor.u32 %v2694_v58, %v2012_v59  ;;  %v2702_v59 = vld [vmem:[%s4261_s1 + $0x224] sm:$0xf] }
  0x76   :  { %1545 = vmatpush.bf16.msrb.mxu2 %v1799_v62  ;;  %v2710_v62 = vld [vmem:[%s4261_s1 + $0x264] sm:$0xf] }
  0x77   :  { %1558 = vmatpush.bf16.msrb.mxu3 %v1863_v8  ;;  %v2140_v8 = vld [vmem:[%s4261_s1 + $0x2e8] sm:$0xf0]  ;;  %v2079_v10 = vor.u32 %v2710_v62, %v2076_v0  ;;  %v2740_v62 = vld [vmem:[%s4261_s1 + $0x354] sm:$0xf]  ;;  %v2196_v0 = vld [vmem:[%s4261_s1 + $0x358] sm:$0xf0] }
  0x78   :  { %1520 = vmatpush.bf16.msrb.mxu0 %v2555_v13  ;;  %v2668_v13 = vld [vmem:[%s4261_s1 + $0x114] sm:$0xf] }
  0x79   :  { %1568 = vmatpush.bf16.msra.mxu1 %v1951_v5  ;;  %v2151_v5 = vor.u32 %v2728_v53, %v2148_v54  ;;  %v2720_v53 = vld [vmem:[%s4261_s1 + $0x2b4] sm:$0xf]  ;;  %v2116_v54 = vld [vmem:[%s4261_s1 + $0x2b8] sm:$0xf0] }
  0x7a   :  { %1546 = vmatpush.bf16.msrb.mxu2 %v1791_v19  ;;  %v1908_v19 = vld [vmem:[%s4261_s1 + $0x118] sm:$0xf0]  ;;  %v2119_v61 = vor.u32 %v2720_v53, %v2116_v54  ;;  %v2774_v53 = vld [vmem:[%s4261_s1 + $0x464] sm:$0xf]  ;;  %v2332_v54 = vld [vmem:[%s4261_s1 + $0x468] sm:$0xf0] }
  0x7b   :  { %1559 = vmatpush.bf16.msrb.mxu3 %v1855_v27  ;;  %v2132_v27 = vld [vmem:[%s4261_s1 + $0x2d8] sm:$0xf0]  ;;  %v1911_v28 = vor.u32 %v2668_v13, %v1908_v19  ;;  %v2199_v13 = vor.u32 %v2740_v62, %v2196_v0  ;;  %v2738_v19 = vld [vmem:[%s4261_s1 + $0x344] sm:$0xf]  ;;  %v2756_v62 = vld [vmem:[%s4261_s1 + $0x3d4] sm:$0xf] }
  0x7c   :  { %1521 = vmatpush.bf16.msrb.mxu0 %v2547_v32  ;;  %v2666_v32 = vld [vmem:[%s4261_s1 + $0x104] sm:$0xf]  ;;  %v2135_v37 = vor.u32 %v2724_v24, %v2132_v27  ;;  %v2260_v0 = vld [vmem:[%s4261_s1 + $0x3d8] sm:$0xf0] }
  0x7d   :  { %1569 = vmatpush.bf16.msra.mxu1 %v1943_v22  ;;  %v2143_v22 = vor.u32 %v2726_v7, %v2140_v8  ;;  %v1903_v42 = vor.u32 %v2666_v32, %v1900_v34  ;;  %v2108_v7 = vld [vmem:[%s4261_s1 + $0x2a8] sm:$0xf0]  ;;  %v2682_v24 = vld [vmem:[%s4261_s1 + $0x184] sm:$0xf]  ;;  %v2760_v34 = vld [vmem:[%s4261_s1 + $0x3f4] sm:$0xf] }
  0x7e   :  { %1547 = vmatpush.bf16.msrb.mxu2 %v1783_v36  ;;  %v2060_v36 = vld [vmem:[%s4261_s1 + $0x248] sm:$0xf0] }
  0x7f   :  { %1560 = vmatpush.bf16.msrb.mxu3 %v1847_v44  ;;  %v2063_v43 = vor.u32 %v2706_v35, %v2060_v36  ;;  %v2688_v44 = vld [vmem:[%s4261_s1 + $0x1b4] sm:$0xf]  ;;  %v2028_v32 = vld [vmem:[%s4261_s1 + $0x208] sm:$0xf0]  ;;  %v2276_v35 = vld [vmem:[%s4261_s1 + $0x3f8] sm:$0xf0] }
  0x80   :  { %1522 = vmatpush.bf16.msrb.mxu0 %v2539_v48  ;;  %v2052_v48 = vld [vmem:[%s4261_s1 + $0x238] sm:$0xf0] }
  0x81   :  { %1570 = vmatpush.bf16.msra.mxu1 %v1935_v40 }
  0x82   :  { %1548 = vmatpush.bf16.msrb.mxu2 %v1775_v51  ;;  %v2204_v51 = vld [vmem:[%s4261_s1 + $0x368] sm:$0xf0] }
  0x83   :  { %1561 = vmatpush.bf16.msrb.mxu3 %v1839_v60  ;;  %1523 = vmatmul.bf16.vlgmr.msrb.gmra.mxu0 %v3736_v4  ;;  %v2207_v58 = vor.u32 %v2742_v50, %v2204_v51  ;;  %v2044_v60 = vld [vmem:[%s4261_s1 + $0x228] sm:$0xf0] }
  0x84   :  { %1580 = vmatpush.bf16.msra.mxu0 %v2023_v52  ;;  %v1991_v52 = vor.u32 %v2688_v44, %v1988_v45  ;;  %v2047_v8 = vor.u32 %v2702_v59, %v2044_v60  ;;  %v2792_v44 = vld [vmem:[%s4261_s1 + $0x4f4] sm:$0xf]  ;;  %v2404_v45 = vld [vmem:[%s4261_s1 + $0x4f8] sm:$0xf0]  ;;  %v2268_v50 = vld [vmem:[%s4261_s1 + $0x3e8] sm:$0xf0]  ;;  %v2335_v60 = vor.u32 %v2774_v53, %v2332_v54 }
  0x85   :  { %1571 = vmatpush.bf16.msra.mxu1 %v1927_v55  ;;  %1549 = vmatmul.bf16.vlgmr.msrb.gmra.mxu2 %v3197_v26  ;;  %v2690_v26 = vld [vmem:[%s4261_s1 + $0x1c4] sm:$0xf]  ;;  %v2055_v55 = vor.u32 %v2704_v47, %v2052_v48  ;;  %v2343_v47 = vor.u32 %v2776_v38, %v2340_v39  ;;  %v2460_v39 = vld [vmem:[%s4261_s1 + $0x568] sm:$0xf0] }
  0x86   :  { %1593 = vmatpush.bf16.msra.mxu2 %v2087_v56  ;;  %1562 = vmatmul.bf16.vlgmr.msrb.gmra.mxu3 %v3204_v31  ;;  %v1999_v40 = vor.u32 %v2690_v26, %v1996_v33  ;;  %v2124_v31 = vld [vmem:[%s4261_s1 + $0x2c8] sm:$0xf0]  ;;  %v2686_v56 = vld [vmem:[%s4261_s1 + $0x1a4] sm:$0xf]  ;;  %v2191_v26 = vor.u32 %v2738_v19, %v2188_v20  ;;  %v2736_v33 = vld [vmem:[%s4261_s1 + $0x334] sm:$0xf] }
  0x87   :  { %1606 = vmatpush.bf16.msra.mxu3 %v2151_v5  ;;  %v2127_v49 = vor.u32 %v2722_v41, %v2124_v31  ;;  %v1983_v5 = vor.u32 %v2686_v56, %v1980_v57  ;;  %v2714_v41 = vld [vmem:[%s4261_s1 + $0x284] sm:$0xf]  ;;  %v2092_v31 = vld [vmem:[%s4261_s1 + $0x288] sm:$0xf0] }
  0x88   :  { %1581 = vmatpush.bf16.msra.mxu0 %v2015_v6  ;;  %v2718_v6 = vld [vmem:[%s4261_s1 + $0x2a4] sm:$0xf]  ;;  %v2095_v51 = vor.u32 %v2714_v41, %v2092_v31  ;;  %v2156_v19 = vld [vmem:[%s4261_s1 + $0x308] sm:$0xf0]  ;;  %v2784_v41 = vld [vmem:[%s4261_s1 + $0x4b4] sm:$0xf] }
  0x89   :  { %1572 = vmatpush.bf16.msra.mxu1 %v1919_v9  ;;  %v2684_v9 = vld [vmem:[%s4261_s1 + $0x194] sm:$0xf]  ;;  %v2111_v17 = vor.u32 %v2718_v6, %v2108_v7  ;;  %v2734_v48 = vld [vmem:[%s4261_s1 + $0x324] sm:$0xf]  ;;  %v2324_v7 = vld [vmem:[%s4261_s1 + $0x458] sm:$0xf0] }
  0x8a   :  { %1594 = vmatpush.bf16.msra.mxu2 %v2079_v10  ;;  %v1972_v10 = vld [vmem:[%s4261_s1 + $0x198] sm:$0xf0]  ;;  %v2790_v57 = vld [vmem:[%s4261_s1 + $0x4e4] sm:$0xf]  ;;  %v2772_v6 = vld [vmem:[%s4261_s1 + $0x454] sm:$0xf] }
  0x8b   :  { %1607 = vmatpush.bf16.msra.mxu3 %v2143_v22  ;;  %v1975_v21 = vor.u32 %v2684_v9, %v1972_v10  ;;  %v2716_v22 = vld [vmem:[%s4261_s1 + $0x294] sm:$0xf]  ;;  %v2263_v9 = vor.u32 %v2756_v62, %v2260_v0  ;;  %v2770_v20 = vld [vmem:[%s4261_s1 + $0x444] sm:$0xf]  ;;  %v2372_v31 = vld [vmem:[%s4261_s1 + $0x4b8] sm:$0xf0] }
  0x8c   :  { %1582 = vmatpush.bf16.msra.mxu0 %v2007_v23  ;;  %v2100_v23 = vld [vmem:[%s4261_s1 + $0x298] sm:$0xf0]  ;;  %v2788_v10 = vld [vmem:[%s4261_s1 + $0x4d4] sm:$0xf]  ;;  %v2806_v38 = vld [vmem:[%s4261_s1 + $0x564] sm:$0xf] }
  0x8d   :  { %1573 = vmatpush.bf16.msra.mxu1 %v1911_v28  ;;  %v1964_v28 = vld [vmem:[%s4261_s1 + $0x188] sm:$0xf0]  ;;  %v2103_v36 = vor.u32 %v2716_v22, %v2100_v23  ;;  %v2808_v23 = vld [vmem:[%s4261_s1 + $0x574] sm:$0xf]  ;;  %v2782_v53 = vld [vmem:[%s4261_s1 + $0x4a4] sm:$0xf] }
  0x8e   :  { %1595 = vmatpush.bf16.msra.mxu2 %v2071_v29  ;;  %v2698_v29 = vld [vmem:[%s4261_s1 + $0x204] sm:$0xf]  ;;  %v2364_v54 = vld [vmem:[%s4261_s1 + $0x4a8] sm:$0xf0] }
  0x8f   :  { %1608 = vmatpush.bf16.msra.mxu3 %v2135_v37  ;;  %v2180_v37 = vld [vmem:[%s4261_s1 + $0x338] sm:$0xf0]  ;;  %v2802_v62 = vld [vmem:[%s4261_s1 + $0x544] sm:$0xf]  ;;  %v2444_v0 = vld [vmem:[%s4261_s1 + $0x548] sm:$0xf0] }
  0x90   :  { %1583 = vmatpush.bf16.msra.mxu0 %v1999_v40  ;;  %v1967_v40 = vor.u32 %v2682_v24, %v1964_v28  ;;  %v2380_v28 = vld [vmem:[%s4261_s1 + $0x4c8] sm:$0xf0] }
  0x91   :  { %1574 = vmatpush.bf16.msra.mxu1 %v1903_v42  ;;  %v2031_v42 = vor.u32 %v2698_v29, %v2028_v32 }
  0x92   :  { %1596 = vmatpush.bf16.msra.mxu2 %v2063_v43  ;;  %v2279_v43 = vor.u32 %v2760_v34, %v2276_v35  ;;  %v2768_v35 = vld [vmem:[%s4261_s1 + $0x434] sm:$0xf] }
  0x93   :  { %1609 = vmatpush.bf16.msra.mxu3 %v2127_v49  ;;  %v2758_v49 = vld [vmem:[%s4261_s1 + $0x3e4] sm:$0xf] }
  0x94   :  { %1584 = vmatpush.bf16.msra.mxu0 %v1991_v52  ;;  %1575 = vmatmul.bf16.vlgmr.msra.gmra.mxu1 %v3195_v25  ;;  %v2036_v25 = vld [vmem:[%s4261_s1 + $0x218] sm:$0xf0]  ;;  %v2172_v52 = vld [vmem:[%s4261_s1 + $0x328] sm:$0xf0]  ;;  %v2271_v56 = vor.u32 %v2758_v49, %v2268_v50  ;;  %v2804_v49 = vld [vmem:[%s4261_s1 + $0x554] sm:$0xf] }
  0x95   :  { %1619 = vmatpush.bf16.msrb.mxu1 %v2215_v46  ;;  %v2039_v27 = vor.u32 %v2700_v16, %v2036_v25  ;;  %v2183_v46 = vor.u32 %v2736_v33, %v2180_v37  ;;  %v2175_v59 = vor.u32 %v2734_v48, %v2172_v52  ;;  %v2327_v25 = vor.u32 %v2772_v6, %v2324_v7  ;;  %v2244_v33 = vld [vmem:[%s4261_s1 + $0x3b8] sm:$0xf0]  ;;  %v2780_v6 = vld [vmem:[%s4261_s1 + $0x494] sm:$0xf] }
  0x96   :  { %1597 = vmatpush.bf16.msra.mxu2 %v2055_v55  ;;  %v2407_v55 = vor.u32 %v2792_v44, %v2404_v45  ;;  %v2236_v44 = vld [vmem:[%s4261_s1 + $0x3a8] sm:$0xf0]  ;;  %v2463_v45 = vor.u32 %v2806_v38, %v2460_v39  ;;  %v2375_v48 = vor.u32 %v2784_v41, %v2372_v31  ;;  %v2452_v50 = vld [vmem:[%s4261_s1 + $0x558] sm:$0xf0]  ;;  %v2822_v38 = vld [vmem:[%s4261_s1 + $0x5e4] sm:$0xf] }
  0x97   :  { %1610 = vmatpush.bf16.msra.mxu3 %v2119_v61  ;;  %v2732_v61 = vld [vmem:[%s4261_s1 + $0x314] sm:$0xf]  ;;  %v2356_v7 = vld [vmem:[%s4261_s1 + $0x498] sm:$0xf0]  ;;  %v2524_v39 = vld [vmem:[%s4261_s1 + $0x5e8] sm:$0xf0] }
  0x98   :  { %1585 = vmatpush.bf16.msra.mxu0 %v1983_v5  ;;  %v2164_v5 = vld [vmem:[%s4261_s1 + $0x318] sm:$0xf0]  ;;  %v2798_v41 = vld [vmem:[%s4261_s1 + $0x524] sm:$0xf]  ;;  %v2428_v31 = vld [vmem:[%s4261_s1 + $0x528] sm:$0xf0] }
  0x99   :  { %1620 = vmatpush.bf16.msrb.mxu1 %v2207_v58  ;;  %v2396_v58 = vld [vmem:[%s4261_s1 + $0x4e8] sm:$0xf0]  ;;  %v2167_v16 = vor.u32 %v2732_v61, %v2164_v5  ;;  %v2367_v61 = vor.u32 %v2782_v53, %v2364_v54  ;;  %v2431_v53 = vor.u32 %v2798_v41, %v2428_v31  ;;  %v2820_v54 = vld [vmem:[%s4261_s1 + $0x5d4] sm:$0xf]  ;;  %v2484_v31 = vld [vmem:[%s4261_s1 + $0x598] sm:$0xf0] }
  0x9a   :  { %1598 = vmatpush.bf16.msra.mxu2 %v2047_v8  ;;  %v2399_v8 = vor.u32 %v2790_v57, %v2396_v58  ;;  %v2228_v57 = vld [vmem:[%s4261_s1 + $0x398] sm:$0xf0]  ;;  %v2764_v58 = vld [vmem:[%s4261_s1 + $0x414] sm:$0xf] }
  0x9b   :  { %1611 = vmatpush.bf16.msra.mxu3 %v2111_v17  ;;  %v2252_v17 = vld [vmem:[%s4261_s1 + $0x3c8] sm:$0xf0]  ;;  %v2812_v41 = vld [vmem:[%s4261_s1 + $0x594] sm:$0xf] }
  0x9c   :  { %1586 = vmatpush.bf16.msra.mxu0 %v1975_v21  ;;  %v2316_v21 = vld [vmem:[%s4261_s1 + $0x448] sm:$0xf0] }
  0x9d   :  { %1621 = vmatpush.bf16.msrb.mxu1 %v2199_v13  ;;  %v2388_v13 = vld [vmem:[%s4261_s1 + $0x4d8] sm:$0xf0]  ;;  %v2319_v32 = vor.u32 %v2770_v20, %v2316_v21  ;;  %v2359_v21 = vor.u32 %v2780_v6, %v2356_v7  ;;  %v2818_v6 = vld [vmem:[%s4261_s1 + $0x5c4] sm:$0xf]  ;;  %v2508_v7 = vld [vmem:[%s4261_s1 + $0x5c8] sm:$0xf0] }
  0x9e   :  { %1599 = vmatpush.bf16.msra.mxu2 %v2039_v27  ;;  %v2391_v22 = vor.u32 %v2788_v10, %v2388_v13  ;;  %v2786_v27 = vld [vmem:[%s4261_s1 + $0x4c4] sm:$0xf]  ;;  %v2220_v10 = vld [vmem:[%s4261_s1 + $0x388] sm:$0xf0] }
  0x9f   :  { %1612 = vmatpush.bf16.msra.mxu3 %v2103_v36  ;;  %v2308_v36 = vld [vmem:[%s4261_s1 + $0x438] sm:$0xf0]  ;;  %v2383_v37 = vor.u32 %v2786_v27, %v2380_v28  ;;  %v2762_v13 = vld [vmem:[%s4261_s1 + $0x404] sm:$0xf] }
  0xa0   :  { %1587 = vmatpush.bf16.msra.mxu0 %v1967_v40  ;;  %v2778_v28 = vld [vmem:[%s4261_s1 + $0x484] sm:$0xf] }
  0xa1   :  { %1622 = vmatpush.bf16.msrb.mxu1 %v2191_v26  ;;  %v2752_v26 = vld [vmem:[%s4261_s1 + $0x3b4] sm:$0xf] }
  0xa2   :  { %1600 = vmatpush.bf16.msra.mxu2 %v2031_v42  ;;  %v2247_v40 = vor.u32 %v2752_v26, %v2244_v33  ;;  %v2311_v42 = vor.u32 %v2768_v35, %v2308_v36  ;;  %v2628_v35 = vld [vmem:[%s4261_s1 + $0x6b8] sm:$0xf0] }
  0xa3   :  { %1613 = vmatpush.bf16.msra.mxu3 %v2095_v51  ;;  %1588 = vmatmul.bf16.vlgmr.msra.gmra.mxu0 %v3202_v30  ;;  %v2730_v30 = vld [vmem:[%s4261_s1 + $0x304] sm:$0xf]  ;;  %v4042_v51 = vld [vmem:[%s4263_s2] sm:$0x3] }
  0xa4   :  { %1632 = vmatpush.bf16.msrb.mxu0 %v2279_v43  ;;  %v2159_v29 = vor.u32 %v2730_v30, %v2156_v19  ;;  %v2750_v43 = vld [vmem:[%s4261_s1 + $0x3a4] sm:$0xf]  ;;  %v2447_v30 = vor.u32 %v2802_v62, %v2444_v0  ;;  %v2532_v19 = vld [vmem:[%s4261_s1 + $0x5f8] sm:$0xf0]  ;;  %v2844_v0 = vld [vmem:[%s4261_s1 + $0x694] sm:$0xf] }
  0xa5   :  { %1623 = vmatpush.bf16.msrb.mxu1 %v2183_v46  ;;  %1601 = vmatmul.bf16.vlgmr.msra.gmra.mxu2 %v3281_v1  ;;  %v2754_v1 = vld [vmem:[%s4261_s1 + $0x3c4] sm:$0xf]  ;;  %v2239_v52 = vor.u32 %v2750_v43, %v2236_v44  ;;  %v2588_v43 = vld [vmem:[%s4261_s1 + $0x668] sm:$0xf0] }
  0xa6   :  { %1645 = vmatpush.bf16.msrb.mxu2 %v2343_v47  ;;  %1614 = vmatmul.bf16.vlgmr.msra.gmra.mxu3 %v3285_v3  ;;  %v2468_v3 = vld [vmem:[%s4261_s1 + $0x578] sm:$0xf0]  ;;  %v2255_v24 = vor.u32 %v2754_v1, %v2252_v17  ;;  %v2766_v46 = vld [vmem:[%s4261_s1 + $0x424] sm:$0xf]  ;;  %v2300_v47 = vld [vmem:[%s4261_s1 + $0x428] sm:$0xf0] }
  0xa7   :  { %1658 = vmatpush.bf16.msrb.mxu3 %v2407_v55  ;;  %v2471_v34 = vor.u32 %v2808_v23, %v2468_v3  ;;  %v2303_v55 = vor.u32 %v2766_v46, %v2300_v47  ;;  %v2800_v1 = vld [vmem:[%s4261_s1 + $0x534] sm:$0xf]  ;;  %v2596_v3 = vld [vmem:[%s4261_s1 + $0x678] sm:$0xf0]  ;;  %v2527_v46 = vor.u32 %v2822_v38, %v2524_v39  ;;  %v2556_v38 = vld [vmem:[%s4261_s1 + $0x628] sm:$0xf0] }
  0xa8   :  { %1633 = vmatpush.bf16.msrb.mxu0 %v2271_v56  ;;  %v2748_v56 = vld [vmem:[%s4261_s1 + $0x394] sm:$0xf] }
  0xa9   :  { %1624 = vmatpush.bf16.msrb.mxu1 %v2175_v59  ;;  %v2292_v59 = vld [vmem:[%s4261_s1 + $0x418] sm:$0xf0]  ;;  %v2231_v5 = vor.u32 %v2748_v56, %v2228_v57  ;;  %v2824_v17 = vld [vmem:[%s4261_s1 + $0x5f4] sm:$0xf] }
  0xaa   :  { %1646 = vmatpush.bf16.msrb.mxu2 %v2335_v60  ;;  %v1352_v60 = vperm.slane %v4042_v51, 0  ;;  %v2840_v23 = vld [vmem:[%s4261_s1 + $0x674] sm:$0xf]  ;;  %v2535_v33 = vor.u32 %v2824_v17, %v2532_v19  ;;  %v2842_v17 = vld [vmem:[%s4261_s1 + $0x684] sm:$0xf] }
  0xab   :  { %1659 = vmatpush.bf16.msrb.mxu3 %v2399_v8  ;;  %v2746_v8 = vld [vmem:[%s4261_s1 + $0x384] sm:$0xf]  ;;  %v1394_v44 = vpop.f32.mrf.mxu2  ;;  %v2796_v57 = vld [vmem:[%s4261_s1 + $0x514] sm:$0xf]  ;;  %v2604_v19 = vld [vmem:[%s4261_s1 + $0x688] sm:$0xf0] }
  0xac   :  { %1634 = vmatpush.bf16.msrb.mxu0 %v2263_v9  ;;  %v2295_v9 = vor.u32 %v2764_v58, %v2292_v59  ;;  %v2223_v27 = vor.u32 %v2746_v8, %v2220_v10  ;;  %v2834_v10 = vld [vmem:[%s4261_s1 + $0x644] sm:$0xf] }
  0xad   :  { %1625 = vmatpush.bf16.msrb.mxu1 %v2167_v16  ;;  %v2284_v16 = vld [vmem:[%s4261_s1 + $0x408] sm:$0xf0] }
  0xae   :  { %1647 = vmatpush.bf16.msrb.mxu2 %v2327_v25  ;;  %v1368_v25 = vpop.f32.mrf.mxu0  ;;  %v2287_v26 = vor.u32 %v2762_v13, %v2284_v16  ;;  %v2572_v13 = vld [vmem:[%s4261_s1 + $0x648] sm:$0xf0] }
  0xaf   :  { %1660 = vmatpush.bf16.msrb.mxu3 %v2391_v22  ;;  %v1369_v20 = vadd.f32 %v1368_v25, %v1352_v60  ;;  %v2436_v22 = vld [vmem:[%s4261_s1 + $0x538] sm:$0xf0]  ;;  %v2836_v60 = vld [vmem:[%s4261_s1 + $0x654] sm:$0xf] }
  0xb0   :  { %1635 = vmatpush.bf16.msrb.mxu0 %v2255_v24  ;;  %v1381_v24 = vpop.f32.mrf.mxu1  ;;  %v2439_v36 = vor.u32 %v2800_v1, %v2436_v22  ;;  %v2500_v22 = vld [vmem:[%s4261_s1 + $0x5b8] sm:$0xf0] }
  0xb1   :  { %1626 = vmatpush.bf16.msrb.mxu1 %v2159_v29  ;;  %v2348_v29 = vld [vmem:[%s4261_s1 + $0x488] sm:$0xf0] }
  0xb2   :  { %1648 = vmatpush.bf16.msrb.mxu2 %v2319_v32  ;;  %v1382_v32 = vadd.f32 %v1381_v24, %v1369_v20  ;;  %v2832_v24 = vld [vmem:[%s4261_s1 + $0x634] sm:$0xf] }
  0xb3   :  { %1661 = vmatpush.bf16.msrb.mxu3 %v2383_v37  ;;  %v2599_v37 = vor.u32 %v2840_v23, %v2596_v3  ;;  %v1396_v16 = vpop.f32.mrf.mxu2  ;;  %v2575_v23 = vor.u32 %v2834_v10, %v2572_v13 }
  0xb4   :  { %1636 = vmatpush.bf16.msrb.mxu0 %v2247_v40  ;;  %1627 = vmatmul.bf16.vlgmr.msrb.gmra.mxu1 %v3279_v63  ;;  %v2455_v63 = vor.u32 %v2804_v49, %v2452_v50  ;;  %v2351_v40 = vor.u32 %v2778_v28, %v2348_v29  ;;  %v1395_v47 = vadd.f32 %v1394_v44, %v1382_v32  ;;  %v2846_v50 = vld [vmem:[%s4261_s1 + $0x6a4] sm:$0xf] }
  0xb5   :  { %1671 = vmatpush.bf16.msra.mxu1 %v2471_v34  ;;  %v2848_v34 = vld [vmem:[%s4261_s1 + $0x6b4] sm:$0xf]  ;;  %v2607_v29 = vor.u32 %v2842_v17, %v2604_v19 }
  0xb6   :  { %1649 = vmatpush.bf16.msrb.mxu2 %v2311_v42  ;;  %v2838_v42 = vld [vmem:[%s4261_s1 + $0x664] sm:$0xf]  ;;  %v1370_v49 = vpop.f32.mrf.mxu0 }
  0xb7   :  { %1662 = vmatpush.bf16.msrb.mxu3 %v2375_v48  ;;  %v1407_v48 = vpop.f32.mrf.mxu3  ;;  %v2591_v56 = vor.u32 %v2838_v42, %v2588_v43 }
  0xb8   :  { %1637 = vmatpush.bf16.msrb.mxu0 %v2239_v52  ;;  %v2620_v52 = vld [vmem:[%s4261_s1 + $0x6a8] sm:$0xf0]  ;;  %v1408_v58 = vadd.f32 %v1407_v48, %v1395_v47  ;;  %v1383_v59 = vpop.f32.mrf.mxu1 }
  0xb9   :  { %1672 = vmatpush.bf16.msra.mxu1 %v2463_v45  ;;  %v2631_v45 = vor.u32 %v2848_v34, %v2628_v35  ;;  %v2492_v34 = vld [vmem:[%s4261_s1 + $0x5a8] sm:$0xf0] }
  0xba   :  { %1650 = vmatpush.bf16.msrb.mxu2 %v2303_v55  ;;  %v2516_v55 = vld [vmem:[%s4261_s1 + $0x5d8] sm:$0xf0] }
  0xbb   :  { %1663 = vmatpush.bf16.msrb.mxu3 %v2367_v61  ;;  %v2623_v61 = vor.u32 %v2846_v50, %v2620_v52  ;;  %v2519_v62 = vor.u32 %v2820_v54, %v2516_v55  ;;  %v2810_v50 = vld [vmem:[%s4261_s1 + $0x584] sm:$0xf]  ;;  %v2476_v52 = vld [vmem:[%s4261_s1 + $0x588] sm:$0xf0] }
  0xbc   :  { %1638 = vmatpush.bf16.msrb.mxu0 %v2231_v5  ;;  %v2826_v54 = vld [vmem:[%s4261_s1 + $0x604] sm:$0xf]  ;;  %v2540_v55 = vld [vmem:[%s4261_s1 + $0x608] sm:$0xf0] }
  0xbd   :  { %1673 = vmatpush.bf16.msra.mxu1 %v2455_v63  ;;  %v2420_v63 = vld [vmem:[%s4261_s1 + $0x518] sm:$0xf0] }
  0xbe   :  { %1651 = vmatpush.bf16.msrb.mxu2 %v2295_v9  ;;  %v2423_v5 = vor.u32 %v2796_v57, %v2420_v63  ;;  %v2794_v9 = vld [vmem:[%s4261_s1 + $0x504] sm:$0xf]  ;;  %v2543_v57 = vor.u32 %v2826_v54, %v2540_v55 }
  0xbf   :  { %1664 = vmatpush.bf16.msrb.mxu3 %v2359_v21  ;;  %v1409_v1 = vpop.f32.mrf.mxu3  ;;  %v2816_v21 = vld [vmem:[%s4261_s1 + $0x5b4] sm:$0xf] }
  0xc0   :  { %1639 = vmatpush.bf16.msrb.mxu0 %v2223_v27  ;;  %v1420_v3 = vpop.f32.mrf.mxu0  ;;  %v2564_v27 = vld [vmem:[%s4261_s1 + $0x638] sm:$0xf0]  ;;  %v2503_v32 = vor.u32 %v2816_v21, %v2500_v22 }
  0xc1   :  { %1674 = vmatpush.bf16.msra.mxu1 %v2447_v30  ;;  %v2511_v30 = vor.u32 %v2818_v6, %v2508_v7  ;;  %v1421_v28 = vadd.f32 %v1420_v3, %v1408_v58 }
  0xc2   :  { %1652 = vmatpush.bf16.msrb.mxu2 %v2287_v26  ;;  %v1433_v26 = vpop.f32.mrf.mxu1 }
  0xc3   :  { %1665 = vmatpush.bf16.msrb.mxu3 %v2351_v40  ;;  %1640 = vmatmul.bf16.vlgmr.msrb.gmra.mxu0 %v3283_v2  ;;  %v2580_v2 = vld [vmem:[%s4261_s1 + $0x658] sm:$0xf0]  ;;  %v1434_v35 = vadd.f32 %v1433_v26, %v1421_v28 }
  0xc4   :  { %1684 = vmatpush.bf16.msra.mxu0 %v2535_v33  ;;  %v2583_v8 = vor.u32 %v2836_v60, %v2580_v2  ;;  %v2814_v33 = vld [vmem:[%s4261_s1 + $0x5a4] sm:$0xf] }
  0xc5   :  { %1675 = vmatpush.bf16.msra.mxu1 %v2439_v36  ;;  %1653 = vmatmul.bf16.vlgmr.msrb.gmra.mxu2 %v3528_v11  ;;  %v2612_v11 = vld [vmem:[%s4261_s1 + $0x698] sm:$0xf0]  ;;  %v2567_v36 = vor.u32 %v2832_v24, %v2564_v27  ;;  %v2495_v39 = vor.u32 %v2814_v33, %v2492_v34 }
  0xc6   :  { %1697 = vmatpush.bf16.msra.mxu2 %v2599_v37  ;;  %1666 = vmatmul.bf16.vlgmr.msrb.gmra.mxu3 %v3532_v14  ;;  %v2412_v14 = vld [vmem:[%s4261_s1 + $0x508] sm:$0xf0]  ;;  %v2615_v25 = vor.u32 %v2844_v0, %v2612_v11  ;;  %v2830_v37 = vld [vmem:[%s4261_s1 + $0x624] sm:$0xf] }
  0xc7   :  { %1714 = vmatpush.bf16.msra.mxu3 %v2631_v45  ;;  %v2415_v20 = vor.u32 %v2794_v9, %v2412_v14  ;;  %v2559_v42 = vor.u32 %v2830_v37, %v2556_v38  ;;  %v2828_v45 = vld [vmem:[%s4261_s1 + $0x614] sm:$0xf] }
  0xc8   :  { %1685 = vmatpush.bf16.msra.mxu0 %v2527_v46  ;;  %v1446_v40 = vpop.f32.mrf.mxu2  ;;  %v1422_v44 = vpop.f32.mrf.mxu0  ;;  %v2487_v46 = vor.u32 %v2812_v41, %v2484_v31 }
  0xc9   :  { %1676 = vmatpush.bf16.msra.mxu1 %v2431_v53  ;;  %v1447_v43 = vadd.f32 %v1446_v40, %v1434_v35  ;;  %v1459_v47 = vpop.f32.mrf.mxu3 }
  0xca   :  { %1698 = vmatpush.bf16.msra.mxu2 %v2591_v56  ;;  %v1435_v48 = vpop.f32.mrf.mxu1 }
  0xcb   :  { %1715 = vmatpush.bf16.msra.mxu3 %v2623_v61  ;;  %v1460_v49 = vadd.f32 %v1459_v47, %v1447_v43  ;;  %v1731_v47 = vld [vmem:[%s4265_s4] sm:$0x3] }
  0xcc   :  { %1686 = vmatpush.bf16.msra.mxu0 %v2519_v62 }
  0xcd   :  { %1677 = vmatpush.bf16.msra.mxu1 %v2423_v5 }
  0xce   :  { %1699 = vmatpush.bf16.msra.mxu2 %v2583_v8 }
  0xcf   :  { %1716 = vmatpush.bf16.msra.mxu3 %v2615_v25 }
  0xd0   :  { %1687 = vmatpush.bf16.msra.mxu0 %v2511_v30  ;;  %v1448_v56 = vpop.f32.mrf.mxu2 }
  0xd1   :  { %1678 = vmatpush.bf16.msra.mxu1 %v2415_v20  ;;  %v1461_v63 = vpop.f32.mrf.mxu3 }
  0xd2   :  { %1700 = vmatpush.bf16.msra.mxu2 %v2575_v23 }
  0xd3   :  { %1717 = vmatpush.bf16.msra.mxu3 %v2607_v29  ;;  %v1353_v29 = vperm.slane %v4042_v51, 1  ;;  %v1723_v51 = vld [vmem:[%s4264_s3] sm:$0x3] }
  0xd4   :  { %1679 = vmatmul.bf16.vlgmr.msra.gmra.mxu1 %v3530_v12  ;;  %1688 = vmatpush.bf16.msra.mxu0 %v2503_v32  ;;  %v2548_v12 = vld [vmem:[%s4261_s1 + $0x618] sm:$0xf0] }
  0xd5   :  { %v2551_v53 = vor.u32 %v2828_v45, %v2548_v12 }
  0xd6   :  { %1701 = vmatpush.bf16.msra.mxu2 %v2567_v36  ;;  %2633 = vmatmul.msk.bf16.vlgmr.msra.gmra.mxu3 %vm1356_vm0, %v3648_v18  ;;  %v2479_v18 = vor.u32 %v2810_v50, %v2476_v52  ;;  %v1732_v50 = vunpack.c.l.bf16 %v1731_v47 }
  0xd8   :  { %1689 = vmatpush.bf16.msra.mxu0 %v2495_v39 }
  0xda   :  { %1702 = vmatpush.bf16.msra.mxu2 %v2559_v42 }
  0xdc   :  { %1690 = vmatpush.bf16.msra.mxu0 %v2487_v46 }
  0xde   :  { %1703 = vmatpush.bf16.msra.mxu2 %v2551_v53 }
  0xe0   :  { %1691 = vmatpush.bf16.msra.mxu0 %v2479_v18  ;;  %v1472_v58 = vpop.f32.mrf.mxu0  ;;  %v1734_v18 = vperm.slane %v1732_v50, 0 }
  0xe1   :  { %v1473_v59 = vadd.f32 %v1472_v58, %v1460_v49  ;;  %v1485_v60 = vpop.f32.mrf.mxu1  ;;  %v1725_v49 = vperm.slane %v1723_v51, 0 }
  0xe2   :  { %1704 = vmatpush.bf16.msra.mxu2 %v2543_v57 }
  0xe3   :  { %1692 = vmatmul.bf16.vlgmr.msra.gmra.mxu0 %v3534_v15  ;;  %v1486_v2 = vadd.f32 %v1485_v60, %v1473_v59  ;;  %v1726_v59 = vperm.slane %v1723_v51, 1 }
  0xe5   :  { %1705 = vmatmul.bf16.vlgmr.msra.gmra.mxu2 %v3736_v4 }
  0xe8   :  { %v1498_v61 = vpop.f32.mrf.mxu2  ;;  %v1474_v11 = vpop.f32.mrf.mxu0 }
  0xe9   :  { %v1499_v62 = vadd.f32 %v1498_v61, %v1486_v2  ;;  %v1511_v0 = vpop.f32.mrf.mxu3  ;;  %v1487_v6 = vpop.f32.mrf.mxu1  ;;  %v1735_v61 = vperm.slane %v1732_v50, 2 }
  0xeb   :  { %v1512_v5 = vadd.f32 %v1511_v0, %v1499_v62 }
  0xf0   :  { %v1500_v7 = vpop.f32.mrf.mxu2 }
  0xf1   :  { %v1513_v8 = vpop.f32.mrf.mxu3  ;;  %v1537_v9 = vpop.f32.mrf.mxu1 }
  0xf9   :  { %v1539_v14 = vpop.f32.mrf.mxu1 }
 0x100   :  { %v1524_v10 = vpop.f32.mrf.mxu0 }
 0x101   :  { %v1525_v13 = vadd.f32 %v1524_v10, %v1512_v5  ;;  %v1761_v10 = vld [vmem:[%s4266_s5] sm:$0x3] }
 0x103   :  { %v1538_v16 = vadd.f32 %v1537_v9, %v1525_v13 }
 0x105   :  { %v1729_v55 = vmul.f32 %v1725_v49, %v1538_v16 }
 0x107   :  { %v1738_v60 = vadd.f32 %v1734_v18, %v1729_v55 }
 0x108   :  { %v1550_v15 = vpop.f32.mrf.mxu2  ;;  %v1526_v25 = vpop.f32.mrf.mxu0 }
 0x109   :  { %v1563_v4 = vpop.f32.mrf.mxu3  ;;  %v1551_v32 = vadd.f32 %v1550_v15, %v1353_v29  ;;  %v1742_v0 = vmul.f32 0.2, %v1738_v60  ;;  %vm1740_vm3 = vcmp.ge.f32.partialorder %v1738_v60, 0.0 }
 0x10b   :  { %v1564_v33 = vadd.f32 %v1563_v4, %v1551_v32  ;;  %v1744_v7 = vsel %vm1740_vm3, %v1738_v60, %v1742_v0 }
 0x110   :  { %v1552_v1 = vpop.f32.mrf.mxu2 }
 0x111   :  { %v1576_v30 = vpop.f32.mrf.mxu1  ;;  %v1565_v17 = vpop.f32.mrf.mxu3 }
 0x112   :  { %v1577_v35 = vadd.f32 %v1576_v30, %v1564_v33 }
 0x119   :  { %v1578_v19 = vpop.f32.mrf.mxu1 }
 0x120   :  { %v1589_v20 = vpop.f32.mrf.mxu0 }
 0x121   :  { %v1590_v38 = vadd.f32 %v1589_v20, %v1577_v35 }
 0x128   :  { %v1602_v21 = vpop.f32.mrf.mxu2  ;;  %v1591_v22 = vpop.f32.mrf.mxu0 }
 0x129   :  { %v1615_v23 = vpop.f32.mrf.mxu3  ;;  %v1603_v41 = vadd.f32 %v1602_v21, %v1590_v38 }
 0x12b   :  { %v1616_v42 = vadd.f32 %v1615_v23, %v1603_v41 }
 0x130   :  { %v1604_v24 = vpop.f32.mrf.mxu2 }
 0x131   :  { %v1628_v3 = vpop.f32.mrf.mxu1  ;;  %v1617_v27 = vpop.f32.mrf.mxu3 }
 0x132   :  { %v1629_v44 = vadd.f32 %v1628_v3, %v1616_v42 }
 0x139   :  { %v1630_v28 = vpop.f32.mrf.mxu1 }
 0x140   :  { %v1641_v26 = vpop.f32.mrf.mxu0 }
 0x141   :  { %v1642_v12 = vadd.f32 %v1641_v26, %v1629_v44 }
 0x148   :  { %v1654_v34 = vpop.f32.mrf.mxu2  ;;  %v1643_v36 = vpop.f32.mrf.mxu0 }
 0x149   :  { %v1667_v37 = vpop.f32.mrf.mxu3  ;;  %v1655_v46 = vadd.f32 %v1654_v34, %v1642_v12 }
 0x14b   :  { %v1668_v52 = vadd.f32 %v1667_v37, %v1655_v46 }
 0x150   :  { %v1656_v40 = vpop.f32.mrf.mxu2 }
 0x151   :  { %v1680_v39 = vpop.f32.mrf.mxu1  ;;  %v1669_v31 = vpop.f32.mrf.mxu3 }
 0x152   :  { %v1681_v54 = vadd.f32 %v1680_v39, %v1668_v52 }
 0x159   :  { %v1682_v43 = vpop.f32.mrf.mxu1  ;;  %v1719_v45 = vpop.f32.mrf.mxu3 }
 0x160   :  { %v1693_v48 = vpop.f32.mrf.mxu0 }
 0x161   :  { %v1721_v53 = vpop.f32.mrf.mxu3  ;;  %v1694_v56 = vadd.f32 %v1693_v48, %v1681_v54 }
 0x168   :  { %v1706_v57 = vpop.f32.mrf.mxu2  ;;  %v1695_v63 = vpop.f32.mrf.mxu0 }
 0x169   :  { %v1707_v58 = vadd.f32 %v1706_v57, %v1694_v56 }
 0x16b   :  { %v1720_v2 = vadd.f32 %v1719_v45, %v1707_v58 }
 0x16d   :  { %v1730_v62 = vmul.f32 %v1726_v59, %v1720_v2 }
 0x16f   :  { %v1739_v11 = vadd.f32 %v1735_v61, %v1730_v62 }
 0x170   :  { %v1708_v5 = vpop.f32.mrf.mxu2 }
 0x171   :  { %vm1741_vm6 = vcmp.ge.f32.partialorder %v1739_v11, 0.0  ;;  %v1743_v6 = vmul.f32 0.2, %v1739_v11 }
 0x173   :  { %v1745_v8 = vsel %vm1741_vm6, %v1739_v11, %v1743_v6 }
 0x174   :  { %v1746_v9 = vpack.c.bf16 %v1745_v8, %v1744_v7 }
 0x176   :  { %v1748_v14 = vrot.slane %v1746_v9, 3 }
 0x178   :  { %v1752_v13 = vsel %vm1749_vm1, %v1746_v9, %v1748_v14 }
 0x179   :  { %v1762_v16 = vsel %vm1760_vm9, %v1752_v13, %v1761_v10 }
 0x17a   :  { %1763 = vst [vmem:[%s4266_s5] sm:$0x3] %v1762_v16 }

// kernel: ifnet_forward.55
= control target key start
LH: loop header
LB: loop body
LE: loop exit
PB: predicated region body
PF: predicated region fallthrough
CT: control target
= control target key end

     0   :  { %vm913_vm0 = vcmask 523264   ;;  %vm1098_vm1 = vcmask 778240   ;;  %s2013_s1 = inlined_call_operand.vmem [shape: bf16[1728,96], index: 1, kind: input, shape index: {}]   ;;  %s2014_s0 = inlined_call_operand.vmem [shape: bf16[1,1728], index: 0, kind: input, shape index: {}]   ;;  %s2015_s2 = inlined_call_operand.vmem [shape: f32[1,96], index: 2, kind: input, shape index: {}]   ;;  %s2016_s3 = inlined_call_operand.vmem [shape: f32[1,96], index: 3, kind: output, shape index: {}]  }
   0x1   :  { %v1544_v0 = vld [vmem:[%s2013_s1 + $0x38] sm:$0xff]  ;;  %v1543_v4 = vld [vmem:[%s2013_s1 + $0x30] sm:$0xff]  ;;  %v1542_v8 = vld [vmem:[%s2013_s1 + $0x28] sm:$0xff] }
   0x2   :  { %v1560_v1 = vld [vmem:[%s2013_s1 + $0xb8] sm:$0xff]  ;;  %916 = vmatpush.bf16.msra.mxu0 %v1544_v0  ;;  %v1559_v5 = vld [vmem:[%s2013_s1 + $0xb0] sm:$0xff]  ;;  %v1558_v9 = vld [vmem:[%s2013_s1 + $0xa8] sm:$0xff] }
   0x3   :  { %v1552_v2 = vld [vmem:[%s2013_s1 + $0x78] sm:$0xff]  ;;  %942 = vmatpush.bf16.msra.mxu2 %v1560_v1  ;;  %v1551_v6 = vld [vmem:[%s2013_s1 + $0x70] sm:$0xff]  ;;  %v1550_v10 = vld [vmem:[%s2013_s1 + $0x68] sm:$0xff] }
   0x4   :  { %v1568_v3 = vld [vmem:[%s2013_s1 + $0xf8] sm:$0xff]  ;;  %929 = vmatpush.bf16.msra.mxu1 %v1552_v2  ;;  %v1567_v7 = vld [vmem:[%s2013_s1 + $0xf0] sm:$0xff]  ;;  %v1566_v11 = vld [vmem:[%s2013_s1 + $0xe8] sm:$0xff] }
   0x5   :  { %955 = vmatpush.bf16.msra.mxu3 %v1568_v3  ;;  %v1541_v12 = vld [vmem:[%s2013_s1 + $0x20] sm:$0xff]  ;;  %v1540_v16 = vld [vmem:[%s2013_s1 + $0x18] sm:$0xff]  ;;  %v1539_v21 = vld [vmem:[%s2013_s1 + $0x10] sm:$0xff] }
   0x6   :  { %917 = vmatpush.bf16.msra.mxu0 %v1543_v4  ;;  %v1557_v13 = vld [vmem:[%s2013_s1 + $0xa0] sm:$0xff]  ;;  %v1556_v17 = vld [vmem:[%s2013_s1 + $0x98] sm:$0xff]  ;;  %v1555_v22 = vld [vmem:[%s2013_s1 + $0x90] sm:$0xff] }
   0x7   :  { %943 = vmatpush.bf16.msra.mxu2 %v1559_v5  ;;  %v1549_v14 = vld [vmem:[%s2013_s1 + $0x60] sm:$0xff]  ;;  %v1548_v18 = vld [vmem:[%s2013_s1 + $0x58] sm:$0xff]  ;;  %v1547_v23 = vld [vmem:[%s2013_s1 + $0x50] sm:$0xff] }
   0x8   :  { %930 = vmatpush.bf16.msra.mxu1 %v1551_v6  ;;  %v1565_v15 = vld [vmem:[%s2013_s1 + $0xe0] sm:$0xff]  ;;  %v1564_v19 = vld [vmem:[%s2013_s1 + $0xd8] sm:$0xff]  ;;  %v1563_v24 = vld [vmem:[%s2013_s1 + $0xd0] sm:$0xff] }
   0x9   :  { %956 = vmatpush.bf16.msra.mxu3 %v1567_v7  ;;  %v15_v20 = vld [vmem:[%s2014_s0] sm:$0xff]  ;;  %v1538_v25 = vld [vmem:[%s2013_s1 + $0x8] sm:$0xff]  ;;  %v1576_v31 = vld [vmem:[%s2013_s1 + $0x138] sm:$0xff] }
   0xa   :  { %918 = vmatpush.bf16.msra.mxu0 %v1542_v8  ;;  %235 = vst [vmem:[#allocation1] ss:$9 sm:$0xff] %v15_v20  ;;  %v1554_v26 = vld [vmem:[%s2013_s1 + $0x88] sm:$0xff]  ;;  %v1537_v29 = vld [vmem:[%s2013_s1] sm:$0xff]  ;;  %v1592_v32 = vld [vmem:[%s2013_s1 + $0x1b8] sm:$0xff] }
   0xb   :  { %944 = vmatpush.bf16.msra.mxu2 %v1558_v9  ;;  %v1546_v27 = vld [vmem:[%s2013_s1 + $0x48] sm:$0xff]  ;;  %v1553_v30 = vld [vmem:[%s2013_s1 + $0x80] sm:$0xff]  ;;  %v1584_v35 = vld [vmem:[%s2013_s1 + $0x178] sm:$0xff] }
   0xc   :  { %931 = vmatpush.bf16.msra.mxu1 %v1550_v10  ;;  %v1562_v28 = vld [vmem:[%s2013_s1 + $0xc8] sm:$0xff]  ;;  %v1545_v33 = vld [vmem:[%s2013_s1 + $0x40] sm:$0xff]  ;;  %v1600_v36 = vld [vmem:[%s2013_s1 + $0x1f8] sm:$0xff] }
   0xd   :  { %957 = vmatpush.bf16.msra.mxu3 %v1566_v11  ;;  %v1561_v34 = vld [vmem:[%s2013_s1 + $0xc0] sm:$0xff]  ;;  %v1575_v37 = vld [vmem:[%s2013_s1 + $0x130] sm:$0xff]  ;;  %v16_v45 = vld [vmem:[%s2014_s0 + $0x8] sm:$0x3f] }
   0xe   :  { %919 = vmatpush.bf16.msra.mxu0 %v1541_v12  ;;  %v1591_v38 = vld [vmem:[%s2013_s1 + $0x1b0] sm:$0xff]  ;;  %v1574_v46 = vld [vmem:[%s2013_s1 + $0x128] sm:$0xff]  ;;  %v1573_v54 = vld [vmem:[%s2013_s1 + $0x120] sm:$0xff] }
   0xf   :  { %945 = vmatpush.bf16.msra.mxu2 %v1557_v13  ;;  %v1583_v41 = vld [vmem:[%s2013_s1 + $0x170] sm:$0xff]  ;;  %v1590_v47 = vld [vmem:[%s2013_s1 + $0x1a8] sm:$0xff]  ;;  %v1589_v55 = vld [vmem:[%s2013_s1 + $0x1a0] sm:$0xff] }
  0x10   :  { %932 = vmatpush.bf16.msra.mxu1 %v1549_v14  ;;  %v1599_v42 = vld [vmem:[%s2013_s1 + $0x1f0] sm:$0xff]  ;;  %v1582_v52 = vld [vmem:[%s2013_s1 + $0x168] sm:$0xff]  ;;  %v1581_v56 = vld [vmem:[%s2013_s1 + $0x160] sm:$0xff] }
  0x11   :  { %958 = vmatpush.bf16.msra.mxu3 %v1565_v15  ;;  %v238_v39 = vld [vmem:[#allocation1 + $0x12] sm:$0xff]  ;;  %v236_v40 = vld [vmem:[#allocation1] sm:$0xff]  ;;  %v237_v44 = vld [vmem:[#allocation1 + $0x9] sm:$0xff] }
  0x12   :  { %920 = vmatpush.bf16.msra.mxu0 %v1540_v16  ;;  %v239_v43 = vld [vmem:[#allocation1 + $0x1b] sm:$0xff]  ;;  %v1799_v49 = vld [vmem:[#allocation1 + $0x24] sm:$0xff]  ;;  %v1803_v51 = vld [vmem:[#allocation1 + $0x2d] sm:$0xff] }
  0x13   :  { %946 = vmatpush.bf16.msra.mxu2 %v1556_v17  ;;  %v1797_v48 = vld [vmem:[#allocation1 + $0x36] sm:$0xff]  ;;  %v1801_v50 = vld [vmem:[#allocation1 + $0x3f] sm:$0xff]  ;;  %v1598_v53 = vld [vmem:[%s2013_s1 + $0x1e8] sm:$0xff] }
  0x14   :  { %933 = vmatpush.bf16.msra.mxu1 %v1548_v18  ;;  %245 = vst [vmem:[#allocation1] ss:$9 sm:$0xff] %v16_v45  ;;  %v1597_v57 = vld [vmem:[%s2013_s1 + $0x1e0] sm:$0xff]  ;;  %v1572_v58 = vld [vmem:[%s2013_s1 + $0x118] sm:$0xff]  ;;  %v1571_v62 = vld [vmem:[%s2013_s1 + $0x110] sm:$0xff] }
  0x15   :  { %959 = vmatpush.bf16.msra.mxu3 %v1564_v19  ;;  %v1588_v59 = vld [vmem:[%s2013_s1 + $0x198] sm:$0xff]  ;;  %v1587_v63 = vld [vmem:[%s2013_s1 + $0x190] sm:$0xff]  ;;  %v1570_v2 = vld [vmem:[%s2013_s1 + $0x108] sm:$0xff] }
  0x16   :  { %921 = vmatpush.bf16.msra.mxu0 %v1539_v21  ;;  %v1580_v60 = vld [vmem:[%s2013_s1 + $0x158] sm:$0xff]  ;;  %v1579_v0 = vld [vmem:[%s2013_s1 + $0x150] sm:$0xff]  ;;  %v1586_v3 = vld [vmem:[%s2013_s1 + $0x188] sm:$0xff] }
  0x17   :  { %947 = vmatpush.bf16.msra.mxu2 %v1555_v22  ;;  %v1596_v61 = vld [vmem:[%s2013_s1 + $0x1d8] sm:$0xff]  ;;  %v1595_v1 = vld [vmem:[%s2013_s1 + $0x1d0] sm:$0xff]  ;;  %v1578_v4 = vld [vmem:[%s2013_s1 + $0x148] sm:$0xff] }
  0x18   :  { %934 = vmatpush.bf16.msra.mxu1 %v1547_v23  ;;  %v1594_v5 = vld [vmem:[%s2013_s1 + $0x1c8] sm:$0xff]  ;;  %v1569_v6 = vld [vmem:[%s2013_s1 + $0x100] sm:$0xff]  ;;  %v1608_v8 = vld [vmem:[%s2013_s1 + $0x238] sm:$0xff] }
  0x19   :  { %960 = vmatpush.bf16.msra.mxu3 %v1563_v24  ;;  %v1585_v7 = vld [vmem:[%s2013_s1 + $0x180] sm:$0xff]  ;;  %v1624_v9 = vld [vmem:[%s2013_s1 + $0x2b8] sm:$0xff]  ;;  %v1607_v14 = vld [vmem:[%s2013_s1 + $0x230] sm:$0xff] }
  0x1a   :  { %922 = vmatpush.bf16.msra.mxu0 %v1538_v25  ;;  %v1577_v10 = vld [vmem:[%s2013_s1 + $0x140] sm:$0xff]  ;;  %v1616_v12 = vld [vmem:[%s2013_s1 + $0x278] sm:$0xff]  ;;  %v1623_v15 = vld [vmem:[%s2013_s1 + $0x2b0] sm:$0xff] }
  0x1b   :  { %948 = vmatpush.bf16.msra.mxu2 %v1554_v26  ;;  %v1593_v11 = vld [vmem:[%s2013_s1 + $0x1c0] sm:$0xff]  ;;  %v1632_v13 = vld [vmem:[%s2013_s1 + $0x2f8] sm:$0xff]  ;;  %v1615_v16 = vld [vmem:[%s2013_s1 + $0x270] sm:$0xff] }
  0x1c   :  { %935 = vmatpush.bf16.msra.mxu1 %v1546_v27  ;;  %v1631_v17 = vld [vmem:[%s2013_s1 + $0x2f0] sm:$0xff]  ;;  %v1606_v18 = vld [vmem:[%s2013_s1 + $0x228] sm:$0xff]  ;;  %v1605_v22 = vld [vmem:[%s2013_s1 + $0x220] sm:$0xff] }
  0x1d   :  { %961 = vmatpush.bf16.msra.mxu3 %v1562_v28  ;;  %v1622_v19 = vld [vmem:[%s2013_s1 + $0x2a8] sm:$0xff]  ;;  %v1621_v23 = vld [vmem:[%s2013_s1 + $0x2a0] sm:$0xff]  ;;  %v1604_v26 = vld [vmem:[%s2013_s1 + $0x218] sm:$0xff] }
  0x1e   :  { %923 = vmatpush.bf16.msra.mxu0 %v1537_v29  ;;  %v1614_v20 = vld [vmem:[%s2013_s1 + $0x268] sm:$0xff]  ;;  %v1613_v24 = vld [vmem:[%s2013_s1 + $0x260] sm:$0xff]  ;;  %v1620_v27 = vld [vmem:[%s2013_s1 + $0x298] sm:$0xff] }
  0x1f   :  { %949 = vmatpush.bf16.msra.mxu2 %v1553_v30  ;;  %v1630_v21 = vld [vmem:[%s2013_s1 + $0x2e8] sm:$0xff]  ;;  %v1629_v25 = vld [vmem:[%s2013_s1 + $0x2e0] sm:$0xff]  ;;  %v1612_v28 = vld [vmem:[%s2013_s1 + $0x258] sm:$0xff] }
  0x20   :  { %936 = vmatpush.bf16.msra.mxu1 %v1545_v33  ;;  %v1628_v29 = vld [vmem:[%s2013_s1 + $0x2d8] sm:$0xff]  ;;  %v1603_v30 = vld [vmem:[%s2013_s1 + $0x210] sm:$0xff] }
  0x21   :  { %962 = vmatpush.bf16.msra.mxu3 %v1561_v34  ;;  %924 = vmatmul.bf16.vlgmr.msra.gmra.mxu0 %v236_v40  ;;  %v1627_v33 = vld [vmem:[%s2013_s1 + $0x2d0] sm:$0xff]  ;;  %v1602_v34 = vld [vmem:[%s2013_s1 + $0x208] sm:$0xff]  ;;  %v1640_v40 = vld [vmem:[%s2013_s1 + $0x338] sm:$0xff] }
  0x22   :  { %968 = vmatpush.bf16.msrb.mxu0 %v1576_v31  ;;  %950 = vmatmul.bf16.vlgmr.msra.gmra.mxu2 %v238_v39  ;;  %v1619_v31 = vld [vmem:[%s2013_s1 + $0x290] sm:$0xff]  ;;  %v1617_v39 = vld [vmem:[%s2013_s1 + $0x280] sm:$0xff]  ;;  %v1644_v45 = vld [vmem:[%s2013_s1 + $0x358] sm:$0xff] }
  0x23   :  { %994 = vmatpush.bf16.msrb.mxu2 %v1592_v32  ;;  %937 = vmatmul.bf16.vlgmr.msra.gmra.mxu1 %v237_v44  ;;  %v1611_v32 = vld [vmem:[%s2013_s1 + $0x250] sm:$0xff] }
  0x24   :  { %981 = vmatpush.bf16.msrb.mxu1 %v1584_v35  ;;  %963 = vmatmul.bf16.vlgmr.msra.gmra.mxu3 %v239_v43  ;;  %v1618_v35 = vld [vmem:[%s2013_s1 + $0x288] sm:$0xff]  ;;  %v246_v43 = vld [vmem:[#allocation1] sm:$0xff]  ;;  %v248_v44 = vld [vmem:[#allocation1 + $0x12] sm:$0xff] }
  0x25   :  { %1007 = vmatpush.bf16.msrb.mxu3 %v1600_v36  ;;  %v1610_v36 = vld [vmem:[%s2013_s1 + $0x248] sm:$0xff] }
  0x26   :  { %969 = vmatpush.bf16.msrb.mxu0 %v1575_v37  ;;  %v1626_v37 = vld [vmem:[%s2013_s1 + $0x2c8] sm:$0xff] }
  0x27   :  { %995 = vmatpush.bf16.msrb.mxu2 %v1591_v38  ;;  %v1601_v38 = vld [vmem:[%s2013_s1 + $0x200] sm:$0xff] }
  0x28   :  { %982 = vmatpush.bf16.msrb.mxu1 %v1583_v41  ;;  %v1609_v41 = vld [vmem:[%s2013_s1 + $0x240] sm:$0xff] }
  0x29   :  { %1008 = vmatpush.bf16.msrb.mxu3 %v1599_v42  ;;  %v1625_v42 = vld [vmem:[%s2013_s1 + $0x2c0] sm:$0xff] }
  0x2a   :  { %970 = vmatpush.bf16.msrb.mxu0 %v1574_v46  ;;  %v247_v46 = vld [vmem:[#allocation1 + $0x9] sm:$0xff] }
  0x2b   :  { %996 = vmatpush.bf16.msrb.mxu2 %v1590_v47  ;;  %v249_v47 = vld [vmem:[#allocation1 + $0x1b] sm:$0xff] }
  0x2c   :  { %983 = vmatpush.bf16.msrb.mxu1 %v1582_v52  ;;  %v1637_v52 = vld [vmem:[%s2013_s1 + $0x320] sm:$0xff] }
  0x2d   :  { %1009 = vmatpush.bf16.msrb.mxu3 %v1598_v53  ;;  %v1641_v53 = vld [vmem:[%s2013_s1 + $0x340] sm:$0xff] }
  0x2e   :  { %971 = vmatpush.bf16.msrb.mxu0 %v1573_v54  ;;  %v1636_v54 = vld [vmem:[%s2013_s1 + $0x318] sm:$0xff] }
  0x2f   :  { %997 = vmatpush.bf16.msrb.mxu2 %v1589_v55  ;;  %v1635_v55 = vld [vmem:[%s2013_s1 + $0x310] sm:$0xff] }
  0x30   :  { %984 = vmatpush.bf16.msrb.mxu1 %v1581_v56  ;;  %v251_v56 = vld [vmem:[#allocation1 + $0x2d] sm:$0xff] }
  0x31   :  { %1010 = vmatpush.bf16.msrb.mxu3 %v1597_v57  ;;  %v1634_v57 = vld [vmem:[%s2013_s1 + $0x308] sm:$0xff] }
  0x32   :  { %972 = vmatpush.bf16.msrb.mxu0 %v1572_v58  ;;  %v1633_v58 = vld [vmem:[%s2013_s1 + $0x300] sm:$0xff] }
  0x33   :  { %998 = vmatpush.bf16.msrb.mxu2 %v1588_v59  ;;  %v250_v59 = vld [vmem:[#allocation1 + $0x24] sm:$0xff] }
  0x34   :  { %985 = vmatpush.bf16.msrb.mxu1 %v1580_v60 }
  0x35   :  { %1011 = vmatpush.bf16.msrb.mxu3 %v1596_v61 }
  0x36   :  { %973 = vmatpush.bf16.msrb.mxu0 %v1571_v62 }
  0x37   :  { %999 = vmatpush.bf16.msrb.mxu2 %v1587_v63 }
  0x38   :  { %986 = vmatpush.bf16.msrb.mxu1 %v1579_v0 }
  0x39   :  { %1012 = vmatpush.bf16.msrb.mxu3 %v1595_v1 }
  0x3a   :  { %974 = vmatpush.bf16.msrb.mxu0 %v1570_v2 }
  0x3b   :  { %1000 = vmatpush.bf16.msrb.mxu2 %v1586_v3 }
  0x3c   :  { %987 = vmatpush.bf16.msrb.mxu1 %v1578_v4 }
  0x3d   :  { %1013 = vmatpush.bf16.msrb.mxu3 %v1594_v5 }
  0x3e   :  { %975 = vmatpush.bf16.msrb.mxu0 %v1569_v6 }
  0x3f   :  { %1001 = vmatpush.bf16.msrb.mxu2 %v1585_v7 }
  0x40   :  { %988 = vmatpush.bf16.msrb.mxu1 %v1577_v10  ;;  %v233_v10 = vld [vmem:[%s2015_s2] sm:$0x1] }
  0x41   :  { %1014 = vmatpush.bf16.msrb.mxu3 %v1593_v11  ;;  %976 = vmatmul.bf16.vlgmr.msrb.gmra.mxu0 %v1799_v49  ;;  %v1643_v49 = vld [vmem:[%s2013_s1 + $0x350] sm:$0xff] }
  0x42   :  { %1020 = vmatpush.bf16.msra.mxu0 %v1608_v8  ;;  %1002 = vmatmul.bf16.vlgmr.msrb.gmra.mxu2 %v1797_v48  ;;  %v1639_v48 = vld [vmem:[%s2013_s1 + $0x330] sm:$0xff] }
  0x43   :  { %1046 = vmatpush.bf16.msra.mxu2 %v1624_v9  ;;  %989 = vmatmul.bf16.vlgmr.msrb.gmra.mxu1 %v1803_v51  ;;  %v1642_v51 = vld [vmem:[%s2013_s1 + $0x348] sm:$0xff] }
  0x44   :  { %1033 = vmatpush.bf16.msra.mxu1 %v1616_v12  ;;  %1015 = vmatmul.bf16.vlgmr.msrb.gmra.mxu3 %v1801_v50  ;;  %v1638_v50 = vld [vmem:[%s2013_s1 + $0x328] sm:$0xff] }
  0x45   :  { %1059 = vmatpush.bf16.msra.mxu3 %v1632_v13 }
  0x46   :  { %1021 = vmatpush.bf16.msra.mxu0 %v1607_v14 }
  0x47   :  { %1047 = vmatpush.bf16.msra.mxu2 %v1623_v15 }
  0x48   :  { %1034 = vmatpush.bf16.msra.mxu1 %v1615_v16 }
  0x49   :  { %1060 = vmatpush.bf16.msra.mxu3 %v1631_v17 }
  0x4a   :  { %1022 = vmatpush.bf16.msra.mxu0 %v1606_v18 }
  0x4b   :  { %1048 = vmatpush.bf16.msra.mxu2 %v1622_v19 }
  0x4c   :  { %1035 = vmatpush.bf16.msra.mxu1 %v1614_v20 }
  0x4d   :  { %1061 = vmatpush.bf16.msra.mxu3 %v1630_v21 }
  0x4e   :  { %1023 = vmatpush.bf16.msra.mxu0 %v1605_v22 }
  0x4f   :  { %1049 = vmatpush.bf16.msra.mxu2 %v1621_v23 }
  0x50   :  { %1036 = vmatpush.bf16.msra.mxu1 %v1613_v24 }
  0x51   :  { %1062 = vmatpush.bf16.msra.mxu3 %v1629_v25 }
  0x52   :  { %1024 = vmatpush.bf16.msra.mxu0 %v1604_v26 }
  0x53   :  { %1050 = vmatpush.bf16.msra.mxu2 %v1620_v27 }
  0x54   :  { %1037 = vmatpush.bf16.msra.mxu1 %v1612_v28 }
  0x55   :  { %1063 = vmatpush.bf16.msra.mxu3 %v1628_v29 }
  0x56   :  { %1025 = vmatpush.bf16.msra.mxu0 %v1603_v30 }
  0x57   :  { %1051 = vmatpush.bf16.msra.mxu2 %v1619_v31 }
  0x58   :  { %1038 = vmatpush.bf16.msra.mxu1 %v1611_v32 }
  0x59   :  { %1064 = vmatpush.bf16.msra.mxu3 %v1627_v33 }
  0x5a   :  { %1026 = vmatpush.bf16.msra.mxu0 %v1602_v34 }
  0x5b   :  { %1052 = vmatpush.bf16.msra.mxu2 %v1618_v35 }
  0x5c   :  { %1039 = vmatpush.bf16.msra.mxu1 %v1610_v36 }
  0x5d   :  { %1065 = vmatpush.bf16.msra.mxu3 %v1626_v37 }
  0x5e   :  { %1027 = vmatpush.bf16.msra.mxu0 %v1601_v38 }
  0x5f   :  { %1053 = vmatpush.bf16.msra.mxu2 %v1617_v39 }
  0x60   :  { %1040 = vmatpush.bf16.msra.mxu1 %v1609_v41 }
  0x61   :  { %1066 = vmatpush.bf16.msra.mxu3 %v1625_v42  ;;  %1028 = vmatmul.bf16.vlgmr.msra.gmra.mxu0 %v246_v43 }
  0x62   :  { %1072 = vmatpush.bf16.msrb.mxu0 %v1640_v40  ;;  %1054 = vmatmul.bf16.vlgmr.msra.gmra.mxu2 %v248_v44 }
  0x63   :  { %1041 = vmatmul.bf16.vlgmr.msra.gmra.mxu1 %v247_v46 }
  0x64   :  { %1089 = vmatpush.bf16.msrb.mxu1 %v1644_v45  ;;  %1067 = vmatmul.bf16.vlgmr.msra.gmra.mxu3 %v249_v47 }
  0x66   :  { %1073 = vmatpush.bf16.msrb.mxu0 %v1639_v48 }
  0x68   :  { %1090 = vmatpush.bf16.msrb.mxu1 %v1643_v49 }
  0x6a   :  { %1074 = vmatpush.bf16.msrb.mxu0 %v1638_v50 }
  0x6c   :  { %1091 = vmatpush.bf16.msrb.mxu1 %v1642_v51 }
  0x6e   :  { %1075 = vmatpush.bf16.msrb.mxu0 %v1637_v52 }
  0x70   :  { %1092 = vmatpush.bf16.msrb.mxu1 %v1641_v53 }
  0x72   :  { %1076 = vmatpush.bf16.msrb.mxu0 %v1636_v54 }
  0x73   :  { %1536 = vmatmul.msk.bf16.vlgmr.msrb.gmra.mxu1 %vm913_vm0, %v251_v56 }
  0x76   :  { %1077 = vmatpush.bf16.msrb.mxu0 %v1635_v55 }
  0x7a   :  { %1078 = vmatpush.bf16.msrb.mxu0 %v1634_v57 }
  0x7e   :  { %1079 = vmatpush.bf16.msrb.mxu0 %v1633_v58 }
  0x81   :  { %1080 = vmatmul.bf16.vlgmr.msrb.gmra.mxu0 %v250_v59 }
  0x9e   :  { %v925_v60 = vpop.f32.mrf.mxu0 }
  0x9f   :  { %v926_v13 = vadd.f32 %v925_v60, %v233_v10 }
  0xa0   :  { %v938_v61 = vpop.f32.mrf.mxu1 }
  0xa1   :  { %v939_v14 = vadd.f32 %v938_v61, %v926_v13 }
  0xa5   :  { %v951_v62 = vpop.f32.mrf.mxu2 }
  0xa6   :  { %v927_v0 = vpop.f32.mrf.mxu0  ;;  %v952_v15 = vadd.f32 %v951_v62, %v939_v14 }
  0xa7   :  { %v964_v63 = vpop.f32.mrf.mxu3 }
  0xa8   :  { %v940_v1 = vpop.f32.mrf.mxu1  ;;  %v965_v17 = vadd.f32 %v964_v63, %v952_v15 }
  0xad   :  { %v953_v2 = vpop.f32.mrf.mxu2 }
  0xaf   :  { %v966_v3 = vpop.f32.mrf.mxu3 }
  0xbe   :  { %v977_v4 = vpop.f32.mrf.mxu0 }
  0xbf   :  { %v978_v19 = vadd.f32 %v977_v4, %v965_v17 }
  0xc0   :  { %v990_v5 = vpop.f32.mrf.mxu1 }
  0xc1   :  { %v991_v23 = vadd.f32 %v990_v5, %v978_v19 }
  0xc5   :  { %v1003_v6 = vpop.f32.mrf.mxu2 }
  0xc6   :  { %v979_v8 = vpop.f32.mrf.mxu0  ;;  %v1004_v25 = vadd.f32 %v1003_v6, %v991_v23 }
  0xc7   :  { %v1016_v7 = vpop.f32.mrf.mxu3 }
  0xc8   :  { %v992_v9 = vpop.f32.mrf.mxu1  ;;  %v1017_v28 = vadd.f32 %v1016_v7, %v1004_v25 }
  0xcd   :  { %v1005_v11 = vpop.f32.mrf.mxu2 }
  0xcf   :  { %v1018_v12 = vpop.f32.mrf.mxu3 }
  0xde   :  { %v1029_v16 = vpop.f32.mrf.mxu0 }
  0xdf   :  { %v1030_v30 = vadd.f32 %v1029_v16, %v1017_v28 }
  0xe0   :  { %v1042_v18 = vpop.f32.mrf.mxu1 }
  0xe1   :  { %v1043_v31 = vadd.f32 %v1042_v18, %v1030_v30 }
  0xe5   :  { %v1055_v20 = vpop.f32.mrf.mxu2 }
  0xe6   :  { %v1031_v22 = vpop.f32.mrf.mxu0  ;;  %v1056_v32 = vadd.f32 %v1055_v20, %v1043_v31 }
  0xe7   :  { %v1068_v21 = vpop.f32.mrf.mxu3 }
  0xe8   :  { %v1044_v24 = vpop.f32.mrf.mxu1  ;;  %v1069_v34 = vadd.f32 %v1068_v21, %v1056_v32 }
  0xed   :  { %v1057_v26 = vpop.f32.mrf.mxu2 }
  0xef   :  { %v1070_v27 = vpop.f32.mrf.mxu3 }
  0xf0   :  { %v1094_v29 = vpop.f32.mrf.mxu1 }
  0xf8   :  { %v1096_v33 = vpop.f32.mrf.mxu1 }
  0xfe   :  { %v1081_v35 = vpop.f32.mrf.mxu0 }
  0xff   :  { %v1082_v36 = vadd.f32 %v1081_v35, %v1069_v34 }
 0x101   :  { %v1095_v37 = vadd.f32 %v1094_v29, %v1082_v36 }
 0x103   :  { %1099 = vst.msk [vmem:[%s2016_s3] sm:$0x1] %vm1098_vm1, %v1095_v37 }
 0x106   :  { %v1083_v38 = vpop.f32.mrf.mxu0 }

// kernel: ifnet_forward.56
= control target key start
LH: loop header
LB: loop body
LE: loop exit
PB: predicated region body
PF: predicated region fallthrough
CT: control target
= control target key end

     0   :  { %vm85_vm0 = vcmask 1045504   ;;  %vm81_vm1 = vcmask 883712   ;;  %vm111_vm3 = vcmask 519168   ;;  %s216_s1 = inlined_call_operand.vmem [shape: bf16[108,64], index: 1, kind: input, shape index: {}]   ;;  %s217_s2 = inlined_call_operand.vmem [shape: f32[1,64], index: 2, kind: input, shape index: {}]   ;;  %s218_s0 = inlined_call_operand.vmem [shape: bf16[16,108], index: 0, kind: input, shape index: {}]   ;;  %s219_s3 = inlined_call_operand.vmem [shape: bf16[16,64], index: 3, kind: output, shape index: {}]  }
   0x1   :  { %v148_v0 = vld [vmem:[%s216_s1 + $0x30] sm:$0xf]  ;;  %v158_v1 = vld [vmem:[%s216_s1 + $0x30] sm:$0x30]  ;;  %v157_v4 = vld [vmem:[%s216_s1 + $0x28] sm:$0xff] }
   0x2   :  { %v149_v2 = vor.u32 %v158_v1, %v148_v0  ;;  %v156_v5 = vld [vmem:[%s216_s1 + $0x20] sm:$0xff]  ;;  %v155_v6 = vld [vmem:[%s216_s1 + $0x18] sm:$0xff]  ;;  %v154_v7 = vld [vmem:[%s216_s1 + $0x10] sm:$0xff] }
   0x3   :  { %v153_v8 = vld [vmem:[%s216_s1 + $0x8] sm:$0xff]  ;;  %v152_v9 = vld [vmem:[%s216_s1] sm:$0xff] }
   0x4   :  { %v87_v3 = vsel %vm85_vm0, %v149_v2, 0  ;;  %v151_v10 = vld [vmem:[%s218_s0] sm:$0xff] }
   0x5   :  { %90 = vmatpush.bf16.msra.mxu0 %v87_v3  ;;  %v159_v11 = vld [vmem:[%s217_s2] ss:$0 sm:$0xff] }
   0x9   :  { %91 = vmatpush.bf16.msra.mxu0 %v157_v4 }
   0xd   :  { %92 = vmatpush.bf16.msra.mxu0 %v156_v5 }
  0x11   :  { %93 = vmatpush.bf16.msra.mxu0 %v155_v6 }
  0x15   :  { %94 = vmatpush.bf16.msra.mxu0 %v154_v7 }
  0x19   :  { %95 = vmatpush.bf16.msra.mxu0 %v153_v8 }
  0x1d   :  { %96 = vmatpush.bf16.msra.mxu0 %v152_v9 }
  0x20   :  { %150 = vmatmul.msk.bf16.vlgmr.msra.gmra.mxu0 %vm81_vm1, %v151_v10 }
  0x9d   :  { %v98_v12 = vpop.f32.mrf.mxu0 }
  0x9e   :  { %v99_v13 = vadd.f32 %v159_v11, %v98_v12 }
  0xa0   :  { %vm103_vm2 = vcmp.ge.f32.partialorder %v99_v13, 0.0  ;;  %v105_v14 = vmul.f32 0.2, %v99_v13 }
  0xa2   :  { %v107_v15 = vsel %vm103_vm2, %v99_v13, %v105_v14 }
  0xa3   :  { %v109_v16 = vpack.c.bf16 %v107_v15, %v107_v15 }
  0xa5   :  { %112 = vst.msk [vmem:[%s219_s3] sm:$0xf] %vm111_vm3, %v109_v16  ;;  %v100_v17 = vpop.f32.mrf.mxu0 }
  0xa6   :  { %v101_v18 = vadd.f32 %v159_v11, %v100_v17 }
  0xa8   :  { %vm104_vm4 = vcmp.ge.f32.partialorder %v101_v18, 0.0  ;;  %v106_v19 = vmul.f32 0.2, %v101_v18 }
  0xaa   :  { %v108_v20 = vsel %vm104_vm4, %v101_v18, %v106_v19 }
  0xab   :  { %v110_v21 = vpack.c.bf16 %v108_v20, %v108_v20 }
  0xad   :  { %113 = vst.msk [vmem:[%s219_s3 + $0x4] sm:$0xf] %vm111_vm3, %v110_v21 }

// kernel: ifnet_forward.57
= control target key start
LH: loop header
LB: loop body
LE: loop exit
PB: predicated region body
PF: predicated region fallthrough
CT: control target
= control target key end

     0   :  { %vm323_vm0 = vcmask 523264   ;;  %s722_s1 = inlined_call_operand.vmem [shape: bf16[576,128], index: 1, kind: input, shape index: {}]   ;;  %s723_s0 = inlined_call_operand.vmem [shape: bf16[4,576], index: 0, kind: input, shape index: {}]   ;;  %s724_s2 = inlined_call_operand.vmem [shape: f32[1,128], index: 2, kind: input, shape index: {}]   ;;  %s725_s3 = inlined_call_operand.vmem [shape: bf16[4,128], index: 3, kind: output, shape index: {}]  }
   0x1   :  { %v552_v0 = vld [vmem:[%s722_s1 + $0x38] sm:$0xff]  ;;  %v551_v4 = vld [vmem:[%s722_s1 + $0x30] sm:$0xff]  ;;  %v550_v8 = vld [vmem:[%s722_s1 + $0x28] sm:$0xff] }
   0x2   :  { %v568_v1 = vld [vmem:[%s722_s1 + $0xb8] sm:$0xff]  ;;  %326 = vmatpush.bf16.msra.mxu0 %v552_v0  ;;  %v567_v5 = vld [vmem:[%s722_s1 + $0xb0] sm:$0xff]  ;;  %v566_v9 = vld [vmem:[%s722_s1 + $0xa8] sm:$0xff] }
   0x3   :  { %v576_v2 = vld [vmem:[%s722_s1 + $0xf8] sm:$0xff]  ;;  %352 = vmatpush.bf16.msra.mxu2 %v568_v1  ;;  %v575_v6 = vld [vmem:[%s722_s1 + $0xf0] sm:$0xff]  ;;  %v574_v10 = vld [vmem:[%s722_s1 + $0xe8] sm:$0xff] }
   0x4   :  { %v560_v3 = vld [vmem:[%s722_s1 + $0x78] sm:$0xff]  ;;  %365 = vmatpush.bf16.msra.mxu3 %v576_v2  ;;  %v559_v7 = vld [vmem:[%s722_s1 + $0x70] sm:$0xff]  ;;  %v558_v11 = vld [vmem:[%s722_s1 + $0x68] sm:$0xff] }
   0x5   :  { %339 = vmatpush.bf16.msra.mxu1 %v560_v3  ;;  %v549_v12 = vld [vmem:[%s722_s1 + $0x20] sm:$0xff]  ;;  %v16_v17 = vld [vmem:[%s723_s0 + $0x8] sm:$0x3]  ;;  %v548_v18 = vld [vmem:[%s722_s1 + $0x18] sm:$0xff] }
   0x6   :  { %327 = vmatpush.bf16.msra.mxu0 %v551_v4  ;;  %v565_v13 = vld [vmem:[%s722_s1 + $0xa0] sm:$0xff]  ;;  %97 = vst [vmem:[#allocation1 + $0x20] ss:$4 sm:$0xff] %v16_v17  ;;  %v564_v19 = vld [vmem:[%s722_s1 + $0x98] sm:$0xff]  ;;  %v547_v22 = vld [vmem:[%s722_s1 + $0x10] sm:$0xff] }
   0x7   :  { %353 = vmatpush.bf16.msra.mxu2 %v567_v5  ;;  %v15_v14 = vld [vmem:[%s723_s0] sm:$0xff]  ;;  %v572_v20 = vld [vmem:[%s722_s1 + $0xd8] sm:$0xff]  ;;  %v563_v23 = vld [vmem:[%s722_s1 + $0x90] sm:$0xff] }
   0x8   :  { %366 = vmatpush.bf16.msra.mxu3 %v575_v6  ;;  %v573_v15 = vld [vmem:[%s722_s1 + $0xe0] sm:$0xff]  ;;  %94 = vst [vmem:[#allocation1] ss:$4 sm:$0xff] %v15_v14  ;;  %v556_v21 = vld [vmem:[%s722_s1 + $0x58] sm:$0xff]  ;;  %v571_v24 = vld [vmem:[%s722_s1 + $0xd0] sm:$0xff] }
   0x9   :  { %340 = vmatpush.bf16.msra.mxu1 %v559_v7  ;;  %v557_v16 = vld [vmem:[%s722_s1 + $0x60] sm:$0xff]  ;;  %v555_v25 = vld [vmem:[%s722_s1 + $0x50] sm:$0xff]  ;;  %v546_v26 = vld [vmem:[%s722_s1 + $0x8] sm:$0xff] }
   0xa   :  { %328 = vmatpush.bf16.msra.mxu0 %v550_v8  ;;  %v562_v27 = vld [vmem:[%s722_s1 + $0x88] sm:$0xff]  ;;  %v545_v30 = vld [vmem:[%s722_s1] sm:$0xff]  ;;  %v580_v34 = vld [vmem:[%s722_s1 + $0x118] sm:$0xff] }
   0xb   :  { %354 = vmatpush.bf16.msra.mxu2 %v566_v9  ;;  %v570_v28 = vld [vmem:[%s722_s1 + $0xc8] sm:$0xff]  ;;  %v561_v31 = vld [vmem:[%s722_s1 + $0x80] sm:$0xff]  ;;  %v579_v39 = vld [vmem:[%s722_s1 + $0x110] sm:$0xff] }
   0xc   :  { %367 = vmatpush.bf16.msra.mxu3 %v574_v10  ;;  %v554_v29 = vld [vmem:[%s722_s1 + $0x48] sm:$0xff]  ;;  %v569_v32 = vld [vmem:[%s722_s1 + $0xc0] sm:$0xff] }
   0xd   :  { %341 = vmatpush.bf16.msra.mxu1 %v558_v11  ;;  %v553_v33 = vld [vmem:[%s722_s1 + $0x40] sm:$0xff]  ;;  %v578_v40 = vld [vmem:[%s722_s1 + $0x108] sm:$0xff] }
   0xe   :  { %329 = vmatpush.bf16.msra.mxu0 %v549_v12  ;;  %v577_v41 = vld [vmem:[%s722_s1 + $0x100] sm:$0xff] }
   0xf   :  { %355 = vmatpush.bf16.msra.mxu2 %v565_v13  ;;  %v98_v35 = vld.sshfl [vmem:[#allocation1] sm:$0xff pattern:$0x73625140]  ;;  %v100_v36 = vld.sshfl [vmem:[#allocation1 + $0x10] sm:$0xff pattern:$0x73625140] }
  0x10   :  { %368 = vmatpush.bf16.msra.mxu3 %v573_v15  ;;  %v101_v37 = vld.sshfl [vmem:[#allocation1 + $0x18] sm:$0xff pattern:$0x73625140]  ;;  %v99_v38 = vld.sshfl [vmem:[#allocation1 + $0x8] sm:$0xff pattern:$0x73625140] }
  0x11   :  { %342 = vmatpush.bf16.msra.mxu1 %v557_v16  ;;  %v102_v42 = vld.sshfl [vmem:[#allocation1 + $0x20] sm:$0xff pattern:$0x73625140] }
  0x12   :  { %330 = vmatpush.bf16.msra.mxu0 %v548_v18  ;;  %v581_v44 = vld [vmem:[%s724_s2] ss:$0 sm:$0xff] }
  0x13   :  { %356 = vmatpush.bf16.msra.mxu2 %v564_v19 }
  0x14   :  { %369 = vmatpush.bf16.msra.mxu3 %v572_v20 }
  0x15   :  { %343 = vmatpush.bf16.msra.mxu1 %v556_v21 }
  0x16   :  { %331 = vmatpush.bf16.msra.mxu0 %v547_v22 }
  0x17   :  { %357 = vmatpush.bf16.msra.mxu2 %v563_v23 }
  0x18   :  { %370 = vmatpush.bf16.msra.mxu3 %v571_v24 }
  0x19   :  { %344 = vmatpush.bf16.msra.mxu1 %v555_v25 }
  0x1a   :  { %332 = vmatpush.bf16.msra.mxu0 %v546_v26 }
  0x1b   :  { %358 = vmatpush.bf16.msra.mxu2 %v562_v27 }
  0x1c   :  { %371 = vmatpush.bf16.msra.mxu3 %v570_v28 }
  0x1d   :  { %345 = vmatpush.bf16.msra.mxu1 %v554_v29 }
  0x1e   :  { %333 = vmatpush.bf16.msra.mxu0 %v545_v30 }
  0x1f   :  { %359 = vmatpush.bf16.msra.mxu2 %v561_v31 }
  0x20   :  { %372 = vmatpush.bf16.msra.mxu3 %v569_v32 }
  0x21   :  { %346 = vmatpush.bf16.msra.mxu1 %v553_v33  ;;  %334 = vmatmul.bf16.vlgmr.msra.gmra.mxu0 %v98_v35 }
  0x22   :  { %382 = vmatpush.bf16.msrb.mxu0 %v580_v34  ;;  %360 = vmatmul.bf16.vlgmr.msra.gmra.mxu2 %v100_v36 }
  0x23   :  { %373 = vmatmul.bf16.vlgmr.msra.gmra.mxu3 %v101_v37 }
  0x24   :  { %347 = vmatmul.bf16.vlgmr.msra.gmra.mxu1 %v99_v38 }
  0x26   :  { %383 = vmatpush.bf16.msrb.mxu0 %v579_v39 }
  0x2a   :  { %384 = vmatpush.bf16.msrb.mxu0 %v578_v40 }
  0x2e   :  { %385 = vmatpush.bf16.msrb.mxu0 %v577_v41 }
  0x31   :  { %544 = vmatmul.msk.bf16.vlgmr.msrb.gmra.mxu0 %vm323_vm0, %v102_v42 }
  0x9e   :  { %v335_v43 = vpop.f32.mrf.mxu0 }
  0x9f   :  { %v336_v46 = vadd.f32 %v581_v44, %v335_v43 }
  0xa1   :  { %v348_v45 = vpop.f32.mrf.mxu1 }
  0xa2   :  { %v349_v50 = vadd.f32 %v348_v45, %v336_v46 }
  0xa5   :  { %v361_v47 = vpop.f32.mrf.mxu2 }
  0xa6   :  { %v374_v48 = vpop.f32.mrf.mxu3  ;;  %v337_v49 = vpop.f32.mrf.mxu0  ;;  %v362_v52 = vadd.f32 %v361_v47, %v349_v50 }
  0xa8   :  { %v375_v54 = vadd.f32 %v374_v48, %v362_v52 }
  0xa9   :  { %v350_v51 = vpop.f32.mrf.mxu1 }
  0xad   :  { %v363_v53 = vpop.f32.mrf.mxu2 }
  0xae   :  { %v376_v55 = vpop.f32.mrf.mxu3  ;;  %v387_v56 = vpop.f32.mrf.mxu0 }
  0xaf   :  { %v388_v57 = vadd.f32 %v387_v56, %v375_v54 }
  0xb1   :  { %vm391_vm1 = vcmp.ge.f32.partialorder %v388_v57, 0.0  ;;  %v392_v58 = vmul.f32 0.2, %v388_v57 }
  0xb3   :  { %v393_v59 = vsel %vm391_vm1, %v388_v57, %v392_v58 }
  0xb4   :  { %v394_v60 = vpack.c.bf16 %v393_v59, %v393_v59 }
  0xb6   :  { %395 = vst [vmem:[%s725_s3] sm:$0x3] %v394_v60  ;;  %v389_v61 = vpop.f32.mrf.mxu0 }

// kernel: ifnet_forward.58
= control target key start
LH: loop header
LB: loop body
LE: loop exit
PB: predicated region body
PF: predicated region fallthrough
CT: control target
= control target key end

     0   :  { %10 = vsyncpa [#allocation3], 0  ;;  %s1166_s21 = smov [#allocation2]   ;;  %s1428_s0 = inlined_call_operand.hbm [shape: bf16[4,1152], index: 0, kind: input, shape index: {}]   ;;  %s1429_s1 = inlined_call_operand.vmem [shape: bf16[1152,128], index: 1, kind: input, shape index: {}]   ;;  %s1430_s2 = inlined_call_operand.vmem [shape: f32[1,128], index: 2, kind: input, shape index: {}]   ;;  %s1431_s3 = inlined_call_operand.vmem [shape: f32[1,128], index: 3, kind: input, shape index: {}]   ;;  %s1432_s4 = inlined_call_operand.vmem [shape: bf16[4,128], index: 4, kind: input, shape index: {}, may-alias: {4,5}]   ;;  %s1433_s5 = inlined_call_operand.vmem [shape: bf16[4,128], index: 5, kind: output, shape index: {}, may-alias: {4,5}]  }
   0x1   :  { %s16_s20 = sshll.u32 %s1428_s0, 4  ;;  %s18_s22 = sshll.u32 %s1166_s21, 4  ;;  %s17_s20 = int_to_ptr.hbm [resolvable:$true] %s16_s20  ;;  %s19_s22 = int_to_ptr.vmem [resolvable:$true] %s18_s22 }
   0x2   :  { %21 = dma.hbm_to_vmem [thread:$0]  %s17_s20, 288, %s19_s22, [#allocation3]  }
   0x3   :  { %1164 = dma.done.wait [#allocation3], 288  }
   0x4   :  { %1165 = vsyncadd [#allocation3], 4294967008  ;;  %v1072_v0 = vld [vmem:[%s1429_s1 + $0x38] sm:$0xff]  ;;  %v1071_v4 = vld [vmem:[%s1429_s1 + $0x30] sm:$0xff] }
   0x5   :  { %v1088_v1 = vld [vmem:[%s1429_s1 + $0xb8] sm:$0xff]  ;;  %642 = vmatpush.bf16.msra.mxu0 %v1072_v0  ;;  %v1087_v5 = vld [vmem:[%s1429_s1 + $0xb0] sm:$0xff]  ;;  %v1070_v8 = vld [vmem:[%s1429_s1 + $0x28] sm:$0xff] }
   0x6   :  { %v1096_v2 = vld [vmem:[%s1429_s1 + $0xf8] sm:$0xff]  ;;  %668 = vmatpush.bf16.msra.mxu2 %v1088_v1  ;;  %v1095_v6 = vld [vmem:[%s1429_s1 + $0xf0] sm:$0xff]  ;;  %v1086_v9 = vld [vmem:[%s1429_s1 + $0xa8] sm:$0xff] }
   0x7   :  { %v1080_v3 = vld [vmem:[%s1429_s1 + $0x78] sm:$0xff]  ;;  %681 = vmatpush.bf16.msra.mxu3 %v1096_v2  ;;  %v1079_v7 = vld [vmem:[%s1429_s1 + $0x70] sm:$0xff]  ;;  %v1094_v10 = vld [vmem:[%s1429_s1 + $0xe8] sm:$0xff] }
   0x8   :  { %655 = vmatpush.bf16.msra.mxu1 %v1080_v3  ;;  %v1078_v11 = vld [vmem:[%s1429_s1 + $0x68] sm:$0xff]  ;;  %v1069_v12 = vld [vmem:[%s1429_s1 + $0x20] sm:$0xff]  ;;  %v1068_v16 = vld [vmem:[%s1429_s1 + $0x18] sm:$0xff] }
   0x9   :  { %643 = vmatpush.bf16.msra.mxu0 %v1071_v4  ;;  %v1085_v13 = vld [vmem:[%s1429_s1 + $0xa0] sm:$0xff]  ;;  %v1084_v17 = vld [vmem:[%s1429_s1 + $0x98] sm:$0xff]  ;;  %v34_v20 = vld [vmem:[#allocation2] sm:$0xff] }
   0xa   :  { %669 = vmatpush.bf16.msra.mxu2 %v1087_v5  ;;  %v1093_v14 = vld [vmem:[%s1429_s1 + $0xe0] sm:$0xff]  ;;  %v1092_v18 = vld [vmem:[%s1429_s1 + $0xd8] sm:$0xff]  ;;  %186 = vst [vmem:[#allocation1] ss:$4 sm:$0xff] %v34_v20  ;;  %v1067_v21 = vld [vmem:[%s1429_s1 + $0x10] sm:$0xff] }
   0xb   :  { %682 = vmatpush.bf16.msra.mxu3 %v1095_v6  ;;  %v1077_v15 = vld [vmem:[%s1429_s1 + $0x60] sm:$0xff]  ;;  %v1076_v19 = vld [vmem:[%s1429_s1 + $0x58] sm:$0xff]  ;;  %v1083_v22 = vld [vmem:[%s1429_s1 + $0x90] sm:$0xff] }
   0xc   :  { %656 = vmatpush.bf16.msra.mxu1 %v1079_v7  ;;  %v1091_v23 = vld [vmem:[%s1429_s1 + $0xd0] sm:$0xff]  ;;  %v1066_v25 = vld [vmem:[%s1429_s1 + $0x8] sm:$0xff]  ;;  %v36_v29 = vld [vmem:[#allocation2 + $0x10] sm:$0x3] }
   0xd   :  { %644 = vmatpush.bf16.msra.mxu0 %v1070_v8  ;;  %v1075_v24 = vld [vmem:[%s1429_s1 + $0x50] sm:$0xff]  ;;  %v1082_v26 = vld [vmem:[%s1429_s1 + $0x88] sm:$0xff]  ;;  %v1065_v34 = vld [vmem:[%s1429_s1] sm:$0xff] }
   0xe   :  { %670 = vmatpush.bf16.msra.mxu2 %v1086_v9  ;;  %v1090_v27 = vld [vmem:[%s1429_s1 + $0xc8] sm:$0xff]  ;;  %v1081_v35 = vld [vmem:[%s1429_s1 + $0x80] sm:$0xff]  ;;  %v35_v36 = vld [vmem:[#allocation2 + $0x8] sm:$0xff] }
   0xf   :  { %683 = vmatpush.bf16.msra.mxu3 %v1094_v10  ;;  %v1074_v28 = vld [vmem:[%s1429_s1 + $0x48] sm:$0xff]  ;;  %v1104_v37 = vld [vmem:[%s1429_s1 + $0x138] sm:$0xff]  ;;  %189 = vst [vmem:[#allocation1 + $0x20] ss:$4 sm:$0xff] %v35_v36  ;;  %v1089_v39 = vld [vmem:[%s1429_s1 + $0xc0] sm:$0xff] }
  0x10   :  { %657 = vmatpush.bf16.msra.mxu1 %v1078_v11  ;;  %v1120_v38 = vld [vmem:[%s1429_s1 + $0x1b8] sm:$0xff]  ;;  %v1073_v40 = vld [vmem:[%s1429_s1 + $0x40] sm:$0xff]  ;;  %v1103_v43 = vld [vmem:[%s1429_s1 + $0x130] sm:$0xff] }
  0x11   :  { %645 = vmatpush.bf16.msra.mxu0 %v1069_v12  ;;  %v192_v30 = vld.sshfl [vmem:[#allocation1 + $0x10] sm:$0xff pattern:$0x73625140]  ;;  %v190_v31 = vld.sshfl [vmem:[#allocation1] sm:$0xff pattern:$0x73625140] }
  0x12   :  { %671 = vmatpush.bf16.msra.mxu2 %v1085_v13  ;;  %v193_v32 = vld.sshfl [vmem:[#allocation1 + $0x18] sm:$0xff pattern:$0x73625140]  ;;  %v191_v33 = vld.sshfl [vmem:[#allocation1 + $0x8] sm:$0xff pattern:$0x73625140] }
  0x13   :  { %684 = vmatpush.bf16.msra.mxu3 %v1093_v14  ;;  %199 = vst [vmem:[#allocation1] ss:$4 sm:$0xff] %v36_v29  ;;  %v1128_v41 = vld [vmem:[%s1429_s1 + $0x1f8] sm:$0xff]  ;;  %v1119_v44 = vld [vmem:[%s1429_s1 + $0x1b0] sm:$0xff]  ;;  %v1102_v47 = vld [vmem:[%s1429_s1 + $0x128] sm:$0xff] }
  0x14   :  { %658 = vmatpush.bf16.msra.mxu1 %v1077_v15  ;;  %v1112_v42 = vld [vmem:[%s1429_s1 + $0x178] sm:$0xff]  ;;  %v1127_v45 = vld [vmem:[%s1429_s1 + $0x1f0] sm:$0xff]  ;;  %v1118_v48 = vld [vmem:[%s1429_s1 + $0x1a8] sm:$0xff] }
  0x15   :  { %646 = vmatpush.bf16.msra.mxu0 %v1068_v16  ;;  %v1111_v46 = vld [vmem:[%s1429_s1 + $0x170] sm:$0xff]  ;;  %v1126_v49 = vld [vmem:[%s1429_s1 + $0x1e8] sm:$0xff]  ;;  %v1101_v51 = vld [vmem:[%s1429_s1 + $0x120] sm:$0xff] }
  0x16   :  { %672 = vmatpush.bf16.msra.mxu2 %v1084_v17  ;;  %v1110_v50 = vld [vmem:[%s1429_s1 + $0x168] sm:$0xff]  ;;  %v1117_v52 = vld [vmem:[%s1429_s1 + $0x1a0] sm:$0xff]  ;;  %v1100_v55 = vld [vmem:[%s1429_s1 + $0x118] sm:$0xff] }
  0x17   :  { %685 = vmatpush.bf16.msra.mxu3 %v1092_v18  ;;  %v1125_v53 = vld [vmem:[%s1429_s1 + $0x1e0] sm:$0xff]  ;;  %v1116_v56 = vld [vmem:[%s1429_s1 + $0x198] sm:$0xff]  ;;  %v1099_v59 = vld [vmem:[%s1429_s1 + $0x110] sm:$0xff] }
  0x18   :  { %659 = vmatpush.bf16.msra.mxu1 %v1076_v19  ;;  %v1109_v54 = vld [vmem:[%s1429_s1 + $0x160] sm:$0xff]  ;;  %v1124_v57 = vld [vmem:[%s1429_s1 + $0x1d8] sm:$0xff]  ;;  %v1115_v60 = vld [vmem:[%s1429_s1 + $0x190] sm:$0xff] }
  0x19   :  { %647 = vmatpush.bf16.msra.mxu0 %v1067_v21  ;;  %v1108_v58 = vld [vmem:[%s1429_s1 + $0x158] sm:$0xff]  ;;  %v1123_v61 = vld [vmem:[%s1429_s1 + $0x1d0] sm:$0xff]  ;;  %v1098_v63 = vld [vmem:[%s1429_s1 + $0x108] sm:$0xff] }
  0x1a   :  { %673 = vmatpush.bf16.msra.mxu2 %v1083_v22  ;;  %v1107_v62 = vld [vmem:[%s1429_s1 + $0x150] sm:$0xff]  ;;  %v1114_v0 = vld [vmem:[%s1429_s1 + $0x188] sm:$0xff]  ;;  %v1097_v3 = vld [vmem:[%s1429_s1 + $0x100] sm:$0xff] }
  0x1b   :  { %686 = vmatpush.bf16.msra.mxu3 %v1091_v23  ;;  %v1122_v1 = vld [vmem:[%s1429_s1 + $0x1c8] sm:$0xff]  ;;  %v1113_v4 = vld [vmem:[%s1429_s1 + $0x180] sm:$0xff]  ;;  %v1136_v5 = vld [vmem:[%s1429_s1 + $0x238] sm:$0xff] }
  0x1c   :  { %660 = vmatpush.bf16.msra.mxu1 %v1075_v24  ;;  %v1106_v2 = vld [vmem:[%s1429_s1 + $0x148] sm:$0xff]  ;;  %v1121_v6 = vld [vmem:[%s1429_s1 + $0x1c0] sm:$0xff]  ;;  %v196_v8 = vld.sshfl [vmem:[#allocation1 + $0x30] sm:$0xff pattern:$0x73625140] }
  0x1d   :  { %648 = vmatpush.bf16.msra.mxu0 %v1066_v25  ;;  %v1105_v7 = vld [vmem:[%s1429_s1 + $0x140] sm:$0xff]  ;;  %v1135_v10 = vld [vmem:[%s1429_s1 + $0x230] sm:$0xff]  ;;  %v197_v11 = vld.sshfl [vmem:[#allocation1 + $0x38] sm:$0xff pattern:$0x73625140] }
  0x1e   :  { %674 = vmatpush.bf16.msra.mxu2 %v1082_v26  ;;  %v194_v9 = vld.sshfl [vmem:[#allocation1 + $0x20] sm:$0xff pattern:$0x73625140]  ;;  %v195_v12 = vld.sshfl [vmem:[#allocation1 + $0x28] sm:$0xff pattern:$0x73625140] }
  0x1f   :  { %687 = vmatpush.bf16.msra.mxu3 %v1090_v27  ;;  %v1134_v13 = vld [vmem:[%s1429_s1 + $0x228] sm:$0xff]  ;;  %v1133_v14 = vld [vmem:[%s1429_s1 + $0x220] sm:$0xff]  ;;  %v1132_v15 = vld [vmem:[%s1429_s1 + $0x218] sm:$0xff] }
  0x20   :  { %661 = vmatpush.bf16.msra.mxu1 %v1074_v28  ;;  %v1131_v16 = vld [vmem:[%s1429_s1 + $0x210] sm:$0xff]  ;;  %v1130_v17 = vld [vmem:[%s1429_s1 + $0x208] sm:$0xff]  ;;  %v1129_v18 = vld [vmem:[%s1429_s1 + $0x200] sm:$0xff] }
  0x21   :  { %649 = vmatpush.bf16.msra.mxu0 %v1065_v34  ;;  %v200_v19 = vld.sshfl [vmem:[#allocation1] sm:$0xff pattern:$0x73625140] }
  0x22   :  { %675 = vmatpush.bf16.msra.mxu2 %v1081_v35  ;;  %v1138_v28 = vld [vmem:[%s1430_s2] ss:$0 sm:$0xff] }
  0x23   :  { %688 = vmatpush.bf16.msra.mxu3 %v1089_v39 }
  0x24   :  { %662 = vmatpush.bf16.msra.mxu1 %v1073_v40  ;;  %650 = vmatmul.bf16.vlgmr.msra.gmra.mxu0 %v190_v31 }
  0x25   :  { %694 = vmatpush.bf16.msrb.mxu0 %v1104_v37  ;;  %676 = vmatmul.bf16.vlgmr.msra.gmra.mxu2 %v192_v30 }
  0x26   :  { %720 = vmatpush.bf16.msrb.mxu2 %v1120_v38  ;;  %689 = vmatmul.bf16.vlgmr.msra.gmra.mxu3 %v193_v32 }
  0x27   :  { %733 = vmatpush.bf16.msrb.mxu3 %v1128_v41  ;;  %663 = vmatmul.bf16.vlgmr.msra.gmra.mxu1 %v191_v33 }
  0x28   :  { %707 = vmatpush.bf16.msrb.mxu1 %v1112_v42 }
  0x29   :  { %695 = vmatpush.bf16.msrb.mxu0 %v1103_v43 }
  0x2a   :  { %721 = vmatpush.bf16.msrb.mxu2 %v1119_v44  ;;  %v764_v44 = vld [vmem:[%s1432_s4] sm:$0x3] }
  0x2b   :  { %734 = vmatpush.bf16.msrb.mxu3 %v1127_v45 }
  0x2c   :  { %708 = vmatpush.bf16.msrb.mxu1 %v1111_v46  ;;  %v1139_v46 = vld [vmem:[%s1431_s3] ss:$0 sm:$0xff] }
  0x2d   :  { %696 = vmatpush.bf16.msrb.mxu0 %v1102_v47 }
  0x2e   :  { %722 = vmatpush.bf16.msrb.mxu2 %v1118_v48 }
  0x2f   :  { %735 = vmatpush.bf16.msrb.mxu3 %v1126_v49  ;;  %v765_v49 = vunpack.c.l.bf16 %v764_v44 }
  0x30   :  { %709 = vmatpush.bf16.msrb.mxu1 %v1110_v50 }
  0x31   :  { %697 = vmatpush.bf16.msrb.mxu0 %v1101_v51 }
  0x32   :  { %723 = vmatpush.bf16.msrb.mxu2 %v1117_v52 }
  0x33   :  { %736 = vmatpush.bf16.msrb.mxu3 %v1125_v53 }
  0x34   :  { %710 = vmatpush.bf16.msrb.mxu1 %v1109_v54 }
  0x35   :  { %698 = vmatpush.bf16.msrb.mxu0 %v1100_v55 }
  0x36   :  { %724 = vmatpush.bf16.msrb.mxu2 %v1116_v56 }
  0x37   :  { %737 = vmatpush.bf16.msrb.mxu3 %v1124_v57 }
  0x38   :  { %711 = vmatpush.bf16.msrb.mxu1 %v1108_v58 }
  0x39   :  { %699 = vmatpush.bf16.msrb.mxu0 %v1099_v59 }
  0x3a   :  { %725 = vmatpush.bf16.msrb.mxu2 %v1115_v60 }
  0x3b   :  { %738 = vmatpush.bf16.msrb.mxu3 %v1123_v61 }
  0x3c   :  { %712 = vmatpush.bf16.msrb.mxu1 %v1107_v62 }
  0x3d   :  { %700 = vmatpush.bf16.msrb.mxu0 %v1098_v63 }
  0x3e   :  { %726 = vmatpush.bf16.msrb.mxu2 %v1114_v0 }
  0x3f   :  { %739 = vmatpush.bf16.msrb.mxu3 %v1122_v1 }
  0x40   :  { %713 = vmatpush.bf16.msrb.mxu1 %v1106_v2 }
  0x41   :  { %701 = vmatpush.bf16.msrb.mxu0 %v1097_v3 }
  0x42   :  { %727 = vmatpush.bf16.msrb.mxu2 %v1113_v4 }
  0x43   :  { %740 = vmatpush.bf16.msrb.mxu3 %v1121_v6 }
  0x44   :  { %714 = vmatpush.bf16.msrb.mxu1 %v1105_v7  ;;  %702 = vmatmul.bf16.vlgmr.msrb.gmra.mxu0 %v194_v9 }
  0x45   :  { %746 = vmatpush.bf16.msra.mxu0 %v1136_v5  ;;  %728 = vmatmul.bf16.vlgmr.msrb.gmra.mxu2 %v196_v8 }
  0x46   :  { %741 = vmatmul.bf16.vlgmr.msrb.gmra.mxu3 %v197_v11 }
  0x47   :  { %715 = vmatmul.bf16.vlgmr.msrb.gmra.mxu1 %v195_v12 }
  0x49   :  { %747 = vmatpush.bf16.msra.mxu0 %v1135_v10 }
  0x4d   :  { %748 = vmatpush.bf16.msra.mxu0 %v1134_v13 }
  0x51   :  { %749 = vmatpush.bf16.msra.mxu0 %v1133_v14 }
  0x55   :  { %750 = vmatpush.bf16.msra.mxu0 %v1132_v15 }
  0x59   :  { %751 = vmatpush.bf16.msra.mxu0 %v1131_v16 }
  0x5d   :  { %752 = vmatpush.bf16.msra.mxu0 %v1130_v17 }
  0x61   :  { %753 = vmatpush.bf16.msra.mxu0 %v1129_v18 }
  0x64   :  { %754 = vmatmul.bf16.vlgmr.msra.gmra.mxu0 %v200_v19 }
  0xa1   :  { %v651_v20 = vpop.f32.mrf.mxu0 }
  0xa2   :  { %v652_v29 = vadd.f32 %v1138_v28, %v651_v20 }
  0xa4   :  { %v664_v21 = vpop.f32.mrf.mxu1 }
  0xa5   :  { %v665_v32 = vadd.f32 %v664_v21, %v652_v29 }
  0xa8   :  { %v677_v22 = vpop.f32.mrf.mxu2 }
  0xa9   :  { %v690_v23 = vpop.f32.mrf.mxu3  ;;  %v653_v24 = vpop.f32.mrf.mxu0  ;;  %v678_v34 = vadd.f32 %v677_v22, %v665_v32 }
  0xab   :  { %v691_v38 = vadd.f32 %v690_v23, %v678_v34 }
  0xac   :  { %v666_v25 = vpop.f32.mrf.mxu1 }
  0xb0   :  { %v679_v26 = vpop.f32.mrf.mxu2 }
  0xb1   :  { %v692_v27 = vpop.f32.mrf.mxu3 }
  0xc1   :  { %v703_v30 = vpop.f32.mrf.mxu0 }
  0xc2   :  { %v704_v40 = vadd.f32 %v703_v30, %v691_v38 }
  0xc4   :  { %v716_v31 = vpop.f32.mrf.mxu1 }
  0xc5   :  { %v717_v42 = vadd.f32 %v716_v31, %v704_v40 }
  0xc8   :  { %v729_v33 = vpop.f32.mrf.mxu2 }
  0xc9   :  { %v742_v35 = vpop.f32.mrf.mxu3  ;;  %v705_v36 = vpop.f32.mrf.mxu0  ;;  %v730_v43 = vadd.f32 %v729_v33, %v717_v42 }
  0xcb   :  { %v743_v45 = vadd.f32 %v742_v35, %v730_v43 }
  0xcc   :  { %v718_v37 = vpop.f32.mrf.mxu1 }
  0xd0   :  { %v731_v39 = vpop.f32.mrf.mxu2 }
  0xd1   :  { %v744_v41 = vpop.f32.mrf.mxu3 }
  0xe1   :  { %v755_v47 = vpop.f32.mrf.mxu0 }
  0xe2   :  { %v756_v48 = vadd.f32 %v755_v47, %v743_v45 }
  0xe4   :  { %v763_v50 = vmul.f32 %v1139_v46, %v756_v48 }
  0xe6   :  { %v766_v51 = vadd.f32 %v765_v49, %v763_v50 }
  0xe8   :  { %vm767_vm0 = vcmp.ge.f32.partialorder %v766_v51, 0.0  ;;  %v768_v52 = vmul.f32 0.2, %v766_v51 }
  0xe9   :  { %v757_v53 = vpop.f32.mrf.mxu0 }
  0xea   :  { %v769_v54 = vsel %vm767_vm0, %v766_v51, %v768_v52 }
  0xeb   :  { %v770_v55 = vpack.c.bf16 %v769_v54, %v769_v54 }
  0xed   :  { %771 = vst [vmem:[%s1433_s5] sm:$0x3] %v770_v55 }
  0xee   :  { %776 = vsyncpa [#allocation3], 1 }

// kernel: ifnet_forward.66
= control target key start
LH: loop header
LB: loop body
LE: loop exit
PB: predicated region body
PF: predicated region fallthrough
CT: control target
= control target key end

     0   :  { %8 = vsyncpa [#allocation3], 0  ;;  %s1148_s15 = smov [#allocation2]   ;;  %s1394_s0 = inlined_call_operand.hbm [shape: bf16[4,1152], index: 0, kind: input, shape index: {}]   ;;  %s1395_s1 = inlined_call_operand.vmem [shape: bf16[1152,96], index: 1, kind: input, shape index: {}]   ;;  %s1396_s2 = inlined_call_operand.vmem [shape: f32[1,96], index: 2, kind: input, shape index: {}]   ;;  %s1397_s3 = inlined_call_operand.vmem [shape: f32[4,96], index: 3, kind: output, shape index: {}]  }
   0x1   :  { %s14_s14 = sshll.u32 %s1394_s0, 4  ;;  %s16_s16 = sshll.u32 %s1148_s15, 4  ;;  %s15_s14 = int_to_ptr.hbm [resolvable:$true] %s14_s14  ;;  %s17_s16 = int_to_ptr.vmem [resolvable:$true] %s16_s16 }
   0x2   :  { %19 = dma.hbm_to_vmem [thread:$0]  %s15_s14, 288, %s17_s16, [#allocation3]  }
   0x3   :  { %1146 = dma.done.wait [#allocation3], 288  }
   0x4   :  { %1147 = vsyncadd [#allocation3], 4294967008  ;;  %v1055_v0 = vld [vmem:[%s1395_s1 + $0x38] sm:$0xff]  ;;  %v1054_v4 = vld [vmem:[%s1395_s1 + $0x30] sm:$0xff]  ;;  %vm753_vm0 = vcmask 781312  }
   0x5   :  { %v1071_v1 = vld [vmem:[%s1395_s1 + $0xb8] sm:$0xff]  ;;  %636 = vmatpush.bf16.msra.mxu0 %v1055_v0  ;;  %v1070_v5 = vld [vmem:[%s1395_s1 + $0xb0] sm:$0xff]  ;;  %v1053_v8 = vld [vmem:[%s1395_s1 + $0x28] sm:$0xff] }
   0x6   :  { %v1079_v2 = vld [vmem:[%s1395_s1 + $0xf8] sm:$0xff]  ;;  %662 = vmatpush.bf16.msra.mxu2 %v1071_v1  ;;  %v1078_v6 = vld [vmem:[%s1395_s1 + $0xf0] sm:$0xff]  ;;  %v1069_v9 = vld [vmem:[%s1395_s1 + $0xa8] sm:$0xff] }
   0x7   :  { %v1063_v3 = vld [vmem:[%s1395_s1 + $0x78] sm:$0xff]  ;;  %675 = vmatpush.bf16.msra.mxu3 %v1079_v2  ;;  %v1062_v7 = vld [vmem:[%s1395_s1 + $0x70] sm:$0xff]  ;;  %v1077_v10 = vld [vmem:[%s1395_s1 + $0xe8] sm:$0xff] }
   0x8   :  { %649 = vmatpush.bf16.msra.mxu1 %v1063_v3  ;;  %v1061_v11 = vld [vmem:[%s1395_s1 + $0x68] sm:$0xff]  ;;  %v1052_v12 = vld [vmem:[%s1395_s1 + $0x20] sm:$0xff]  ;;  %v1051_v16 = vld [vmem:[%s1395_s1 + $0x18] sm:$0xff] }
   0x9   :  { %637 = vmatpush.bf16.msra.mxu0 %v1054_v4  ;;  %v1068_v13 = vld [vmem:[%s1395_s1 + $0xa0] sm:$0xff]  ;;  %v1067_v17 = vld [vmem:[%s1395_s1 + $0x98] sm:$0xff]  ;;  %v28_v20 = vld [vmem:[#allocation2] sm:$0xff] }
   0xa   :  { %663 = vmatpush.bf16.msra.mxu2 %v1070_v5  ;;  %v1076_v14 = vld [vmem:[%s1395_s1 + $0xe0] sm:$0xff]  ;;  %v1075_v18 = vld [vmem:[%s1395_s1 + $0xd8] sm:$0xff]  ;;  %180 = vst [vmem:[#allocation1] ss:$4 sm:$0xff] %v28_v20  ;;  %v1050_v21 = vld [vmem:[%s1395_s1 + $0x10] sm:$0xff] }
   0xb   :  { %676 = vmatpush.bf16.msra.mxu3 %v1078_v6  ;;  %v1060_v15 = vld [vmem:[%s1395_s1 + $0x60] sm:$0xff]  ;;  %v1059_v19 = vld [vmem:[%s1395_s1 + $0x58] sm:$0xff]  ;;  %v1066_v22 = vld [vmem:[%s1395_s1 + $0x90] sm:$0xff] }
   0xc   :  { %650 = vmatpush.bf16.msra.mxu1 %v1062_v7  ;;  %v1074_v23 = vld [vmem:[%s1395_s1 + $0xd0] sm:$0xff]  ;;  %v1049_v25 = vld [vmem:[%s1395_s1 + $0x8] sm:$0xff]  ;;  %v30_v29 = vld [vmem:[#allocation2 + $0x10] sm:$0x3] }
   0xd   :  { %638 = vmatpush.bf16.msra.mxu0 %v1053_v8  ;;  %v1058_v24 = vld [vmem:[%s1395_s1 + $0x50] sm:$0xff]  ;;  %v1065_v26 = vld [vmem:[%s1395_s1 + $0x88] sm:$0xff]  ;;  %v1048_v34 = vld [vmem:[%s1395_s1] sm:$0xff] }
   0xe   :  { %664 = vmatpush.bf16.msra.mxu2 %v1069_v9  ;;  %v1073_v27 = vld [vmem:[%s1395_s1 + $0xc8] sm:$0xff]  ;;  %v1064_v35 = vld [vmem:[%s1395_s1 + $0x80] sm:$0xff]  ;;  %v29_v36 = vld [vmem:[#allocation2 + $0x8] sm:$0xff] }
   0xf   :  { %677 = vmatpush.bf16.msra.mxu3 %v1077_v10  ;;  %v1057_v28 = vld [vmem:[%s1395_s1 + $0x48] sm:$0xff]  ;;  %v1087_v37 = vld [vmem:[%s1395_s1 + $0x138] sm:$0xff]  ;;  %183 = vst [vmem:[#allocation1 + $0x20] ss:$4 sm:$0xff] %v29_v36  ;;  %v1072_v39 = vld [vmem:[%s1395_s1 + $0xc0] sm:$0xff] }
  0x10   :  { %651 = vmatpush.bf16.msra.mxu1 %v1061_v11  ;;  %v1103_v38 = vld [vmem:[%s1395_s1 + $0x1b8] sm:$0xff]  ;;  %v1056_v40 = vld [vmem:[%s1395_s1 + $0x40] sm:$0xff]  ;;  %v1086_v43 = vld [vmem:[%s1395_s1 + $0x130] sm:$0xff] }
  0x11   :  { %639 = vmatpush.bf16.msra.mxu0 %v1052_v12  ;;  %v186_v30 = vld.sshfl [vmem:[#allocation1 + $0x10] sm:$0xff pattern:$0x73625140]  ;;  %v184_v31 = vld.sshfl [vmem:[#allocation1] sm:$0xff pattern:$0x73625140] }
  0x12   :  { %665 = vmatpush.bf16.msra.mxu2 %v1068_v13  ;;  %v187_v32 = vld.sshfl [vmem:[#allocation1 + $0x18] sm:$0xff pattern:$0x73625140]  ;;  %v185_v33 = vld.sshfl [vmem:[#allocation1 + $0x8] sm:$0xff pattern:$0x73625140] }
  0x13   :  { %678 = vmatpush.bf16.msra.mxu3 %v1076_v14  ;;  %193 = vst [vmem:[#allocation1] ss:$4 sm:$0xff] %v30_v29  ;;  %v1111_v41 = vld [vmem:[%s1395_s1 + $0x1f8] sm:$0xff]  ;;  %v1102_v44 = vld [vmem:[%s1395_s1 + $0x1b0] sm:$0xff]  ;;  %v1085_v47 = vld [vmem:[%s1395_s1 + $0x128] sm:$0xff] }
  0x14   :  { %652 = vmatpush.bf16.msra.mxu1 %v1060_v15  ;;  %v1095_v42 = vld [vmem:[%s1395_s1 + $0x178] sm:$0xff]  ;;  %v1110_v45 = vld [vmem:[%s1395_s1 + $0x1f0] sm:$0xff]  ;;  %v1101_v48 = vld [vmem:[%s1395_s1 + $0x1a8] sm:$0xff] }
  0x15   :  { %640 = vmatpush.bf16.msra.mxu0 %v1051_v16  ;;  %v1094_v46 = vld [vmem:[%s1395_s1 + $0x170] sm:$0xff]  ;;  %v1109_v49 = vld [vmem:[%s1395_s1 + $0x1e8] sm:$0xff]  ;;  %v1084_v51 = vld [vmem:[%s1395_s1 + $0x120] sm:$0xff] }
  0x16   :  { %666 = vmatpush.bf16.msra.mxu2 %v1067_v17  ;;  %v1093_v50 = vld [vmem:[%s1395_s1 + $0x168] sm:$0xff]  ;;  %v1100_v52 = vld [vmem:[%s1395_s1 + $0x1a0] sm:$0xff]  ;;  %v1083_v55 = vld [vmem:[%s1395_s1 + $0x118] sm:$0xff] }
  0x17   :  { %679 = vmatpush.bf16.msra.mxu3 %v1075_v18  ;;  %v1108_v53 = vld [vmem:[%s1395_s1 + $0x1e0] sm:$0xff]  ;;  %v1099_v56 = vld [vmem:[%s1395_s1 + $0x198] sm:$0xff]  ;;  %v1082_v59 = vld [vmem:[%s1395_s1 + $0x110] sm:$0xff] }
  0x18   :  { %653 = vmatpush.bf16.msra.mxu1 %v1059_v19  ;;  %v1092_v54 = vld [vmem:[%s1395_s1 + $0x160] sm:$0xff]  ;;  %v1107_v57 = vld [vmem:[%s1395_s1 + $0x1d8] sm:$0xff]  ;;  %v1098_v60 = vld [vmem:[%s1395_s1 + $0x190] sm:$0xff] }
  0x19   :  { %641 = vmatpush.bf16.msra.mxu0 %v1050_v21  ;;  %v1091_v58 = vld [vmem:[%s1395_s1 + $0x158] sm:$0xff]  ;;  %v1106_v61 = vld [vmem:[%s1395_s1 + $0x1d0] sm:$0xff]  ;;  %v1081_v63 = vld [vmem:[%s1395_s1 + $0x108] sm:$0xff] }
  0x1a   :  { %667 = vmatpush.bf16.msra.mxu2 %v1066_v22  ;;  %v1090_v62 = vld [vmem:[%s1395_s1 + $0x150] sm:$0xff]  ;;  %v1097_v0 = vld [vmem:[%s1395_s1 + $0x188] sm:$0xff]  ;;  %v1080_v3 = vld [vmem:[%s1395_s1 + $0x100] sm:$0xff] }
  0x1b   :  { %680 = vmatpush.bf16.msra.mxu3 %v1074_v23  ;;  %v1105_v1 = vld [vmem:[%s1395_s1 + $0x1c8] sm:$0xff]  ;;  %v1096_v4 = vld [vmem:[%s1395_s1 + $0x180] sm:$0xff]  ;;  %v1119_v5 = vld [vmem:[%s1395_s1 + $0x238] sm:$0xff] }
  0x1c   :  { %654 = vmatpush.bf16.msra.mxu1 %v1058_v24  ;;  %v1089_v2 = vld [vmem:[%s1395_s1 + $0x148] sm:$0xff]  ;;  %v1104_v6 = vld [vmem:[%s1395_s1 + $0x1c0] sm:$0xff]  ;;  %v190_v8 = vld.sshfl [vmem:[#allocation1 + $0x30] sm:$0xff pattern:$0x73625140] }
  0x1d   :  { %642 = vmatpush.bf16.msra.mxu0 %v1049_v25  ;;  %v1088_v7 = vld [vmem:[%s1395_s1 + $0x140] sm:$0xff]  ;;  %v1118_v10 = vld [vmem:[%s1395_s1 + $0x230] sm:$0xff]  ;;  %v191_v11 = vld.sshfl [vmem:[#allocation1 + $0x38] sm:$0xff pattern:$0x73625140] }
  0x1e   :  { %668 = vmatpush.bf16.msra.mxu2 %v1065_v26  ;;  %v188_v9 = vld.sshfl [vmem:[#allocation1 + $0x20] sm:$0xff pattern:$0x73625140]  ;;  %v189_v12 = vld.sshfl [vmem:[#allocation1 + $0x28] sm:$0xff pattern:$0x73625140] }
  0x1f   :  { %681 = vmatpush.bf16.msra.mxu3 %v1073_v27  ;;  %v1117_v13 = vld [vmem:[%s1395_s1 + $0x228] sm:$0xff]  ;;  %v1116_v14 = vld [vmem:[%s1395_s1 + $0x220] sm:$0xff]  ;;  %v1115_v15 = vld [vmem:[%s1395_s1 + $0x218] sm:$0xff] }
  0x20   :  { %655 = vmatpush.bf16.msra.mxu1 %v1057_v28  ;;  %v1114_v16 = vld [vmem:[%s1395_s1 + $0x210] sm:$0xff]  ;;  %v1113_v17 = vld [vmem:[%s1395_s1 + $0x208] sm:$0xff]  ;;  %v1112_v18 = vld [vmem:[%s1395_s1 + $0x200] sm:$0xff] }
  0x21   :  { %643 = vmatpush.bf16.msra.mxu0 %v1048_v34  ;;  %v194_v19 = vld.sshfl [vmem:[#allocation1] sm:$0xff pattern:$0x73625140] }
  0x22   :  { %669 = vmatpush.bf16.msra.mxu2 %v1064_v35  ;;  %v1121_v28 = vld [vmem:[%s1396_s2] ss:$0 sm:$0xff] }
  0x23   :  { %682 = vmatpush.bf16.msra.mxu3 %v1072_v39 }
  0x24   :  { %656 = vmatpush.bf16.msra.mxu1 %v1056_v40  ;;  %644 = vmatmul.bf16.vlgmr.msra.gmra.mxu0 %v184_v31 }
  0x25   :  { %688 = vmatpush.bf16.msrb.mxu0 %v1087_v37  ;;  %670 = vmatmul.bf16.vlgmr.msra.gmra.mxu2 %v186_v30 }
  0x26   :  { %714 = vmatpush.bf16.msrb.mxu2 %v1103_v38  ;;  %683 = vmatmul.bf16.vlgmr.msra.gmra.mxu3 %v187_v32 }
  0x27   :  { %727 = vmatpush.bf16.msrb.mxu3 %v1111_v41  ;;  %657 = vmatmul.bf16.vlgmr.msra.gmra.mxu1 %v185_v33 }
  0x28   :  { %701 = vmatpush.bf16.msrb.mxu1 %v1095_v42 }
  0x29   :  { %689 = vmatpush.bf16.msrb.mxu0 %v1086_v43 }
  0x2a   :  { %715 = vmatpush.bf16.msrb.mxu2 %v1102_v44 }
  0x2b   :  { %728 = vmatpush.bf16.msrb.mxu3 %v1110_v45 }
  0x2c   :  { %702 = vmatpush.bf16.msrb.mxu1 %v1094_v46 }
  0x2d   :  { %690 = vmatpush.bf16.msrb.mxu0 %v1085_v47 }
  0x2e   :  { %716 = vmatpush.bf16.msrb.mxu2 %v1101_v48 }
  0x2f   :  { %729 = vmatpush.bf16.msrb.mxu3 %v1109_v49 }
  0x30   :  { %703 = vmatpush.bf16.msrb.mxu1 %v1093_v50 }
  0x31   :  { %691 = vmatpush.bf16.msrb.mxu0 %v1084_v51 }
  0x32   :  { %717 = vmatpush.bf16.msrb.mxu2 %v1100_v52 }
  0x33   :  { %730 = vmatpush.bf16.msrb.mxu3 %v1108_v53 }
  0x34   :  { %704 = vmatpush.bf16.msrb.mxu1 %v1092_v54 }
  0x35   :  { %692 = vmatpush.bf16.msrb.mxu0 %v1083_v55 }
  0x36   :  { %718 = vmatpush.bf16.msrb.mxu2 %v1099_v56 }
  0x37   :  { %731 = vmatpush.bf16.msrb.mxu3 %v1107_v57 }
  0x38   :  { %705 = vmatpush.bf16.msrb.mxu1 %v1091_v58 }
  0x39   :  { %693 = vmatpush.bf16.msrb.mxu0 %v1082_v59 }
  0x3a   :  { %719 = vmatpush.bf16.msrb.mxu2 %v1098_v60 }
  0x3b   :  { %732 = vmatpush.bf16.msrb.mxu3 %v1106_v61 }
  0x3c   :  { %706 = vmatpush.bf16.msrb.mxu1 %v1090_v62 }
  0x3d   :  { %694 = vmatpush.bf16.msrb.mxu0 %v1081_v63 }
  0x3e   :  { %720 = vmatpush.bf16.msrb.mxu2 %v1097_v0 }
  0x3f   :  { %733 = vmatpush.bf16.msrb.mxu3 %v1105_v1 }
  0x40   :  { %707 = vmatpush.bf16.msrb.mxu1 %v1089_v2 }
  0x41   :  { %695 = vmatpush.bf16.msrb.mxu0 %v1080_v3 }
  0x42   :  { %721 = vmatpush.bf16.msrb.mxu2 %v1096_v4 }
  0x43   :  { %734 = vmatpush.bf16.msrb.mxu3 %v1104_v6 }
  0x44   :  { %708 = vmatpush.bf16.msrb.mxu1 %v1088_v7  ;;  %696 = vmatmul.bf16.vlgmr.msrb.gmra.mxu0 %v188_v9 }
  0x45   :  { %740 = vmatpush.bf16.msra.mxu0 %v1119_v5  ;;  %722 = vmatmul.bf16.vlgmr.msrb.gmra.mxu2 %v190_v8 }
  0x46   :  { %735 = vmatmul.bf16.vlgmr.msrb.gmra.mxu3 %v191_v11 }
  0x47   :  { %709 = vmatmul.bf16.vlgmr.msrb.gmra.mxu1 %v189_v12 }
  0x49   :  { %741 = vmatpush.bf16.msra.mxu0 %v1118_v10 }
  0x4d   :  { %742 = vmatpush.bf16.msra.mxu0 %v1117_v13 }
  0x51   :  { %743 = vmatpush.bf16.msra.mxu0 %v1116_v14 }
  0x55   :  { %744 = vmatpush.bf16.msra.mxu0 %v1115_v15 }
  0x59   :  { %745 = vmatpush.bf16.msra.mxu0 %v1114_v16 }
  0x5d   :  { %746 = vmatpush.bf16.msra.mxu0 %v1113_v17 }
  0x61   :  { %747 = vmatpush.bf16.msra.mxu0 %v1112_v18 }
  0x64   :  { %748 = vmatmul.bf16.vlgmr.msra.gmra.mxu0 %v194_v19 }
  0xa1   :  { %v645_v20 = vpop.f32.mrf.mxu0 }
  0xa2   :  { %v646_v29 = vadd.f32 %v1121_v28, %v645_v20 }
  0xa4   :  { %v658_v21 = vpop.f32.mrf.mxu1 }
  0xa5   :  { %v659_v32 = vadd.f32 %v658_v21, %v646_v29 }
  0xa8   :  { %v671_v22 = vpop.f32.mrf.mxu2 }
  0xa9   :  { %v684_v23 = vpop.f32.mrf.mxu3  ;;  %v647_v24 = vpop.f32.mrf.mxu0  ;;  %v672_v34 = vadd.f32 %v671_v22, %v659_v32 }
  0xab   :  { %v685_v38 = vadd.f32 %v684_v23, %v672_v34 }
  0xac   :  { %v660_v25 = vpop.f32.mrf.mxu1 }
  0xb0   :  { %v673_v26 = vpop.f32.mrf.mxu2 }
  0xb1   :  { %v686_v27 = vpop.f32.mrf.mxu3 }
  0xc1   :  { %v697_v30 = vpop.f32.mrf.mxu0 }
  0xc2   :  { %v698_v40 = vadd.f32 %v697_v30, %v685_v38 }
  0xc4   :  { %v710_v31 = vpop.f32.mrf.mxu1 }
  0xc5   :  { %v711_v42 = vadd.f32 %v710_v31, %v698_v40 }
  0xc8   :  { %v723_v33 = vpop.f32.mrf.mxu2 }
  0xc9   :  { %v736_v35 = vpop.f32.mrf.mxu3  ;;  %v699_v36 = vpop.f32.mrf.mxu0  ;;  %v724_v43 = vadd.f32 %v723_v33, %v711_v42 }
  0xcb   :  { %v737_v44 = vadd.f32 %v736_v35, %v724_v43 }
  0xcc   :  { %v712_v37 = vpop.f32.mrf.mxu1 }
  0xd0   :  { %v725_v39 = vpop.f32.mrf.mxu2 }
  0xd1   :  { %v738_v41 = vpop.f32.mrf.mxu3 }
  0xe1   :  { %v749_v45 = vpop.f32.mrf.mxu0 }
  0xe2   :  { %v750_v46 = vadd.f32 %v749_v45, %v737_v44 }
  0xe4   :  { %754 = vst.msk [vmem:[%s1397_s3] sm:$0xf] %vm753_vm0, %v750_v46 }
  0xe9   :  { %v751_v47 = vpop.f32.mrf.mxu0 }
  0xea   :  { %759 = vsyncpa [#allocation3], 1 }

// kernel: ifnet_forward.67
= control target key start
LH: loop header
LB: loop body
LE: loop exit
PB: predicated region body
PF: predicated region fallthrough
CT: control target
= control target key end

     0   :  { %vm115_vm0 = vcmask 1045504   ;;  %vm102_vm1 = vcmask 883712   ;;  %vm180_vm4 = vcmask 388096   ;;  %s365_s1 = inlined_call_operand.vmem [shape: bf16[108,48], index: 1, kind: input, shape index: {}]   ;;  %s366_s2 = inlined_call_operand.vmem [shape: f32[1,48], index: 2, kind: input, shape index: {}]   ;;  %s367_s0 = inlined_call_operand.vmem [shape: bf16[64,108], index: 0, kind: input, shape index: {}]   ;;  %s368_s3 = inlined_call_operand.vmem [shape: bf16[64,48], index: 3, kind: output, shape index: {}]  }
   0x1   :  { %v235_v0 = vld [vmem:[%s365_s1 + $0x30] sm:$0xf]  ;;  %v251_v1 = vld [vmem:[%s365_s1 + $0x30] sm:$0x30]  ;;  %v250_v4 = vld [vmem:[%s365_s1 + $0x28] sm:$0xff] }
   0x2   :  { %v236_v2 = vor.u32 %v251_v1, %v235_v0  ;;  %v249_v5 = vld [vmem:[%s365_s1 + $0x20] sm:$0xff]  ;;  %v248_v6 = vld [vmem:[%s365_s1 + $0x18] sm:$0xff]  ;;  %v247_v7 = vld [vmem:[%s365_s1 + $0x10] sm:$0xff] }
   0x3   :  { %v246_v8 = vld [vmem:[%s365_s1 + $0x8] sm:$0xff]  ;;  %v245_v9 = vld [vmem:[%s365_s1] sm:$0xff]  ;;  %v243_v12 = vld [vmem:[%s367_s0 + $0x10] sm:$0xff] }
   0x4   :  { %v117_v3 = vsel %vm115_vm0, %v236_v2, 0  ;;  %v241_v10 = vld [vmem:[%s367_s0] sm:$0xff]  ;;  %v242_v11 = vld [vmem:[%s367_s0 + $0x8] sm:$0xff]  ;;  %v244_v13 = vld [vmem:[%s367_s0 + $0x18] sm:$0xff] }
   0x5   :  { %120 = vmatpush.bf16.msra.mxu0 %v117_v3  ;;  %252 = vmatpush.bf16.msra.mxu1 %v117_v3  ;;  %v273_v14 = vld [vmem:[%s366_s2] ss:$0 sm:$0xff] }
   0x6   :  { %253 = vmatpush.bf16.msra.mxu2 %v117_v3  ;;  %254 = vmatpush.bf16.msra.mxu3 %v117_v3 }
   0x9   :  { %121 = vmatpush.bf16.msra.mxu0 %v250_v4  ;;  %255 = vmatpush.bf16.msra.mxu1 %v250_v4 }
   0xa   :  { %256 = vmatpush.bf16.msra.mxu2 %v250_v4  ;;  %257 = vmatpush.bf16.msra.mxu3 %v250_v4 }
   0xd   :  { %122 = vmatpush.bf16.msra.mxu0 %v249_v5  ;;  %258 = vmatpush.bf16.msra.mxu1 %v249_v5 }
   0xe   :  { %259 = vmatpush.bf16.msra.mxu2 %v249_v5  ;;  %260 = vmatpush.bf16.msra.mxu3 %v249_v5 }
  0x11   :  { %123 = vmatpush.bf16.msra.mxu0 %v248_v6  ;;  %261 = vmatpush.bf16.msra.mxu1 %v248_v6 }
  0x12   :  { %262 = vmatpush.bf16.msra.mxu2 %v248_v6  ;;  %263 = vmatpush.bf16.msra.mxu3 %v248_v6 }
  0x15   :  { %124 = vmatpush.bf16.msra.mxu0 %v247_v7  ;;  %264 = vmatpush.bf16.msra.mxu1 %v247_v7 }
  0x16   :  { %265 = vmatpush.bf16.msra.mxu2 %v247_v7  ;;  %266 = vmatpush.bf16.msra.mxu3 %v247_v7 }
  0x19   :  { %125 = vmatpush.bf16.msra.mxu0 %v246_v8  ;;  %267 = vmatpush.bf16.msra.mxu1 %v246_v8 }
  0x1a   :  { %268 = vmatpush.bf16.msra.mxu2 %v246_v8  ;;  %269 = vmatpush.bf16.msra.mxu3 %v246_v8 }
  0x1d   :  { %126 = vmatpush.bf16.msra.mxu0 %v245_v9  ;;  %270 = vmatpush.bf16.msra.mxu1 %v245_v9 }
  0x1e   :  { %271 = vmatpush.bf16.msra.mxu2 %v245_v9  ;;  %272 = vmatpush.bf16.msra.mxu3 %v245_v9 }
  0x20   :  { %237 = vmatmul.msk.bf16.vlgmr.msra.gmra.mxu0 %vm102_vm1, %v241_v10  ;;  %238 = vmatmul.msk.bf16.vlgmr.msra.gmra.mxu1 %vm102_vm1, %v242_v11 }
  0x21   :  { %239 = vmatmul.msk.bf16.vlgmr.msra.gmra.mxu2 %vm102_vm1, %v243_v12  ;;  %240 = vmatmul.msk.bf16.vlgmr.msra.gmra.mxu3 %vm102_vm1, %v244_v13 }
  0x9d   :  { %v128_v15 = vpop.f32.mrf.mxu0  ;;  %v133_v16 = vpop.f32.mrf.mxu1 }
  0x9e   :  { %v129_v17 = vadd.f32 %v273_v14, %v128_v15  ;;  %v134_v18 = vadd.f32 %v273_v14, %v133_v16 }
  0xa0   :  { %vm148_vm2 = vcmp.ge.f32.partialorder %v129_v17, 0.0  ;;  %v156_v19 = vmul.f32 0.2, %v129_v17  ;;  %vm150_vm3 = vcmp.ge.f32.partialorder %v134_v18, 0.0  ;;  %v158_v20 = vmul.f32 0.2, %v134_v18 }
  0xa2   :  { %v164_v21 = vsel %vm148_vm2, %v129_v17, %v156_v19  ;;  %v166_v22 = vsel %vm150_vm3, %v134_v18, %v158_v20 }
  0xa3   :  { %v172_v23 = vpack.c.bf16 %v164_v21, %v164_v21  ;;  %v174_v24 = vpack.c.bf16 %v166_v22, %v166_v22 }
  0xa4   :  { %v138_v25 = vpop.f32.mrf.mxu2  ;;  %v143_v26 = vpop.f32.mrf.mxu3 }
  0xa5   :  { %181 = vst.msk [vmem:[%s368_s3] sm:$0xf] %vm180_vm4, %v172_v23  ;;  %v139_v27 = vadd.f32 %v273_v14, %v138_v25  ;;  %v144_v28 = vadd.f32 %v273_v14, %v143_v26  ;;  %v130_v29 = vpop.f32.mrf.mxu0  ;;  %v135_v30 = vpop.f32.mrf.mxu1 }
  0xa6   :  { %183 = vst.msk [vmem:[%s368_s3 + $0x8] sm:$0xf] %vm180_vm4, %v174_v24  ;;  %v131_v31 = vadd.f32 %v273_v14, %v130_v29  ;;  %v136_v32 = vadd.f32 %v273_v14, %v135_v30 }
  0xa7   :  { %vm152_vm5 = vcmp.ge.f32.partialorder %v139_v27, 0.0  ;;  %v160_v33 = vmul.f32 0.2, %v139_v27  ;;  %vm154_vm6 = vcmp.ge.f32.partialorder %v144_v28, 0.0  ;;  %v162_v34 = vmul.f32 0.2, %v144_v28 }
  0xa8   :  { %vm149_vm7 = vcmp.ge.f32.partialorder %v131_v31, 0.0  ;;  %v157_v35 = vmul.f32 0.2, %v131_v31  ;;  %vm151_vm8 = vcmp.ge.f32.partialorder %v136_v32, 0.0  ;;  %v159_v36 = vmul.f32 0.2, %v136_v32 }
  0xa9   :  { %v168_v37 = vsel %vm152_vm5, %v139_v27, %v160_v33  ;;  %v170_v38 = vsel %vm154_vm6, %v144_v28, %v162_v34 }
  0xaa   :  { %v176_v39 = vpack.c.bf16 %v168_v37, %v168_v37  ;;  %v178_v40 = vpack.c.bf16 %v170_v38, %v170_v38  ;;  %v165_v41 = vsel %vm149_vm7, %v131_v31, %v157_v35  ;;  %v167_v42 = vsel %vm151_vm8, %v136_v32, %v159_v36 }
  0xab   :  { %v173_v43 = vpack.c.bf16 %v165_v41, %v165_v41  ;;  %v175_v44 = vpack.c.bf16 %v167_v42, %v167_v42 }
  0xac   :  { %185 = vst.msk [vmem:[%s368_s3 + $0x10] sm:$0xf] %vm180_vm4, %v176_v39  ;;  %v140_v45 = vpop.f32.mrf.mxu2  ;;  %v145_v46 = vpop.f32.mrf.mxu3 }
  0xad   :  { %187 = vst.msk [vmem:[%s368_s3 + $0x18] sm:$0xf] %vm180_vm4, %v178_v40  ;;  %v141_v47 = vadd.f32 %v273_v14, %v140_v45  ;;  %v146_v48 = vadd.f32 %v273_v14, %v145_v46 }
  0xae   :  { %182 = vst.msk [vmem:[%s368_s3 + $0x4] sm:$0xf] %vm180_vm4, %v173_v43 }
  0xaf   :  { %184 = vst.msk [vmem:[%s368_s3 + $0xc] sm:$0xf] %vm180_vm4, %v175_v44  ;;  %vm153_vm9 = vcmp.ge.f32.partialorder %v141_v47, 0.0  ;;  %v161_v49 = vmul.f32 0.2, %v141_v47  ;;  %vm155_vm10 = vcmp.ge.f32.partialorder %v146_v48, 0.0 }
  0xb0   :  { %v163_v50 = vmul.f32 0.2, %v146_v48 }
  0xb1   :  { %v169_v51 = vsel %vm153_vm9, %v141_v47, %v161_v49 }
  0xb2   :  { %v177_v52 = vpack.c.bf16 %v169_v51, %v169_v51  ;;  %v171_v53 = vsel %vm155_vm10, %v146_v48, %v163_v50 }
  0xb3   :  { %v179_v54 = vpack.c.bf16 %v171_v53, %v171_v53 }
  0xb4   :  { %186 = vst.msk [vmem:[%s368_s3 + $0x14] sm:$0xf] %vm180_vm4, %v177_v52 }
  0xb5   :  { %188 = vst.msk [vmem:[%s368_s3 + $0x1c] sm:$0xf] %vm180_vm4, %v179_v54 }

// kernel: ifnet_forward.68
= control target key start
LH: loop header
LB: loop body
LE: loop exit
PB: predicated region body
PF: predicated region fallthrough
CT: control target
= control target key end

     0   :  { %vm258_vm0 = vcmask 392192   ;;  %vm326_vm2 = vcmask 781312   ;;  %s624_s1 = inlined_call_operand.vmem [shape: bf16[432,96], index: 1, kind: input, shape index: {}]   ;;  %s625_s0 = inlined_call_operand.vmem [shape: bf16[16,432], index: 0, kind: input, shape index: {}]   ;;  %s626_s2 = inlined_call_operand.vmem [shape: f32[1,96], index: 2, kind: input, shape index: {}]   ;;  %s627_s3 = inlined_call_operand.vmem [shape: bf16[16,96], index: 3, kind: output, shape index: {}]  }
   0x1   :  { %v469_v0 = vld [vmem:[%s624_s1 + $0x38] sm:$0xff]  ;;  %v468_v3 = vld [vmem:[%s624_s1 + $0x30] sm:$0xff]  ;;  %v467_v7 = vld [vmem:[%s624_s1 + $0x28] sm:$0xff] }
   0x2   :  { %v477_v1 = vld [vmem:[%s624_s1 + $0x78] sm:$0xff]  ;;  %262 = vmatpush.bf16.msra.mxu0 %v469_v0  ;;  %v476_v4 = vld [vmem:[%s624_s1 + $0x70] sm:$0xff]  ;;  %v475_v8 = vld [vmem:[%s624_s1 + $0x68] sm:$0xff] }
   0x3   :  { %v485_v2 = vld [vmem:[%s624_s1 + $0xb8] sm:$0xff]  ;;  %276 = vmatpush.bf16.msra.mxu1 %v477_v1  ;;  %v484_v5 = vld [vmem:[%s624_s1 + $0xb0] sm:$0xff]  ;;  %v483_v9 = vld [vmem:[%s624_s1 + $0xa8] sm:$0xff] }
   0x4   :  { %290 = vmatpush.bf16.msra.mxu2 %v485_v2  ;;  %v488_v6 = vld [vmem:[%s624_s1 + $0xd0] sm:$0xff]  ;;  %v487_v10 = vld [vmem:[%s624_s1 + $0xc8] sm:$0xff]  ;;  %v466_v11 = vld [vmem:[%s624_s1 + $0x20] sm:$0xff] }
   0x5   :  { %309 = vmatpush.bf16.msra.mxu3 %v488_v6  ;;  %v474_v12 = vld [vmem:[%s624_s1 + $0x60] sm:$0xff]  ;;  %v459_v15 = vld [vmem:[%s625_s0 + $0xc] sm:$0xf]  ;;  %v345_v16 = vld [vmem:[%s625_s0 + $0x18] sm:$0xf0] }
   0x6   :  { %263 = vmatpush.bf16.msra.mxu0 %v468_v3  ;;  %v482_v13 = vld [vmem:[%s624_s1 + $0xa0] sm:$0xff]  ;;  %v465_v17 = vld [vmem:[%s624_s1 + $0x18] sm:$0xff]  ;;  %v348_v20 = vor.u32 %v459_v15, %v345_v16  ;;  %v464_v21 = vld [vmem:[%s624_s1 + $0x10] sm:$0xff] }
   0x7   :  { %277 = vmatpush.bf16.msra.mxu1 %v476_v4  ;;  %v486_v14 = vld [vmem:[%s624_s1 + $0xc0] sm:$0xff]  ;;  %v473_v18 = vld [vmem:[%s624_s1 + $0x58] sm:$0xff]  ;;  %v472_v22 = vld [vmem:[%s624_s1 + $0x50] sm:$0xff] }
   0x8   :  { %291 = vmatpush.bf16.msra.mxu2 %v484_v5  ;;  %v481_v19 = vld [vmem:[%s624_s1 + $0x98] sm:$0xff]  ;;  %v480_v23 = vld [vmem:[%s624_s1 + $0x90] sm:$0xff]  ;;  %v463_v24 = vld [vmem:[%s624_s1 + $0x8] sm:$0xff] }
   0x9   :  { %310 = vmatpush.bf16.msra.mxu3 %v487_v10  ;;  %v471_v25 = vld [vmem:[%s624_s1 + $0x48] sm:$0xff]  ;;  %v462_v27 = vld [vmem:[%s624_s1] sm:$0xff]  ;;  %v460_v30 = vld [vmem:[%s625_s0 + $0xc] sm:$0xf0] }
   0xa   :  { %264 = vmatpush.bf16.msra.mxu0 %v467_v7  ;;  %v479_v26 = vld [vmem:[%s624_s1 + $0x88] sm:$0xff]  ;;  %v470_v28 = vld [vmem:[%s624_s1 + $0x40] sm:$0xff]  ;;  %v337_v32 = vld [vmem:[%s625_s0 + $0x10] sm:$0xf0] }
   0xb   :  { %278 = vmatpush.bf16.msra.mxu1 %v475_v8  ;;  %v335_v29 = vld [vmem:[%s625_s0] sm:$0xf]  ;;  %v458_v31 = vld [vmem:[%s625_s0 + $0x4] sm:$0xf]  ;;  %v343_v34 = vld [vmem:[%s625_s0 + $0x8] sm:$0xf] }
   0xc   :  { %292 = vmatpush.bf16.msra.mxu2 %v483_v9  ;;  %v478_v33 = vld [vmem:[%s624_s1 + $0x80] sm:$0xff]  ;;  %v461_v35 = vld [vmem:[%s625_s0 + $0x14] sm:$0xf0]  ;;  %v336_v36 = vor.u32 %v460_v30, %v335_v29  ;;  %v340_v37 = vor.u32 %v458_v31, %v337_v32 }
   0xd   :  { %311 = vmatpush.bf16.msra.mxu3 %v486_v14  ;;  %v344_v38 = vor.u32 %v461_v35, %v343_v34  ;;  %v489_v39 = vld [vmem:[%s626_s2] ss:$0 sm:$0xff] }
   0xe   :  { %265 = vmatpush.bf16.msra.mxu0 %v466_v11 }
   0xf   :  { %279 = vmatpush.bf16.msra.mxu1 %v474_v12 }
  0x10   :  { %293 = vmatpush.bf16.msra.mxu2 %v482_v13  ;;  %457 = vmatmul.msk.bf16.vlgmr.msra.gmra.mxu3 %vm258_vm0, %v348_v20 }
  0x12   :  { %266 = vmatpush.bf16.msra.mxu0 %v465_v17 }
  0x13   :  { %280 = vmatpush.bf16.msra.mxu1 %v473_v18 }
  0x14   :  { %294 = vmatpush.bf16.msra.mxu2 %v481_v19 }
  0x16   :  { %267 = vmatpush.bf16.msra.mxu0 %v464_v21 }
  0x17   :  { %281 = vmatpush.bf16.msra.mxu1 %v472_v22 }
  0x18   :  { %295 = vmatpush.bf16.msra.mxu2 %v480_v23 }
  0x1a   :  { %268 = vmatpush.bf16.msra.mxu0 %v463_v24 }
  0x1b   :  { %282 = vmatpush.bf16.msra.mxu1 %v471_v25 }
  0x1c   :  { %296 = vmatpush.bf16.msra.mxu2 %v479_v26 }
  0x1e   :  { %269 = vmatpush.bf16.msra.mxu0 %v462_v27 }
  0x1f   :  { %283 = vmatpush.bf16.msra.mxu1 %v470_v28 }
  0x20   :  { %297 = vmatpush.bf16.msra.mxu2 %v478_v33 }
  0x21   :  { %270 = vmatmul.bf16.vlgmr.msra.gmra.mxu0 %v336_v36 }
  0x22   :  { %284 = vmatmul.bf16.vlgmr.msra.gmra.mxu1 %v340_v37 }
  0x23   :  { %298 = vmatmul.bf16.vlgmr.msra.gmra.mxu2 %v344_v38 }
  0x93   :  { %v313_v44 = vpop.f32.mrf.mxu3 }
  0x9b   :  { %v315_v57 = vpop.f32.mrf.mxu3 }
  0x9e   :  { %v271_v40 = vpop.f32.mrf.mxu0 }
  0x9f   :  { %v272_v41 = vadd.f32 %v489_v39, %v271_v40  ;;  %v285_v42 = vpop.f32.mrf.mxu1 }
  0xa1   :  { %v286_v43 = vadd.f32 %v285_v42, %v272_v41 }
  0xa6   :  { %v299_v45 = vpop.f32.mrf.mxu2  ;;  %v273_v47 = vpop.f32.mrf.mxu0 }
  0xa7   :  { %v300_v46 = vadd.f32 %v299_v45, %v286_v43  ;;  %v274_v49 = vadd.f32 %v489_v39, %v273_v47  ;;  %v287_v51 = vpop.f32.mrf.mxu1 }
  0xa9   :  { %v314_v48 = vadd.f32 %v313_v44, %v300_v46  ;;  %v288_v53 = vadd.f32 %v287_v51, %v274_v49 }
  0xab   :  { %vm318_vm1 = vcmp.ge.f32.partialorder %v314_v48, 0.0  ;;  %v320_v50 = vmul.f32 0.2, %v314_v48 }
  0xad   :  { %v322_v52 = vsel %vm318_vm1, %v314_v48, %v320_v50 }
  0xae   :  { %v324_v54 = vpack.c.bf16 %v322_v52, %v322_v52  ;;  %v301_v55 = vpop.f32.mrf.mxu2 }
  0xaf   :  { %v302_v56 = vadd.f32 %v301_v55, %v288_v53 }
  0xb0   :  { %327 = vst.msk [vmem:[%s627_s3] sm:$0xf] %vm326_vm2, %v324_v54 }
  0xb1   :  { %v316_v58 = vadd.f32 %v315_v57, %v302_v56 }
  0xb3   :  { %vm319_vm3 = vcmp.ge.f32.partialorder %v316_v58, 0.0  ;;  %v321_v59 = vmul.f32 0.2, %v316_v58 }
  0xb5   :  { %v323_v60 = vsel %vm319_vm3, %v316_v58, %v321_v59 }
  0xb6   :  { %v325_v61 = vpack.c.bf16 %v323_v60, %v323_v60 }
  0xb8   :  { %328 = vst.msk [vmem:[%s627_s3 + $0x4] sm:$0xf] %vm326_vm2, %v325_v61 }

// kernel: ifnet_forward.77
= control target key start
LH: loop header
LB: loop body
LE: loop exit
PB: predicated region body
PF: predicated region fallthrough
CT: control target
= control target key end

     0   :  { %vm494_vm0 = vcmask 785408   ;;  %s1145_s1 = inlined_call_operand.vmem [shape: bf16[864,96], index: 1, kind: input, shape index: {}]   ;;  %s1146_s2 = inlined_call_operand.vmem [shape: f32[1,96], index: 2, kind: input, shape index: {}]   ;;  %s1147_s0 = inlined_call_operand.vmem [shape: bf16[16,864], index: 0, kind: input, shape index: {}]   ;;  %s1148_s3 = inlined_call_operand.vmem [shape: f32[16,96], index: 3, kind: output, shape index: {}]  }
   0x1   :  { %v861_v0 = vld [vmem:[%s1145_s1 + $0x38] sm:$0xff]  ;;  %v860_v3 = vld [vmem:[%s1145_s1 + $0x30] sm:$0xff]  ;;  %v859_v8 = vld [vmem:[%s1145_s1 + $0x28] sm:$0xff] }
   0x2   :  { %v869_v1 = vld [vmem:[%s1145_s1 + $0x78] sm:$0xff]  ;;  %498 = vmatpush.bf16.msra.mxu0 %v861_v0  ;;  %v868_v4 = vld [vmem:[%s1145_s1 + $0x70] sm:$0xff]  ;;  %v867_v9 = vld [vmem:[%s1145_s1 + $0x68] sm:$0xff] }
   0x3   :  { %v877_v2 = vld [vmem:[%s1145_s1 + $0xb8] sm:$0xff]  ;;  %512 = vmatpush.bf16.msra.mxu1 %v869_v1  ;;  %v876_v6 = vld [vmem:[%s1145_s1 + $0xb0] sm:$0xff]  ;;  %v875_v10 = vld [vmem:[%s1145_s1 + $0xa8] sm:$0xff] }
   0x4   :  { %v885_v5 = vld [vmem:[%s1145_s1 + $0xf8] sm:$0xff]  ;;  %526 = vmatpush.bf16.msra.mxu2 %v877_v2  ;;  %v884_v7 = vld [vmem:[%s1145_s1 + $0xf0] sm:$0xff]  ;;  %v883_v11 = vld [vmem:[%s1145_s1 + $0xe8] sm:$0xff] }
   0x5   :  { %540 = vmatpush.bf16.msra.mxu3 %v885_v5  ;;  %v858_v12 = vld [vmem:[%s1145_s1 + $0x20] sm:$0xff]  ;;  %v857_v16 = vld [vmem:[%s1145_s1 + $0x18] sm:$0xff]  ;;  %v856_v20 = vld [vmem:[%s1145_s1 + $0x10] sm:$0xff] }
   0x6   :  { %499 = vmatpush.bf16.msra.mxu0 %v860_v3  ;;  %v866_v13 = vld [vmem:[%s1145_s1 + $0x60] sm:$0xff]  ;;  %v865_v17 = vld [vmem:[%s1145_s1 + $0x58] sm:$0xff]  ;;  %v864_v21 = vld [vmem:[%s1145_s1 + $0x50] sm:$0xff] }
   0x7   :  { %513 = vmatpush.bf16.msra.mxu1 %v868_v4  ;;  %v874_v14 = vld [vmem:[%s1145_s1 + $0xa0] sm:$0xff]  ;;  %v873_v18 = vld [vmem:[%s1145_s1 + $0x98] sm:$0xff]  ;;  %v872_v22 = vld [vmem:[%s1145_s1 + $0x90] sm:$0xff] }
   0x8   :  { %527 = vmatpush.bf16.msra.mxu2 %v876_v6  ;;  %v882_v15 = vld [vmem:[%s1145_s1 + $0xe0] sm:$0xff]  ;;  %v881_v19 = vld [vmem:[%s1145_s1 + $0xd8] sm:$0xff]  ;;  %v880_v23 = vld [vmem:[%s1145_s1 + $0xd0] sm:$0xff] }
   0x9   :  { %541 = vmatpush.bf16.msra.mxu3 %v884_v7  ;;  %v855_v24 = vld [vmem:[%s1145_s1 + $0x8] sm:$0xff]  ;;  %v854_v27 = vld [vmem:[%s1145_s1] sm:$0xff]  ;;  %v893_v31 = vld [vmem:[%s1145_s1 + $0x138] sm:$0xff] }
   0xa   :  { %500 = vmatpush.bf16.msra.mxu0 %v859_v8  ;;  %v863_v25 = vld [vmem:[%s1145_s1 + $0x48] sm:$0xff]  ;;  %v862_v29 = vld [vmem:[%s1145_s1 + $0x40] sm:$0xff]  ;;  %v850_v34 = vld [vmem:[%s1147_s0 + $0x18] sm:$0xf0] }
   0xb   :  { %514 = vmatpush.bf16.msra.mxu1 %v867_v9  ;;  %v871_v26 = vld [vmem:[%s1145_s1 + $0x88] sm:$0xff]  ;;  %v870_v30 = vld [vmem:[%s1145_s1 + $0x80] sm:$0xff]  ;;  %v901_v38 = vld [vmem:[%s1145_s1 + $0x178] sm:$0xff] }
   0xc   :  { %528 = vmatpush.bf16.msra.mxu2 %v875_v10  ;;  %v879_v28 = vld [vmem:[%s1145_s1 + $0xc8] sm:$0xff]  ;;  %v604_v33 = vld [vmem:[%s1147_s0] sm:$0xf]  ;;  %v851_v35 = vld [vmem:[%s1147_s0 + $0x20] sm:$0xf0] }
   0xd   :  { %542 = vmatpush.bf16.msra.mxu3 %v883_v11  ;;  %v612_v32 = vld [vmem:[%s1147_s0 + $0x8] sm:$0xf]  ;;  %v847_v36 = vld [vmem:[%s1147_s0 + $0x4] sm:$0xf]  ;;  %v606_v37 = vld [vmem:[%s1147_s0 + $0x1c] sm:$0xf0]  ;;  %v605_v41 = vor.u32 %v850_v34, %v604_v33 }
   0xe   :  { %501 = vmatpush.bf16.msra.mxu0 %v858_v12  ;;  %v907_v39 = vld [vmem:[%s1145_s1 + $0x1a8] sm:$0xff]  ;;  %v878_v40 = vld [vmem:[%s1145_s1 + $0xc0] sm:$0xff]  ;;  %v613_v42 = vor.u32 %v851_v35, %v612_v32  ;;  %v609_v45 = vor.u32 %v847_v36, %v606_v37  ;;  %v892_v46 = vld [vmem:[%s1145_s1 + $0x130] sm:$0xff] }
   0xf   :  { %515 = vmatpush.bf16.msra.mxu1 %v866_v13  ;;  %v848_v43 = vld [vmem:[%s1147_s0 + $0xc] sm:$0xf]  ;;  %v614_v44 = vld [vmem:[%s1147_s0 + $0x24] sm:$0xf0]  ;;  %v900_v47 = vld [vmem:[%s1145_s1 + $0x170] sm:$0xff] }
  0x10   :  { %529 = vmatpush.bf16.msra.mxu2 %v874_v14  ;;  %v906_v48 = vld [vmem:[%s1145_s1 + $0x1a0] sm:$0xff]  ;;  %v617_v49 = vor.u32 %v848_v43, %v614_v44  ;;  %v891_v50 = vld [vmem:[%s1145_s1 + $0x128] sm:$0xff]  ;;  %v905_v52 = vld [vmem:[%s1145_s1 + $0x198] sm:$0xff] }
  0x11   :  { %543 = vmatpush.bf16.msra.mxu3 %v882_v15  ;;  %v899_v51 = vld [vmem:[%s1145_s1 + $0x168] sm:$0xff]  ;;  %v890_v53 = vld [vmem:[%s1145_s1 + $0x120] sm:$0xff]  ;;  %v904_v55 = vld [vmem:[%s1145_s1 + $0x190] sm:$0xff] }
  0x12   :  { %502 = vmatpush.bf16.msra.mxu0 %v857_v16  ;;  %v898_v54 = vld [vmem:[%s1145_s1 + $0x160] sm:$0xff]  ;;  %v889_v56 = vld [vmem:[%s1145_s1 + $0x118] sm:$0xff]  ;;  %v903_v58 = vld [vmem:[%s1145_s1 + $0x188] sm:$0xff] }
  0x13   :  { %516 = vmatpush.bf16.msra.mxu1 %v865_v17  ;;  %v897_v57 = vld [vmem:[%s1145_s1 + $0x158] sm:$0xff]  ;;  %v888_v59 = vld [vmem:[%s1145_s1 + $0x110] sm:$0xff]  ;;  %v902_v61 = vld [vmem:[%s1145_s1 + $0x180] sm:$0xff] }
  0x14   :  { %530 = vmatpush.bf16.msra.mxu2 %v873_v18  ;;  %v896_v60 = vld [vmem:[%s1145_s1 + $0x150] sm:$0xff]  ;;  %v628_v62 = vld [vmem:[%s1147_s0 + $0x18] sm:$0xf]  ;;  %v887_v1 = vld [vmem:[%s1145_s1 + $0x108] sm:$0xff] }
  0x15   :  { %544 = vmatpush.bf16.msra.mxu3 %v881_v19  ;;  %v853_v63 = vld [vmem:[%s1147_s0 + $0x30] sm:$0xf0]  ;;  %v895_v2 = vld [vmem:[%s1145_s1 + $0x148] sm:$0xff]  ;;  %v886_v3 = vld [vmem:[%s1145_s1 + $0x100] sm:$0xff] }
  0x16   :  { %503 = vmatpush.bf16.msra.mxu0 %v856_v20  ;;  %v629_v0 = vor.u32 %v853_v63, %v628_v62  ;;  %v620_v4 = vld [vmem:[%s1147_s0 + $0x10] sm:$0xf]  ;;  %v852_v5 = vld [vmem:[%s1147_s0 + $0x28] sm:$0xf0]  ;;  %v894_v6 = vld [vmem:[%s1145_s1 + $0x140] sm:$0xff] }
  0x17   :  { %517 = vmatpush.bf16.msra.mxu1 %v864_v21  ;;  %v849_v7 = vld [vmem:[%s1147_s0 + $0x14] sm:$0xf]  ;;  %v622_v8 = vld [vmem:[%s1147_s0 + $0x2c] sm:$0xf0]  ;;  %v621_v9 = vor.u32 %v852_v5, %v620_v4  ;;  %v908_v12 = vld [vmem:[%s1146_s2] ss:$0 sm:$0xff] }
  0x18   :  { %531 = vmatpush.bf16.msra.mxu2 %v872_v22  ;;  %v625_v10 = vor.u32 %v849_v7, %v622_v8 }
  0x19   :  { %545 = vmatpush.bf16.msra.mxu3 %v880_v23 }
  0x1a   :  { %504 = vmatpush.bf16.msra.mxu0 %v855_v24 }
  0x1b   :  { %518 = vmatpush.bf16.msra.mxu1 %v863_v25 }
  0x1c   :  { %532 = vmatpush.bf16.msra.mxu2 %v871_v26 }
  0x1d   :  { %546 = vmatpush.bf16.msra.mxu3 %v879_v28 }
  0x1e   :  { %505 = vmatpush.bf16.msra.mxu0 %v854_v27 }
  0x1f   :  { %519 = vmatpush.bf16.msra.mxu1 %v862_v29 }
  0x20   :  { %533 = vmatpush.bf16.msra.mxu2 %v870_v30 }
  0x21   :  { %547 = vmatpush.bf16.msra.mxu3 %v878_v40  ;;  %506 = vmatmul.bf16.vlgmr.msra.gmra.mxu0 %v605_v41 }
  0x22   :  { %554 = vmatpush.bf16.msrb.mxu0 %v893_v31  ;;  %520 = vmatmul.bf16.vlgmr.msra.gmra.mxu1 %v609_v45 }
  0x23   :  { %568 = vmatpush.bf16.msrb.mxu1 %v901_v38  ;;  %534 = vmatmul.bf16.vlgmr.msra.gmra.mxu2 %v613_v42 }
  0x24   :  { %584 = vmatpush.bf16.msrb.mxu2 %v907_v39  ;;  %548 = vmatmul.bf16.vlgmr.msra.gmra.mxu3 %v617_v49 }
  0x26   :  { %555 = vmatpush.bf16.msrb.mxu0 %v892_v46 }
  0x27   :  { %569 = vmatpush.bf16.msrb.mxu1 %v900_v47 }
  0x28   :  { %585 = vmatpush.bf16.msrb.mxu2 %v906_v48 }
  0x2a   :  { %556 = vmatpush.bf16.msrb.mxu0 %v891_v50 }
  0x2b   :  { %570 = vmatpush.bf16.msrb.mxu1 %v899_v51 }
  0x2c   :  { %586 = vmatpush.bf16.msrb.mxu2 %v905_v52 }
  0x2e   :  { %557 = vmatpush.bf16.msrb.mxu0 %v890_v53 }
  0x2f   :  { %571 = vmatpush.bf16.msrb.mxu1 %v898_v54 }
  0x30   :  { %587 = vmatpush.bf16.msrb.mxu2 %v904_v55 }
  0x32   :  { %558 = vmatpush.bf16.msrb.mxu0 %v889_v56 }
  0x33   :  { %572 = vmatpush.bf16.msrb.mxu1 %v897_v57 }
  0x34   :  { %588 = vmatpush.bf16.msrb.mxu2 %v903_v58 }
  0x36   :  { %559 = vmatpush.bf16.msrb.mxu0 %v888_v59 }
  0x37   :  { %573 = vmatpush.bf16.msrb.mxu1 %v896_v60 }
  0x38   :  { %589 = vmatpush.bf16.msrb.mxu2 %v902_v61 }
  0x3a   :  { %560 = vmatpush.bf16.msrb.mxu0 %v887_v1 }
  0x3b   :  { %846 = vmatmul.msk.bf16.vlgmr.msrb.gmra.mxu2 %vm494_vm0, %v629_v0  ;;  %574 = vmatpush.bf16.msrb.mxu1 %v895_v2 }
  0x3e   :  { %561 = vmatpush.bf16.msrb.mxu0 %v886_v3 }
  0x3f   :  { %575 = vmatpush.bf16.msrb.mxu1 %v894_v6 }
  0x41   :  { %562 = vmatmul.bf16.vlgmr.msrb.gmra.mxu0 %v621_v9 }
  0x42   :  { %576 = vmatmul.bf16.vlgmr.msrb.gmra.mxu1 %v625_v10 }
  0x9e   :  { %v507_v11 = vpop.f32.mrf.mxu0 }
  0x9f   :  { %v521_v13 = vpop.f32.mrf.mxu1  ;;  %v508_v15 = vadd.f32 %v908_v12, %v507_v11 }
  0xa1   :  { %v522_v16 = vadd.f32 %v521_v13, %v508_v15 }
  0xa6   :  { %v535_v14 = vpop.f32.mrf.mxu2  ;;  %v509_v17 = vpop.f32.mrf.mxu0 }
  0xa7   :  { %v523_v18 = vpop.f32.mrf.mxu1  ;;  %v549_v19 = vpop.f32.mrf.mxu3  ;;  %v536_v21 = vadd.f32 %v535_v14, %v522_v16  ;;  %v510_v22 = vadd.f32 %v908_v12, %v509_v17 }
  0xa9   :  { %v550_v23 = vadd.f32 %v549_v19, %v536_v21  ;;  %v524_v24 = vadd.f32 %v523_v18, %v510_v22 }
  0xae   :  { %v537_v20 = vpop.f32.mrf.mxu2 }
  0xaf   :  { %v538_v29 = vadd.f32 %v537_v20, %v524_v24  ;;  %v551_v31 = vpop.f32.mrf.mxu3 }
  0xb1   :  { %v552_v33 = vadd.f32 %v551_v31, %v538_v29 }
  0xbe   :  { %v563_v25 = vpop.f32.mrf.mxu0  ;;  %v591_v28 = vpop.f32.mrf.mxu2 }
  0xbf   :  { %v564_v26 = vadd.f32 %v563_v25, %v550_v23  ;;  %v577_v27 = vpop.f32.mrf.mxu1 }
  0xc1   :  { %v578_v30 = vadd.f32 %v577_v27, %v564_v26 }
  0xc3   :  { %v592_v32 = vadd.f32 %v591_v28, %v578_v30 }
  0xc5   :  { %596 = vst.msk [vmem:[%s1148_s3] sm:$0xff] %vm494_vm0, %v592_v32 }
  0xc6   :  { %v565_v34 = vpop.f32.mrf.mxu0  ;;  %v593_v38 = vpop.f32.mrf.mxu2 }
  0xc7   :  { %v566_v35 = vadd.f32 %v565_v34, %v552_v33  ;;  %v579_v36 = vpop.f32.mrf.mxu1 }
  0xc9   :  { %v580_v37 = vadd.f32 %v579_v36, %v566_v35 }
  0xcb   :  { %v594_v39 = vadd.f32 %v593_v38, %v580_v37 }
  0xcd   :  { %597 = vst.msk [vmem:[%s1148_s3 + $0x8] sm:$0xff] %vm494_vm0, %v594_v39 }

// kernel: ifnet_forward.69
= control target key start
LH: loop header
LB: loop body
LE: loop exit
PB: predicated region body
PF: predicated region fallthrough
CT: control target
= control target key end

     0   :  { %vm500_vm0 = vcmask 785408   ;;  %vm622_vm2 = vcmask 781312   ;;  %s1190_s1 = inlined_call_operand.vmem [shape: bf16[864,96], index: 1, kind: input, shape index: {}]   ;;  %s1191_s2 = inlined_call_operand.vmem [shape: f32[1,96], index: 2, kind: input, shape index: {}]   ;;  %s1192_s0 = inlined_call_operand.vmem [shape: bf16[16,864], index: 0, kind: input, shape index: {}]   ;;  %s1193_s3 = inlined_call_operand.vmem [shape: f32[1,96], index: 3, kind: input, shape index: {}]   ;;  %s1194_s4 = inlined_call_operand.vmem [shape: bf16[16,96], index: 4, kind: input, shape index: {}, may-alias: {4,5}]   ;;  %s1195_s5 = inlined_call_operand.vmem [shape: bf16[16,96], index: 5, kind: output, shape index: {}, may-alias: {4,5}]  }
   0x1   :  { %v888_v0 = vld [vmem:[%s1190_s1 + $0x38] sm:$0xff]  ;;  %v887_v3 = vld [vmem:[%s1190_s1 + $0x30] sm:$0xff]  ;;  %v886_v8 = vld [vmem:[%s1190_s1 + $0x28] sm:$0xff] }
   0x2   :  { %v896_v1 = vld [vmem:[%s1190_s1 + $0x78] sm:$0xff]  ;;  %504 = vmatpush.bf16.msra.mxu0 %v888_v0  ;;  %v895_v4 = vld [vmem:[%s1190_s1 + $0x70] sm:$0xff]  ;;  %v894_v9 = vld [vmem:[%s1190_s1 + $0x68] sm:$0xff] }
   0x3   :  { %v904_v2 = vld [vmem:[%s1190_s1 + $0xb8] sm:$0xff]  ;;  %518 = vmatpush.bf16.msra.mxu1 %v896_v1  ;;  %v903_v6 = vld [vmem:[%s1190_s1 + $0xb0] sm:$0xff]  ;;  %v902_v10 = vld [vmem:[%s1190_s1 + $0xa8] sm:$0xff] }
   0x4   :  { %v912_v5 = vld [vmem:[%s1190_s1 + $0xf8] sm:$0xff]  ;;  %532 = vmatpush.bf16.msra.mxu2 %v904_v2  ;;  %v911_v7 = vld [vmem:[%s1190_s1 + $0xf0] sm:$0xff]  ;;  %v910_v11 = vld [vmem:[%s1190_s1 + $0xe8] sm:$0xff] }
   0x5   :  { %546 = vmatpush.bf16.msra.mxu3 %v912_v5  ;;  %v885_v12 = vld [vmem:[%s1190_s1 + $0x20] sm:$0xff]  ;;  %v884_v16 = vld [vmem:[%s1190_s1 + $0x18] sm:$0xff]  ;;  %v883_v20 = vld [vmem:[%s1190_s1 + $0x10] sm:$0xff] }
   0x6   :  { %505 = vmatpush.bf16.msra.mxu0 %v887_v3  ;;  %v893_v13 = vld [vmem:[%s1190_s1 + $0x60] sm:$0xff]  ;;  %v892_v17 = vld [vmem:[%s1190_s1 + $0x58] sm:$0xff]  ;;  %v891_v21 = vld [vmem:[%s1190_s1 + $0x50] sm:$0xff] }
   0x7   :  { %519 = vmatpush.bf16.msra.mxu1 %v895_v4  ;;  %v901_v14 = vld [vmem:[%s1190_s1 + $0xa0] sm:$0xff]  ;;  %v900_v18 = vld [vmem:[%s1190_s1 + $0x98] sm:$0xff]  ;;  %v899_v22 = vld [vmem:[%s1190_s1 + $0x90] sm:$0xff] }
   0x8   :  { %533 = vmatpush.bf16.msra.mxu2 %v903_v6  ;;  %v909_v15 = vld [vmem:[%s1190_s1 + $0xe0] sm:$0xff]  ;;  %v908_v19 = vld [vmem:[%s1190_s1 + $0xd8] sm:$0xff]  ;;  %v907_v23 = vld [vmem:[%s1190_s1 + $0xd0] sm:$0xff] }
   0x9   :  { %547 = vmatpush.bf16.msra.mxu3 %v911_v7  ;;  %v882_v24 = vld [vmem:[%s1190_s1 + $0x8] sm:$0xff]  ;;  %v881_v27 = vld [vmem:[%s1190_s1] sm:$0xff]  ;;  %v920_v31 = vld [vmem:[%s1190_s1 + $0x138] sm:$0xff] }
   0xa   :  { %506 = vmatpush.bf16.msra.mxu0 %v886_v8  ;;  %v890_v25 = vld [vmem:[%s1190_s1 + $0x48] sm:$0xff]  ;;  %v889_v29 = vld [vmem:[%s1190_s1 + $0x40] sm:$0xff]  ;;  %v877_v34 = vld [vmem:[%s1192_s0 + $0x18] sm:$0xf0] }
   0xb   :  { %520 = vmatpush.bf16.msra.mxu1 %v894_v9  ;;  %v898_v26 = vld [vmem:[%s1190_s1 + $0x88] sm:$0xff]  ;;  %v897_v30 = vld [vmem:[%s1190_s1 + $0x80] sm:$0xff]  ;;  %v928_v38 = vld [vmem:[%s1190_s1 + $0x178] sm:$0xff] }
   0xc   :  { %534 = vmatpush.bf16.msra.mxu2 %v902_v10  ;;  %v906_v28 = vld [vmem:[%s1190_s1 + $0xc8] sm:$0xff]  ;;  %v631_v33 = vld [vmem:[%s1192_s0] sm:$0xf]  ;;  %v878_v35 = vld [vmem:[%s1192_s0 + $0x20] sm:$0xf0] }
   0xd   :  { %548 = vmatpush.bf16.msra.mxu3 %v910_v11  ;;  %v639_v32 = vld [vmem:[%s1192_s0 + $0x8] sm:$0xf]  ;;  %v874_v36 = vld [vmem:[%s1192_s0 + $0x4] sm:$0xf]  ;;  %v633_v37 = vld [vmem:[%s1192_s0 + $0x1c] sm:$0xf0]  ;;  %v632_v41 = vor.u32 %v877_v34, %v631_v33 }
   0xe   :  { %507 = vmatpush.bf16.msra.mxu0 %v885_v12  ;;  %v934_v39 = vld [vmem:[%s1190_s1 + $0x1a8] sm:$0xff]  ;;  %v905_v40 = vld [vmem:[%s1190_s1 + $0xc0] sm:$0xff]  ;;  %v640_v42 = vor.u32 %v878_v35, %v639_v32  ;;  %v636_v45 = vor.u32 %v874_v36, %v633_v37  ;;  %v919_v46 = vld [vmem:[%s1190_s1 + $0x130] sm:$0xff] }
   0xf   :  { %521 = vmatpush.bf16.msra.mxu1 %v893_v13  ;;  %v875_v43 = vld [vmem:[%s1192_s0 + $0xc] sm:$0xf]  ;;  %v641_v44 = vld [vmem:[%s1192_s0 + $0x24] sm:$0xf0]  ;;  %v927_v47 = vld [vmem:[%s1190_s1 + $0x170] sm:$0xff] }
  0x10   :  { %535 = vmatpush.bf16.msra.mxu2 %v901_v14  ;;  %v933_v48 = vld [vmem:[%s1190_s1 + $0x1a0] sm:$0xff]  ;;  %v644_v49 = vor.u32 %v875_v43, %v641_v44  ;;  %v918_v50 = vld [vmem:[%s1190_s1 + $0x128] sm:$0xff]  ;;  %v932_v52 = vld [vmem:[%s1190_s1 + $0x198] sm:$0xff] }
  0x11   :  { %549 = vmatpush.bf16.msra.mxu3 %v909_v15  ;;  %v926_v51 = vld [vmem:[%s1190_s1 + $0x168] sm:$0xff]  ;;  %v917_v53 = vld [vmem:[%s1190_s1 + $0x120] sm:$0xff]  ;;  %v931_v55 = vld [vmem:[%s1190_s1 + $0x190] sm:$0xff] }
  0x12   :  { %508 = vmatpush.bf16.msra.mxu0 %v884_v16  ;;  %v925_v54 = vld [vmem:[%s1190_s1 + $0x160] sm:$0xff]  ;;  %v916_v56 = vld [vmem:[%s1190_s1 + $0x118] sm:$0xff]  ;;  %v930_v58 = vld [vmem:[%s1190_s1 + $0x188] sm:$0xff] }
  0x13   :  { %522 = vmatpush.bf16.msra.mxu1 %v892_v17  ;;  %v924_v57 = vld [vmem:[%s1190_s1 + $0x158] sm:$0xff]  ;;  %v915_v59 = vld [vmem:[%s1190_s1 + $0x110] sm:$0xff]  ;;  %v929_v61 = vld [vmem:[%s1190_s1 + $0x180] sm:$0xff] }
  0x14   :  { %536 = vmatpush.bf16.msra.mxu2 %v900_v18  ;;  %v923_v60 = vld [vmem:[%s1190_s1 + $0x150] sm:$0xff]  ;;  %v655_v62 = vld [vmem:[%s1192_s0 + $0x18] sm:$0xf]  ;;  %v914_v1 = vld [vmem:[%s1190_s1 + $0x108] sm:$0xff] }
  0x15   :  { %550 = vmatpush.bf16.msra.mxu3 %v908_v19  ;;  %v880_v63 = vld [vmem:[%s1192_s0 + $0x30] sm:$0xf0]  ;;  %v922_v2 = vld [vmem:[%s1190_s1 + $0x148] sm:$0xff]  ;;  %v913_v3 = vld [vmem:[%s1190_s1 + $0x100] sm:$0xff] }
  0x16   :  { %509 = vmatpush.bf16.msra.mxu0 %v883_v20  ;;  %v656_v0 = vor.u32 %v880_v63, %v655_v62  ;;  %v647_v4 = vld [vmem:[%s1192_s0 + $0x10] sm:$0xf]  ;;  %v879_v5 = vld [vmem:[%s1192_s0 + $0x28] sm:$0xf0]  ;;  %v921_v6 = vld [vmem:[%s1190_s1 + $0x140] sm:$0xff] }
  0x17   :  { %523 = vmatpush.bf16.msra.mxu1 %v891_v21  ;;  %v876_v7 = vld [vmem:[%s1192_s0 + $0x14] sm:$0xf]  ;;  %v649_v8 = vld [vmem:[%s1192_s0 + $0x2c] sm:$0xf0]  ;;  %v648_v9 = vor.u32 %v879_v5, %v647_v4  ;;  %v939_v12 = vld [vmem:[%s1191_s2] ss:$0 sm:$0xff] }
  0x18   :  { %537 = vmatpush.bf16.msra.mxu2 %v899_v22  ;;  %v652_v10 = vor.u32 %v876_v7, %v649_v8  ;;  %v940_v32 = vld [vmem:[%s1193_s3] ss:$0 sm:$0xff] }
  0x19   :  { %551 = vmatpush.bf16.msra.mxu3 %v907_v23 }
  0x1a   :  { %510 = vmatpush.bf16.msra.mxu0 %v882_v24 }
  0x1b   :  { %524 = vmatpush.bf16.msra.mxu1 %v890_v25 }
  0x1c   :  { %538 = vmatpush.bf16.msra.mxu2 %v898_v26 }
  0x1d   :  { %552 = vmatpush.bf16.msra.mxu3 %v906_v28 }
  0x1e   :  { %511 = vmatpush.bf16.msra.mxu0 %v881_v27 }
  0x1f   :  { %525 = vmatpush.bf16.msra.mxu1 %v889_v29  ;;  %v936_v29 = vld [vmem:[%s1194_s4] sm:$0xff]  }
  0x20   :  { %539 = vmatpush.bf16.msra.mxu2 %v897_v30  ;;  %v937_v35 = vunpack.c.l.bf16 %v936_v29 }
  0x21   :  { %553 = vmatpush.bf16.msra.mxu3 %v905_v40  ;;  %512 = vmatmul.bf16.vlgmr.msra.gmra.mxu0 %v632_v41 }
  0x22   :  { %560 = vmatpush.bf16.msrb.mxu0 %v920_v31  ;;  %526 = vmatmul.bf16.vlgmr.msra.gmra.mxu1 %v636_v45 }
  0x23   :  { %574 = vmatpush.bf16.msrb.mxu1 %v928_v38  ;;  %540 = vmatmul.bf16.vlgmr.msra.gmra.mxu2 %v640_v42 }
  0x24   :  { %590 = vmatpush.bf16.msrb.mxu2 %v934_v39  ;;  %554 = vmatmul.bf16.vlgmr.msra.gmra.mxu3 %v644_v49 }
  0x26   :  { %561 = vmatpush.bf16.msrb.mxu0 %v919_v46 }
  0x27   :  { %575 = vmatpush.bf16.msrb.mxu1 %v927_v47  ;;  %v938_v47 = vunpack.c.h.bf16 %v936_v29 }
  0x28   :  { %591 = vmatpush.bf16.msrb.mxu2 %v933_v48 }
  0x2a   :  { %562 = vmatpush.bf16.msrb.mxu0 %v918_v50 }
  0x2b   :  { %576 = vmatpush.bf16.msrb.mxu1 %v926_v51 }
  0x2c   :  { %592 = vmatpush.bf16.msrb.mxu2 %v932_v52 }
  0x2e   :  { %563 = vmatpush.bf16.msrb.mxu0 %v917_v53 }
  0x2f   :  { %577 = vmatpush.bf16.msrb.mxu1 %v925_v54 }
  0x30   :  { %593 = vmatpush.bf16.msrb.mxu2 %v931_v55 }
  0x32   :  { %564 = vmatpush.bf16.msrb.mxu0 %v916_v56 }
  0x33   :  { %578 = vmatpush.bf16.msrb.mxu1 %v924_v57 }
  0x34   :  { %594 = vmatpush.bf16.msrb.mxu2 %v930_v58 }
  0x36   :  { %565 = vmatpush.bf16.msrb.mxu0 %v915_v59 }
  0x37   :  { %579 = vmatpush.bf16.msrb.mxu1 %v923_v60 }
  0x38   :  { %595 = vmatpush.bf16.msrb.mxu2 %v929_v61 }
  0x3a   :  { %566 = vmatpush.bf16.msrb.mxu0 %v914_v1 }
  0x3b   :  { %873 = vmatmul.msk.bf16.vlgmr.msrb.gmra.mxu2 %vm500_vm0, %v656_v0  ;;  %580 = vmatpush.bf16.msrb.mxu1 %v922_v2 }
  0x3e   :  { %567 = vmatpush.bf16.msrb.mxu0 %v913_v3 }
  0x3f   :  { %581 = vmatpush.bf16.msrb.mxu1 %v921_v6 }
  0x41   :  { %568 = vmatmul.bf16.vlgmr.msrb.gmra.mxu0 %v648_v9 }
  0x42   :  { %582 = vmatmul.bf16.vlgmr.msrb.gmra.mxu1 %v652_v10 }
  0x9e   :  { %v513_v11 = vpop.f32.mrf.mxu0 }
  0x9f   :  { %v527_v13 = vpop.f32.mrf.mxu1  ;;  %v514_v15 = vadd.f32 %v939_v12, %v513_v11 }
  0xa1   :  { %v528_v16 = vadd.f32 %v527_v13, %v514_v15 }
  0xa6   :  { %v541_v14 = vpop.f32.mrf.mxu2  ;;  %v515_v17 = vpop.f32.mrf.mxu0 }
  0xa7   :  { %v529_v18 = vpop.f32.mrf.mxu1  ;;  %v555_v19 = vpop.f32.mrf.mxu3  ;;  %v542_v21 = vadd.f32 %v541_v14, %v528_v16  ;;  %v516_v22 = vadd.f32 %v939_v12, %v515_v17 }
  0xa9   :  { %v556_v23 = vadd.f32 %v555_v19, %v542_v21  ;;  %v530_v24 = vadd.f32 %v529_v18, %v516_v22 }
  0xae   :  { %v543_v20 = vpop.f32.mrf.mxu2 }
  0xaf   :  { %v544_v30 = vadd.f32 %v543_v20, %v530_v24  ;;  %v557_v33 = vpop.f32.mrf.mxu3 }
  0xb1   :  { %v558_v36 = vadd.f32 %v557_v33, %v544_v30 }
  0xbe   :  { %v569_v25 = vpop.f32.mrf.mxu0  ;;  %v597_v28 = vpop.f32.mrf.mxu2 }
  0xbf   :  { %v570_v26 = vadd.f32 %v569_v25, %v556_v23  ;;  %v583_v27 = vpop.f32.mrf.mxu1 }
  0xc1   :  { %v584_v31 = vadd.f32 %v583_v27, %v570_v26 }
  0xc3   :  { %v598_v34 = vadd.f32 %v597_v28, %v584_v31 }
  0xc5   :  { %v606_v37 = vmul.f32 %v940_v32, %v598_v34 }
  0xc6   :  { %v571_v38 = vpop.f32.mrf.mxu0  ;;  %v599_v44 = vpop.f32.mrf.mxu2 }
  0xc7   :  { %v612_v39 = vadd.f32 %v937_v35, %v606_v37  ;;  %v572_v40 = vadd.f32 %v571_v38, %v558_v36  ;;  %v585_v41 = vpop.f32.mrf.mxu1 }
  0xc9   :  { %vm614_vm1 = vcmp.ge.f32.partialorder %v612_v39, 0.0  ;;  %v616_v42 = vmul.f32 0.2, %v612_v39  ;;  %v586_v43 = vadd.f32 %v585_v41, %v572_v40 }
  0xcb   :  { %v618_v45 = vsel %vm614_vm1, %v612_v39, %v616_v42  ;;  %v600_v46 = vadd.f32 %v599_v44, %v586_v43 }
  0xcc   :  { %v620_v48 = vpack.c.bf16 %v618_v45, %v618_v45 }
  0xcd   :  { %v607_v49 = vmul.f32 %v940_v32, %v600_v46 }
  0xce   :  { %623 = vst.msk [vmem:[%s1195_s5] sm:$0xf] %vm622_vm2, %v620_v48 }
  0xcf   :  { %v613_v50 = vadd.f32 %v938_v47, %v607_v49 }
  0xd1   :  { %vm615_vm3 = vcmp.ge.f32.partialorder %v613_v50, 0.0  ;;  %v617_v51 = vmul.f32 0.2, %v613_v50 }
  0xd3   :  { %v619_v52 = vsel %vm615_vm3, %v613_v50, %v617_v51 }
  0xd4   :  { %v621_v53 = vpack.c.bf16 %v619_v52, %v619_v52 }
  0xd6   :  { %624 = vst.msk [vmem:[%s1195_s5 + $0x4] sm:$0xf] %vm622_vm2, %v621_v53 }

// kernel: ifnet_forward.78
= control target key start
LH: loop header
LB: loop body
LE: loop exit
PB: predicated region body
PF: predicated region fallthrough
CT: control target
= control target key end

     0   :  { %vm235_vm0 = vcmask 1045504   ;;  %vm186_vm1 = vcmask 883712   ;;  %vm456_vm4 = vcmask 257024   ;;  %s919_s1 = inlined_call_operand.vmem [shape: bf16[108,32], index: 1, kind: input, shape index: {}]   ;;  %s920_s2 = inlined_call_operand.vmem [shape: f32[1,32], index: 2, kind: input, shape index: {}]   ;;  %s921_s0 = inlined_call_operand.vmem [shape: bf16[256,108], index: 0, kind: input, shape index: {}]   ;;  %s922_s3 = inlined_call_operand.vmem [shape: bf16[256,32], index: 3, kind: output, shape index: {}]  }
   0x1   :  { %v583_v0 = vld [vmem:[%s919_s1 + $0x30] sm:$0xf]  ;;  %v623_v1 = vld [vmem:[%s919_s1 + $0x30] sm:$0x30]  ;;  %v622_v4 = vld [vmem:[%s919_s1 + $0x28] sm:$0xff] }
   0x2   :  { %v584_v2 = vor.u32 %v623_v1, %v583_v0  ;;  %v621_v5 = vld [vmem:[%s919_s1 + $0x20] sm:$0xff]  ;;  %v620_v6 = vld [vmem:[%s919_s1 + $0x18] sm:$0xff]  ;;  %v619_v7 = vld [vmem:[%s919_s1 + $0x10] sm:$0xff] }
   0x3   :  { %v618_v8 = vld [vmem:[%s919_s1 + $0x8] sm:$0xff]  ;;  %v617_v9 = vld [vmem:[%s919_s1] sm:$0xff]  ;;  %v603_v18 = vld [vmem:[%s921_s0 + $0x10] sm:$0xff] }
   0x4   :  { %v237_v3 = vsel %vm235_vm0, %v584_v2, 0  ;;  %v601_v10 = vld [vmem:[%s921_s0] sm:$0xff]  ;;  %v602_v14 = vld [vmem:[%s921_s0 + $0x8] sm:$0xff]  ;;  %v607_v19 = vld [vmem:[%s921_s0 + $0x30] sm:$0xff] }
   0x5   :  { %240 = vmatpush.bf16.msra.mxu0 %v237_v3  ;;  %624 = vmatpush.bf16.msra.mxu1 %v237_v3  ;;  %v605_v11 = vld [vmem:[%s921_s0 + $0x20] sm:$0xff]  ;;  %v606_v15 = vld [vmem:[%s921_s0 + $0x28] sm:$0xff]  ;;  %v611_v20 = vld [vmem:[%s921_s0 + $0x50] sm:$0xff] }
   0x6   :  { %625 = vmatpush.bf16.msra.mxu2 %v237_v3  ;;  %626 = vmatpush.bf16.msra.mxu3 %v237_v3  ;;  %v609_v12 = vld [vmem:[%s921_s0 + $0x40] sm:$0xff]  ;;  %v610_v16 = vld [vmem:[%s921_s0 + $0x48] sm:$0xff]  ;;  %v615_v21 = vld [vmem:[%s921_s0 + $0x70] sm:$0xff] }
   0x7   :  { %v613_v13 = vld [vmem:[%s921_s0 + $0x60] sm:$0xff]  ;;  %v614_v17 = vld [vmem:[%s921_s0 + $0x68] sm:$0xff]  ;;  %v604_v22 = vld [vmem:[%s921_s0 + $0x18] sm:$0xff] }
   0x8   :  { %v608_v23 = vld [vmem:[%s921_s0 + $0x38] sm:$0xff]  ;;  %v757_v26 = vld [vmem:[%s920_s2] ss:$0 sm:$0xff] }
   0x9   :  { %241 = vmatpush.bf16.msra.mxu0 %v622_v4  ;;  %627 = vmatpush.bf16.msra.mxu1 %v622_v4  ;;  %v612_v24 = vld [vmem:[%s921_s0 + $0x58] sm:$0xff] }
   0xa   :  { %628 = vmatpush.bf16.msra.mxu2 %v622_v4  ;;  %629 = vmatpush.bf16.msra.mxu3 %v622_v4  ;;  %v616_v25 = vld [vmem:[%s921_s0 + $0x78] sm:$0xff] }
   0xd   :  { %242 = vmatpush.bf16.msra.mxu0 %v621_v5  ;;  %630 = vmatpush.bf16.msra.mxu1 %v621_v5 }
   0xe   :  { %631 = vmatpush.bf16.msra.mxu2 %v621_v5  ;;  %632 = vmatpush.bf16.msra.mxu3 %v621_v5 }
  0x11   :  { %243 = vmatpush.bf16.msra.mxu0 %v620_v6  ;;  %633 = vmatpush.bf16.msra.mxu1 %v620_v6 }
  0x12   :  { %634 = vmatpush.bf16.msra.mxu2 %v620_v6  ;;  %635 = vmatpush.bf16.msra.mxu3 %v620_v6 }
  0x15   :  { %244 = vmatpush.bf16.msra.mxu0 %v619_v7  ;;  %636 = vmatpush.bf16.msra.mxu1 %v619_v7 }
  0x16   :  { %637 = vmatpush.bf16.msra.mxu2 %v619_v7  ;;  %638 = vmatpush.bf16.msra.mxu3 %v619_v7 }
  0x19   :  { %245 = vmatpush.bf16.msra.mxu0 %v618_v8  ;;  %639 = vmatpush.bf16.msra.mxu1 %v618_v8 }
  0x1a   :  { %640 = vmatpush.bf16.msra.mxu2 %v618_v8  ;;  %641 = vmatpush.bf16.msra.mxu3 %v618_v8 }
  0x1d   :  { %246 = vmatpush.bf16.msra.mxu0 %v617_v9  ;;  %642 = vmatpush.bf16.msra.mxu1 %v617_v9 }
  0x1e   :  { %643 = vmatpush.bf16.msra.mxu2 %v617_v9  ;;  %644 = vmatpush.bf16.msra.mxu3 %v617_v9 }
  0x20   :  { %585 = vmatmul.msk.bf16.vlgmr.msra.gmra.mxu0 %vm186_vm1, %v601_v10  ;;  %589 = vmatmul.msk.bf16.vlgmr.msra.gmra.mxu1 %vm186_vm1, %v605_v11 }
  0x21   :  { %593 = vmatmul.msk.bf16.vlgmr.msra.gmra.mxu2 %vm186_vm1, %v609_v12  ;;  %597 = vmatmul.msk.bf16.vlgmr.msra.gmra.mxu3 %vm186_vm1, %v613_v13 }
  0x30   :  { %586 = vmatmul.msk.bf16.gmra.mxu0 %vm186_vm1, %v602_v14  ;;  %590 = vmatmul.msk.bf16.gmra.mxu1 %vm186_vm1, %v606_v15 }
  0x31   :  { %594 = vmatmul.msk.bf16.gmra.mxu2 %vm186_vm1, %v610_v16  ;;  %598 = vmatmul.msk.bf16.gmra.mxu3 %vm186_vm1, %v614_v17 }
  0x40   :  { %587 = vmatmul.msk.bf16.gmra.mxu0 %vm186_vm1, %v603_v18  ;;  %591 = vmatmul.msk.bf16.gmra.mxu1 %vm186_vm1, %v607_v19 }
  0x41   :  { %595 = vmatmul.msk.bf16.gmra.mxu2 %vm186_vm1, %v611_v20  ;;  %599 = vmatmul.msk.bf16.gmra.mxu3 %vm186_vm1, %v615_v21 }
  0x50   :  { %588 = vmatmul.msk.bf16.gmra.mxu0 %vm186_vm1, %v604_v22  ;;  %592 = vmatmul.msk.bf16.gmra.mxu1 %vm186_vm1, %v608_v23 }
  0x51   :  { %596 = vmatmul.msk.bf16.gmra.mxu2 %vm186_vm1, %v612_v24  ;;  %600 = vmatmul.msk.bf16.gmra.mxu3 %vm186_vm1, %v616_v25 }
  0x9d   :  { %v248_v27 = vpop.f32.mrf.mxu0  ;;  %v268_v28 = vpop.f32.mrf.mxu1 }
  0x9e   :  { %v249_v29 = vadd.f32 %v757_v26, %v248_v27  ;;  %v269_v30 = vadd.f32 %v757_v26, %v268_v28 }
  0xa0   :  { %vm328_vm2 = vcmp.ge.f32.partialorder %v249_v29, 0.0  ;;  %v360_v31 = vmul.f32 0.2, %v249_v29  ;;  %vm336_vm3 = vcmp.ge.f32.partialorder %v269_v30, 0.0  ;;  %v368_v32 = vmul.f32 0.2, %v269_v30 }
  0xa2   :  { %v392_v33 = vsel %vm328_vm2, %v249_v29, %v360_v31  ;;  %v400_v34 = vsel %vm336_vm3, %v269_v30, %v368_v32 }
  0xa3   :  { %v424_v35 = vpack.c.bf16 %v392_v33, %v392_v33  ;;  %v432_v36 = vpack.c.bf16 %v400_v34, %v400_v34 }
  0xa4   :  { %v288_v37 = vpop.f32.mrf.mxu2  ;;  %v308_v38 = vpop.f32.mrf.mxu3 }
  0xa5   :  { %457 = vst.msk [vmem:[%s922_s3] sm:$0xf] %vm456_vm4, %v424_v35  ;;  %v289_v39 = vadd.f32 %v757_v26, %v288_v37  ;;  %v309_v40 = vadd.f32 %v757_v26, %v308_v38  ;;  %v250_v41 = vpop.f32.mrf.mxu0  ;;  %v270_v42 = vpop.f32.mrf.mxu1 }
  0xa6   :  { %465 = vst.msk [vmem:[%s922_s3 + $0x20] sm:$0xf] %vm456_vm4, %v432_v36  ;;  %v251_v43 = vadd.f32 %v757_v26, %v250_v41  ;;  %v271_v44 = vadd.f32 %v757_v26, %v270_v42 }
  0xa7   :  { %vm344_vm5 = vcmp.ge.f32.partialorder %v289_v39, 0.0  ;;  %v376_v45 = vmul.f32 0.2, %v289_v39  ;;  %vm352_vm6 = vcmp.ge.f32.partialorder %v309_v40, 0.0  ;;  %v384_v46 = vmul.f32 0.2, %v309_v40 }
  0xa8   :  { %vm329_vm7 = vcmp.ge.f32.partialorder %v251_v43, 0.0  ;;  %v361_v47 = vmul.f32 0.2, %v251_v43  ;;  %vm337_vm8 = vcmp.ge.f32.partialorder %v271_v44, 0.0  ;;  %v369_v48 = vmul.f32 0.2, %v271_v44 }
  0xa9   :  { %v408_v49 = vsel %vm344_vm5, %v289_v39, %v376_v45  ;;  %v416_v50 = vsel %vm352_vm6, %v309_v40, %v384_v46 }
  0xaa   :  { %v440_v51 = vpack.c.bf16 %v408_v49, %v408_v49  ;;  %v448_v52 = vpack.c.bf16 %v416_v50, %v416_v50  ;;  %v393_v53 = vsel %vm329_vm7, %v251_v43, %v361_v47  ;;  %v401_v54 = vsel %vm337_vm8, %v271_v44, %v369_v48 }
  0xab   :  { %v425_v55 = vpack.c.bf16 %v393_v53, %v393_v53  ;;  %v433_v56 = vpack.c.bf16 %v401_v54, %v401_v54 }
  0xac   :  { %473 = vst.msk [vmem:[%s922_s3 + $0x40] sm:$0xf] %vm456_vm4, %v440_v51  ;;  %v290_v57 = vpop.f32.mrf.mxu2  ;;  %v310_v58 = vpop.f32.mrf.mxu3 }
  0xad   :  { %481 = vst.msk [vmem:[%s922_s3 + $0x60] sm:$0xf] %vm456_vm4, %v448_v52  ;;  %v291_v59 = vadd.f32 %v757_v26, %v290_v57  ;;  %v311_v60 = vadd.f32 %v757_v26, %v310_v58  ;;  %v253_v61 = vpop.f32.mrf.mxu0  ;;  %v273_v62 = vpop.f32.mrf.mxu1 }
  0xae   :  { %458 = vst.msk [vmem:[%s922_s3 + $0x4] sm:$0xf] %vm456_vm4, %v425_v55  ;;  %v254_v63 = vadd.f32 %v757_v26, %v253_v61  ;;  %v274_v0 = vadd.f32 %v757_v26, %v273_v62 }
  0xaf   :  { %466 = vst.msk [vmem:[%s922_s3 + $0x24] sm:$0xf] %vm456_vm4, %v433_v56  ;;  %vm345_vm9 = vcmp.ge.f32.partialorder %v291_v59, 0.0  ;;  %v377_v1 = vmul.f32 0.2, %v291_v59  ;;  %vm353_vm10 = vcmp.ge.f32.partialorder %v311_v60, 0.0 }
  0xb0   :  { %v385_v2 = vmul.f32 0.2, %v311_v60  ;;  %vm330_vm11 = vcmp.ge.f32.partialorder %v254_v63, 0.0  ;;  %v362_v3 = vmul.f32 0.2, %v254_v63  ;;  %vm338_vm12 = vcmp.ge.f32.partialorder %v274_v0, 0.0 }
  0xb1   :  { %v409_v4 = vsel %vm345_vm9, %v291_v59, %v377_v1  ;;  %v370_v5 = vmul.f32 0.2, %v274_v0 }
  0xb2   :  { %v441_v6 = vpack.c.bf16 %v409_v4, %v409_v4  ;;  %v417_v7 = vsel %vm353_vm10, %v311_v60, %v385_v2  ;;  %v394_v8 = vsel %vm330_vm11, %v254_v63, %v362_v3 }
  0xb3   :  { %v449_v9 = vpack.c.bf16 %v417_v7, %v417_v7  ;;  %v426_v10 = vpack.c.bf16 %v394_v8, %v394_v8  ;;  %v402_v11 = vsel %vm338_vm12, %v274_v0, %v370_v5 }
  0xb4   :  { %474 = vst.msk [vmem:[%s922_s3 + $0x44] sm:$0xf] %vm456_vm4, %v441_v6  ;;  %v434_v12 = vpack.c.bf16 %v402_v11, %v402_v11  ;;  %v293_v13 = vpop.f32.mrf.mxu2  ;;  %v313_v14 = vpop.f32.mrf.mxu3 }
  0xb5   :  { %482 = vst.msk [vmem:[%s922_s3 + $0x64] sm:$0xf] %vm456_vm4, %v449_v9  ;;  %v294_v15 = vadd.f32 %v757_v26, %v293_v13  ;;  %v314_v16 = vadd.f32 %v757_v26, %v313_v14  ;;  %v255_v17 = vpop.f32.mrf.mxu0  ;;  %v275_v18 = vpop.f32.mrf.mxu1 }
  0xb6   :  { %459 = vst.msk [vmem:[%s922_s3 + $0x8] sm:$0xf] %vm456_vm4, %v426_v10  ;;  %v256_v19 = vadd.f32 %v757_v26, %v255_v17  ;;  %v276_v20 = vadd.f32 %v757_v26, %v275_v18 }
  0xb7   :  { %467 = vst.msk [vmem:[%s922_s3 + $0x28] sm:$0xf] %vm456_vm4, %v434_v12  ;;  %vm346_vm13 = vcmp.ge.f32.partialorder %v294_v15, 0.0  ;;  %v378_v21 = vmul.f32 0.2, %v294_v15  ;;  %vm354_vm14 = vcmp.ge.f32.partialorder %v314_v16, 0.0 }
  0xb8   :  { %v386_v22 = vmul.f32 0.2, %v314_v16  ;;  %vm331_vm15 = vcmp.ge.f32.partialorder %v256_v19, 0.0  ;;  %v363_v23 = vmul.f32 0.2, %v256_v19  ;;  %vm339_vm0 = vcmp.ge.f32.partialorder %v276_v20, 0.0 }
  0xb9   :  { %v410_v24 = vsel %vm346_vm13, %v294_v15, %v378_v21  ;;  %v371_v25 = vmul.f32 0.2, %v276_v20 }
  0xba   :  { %v442_v27 = vpack.c.bf16 %v410_v24, %v410_v24  ;;  %v418_v28 = vsel %vm354_vm14, %v314_v16, %v386_v22  ;;  %v395_v29 = vsel %vm331_vm15, %v256_v19, %v363_v23 }
  0xbb   :  { %v450_v30 = vpack.c.bf16 %v418_v28, %v418_v28  ;;  %v427_v31 = vpack.c.bf16 %v395_v29, %v395_v29  ;;  %v403_v32 = vsel %vm339_vm0, %v276_v20, %v371_v25 }
  0xbc   :  { %475 = vst.msk [vmem:[%s922_s3 + $0x48] sm:$0xf] %vm456_vm4, %v442_v27  ;;  %v435_v33 = vpack.c.bf16 %v403_v32, %v403_v32  ;;  %v295_v34 = vpop.f32.mrf.mxu2  ;;  %v315_v35 = vpop.f32.mrf.mxu3 }
  0xbd   :  { %483 = vst.msk [vmem:[%s922_s3 + $0x68] sm:$0xf] %vm456_vm4, %v450_v30  ;;  %v296_v36 = vadd.f32 %v757_v26, %v295_v34  ;;  %v316_v37 = vadd.f32 %v757_v26, %v315_v35  ;;  %v258_v38 = vpop.f32.mrf.mxu0  ;;  %v278_v39 = vpop.f32.mrf.mxu1 }
  0xbe   :  { %460 = vst.msk [vmem:[%s922_s3 + $0xc] sm:$0xf] %vm456_vm4, %v427_v31  ;;  %v259_v40 = vadd.f32 %v757_v26, %v258_v38  ;;  %v279_v41 = vadd.f32 %v757_v26, %v278_v39 }
  0xbf   :  { %468 = vst.msk [vmem:[%s922_s3 + $0x2c] sm:$0xf] %vm456_vm4, %v435_v33  ;;  %vm347_vm1 = vcmp.ge.f32.partialorder %v296_v36, 0.0  ;;  %v379_v42 = vmul.f32 0.2, %v296_v36  ;;  %vm355_vm2 = vcmp.ge.f32.partialorder %v316_v37, 0.0 }
  0xc0   :  { %v387_v43 = vmul.f32 0.2, %v316_v37  ;;  %vm332_vm3 = vcmp.ge.f32.partialorder %v259_v40, 0.0  ;;  %v364_v44 = vmul.f32 0.2, %v259_v40  ;;  %vm340_vm5 = vcmp.ge.f32.partialorder %v279_v41, 0.0 }
  0xc1   :  { %v411_v45 = vsel %vm347_vm1, %v296_v36, %v379_v42  ;;  %v372_v46 = vmul.f32 0.2, %v279_v41 }
  0xc2   :  { %v443_v47 = vpack.c.bf16 %v411_v45, %v411_v45  ;;  %v419_v48 = vsel %vm355_vm2, %v316_v37, %v387_v43  ;;  %v396_v49 = vsel %vm332_vm3, %v259_v40, %v364_v44 }
  0xc3   :  { %v451_v50 = vpack.c.bf16 %v419_v48, %v419_v48  ;;  %v428_v51 = vpack.c.bf16 %v396_v49, %v396_v49  ;;  %v404_v52 = vsel %vm340_vm5, %v279_v41, %v372_v46 }
  0xc4   :  { %476 = vst.msk [vmem:[%s922_s3 + $0x4c] sm:$0xf] %vm456_vm4, %v443_v47  ;;  %v436_v53 = vpack.c.bf16 %v404_v52, %v404_v52  ;;  %v298_v54 = vpop.f32.mrf.mxu2  ;;  %v318_v55 = vpop.f32.mrf.mxu3 }
  0xc5   :  { %484 = vst.msk [vmem:[%s922_s3 + $0x6c] sm:$0xf] %vm456_vm4, %v451_v50  ;;  %v299_v56 = vadd.f32 %v757_v26, %v298_v54  ;;  %v319_v57 = vadd.f32 %v757_v26, %v318_v55  ;;  %v260_v58 = vpop.f32.mrf.mxu0  ;;  %v280_v59 = vpop.f32.mrf.mxu1 }
  0xc6   :  { %461 = vst.msk [vmem:[%s922_s3 + $0x10] sm:$0xf] %vm456_vm4, %v428_v51  ;;  %v261_v60 = vadd.f32 %v757_v26, %v260_v58  ;;  %v281_v61 = vadd.f32 %v757_v26, %v280_v59 }
  0xc7   :  { %469 = vst.msk [vmem:[%s922_s3 + $0x30] sm:$0xf] %vm456_vm4, %v436_v53  ;;  %vm348_vm6 = vcmp.ge.f32.partialorder %v299_v56, 0.0  ;;  %v380_v62 = vmul.f32 0.2, %v299_v56  ;;  %vm356_vm7 = vcmp.ge.f32.partialorder %v319_v57, 0.0 }
  0xc8   :  { %v388_v63 = vmul.f32 0.2, %v319_v57  ;;  %vm333_vm8 = vcmp.ge.f32.partialorder %v261_v60, 0.0  ;;  %v365_v0 = vmul.f32 0.2, %v261_v60  ;;  %vm341_vm9 = vcmp.ge.f32.partialorder %v281_v61, 0.0 }
  0xc9   :  { %v412_v1 = vsel %vm348_vm6, %v299_v56, %v380_v62  ;;  %v373_v2 = vmul.f32 0.2, %v281_v61 }
  0xca   :  { %v444_v3 = vpack.c.bf16 %v412_v1, %v412_v1  ;;  %v420_v4 = vsel %vm356_vm7, %v319_v57, %v388_v63  ;;  %v397_v5 = vsel %vm333_vm8, %v261_v60, %v365_v0 }
  0xcb   :  { %v452_v6 = vpack.c.bf16 %v420_v4, %v420_v4  ;;  %v429_v7 = vpack.c.bf16 %v397_v5, %v397_v5  ;;  %v405_v8 = vsel %vm341_vm9, %v281_v61, %v373_v2 }
  0xcc   :  { %477 = vst.msk [vmem:[%s922_s3 + $0x50] sm:$0xf] %vm456_vm4, %v444_v3  ;;  %v437_v9 = vpack.c.bf16 %v405_v8, %v405_v8  ;;  %v300_v10 = vpop.f32.mrf.mxu2  ;;  %v320_v11 = vpop.f32.mrf.mxu3 }
  0xcd   :  { %485 = vst.msk [vmem:[%s922_s3 + $0x70] sm:$0xf] %vm456_vm4, %v452_v6  ;;  %v301_v12 = vadd.f32 %v757_v26, %v300_v10  ;;  %v321_v13 = vadd.f32 %v757_v26, %v320_v11  ;;  %v263_v14 = vpop.f32.mrf.mxu0  ;;  %v283_v15 = vpop.f32.mrf.mxu1 }
  0xce   :  { %462 = vst.msk [vmem:[%s922_s3 + $0x14] sm:$0xf] %vm456_vm4, %v429_v7  ;;  %v264_v16 = vadd.f32 %v757_v26, %v263_v14  ;;  %v284_v17 = vadd.f32 %v757_v26, %v283_v15 }
  0xcf   :  { %470 = vst.msk [vmem:[%s922_s3 + $0x34] sm:$0xf] %vm456_vm4, %v437_v9  ;;  %vm349_vm10 = vcmp.ge.f32.partialorder %v301_v12, 0.0  ;;  %v381_v18 = vmul.f32 0.2, %v301_v12  ;;  %vm357_vm11 = vcmp.ge.f32.partialorder %v321_v13, 0.0 }
  0xd0   :  { %v389_v19 = vmul.f32 0.2, %v321_v13  ;;  %vm334_vm12 = vcmp.ge.f32.partialorder %v264_v16, 0.0  ;;  %v366_v20 = vmul.f32 0.2, %v264_v16  ;;  %vm342_vm13 = vcmp.ge.f32.partialorder %v284_v17, 0.0 }
  0xd1   :  { %v413_v21 = vsel %vm349_vm10, %v301_v12, %v381_v18  ;;  %v374_v22 = vmul.f32 0.2, %v284_v17 }
  0xd2   :  { %v445_v23 = vpack.c.bf16 %v413_v21, %v413_v21  ;;  %v421_v24 = vsel %vm357_vm11, %v321_v13, %v389_v19  ;;  %v398_v25 = vsel %vm334_vm12, %v264_v16, %v366_v20 }
  0xd3   :  { %v453_v27 = vpack.c.bf16 %v421_v24, %v421_v24  ;;  %v430_v28 = vpack.c.bf16 %v398_v25, %v398_v25  ;;  %v406_v29 = vsel %vm342_vm13, %v284_v17, %v374_v22 }
  0xd4   :  { %478 = vst.msk [vmem:[%s922_s3 + $0x54] sm:$0xf] %vm456_vm4, %v445_v23  ;;  %v438_v30 = vpack.c.bf16 %v406_v29, %v406_v29  ;;  %v303_v31 = vpop.f32.mrf.mxu2  ;;  %v323_v32 = vpop.f32.mrf.mxu3 }
  0xd5   :  { %486 = vst.msk [vmem:[%s922_s3 + $0x74] sm:$0xf] %vm456_vm4, %v453_v27  ;;  %v304_v33 = vadd.f32 %v757_v26, %v303_v31  ;;  %v324_v34 = vadd.f32 %v757_v26, %v323_v32  ;;  %v265_v35 = vpop.f32.mrf.mxu0  ;;  %v285_v36 = vpop.f32.mrf.mxu1 }
  0xd6   :  { %463 = vst.msk [vmem:[%s922_s3 + $0x18] sm:$0xf] %vm456_vm4, %v430_v28  ;;  %v266_v37 = vadd.f32 %v757_v26, %v265_v35  ;;  %v286_v38 = vadd.f32 %v757_v26, %v285_v36 }
  0xd7   :  { %471 = vst.msk [vmem:[%s922_s3 + $0x38] sm:$0xf] %vm456_vm4, %v438_v30  ;;  %vm350_vm14 = vcmp.ge.f32.partialorder %v304_v33, 0.0  ;;  %v382_v39 = vmul.f32 0.2, %v304_v33  ;;  %vm358_vm15 = vcmp.ge.f32.partialorder %v324_v34, 0.0 }
  0xd8   :  { %v390_v40 = vmul.f32 0.2, %v324_v34  ;;  %vm335_vm0 = vcmp.ge.f32.partialorder %v266_v37, 0.0  ;;  %v367_v41 = vmul.f32 0.2, %v266_v37  ;;  %vm343_vm1 = vcmp.ge.f32.partialorder %v286_v38, 0.0 }
  0xd9   :  { %v414_v42 = vsel %vm350_vm14, %v304_v33, %v382_v39  ;;  %v375_v43 = vmul.f32 0.2, %v286_v38 }
  0xda   :  { %v446_v44 = vpack.c.bf16 %v414_v42, %v414_v42  ;;  %v422_v45 = vsel %vm358_vm15, %v324_v34, %v390_v40  ;;  %v399_v46 = vsel %vm335_vm0, %v266_v37, %v367_v41 }
  0xdb   :  { %v454_v47 = vpack.c.bf16 %v422_v45, %v422_v45  ;;  %v431_v48 = vpack.c.bf16 %v399_v46, %v399_v46  ;;  %v407_v49 = vsel %vm343_vm1, %v286_v38, %v375_v43 }
  0xdc   :  { %479 = vst.msk [vmem:[%s922_s3 + $0x58] sm:$0xf] %vm456_vm4, %v446_v44  ;;  %v439_v50 = vpack.c.bf16 %v407_v49, %v407_v49  ;;  %v305_v51 = vpop.f32.mrf.mxu2  ;;  %v325_v52 = vpop.f32.mrf.mxu3 }
  0xdd   :  { %487 = vst.msk [vmem:[%s922_s3 + $0x78] sm:$0xf] %vm456_vm4, %v454_v47  ;;  %v306_v53 = vadd.f32 %v757_v26, %v305_v51  ;;  %v326_v54 = vadd.f32 %v757_v26, %v325_v52 }
  0xde   :  { %464 = vst.msk [vmem:[%s922_s3 + $0x1c] sm:$0xf] %vm456_vm4, %v431_v48 }
  0xdf   :  { %472 = vst.msk [vmem:[%s922_s3 + $0x3c] sm:$0xf] %vm456_vm4, %v439_v50  ;;  %vm351_vm2 = vcmp.ge.f32.partialorder %v306_v53, 0.0  ;;  %v383_v55 = vmul.f32 0.2, %v306_v53  ;;  %vm359_vm3 = vcmp.ge.f32.partialorder %v326_v54, 0.0 }
  0xe0   :  { %v391_v56 = vmul.f32 0.2, %v326_v54 }
  0xe1   :  { %v415_v57 = vsel %vm351_vm2, %v306_v53, %v383_v55 }
  0xe2   :  { %v447_v58 = vpack.c.bf16 %v415_v57, %v415_v57  ;;  %v423_v59 = vsel %vm359_vm3, %v326_v54, %v391_v56 }
  0xe3   :  { %v455_v60 = vpack.c.bf16 %v423_v59, %v423_v59 }
  0xe4   :  { %480 = vst.msk [vmem:[%s922_s3 + $0x5c] sm:$0xf] %vm456_vm4, %v447_v58 }
  0xe5   :  { %488 = vst.msk [vmem:[%s922_s3 + $0x7c] sm:$0xf] %vm456_vm4, %v455_v60 }

// kernel: ifnet_forward.79
= control target key start
LH: loop header
LB: loop body
LE: loop exit
PB: predicated region body
PF: predicated region fallthrough
CT: control target
= control target key end

     0   :  { %vm239_vm0 = vcmask 261120   ;;  %vm371_vm2 = vcmask 519168   ;;  %s753_s1 = inlined_call_operand.vmem [shape: bf16[288,64], index: 1, kind: input, shape index: {}]   ;;  %s754_s0 = inlined_call_operand.vmem [shape: bf16[64,288], index: 0, kind: input, shape index: {}]   ;;  %s755_s2 = inlined_call_operand.vmem [shape: f32[1,64], index: 2, kind: input, shape index: {}]   ;;  %s756_s3 = inlined_call_operand.vmem [shape: bf16[64,64], index: 3, kind: output, shape index: {}]  }
   0x1   :  { %v527_v0 = vld [vmem:[%s753_s1 + $0x38] sm:$0xff]  ;;  %v537_v2 = vld [vmem:[%s753_s1 + $0x88] sm:$0xff]  ;;  %v526_v3 = vld [vmem:[%s753_s1 + $0x30] sm:$0xff] }
   0x2   :  { %v535_v1 = vld [vmem:[%s753_s1 + $0x78] sm:$0xff]  ;;  %252 = vmatpush.bf16.msra.mxu0 %v527_v0  ;;  %538 = vmatpush.bf16.msra.mxu3 %v527_v0  ;;  %v534_v4 = vld [vmem:[%s753_s1 + $0x70] sm:$0xff]  ;;  %v536_v5 = vld [vmem:[%s753_s1 + $0x80] sm:$0xff] }
   0x3   :  { %546 = vmatpush.bf16.msra.mxu1 %v535_v1  ;;  %316 = vmatpush.bf16.msra.mxu2 %v537_v2  ;;  %v394_v6 = vld [vmem:[%s754_s0 + $0x8] sm:$0xf]  ;;  %v510_v7 = vld [vmem:[%s754_s0 + $0x10] sm:$0xf0]  ;;  %v524_v11 = vld [vmem:[%s753_s1 + $0x20] sm:$0xff] }
   0x4   :  { %v525_v8 = vld [vmem:[%s753_s1 + $0x28] sm:$0xff]  ;;  %v395_v10 = vor.u32 %v510_v7, %v394_v6  ;;  %v532_v12 = vld [vmem:[%s753_s1 + $0x60] sm:$0xff]  ;;  %v523_v13 = vld [vmem:[%s753_s1 + $0x18] sm:$0xff] }
   0x5   :  { %v533_v9 = vld [vmem:[%s753_s1 + $0x68] sm:$0xff]  ;;  %v531_v14 = vld [vmem:[%s753_s1 + $0x58] sm:$0xff]  ;;  %v522_v15 = vld [vmem:[%s753_s1 + $0x10] sm:$0xff] }
   0x6   :  { %253 = vmatpush.bf16.msra.mxu0 %v526_v3  ;;  %539 = vmatpush.bf16.msra.mxu3 %v526_v3  ;;  %v530_v16 = vld [vmem:[%s753_s1 + $0x50] sm:$0xff]  ;;  %v406_v17 = vld [vmem:[%s754_s0 + $0x20] sm:$0xf]  ;;  %v513_v18 = vld [vmem:[%s754_s0 + $0x28] sm:$0xf0] }
   0x7   :  { %547 = vmatpush.bf16.msra.mxu1 %v534_v4  ;;  %317 = vmatpush.bf16.msra.mxu2 %v536_v5  ;;  %v521_v19 = vld [vmem:[%s753_s1 + $0x8] sm:$0xff]  ;;  %v407_v21 = vor.u32 %v513_v18, %v406_v17  ;;  %v520_v22 = vld [vmem:[%s753_s1] sm:$0xff]  ;;  %v398_v23 = vld [vmem:[%s754_s0 + $0x18] sm:$0xf] }
   0x8   :  { %v529_v20 = vld [vmem:[%s753_s1 + $0x48] sm:$0xff]  ;;  %v512_v24 = vld [vmem:[%s754_s0 + $0x20] sm:$0xf0]  ;;  %v386_v25 = vld [vmem:[%s754_s0] sm:$0xf] }
   0x9   :  { %v509_v26 = vld [vmem:[%s754_s0 + $0x8] sm:$0xf0]  ;;  %v528_v27 = vld [vmem:[%s753_s1 + $0x40] sm:$0xff]  ;;  %v511_v28 = vld [vmem:[%s754_s0 + $0x1c] sm:$0xf]  ;;  %v399_v30 = vor.u32 %v512_v24, %v398_v23 }
   0xa   :  { %254 = vmatpush.bf16.msra.mxu0 %v525_v8  ;;  %540 = vmatpush.bf16.msra.mxu3 %v525_v8  ;;  %v400_v29 = vld [vmem:[%s754_s0 + $0x24] sm:$0xf0]  ;;  %v387_v31 = vor.u32 %v509_v26, %v386_v25  ;;  %v418_v33 = vld [vmem:[%s754_s0 + $0x38] sm:$0xf]  ;;  %v516_v34 = vld [vmem:[%s754_s0 + $0x40] sm:$0xf0] }
   0xb   :  { %548 = vmatpush.bf16.msra.mxu1 %v533_v9  ;;  %504 = vmatmul.msk.bf16.vlgmr.msra.gmra.mxu2 %vm239_vm0, %v395_v10  ;;  %v403_v32 = vor.u32 %v511_v28, %v400_v29  ;;  %v419_v35 = vor.u32 %v516_v34, %v418_v33  ;;  %v410_v36 = vld [vmem:[%s754_s0 + $0x30] sm:$0xf]  ;;  %v515_v37 = vld [vmem:[%s754_s0 + $0x38] sm:$0xf0]  ;;  %v514_v38 = vld [vmem:[%s754_s0 + $0x34] sm:$0xf] }
   0xc   :  { %v412_v39 = vld [vmem:[%s754_s0 + $0x3c] sm:$0xf0]  ;;  %v411_v40 = vor.u32 %v515_v37, %v410_v36  ;;  %v430_v42 = vld [vmem:[%s754_s0 + $0x50] sm:$0xf]  ;;  %v519_v43 = vld [vmem:[%s754_s0 + $0x58] sm:$0xf0] }
   0xd   :  { %v415_v41 = vor.u32 %v514_v38, %v412_v39  ;;  %v431_v44 = vor.u32 %v519_v43, %v430_v42  ;;  %v508_v45 = vld [vmem:[%s754_s0 + $0x4] sm:$0xf]  ;;  %v388_v46 = vld [vmem:[%s754_s0 + $0xc] sm:$0xf0]  ;;  %v422_v48 = vld [vmem:[%s754_s0 + $0x48] sm:$0xf] }
   0xe   :  { %255 = vmatpush.bf16.msra.mxu0 %v524_v11  ;;  %541 = vmatpush.bf16.msra.mxu3 %v524_v11  ;;  %v391_v47 = vor.u32 %v508_v45, %v388_v46  ;;  %v518_v49 = vld [vmem:[%s754_s0 + $0x50] sm:$0xf0]  ;;  %v517_v50 = vld [vmem:[%s754_s0 + $0x4c] sm:$0xf]  ;;  %v424_v51 = vld [vmem:[%s754_s0 + $0x54] sm:$0xf0] }
   0xf   :  { %549 = vmatpush.bf16.msra.mxu1 %v532_v12  ;;  %v423_v52 = vor.u32 %v518_v49, %v422_v48  ;;  %v427_v53 = vor.u32 %v517_v50, %v424_v51  ;;  %v710_v58 = vld [vmem:[%s755_s2] ss:$0 sm:$0xff] }
  0x12   :  { %256 = vmatpush.bf16.msra.mxu0 %v523_v13  ;;  %542 = vmatpush.bf16.msra.mxu3 %v523_v13 }
  0x13   :  { %550 = vmatpush.bf16.msra.mxu1 %v531_v14 }
  0x16   :  { %257 = vmatpush.bf16.msra.mxu0 %v522_v15  ;;  %543 = vmatpush.bf16.msra.mxu3 %v522_v15 }
  0x17   :  { %551 = vmatpush.bf16.msra.mxu1 %v530_v16 }
  0x1a   :  { %258 = vmatpush.bf16.msra.mxu0 %v521_v19  ;;  %544 = vmatpush.bf16.msra.mxu3 %v521_v19 }
  0x1b   :  { %552 = vmatpush.bf16.msra.mxu1 %v529_v20  ;;  %505 = vmatmul.msk.bf16.gmra.mxu2 %vm239_vm0, %v407_v21 }
  0x1e   :  { %259 = vmatpush.bf16.msra.mxu0 %v520_v22  ;;  %545 = vmatpush.bf16.msra.mxu3 %v520_v22 }
  0x1f   :  { %553 = vmatpush.bf16.msra.mxu1 %v528_v27 }
  0x21   :  { %265 = vmatmul.bf16.vlgmr.msra.gmra.mxu3 %v399_v30  ;;  %260 = vmatmul.bf16.vlgmr.msra.gmra.mxu0 %v387_v31 }
  0x22   :  { %281 = vmatpush.bf16.msrb.mxu0 %v535_v1  ;;  %294 = vmatmul.bf16.vlgmr.msra.gmra.mxu1 %v403_v32 }
  0x26   :  { %282 = vmatpush.bf16.msrb.mxu0 %v534_v4 }
  0x2a   :  { %283 = vmatpush.bf16.msrb.mxu0 %v533_v9 }
  0x2b   :  { %506 = vmatmul.msk.bf16.gmra.mxu2 %vm239_vm0, %v419_v35 }
  0x2e   :  { %284 = vmatpush.bf16.msrb.mxu0 %v532_v12 }
  0x31   :  { %270 = vmatmul.bf16.gmra.mxu3 %v411_v40 }
  0x32   :  { %285 = vmatpush.bf16.msrb.mxu0 %v531_v14  ;;  %299 = vmatmul.bf16.gmra.mxu1 %v415_v41 }
  0x36   :  { %286 = vmatpush.bf16.msrb.mxu0 %v530_v16 }
  0x3a   :  { %287 = vmatpush.bf16.msrb.mxu0 %v529_v20 }
  0x3b   :  { %507 = vmatmul.msk.bf16.gmra.mxu2 %vm239_vm0, %v431_v44 }
  0x3e   :  { %288 = vmatpush.bf16.msrb.mxu0 %v528_v27 }
  0x41   :  { %289 = vmatmul.bf16.vlgmr.msrb.gmra.mxu0 %v391_v47  ;;  %275 = vmatmul.bf16.gmra.mxu3 %v423_v52 }
  0x42   :  { %304 = vmatmul.bf16.gmra.mxu1 %v427_v53 }
  0x8e   :  { %v319_v54 = vpop.f32.mrf.mxu2 }
  0x96   :  { %v705_v55 = vpop.f32.mrf.mxu2 }
  0x9e   :  { %v324_v56 = vpop.f32.mrf.mxu2  ;;  %v261_v63 = vpop.f32.mrf.mxu0 }
  0x9f   :  { %v295_v57 = vpop.f32.mrf.mxu1  ;;  %v262_v19 = vadd.f32 %v710_v58, %v261_v63 }
  0xa4   :  { %v266_v59 = vpop.f32.mrf.mxu3 }
  0xa5   :  { %v267_v60 = vadd.f32 %v710_v58, %v266_v59 }
  0xa6   :  { %v326_v0 = vpop.f32.mrf.mxu2  ;;  %v263_v10 = vpop.f32.mrf.mxu0 }
  0xa7   :  { %v296_v61 = vadd.f32 %v295_v57, %v267_v60  ;;  %v297_v62 = vpop.f32.mrf.mxu1  ;;  %v264_v33 = vadd.f32 %v710_v58, %v263_v10 }
  0xa9   :  { %v325_v1 = vadd.f32 %v324_v56, %v296_v61 }
  0xab   :  { %vm341_vm1 = vcmp.ge.f32.partialorder %v325_v1, 0.0  ;;  %v349_v2 = vmul.f32 0.2, %v325_v1 }
  0xac   :  { %v268_v3 = vpop.f32.mrf.mxu3 }
  0xad   :  { %v357_v4 = vsel %vm341_vm1, %v325_v1, %v349_v2  ;;  %v269_v5 = vadd.f32 %v710_v58, %v268_v3 }
  0xae   :  { %v365_v6 = vpack.c.bf16 %v357_v4, %v357_v4  ;;  %v329_v11 = vpop.f32.mrf.mxu2 }
  0xaf   :  { %v298_v7 = vadd.f32 %v297_v62, %v269_v5  ;;  %v300_v8 = vpop.f32.mrf.mxu1 }
  0xb0   :  { %374 = vst.msk [vmem:[%s756_s3 + $0x8] sm:$0xf] %vm371_vm2, %v365_v6 }
  0xb1   :  { %v327_v9 = vadd.f32 %v326_v0, %v298_v7 }
  0xb3   :  { %vm342_vm3 = vcmp.ge.f32.partialorder %v327_v9, 0.0  ;;  %v350_v12 = vmul.f32 0.2, %v327_v9 }
  0xb4   :  { %v271_v13 = vpop.f32.mrf.mxu3 }
  0xb5   :  { %v358_v14 = vsel %vm342_vm3, %v327_v9, %v350_v12  ;;  %v272_v15 = vadd.f32 %v710_v58, %v271_v13 }
  0xb6   :  { %v366_v16 = vpack.c.bf16 %v358_v14, %v358_v14  ;;  %v331_v23 = vpop.f32.mrf.mxu2 }
  0xb7   :  { %v301_v17 = vadd.f32 %v300_v8, %v272_v15  ;;  %v302_v20 = vpop.f32.mrf.mxu1 }
  0xb8   :  { %375 = vst.msk [vmem:[%s756_s3 + $0xc] sm:$0xf] %vm371_vm2, %v366_v16 }
  0xb9   :  { %v330_v18 = vadd.f32 %v329_v11, %v301_v17 }
  0xbb   :  { %vm343_vm4 = vcmp.ge.f32.partialorder %v330_v18, 0.0  ;;  %v351_v21 = vmul.f32 0.2, %v330_v18 }
  0xbc   :  { %v273_v25 = vpop.f32.mrf.mxu3 }
  0xbd   :  { %v359_v26 = vsel %vm343_vm4, %v330_v18, %v351_v21  ;;  %v274_v27 = vadd.f32 %v710_v58, %v273_v25 }
  0xbe   :  { %v290_v22 = vpop.f32.mrf.mxu0  ;;  %v367_v28 = vpack.c.bf16 %v359_v26, %v359_v26  ;;  %v334_v44 = vpop.f32.mrf.mxu2 }
  0xbf   :  { %v291_v24 = vadd.f32 %v290_v22, %v262_v19  ;;  %v303_v30 = vadd.f32 %v302_v20, %v274_v27  ;;  %v305_v38 = vpop.f32.mrf.mxu1 }
  0xc0   :  { %376 = vst.msk [vmem:[%s756_s3 + $0x10] sm:$0xf] %vm371_vm2, %v367_v28 }
  0xc1   :  { %v320_v29 = vadd.f32 %v319_v54, %v291_v24  ;;  %v332_v32 = vadd.f32 %v331_v23, %v303_v30 }
  0xc3   :  { %vm339_vm5 = vcmp.ge.f32.partialorder %v320_v29, 0.0  ;;  %v347_v31 = vmul.f32 0.2, %v320_v29  ;;  %vm344_vm6 = vcmp.ge.f32.partialorder %v332_v32, 0.0  ;;  %v352_v36 = vmul.f32 0.2, %v332_v32 }
  0xc4   :  { %v276_v40 = vpop.f32.mrf.mxu3 }
  0xc5   :  { %v355_v34 = vsel %vm339_vm5, %v320_v29, %v347_v31  ;;  %v360_v41 = vsel %vm344_vm6, %v332_v32, %v352_v36  ;;  %v277_v42 = vadd.f32 %v710_v58, %v276_v40 }
  0xc6   :  { %v363_v35 = vpack.c.bf16 %v355_v34, %v355_v34  ;;  %v292_v37 = vpop.f32.mrf.mxu0  ;;  %v368_v43 = vpack.c.bf16 %v360_v41, %v360_v41  ;;  %v336_v59 = vpop.f32.mrf.mxu2 }
  0xc7   :  { %v293_v39 = vadd.f32 %v292_v37, %v264_v33  ;;  %v306_v46 = vadd.f32 %v305_v38, %v277_v42  ;;  %v307_v56 = vpop.f32.mrf.mxu1 }
  0xc8   :  { %372 = vst.msk [vmem:[%s756_s3] sm:$0xf] %vm371_vm2, %v363_v35 }
  0xc9   :  { %v322_v45 = vadd.f32 %v705_v55, %v293_v39  ;;  %377 = vst.msk [vmem:[%s756_s3 + $0x14] sm:$0xf] %vm371_vm2, %v368_v43  ;;  %v335_v48 = vadd.f32 %v334_v44, %v306_v46 }
  0xcb   :  { %vm340_vm7 = vcmp.ge.f32.partialorder %v322_v45, 0.0  ;;  %v348_v47 = vmul.f32 0.2, %v322_v45  ;;  %vm345_vm8 = vcmp.ge.f32.partialorder %v335_v48, 0.0  ;;  %v353_v51 = vmul.f32 0.2, %v335_v48 }
  0xcc   :  { %v278_v52 = vpop.f32.mrf.mxu3 }
  0xcd   :  { %v356_v49 = vsel %vm340_vm7, %v322_v45, %v348_v47  ;;  %v361_v53 = vsel %vm345_vm8, %v335_v48, %v353_v51  ;;  %v279_v54 = vadd.f32 %v710_v58, %v278_v52 }
  0xce   :  { %v364_v50 = vpack.c.bf16 %v356_v49, %v356_v49  ;;  %v369_v55 = vpack.c.bf16 %v361_v53, %v361_v53 }
  0xcf   :  { %v308_v57 = vadd.f32 %v307_v56, %v279_v54 }
  0xd0   :  { %373 = vst.msk [vmem:[%s756_s3 + $0x4] sm:$0xf] %vm371_vm2, %v364_v50 }
  0xd1   :  { %378 = vst.msk [vmem:[%s756_s3 + $0x18] sm:$0xf] %vm371_vm2, %v369_v55  ;;  %v337_v60 = vadd.f32 %v336_v59, %v308_v57 }
  0xd3   :  { %vm346_vm9 = vcmp.ge.f32.partialorder %v337_v60, 0.0  ;;  %v354_v61 = vmul.f32 0.2, %v337_v60 }
  0xd5   :  { %v362_v62 = vsel %vm346_vm9, %v337_v60, %v354_v61 }
  0xd6   :  { %v370_v63 = vpack.c.bf16 %v362_v62, %v362_v62 }
  0xd8   :  { %379 = vst.msk [vmem:[%s756_s3 + $0x1c] sm:$0xf] %vm371_vm2, %v370_v63 }

// kernel: ifnet_forward.80
= control target key start
LH: loop header
LB: loop body
LE: loop exit
PB: predicated region body
PF: predicated region fallthrough
CT: control target
= control target key end

     0   :  { %vm437_vm0 = vcmask 523264   ;;  %vm663_vm2 = vcmask 519168   ;;  %s1341_s1 = inlined_call_operand.vmem [shape: bf16[576,64], index: 1, kind: input, shape index: {}]   ;;  %s1342_s2 = inlined_call_operand.vmem [shape: f32[1,64], index: 2, kind: input, shape index: {}]   ;;  %s1343_s0 = inlined_call_operand.vmem [shape: bf16[64,576], index: 0, kind: input, shape index: {}]   ;;  %s1344_s3 = inlined_call_operand.vmem [shape: f32[1,64], index: 3, kind: input, shape index: {}]   ;;  %s1345_s4 = inlined_call_operand.vmem [shape: bf16[64,64], index: 4, kind: input, shape index: {}, may-alias: {4,5}]   ;;  %s1346_s5 = inlined_call_operand.vmem [shape: bf16[64,64], index: 5, kind: output, shape index: {}, may-alias: {4,5}]  }
   0x1   :  { %v931_v0 = vld [vmem:[%s1341_s1 + $0x38] sm:$0xff]  ;;  %v930_v1 = vld [vmem:[%s1341_s1 + $0x30] sm:$0xff]  ;;  %v929_v4 = vld [vmem:[%s1341_s1 + $0x28] sm:$0xff] }
   0x2   :  { %979 = vmatpush.bf16.msra.mxu1 %v931_v0  ;;  %980 = vmatpush.bf16.msra.mxu2 %v931_v0  ;;  %v955_v2 = vld [vmem:[%s1341_s1 + $0xf8] sm:$0xff]  ;;  %v954_v3 = vld [vmem:[%s1341_s1 + $0xf0] sm:$0xff]  ;;  %v953_v5 = vld [vmem:[%s1341_s1 + $0xe8] sm:$0xff] }
   0x3   :  { %450 = vmatpush.bf16.msra.mxu0 %v931_v0  ;;  %537 = vmatpush.bf16.msra.mxu3 %v955_v2  ;;  %v928_v6 = vld [vmem:[%s1341_s1 + $0x20] sm:$0xff]  ;;  %v927_v8 = vld [vmem:[%s1341_s1 + $0x18] sm:$0xff]  ;;  %v926_v10 = vld [vmem:[%s1341_s1 + $0x10] sm:$0xff] }
   0x4   :  { %v952_v7 = vld [vmem:[%s1341_s1 + $0xe0] sm:$0xff]  ;;  %v951_v9 = vld [vmem:[%s1341_s1 + $0xd8] sm:$0xff]  ;;  %v950_v11 = vld [vmem:[%s1341_s1 + $0xd0] sm:$0xff] }
   0x5   :  { %v925_v12 = vld [vmem:[%s1341_s1 + $0x8] sm:$0xff]  ;;  %v924_v14 = vld [vmem:[%s1341_s1] sm:$0xff]  ;;  %v911_v16 = vld [vmem:[%s1343_s0 + $0x38] sm:$0xf0] }
   0x6   :  { %981 = vmatpush.bf16.msra.mxu1 %v930_v1  ;;  %982 = vmatpush.bf16.msra.mxu2 %v930_v1  ;;  %v949_v13 = vld [vmem:[%s1341_s1 + $0xc8] sm:$0xff]  ;;  %v738_v17 = vld [vmem:[%s1343_s0 + $0x78] sm:$0xf]  ;;  %v678_v21 = vld [vmem:[%s1343_s0] sm:$0xf] }
   0x7   :  { %451 = vmatpush.bf16.msra.mxu0 %v930_v1  ;;  %538 = vmatpush.bf16.msra.mxu3 %v954_v3  ;;  %v698_v15 = vld [vmem:[%s1343_s0 + $0x28] sm:$0xf]  ;;  %v921_v18 = vld [vmem:[%s1343_s0 + $0x88] sm:$0xf0]  ;;  %v947_v19 = vld [vmem:[%s1341_s1 + $0xb8] sm:$0xff] }
   0x8   :  { %v939_v20 = vld [vmem:[%s1341_s1 + $0x78] sm:$0xff]  ;;  %v948_v22 = vld [vmem:[%s1341_s1 + $0xc0] sm:$0xff]  ;;  %v699_v23 = vor.u32 %v911_v16, %v698_v15  ;;  %v739_v24 = vor.u32 %v921_v18, %v738_v17  ;;  %v906_v25 = vld [vmem:[%s1343_s0 + $0x10] sm:$0xf0] }
   0x9   :  { %v905_v26 = vld [vmem:[%s1343_s0 + $0xc] sm:$0xf]  ;;  %v688_v27 = vld [vmem:[%s1343_s0 + $0x1c] sm:$0xf0]  ;;  %v959_v28 = vld [vmem:[%s1341_s1 + $0x118] sm:$0xff]  ;;  %v679_v31 = vor.u32 %v906_v25, %v678_v21 }
   0xa   :  { %983 = vmatpush.bf16.msra.mxu1 %v929_v4  ;;  %984 = vmatpush.bf16.msra.mxu2 %v929_v4  ;;  %v946_v29 = vld [vmem:[%s1341_s1 + $0xb0] sm:$0xff]  ;;  %v691_v32 = vor.u32 %v905_v26, %v688_v27  ;;  %v945_v34 = vld [vmem:[%s1341_s1 + $0xa8] sm:$0xff]  ;;  %v944_v37 = vld [vmem:[%s1341_s1 + $0xa0] sm:$0xff] }
   0xb   :  { %452 = vmatpush.bf16.msra.mxu0 %v929_v4  ;;  %539 = vmatpush.bf16.msra.mxu3 %v953_v5  ;;  %v938_v30 = vld [vmem:[%s1341_s1 + $0x70] sm:$0xff]  ;;  %v937_v35 = vld [vmem:[%s1341_s1 + $0x68] sm:$0xff]  ;;  %v936_v38 = vld [vmem:[%s1341_s1 + $0x60] sm:$0xff] }
   0xc   :  { %v958_v33 = vld [vmem:[%s1341_s1 + $0x110] sm:$0xff]  ;;  %v957_v36 = vld [vmem:[%s1341_s1 + $0x108] sm:$0xff]  ;;  %v916_v40 = vld [vmem:[%s1343_s0 + $0x60] sm:$0xf0] }
   0xd   :  { %v718_v39 = vld [vmem:[%s1343_s0 + $0x50] sm:$0xf]  ;;  %v956_v41 = vld [vmem:[%s1341_s1 + $0x100] sm:$0xff]  ;;  %v943_v42 = vld [vmem:[%s1341_s1 + $0x98] sm:$0xff] }
   0xe   :  { %985 = vmatpush.bf16.msra.mxu1 %v928_v6  ;;  %986 = vmatpush.bf16.msra.mxu2 %v928_v6  ;;  %v935_v43 = vld [vmem:[%s1341_s1 + $0x58] sm:$0xff]  ;;  %v694_v44 = vld [vmem:[%s1343_s0 + $0x10] sm:$0xf]  ;;  %v719_v45 = vor.u32 %v916_v40, %v718_v39  ;;  %v908_v46 = vld [vmem:[%s1343_s0 + $0x20] sm:$0xf0] }
   0xf   :  { %453 = vmatpush.bf16.msra.mxu0 %v928_v6  ;;  %540 = vmatpush.bf16.msra.mxu3 %v952_v7  ;;  %v910_v47 = vld [vmem:[%s1343_s0 + $0x34] sm:$0xf]  ;;  %v708_v48 = vld [vmem:[%s1343_s0 + $0x44] sm:$0xf0]  ;;  %v695_v51 = vor.u32 %v908_v46, %v694_v44  ;;  %v940_v55 = vld [vmem:[%s1341_s1 + $0x80] sm:$0xff] }
  0x10   :  { %v942_v49 = vld [vmem:[%s1341_s1 + $0x90] sm:$0xff]  ;;  %v711_v52 = vor.u32 %v910_v47, %v708_v48  ;;  %v941_v53 = vld [vmem:[%s1341_s1 + $0x88] sm:$0xff]  ;;  %v932_v56 = vld [vmem:[%s1341_s1 + $0x40] sm:$0xff] }
  0x11   :  { %v934_v50 = vld [vmem:[%s1341_s1 + $0x50] sm:$0xff]  ;;  %v933_v54 = vld [vmem:[%s1341_s1 + $0x48] sm:$0xff]  ;;  %v907_v58 = vld [vmem:[%s1343_s0 + $0x18] sm:$0xf0] }
  0x12   :  { %987 = vmatpush.bf16.msra.mxu1 %v927_v8  ;;  %988 = vmatpush.bf16.msra.mxu2 %v927_v8  ;;  %v686_v57 = vld [vmem:[%s1343_s0 + $0x8] sm:$0xf]  ;;  %v904_v60 = vld [vmem:[%s1343_s0 + $0x4] sm:$0xf]  ;;  %v680_v61 = vld [vmem:[%s1343_s0 + $0x14] sm:$0xf0] }
  0x13   :  { %454 = vmatpush.bf16.msra.mxu0 %v927_v8  ;;  %541 = vmatpush.bf16.msra.mxu3 %v951_v9  ;;  %v687_v59 = vor.u32 %v907_v58, %v686_v57  ;;  %v714_v62 = vld [vmem:[%s1343_s0 + $0x38] sm:$0xf]  ;;  %v683_v63 = vor.u32 %v904_v60, %v680_v61  ;;  %v913_v0 = vld [vmem:[%s1343_s0 + $0x48] sm:$0xf0]  ;;  %v915_v1 = vld [vmem:[%s1343_s0 + $0x5c] sm:$0xf] }
  0x14   :  { %v728_v2 = vld [vmem:[%s1343_s0 + $0x6c] sm:$0xf0]  ;;  %v715_v3 = vor.u32 %v913_v0, %v714_v62  ;;  %v912_v6 = vld [vmem:[%s1343_s0 + $0x40] sm:$0xf0]  ;;  %v909_v8 = vld [vmem:[%s1343_s0 + $0x2c] sm:$0xf] }
  0x15   :  { %v731_v4 = vor.u32 %v915_v1, %v728_v2  ;;  %v706_v5 = vld [vmem:[%s1343_s0 + $0x30] sm:$0xf]  ;;  %v700_v9 = vld [vmem:[%s1343_s0 + $0x3c] sm:$0xf0]  ;;  %v726_v17 = vld [vmem:[%s1343_s0 + $0x58] sm:$0xf] }
  0x16   :  { %989 = vmatpush.bf16.msra.mxu1 %v926_v10  ;;  %990 = vmatpush.bf16.msra.mxu2 %v926_v10  ;;  %v707_v7 = vor.u32 %v912_v6, %v706_v5  ;;  %v917_v18 = vld [vmem:[%s1343_s0 + $0x68] sm:$0xf0]  ;;  %v720_v21 = vld [vmem:[%s1343_s0 + $0x64] sm:$0xf0]  ;;  %v746_v26 = vld [vmem:[%s1343_s0 + $0x80] sm:$0xf] }
  0x17   :  { %455 = vmatpush.bf16.msra.mxu0 %v926_v10  ;;  %542 = vmatpush.bf16.msra.mxu3 %v950_v11  ;;  %v734_v10 = vld [vmem:[%s1343_s0 + $0x60] sm:$0xf]  ;;  %v703_v11 = vor.u32 %v909_v8, %v700_v9  ;;  %v922_v27 = vld [vmem:[%s1343_s0 + $0x90] sm:$0xf0] }
  0x1a   :  { %991 = vmatpush.bf16.msra.mxu1 %v925_v12  ;;  %992 = vmatpush.bf16.msra.mxu2 %v925_v12 }
  0x1b   :  { %456 = vmatpush.bf16.msra.mxu0 %v925_v12  ;;  %543 = vmatpush.bf16.msra.mxu3 %v949_v13  ;;  %v918_v12 = vld [vmem:[%s1343_s0 + $0x70] sm:$0xf0]  ;;  %v920_v13 = vld [vmem:[%s1343_s0 + $0x84] sm:$0xf] }
  0x1c   :  { %v735_v15 = vor.u32 %v918_v12, %v734_v10 }
  0x1e   :  { %993 = vmatpush.bf16.msra.mxu1 %v924_v14  ;;  %994 = vmatpush.bf16.msra.mxu2 %v924_v14 }
  0x1f   :  { %457 = vmatpush.bf16.msra.mxu0 %v924_v14  ;;  %544 = vmatpush.bf16.msra.mxu3 %v948_v22  ;;  %v748_v14 = vld [vmem:[%s1343_s0 + $0x94] sm:$0xf0] }
  0x20   :  { %v751_v16 = vor.u32 %v920_v13, %v748_v14 }
  0x21   :  { %463 = vmatmul.bf16.vlgmr.msra.gmra.mxu1 %v699_v23  ;;  %473 = vmatmul.bf16.vlgmr.msra.gmra.mxu2 %v739_v24  ;;  %v754_v23 = vld [vmem:[%s1343_s0 + $0x88] sm:$0xf]  ;;  %v923_v24 = vld [vmem:[%s1343_s0 + $0x98] sm:$0xf0] }
  0x22   :  { %508 = vmatpush.bf16.msrb.mxu2 %v947_v19  ;;  %479 = vmatpush.bf16.msrb.mxu1 %v939_v20  ;;  %v727_v19 = vor.u32 %v917_v18, %v726_v17  ;;  %v914_v20 = vld [vmem:[%s1343_s0 + $0x54] sm:$0xf]  ;;  %v755_v25 = vor.u32 %v923_v24, %v754_v23 }
  0x23   :  { %570 = vmatpush.bf16.msrb.mxu0 %v959_v28  ;;  %545 = vmatmul.bf16.vlgmr.msra.gmra.mxu3 %v691_v32  ;;  %v723_v22 = vor.u32 %v914_v20, %v720_v21  ;;  %v747_v28 = vor.u32 %v922_v27, %v746_v26 }
  0x24   :  { %458 = vmatmul.bf16.vlgmr.msra.gmra.mxu0 %v679_v31 }
  0x26   :  { %509 = vmatpush.bf16.msrb.mxu2 %v946_v29  ;;  %480 = vmatpush.bf16.msrb.mxu1 %v938_v30  ;;  %v919_v29 = vld [vmem:[%s1343_s0 + $0x7c] sm:$0xf]  ;;  %v740_v30 = vld [vmem:[%s1343_s0 + $0x8c] sm:$0xf0] }
  0x27   :  { %571 = vmatpush.bf16.msrb.mxu0 %v958_v33  ;;  %v743_v31 = vor.u32 %v919_v29, %v740_v30 }
  0x2a   :  { %510 = vmatpush.bf16.msrb.mxu2 %v945_v34  ;;  %481 = vmatpush.bf16.msrb.mxu1 %v937_v35 }
  0x2b   :  { %572 = vmatpush.bf16.msrb.mxu0 %v957_v36 }
  0x2e   :  { %511 = vmatpush.bf16.msrb.mxu2 %v944_v37  ;;  %482 = vmatpush.bf16.msrb.mxu1 %v936_v38 }
  0x2f   :  { %573 = vmatpush.bf16.msrb.mxu0 %v956_v41 }
  0x31   :  { %468 = vmatmul.bf16.gmra.mxu1 %v719_v45 }
  0x32   :  { %512 = vmatpush.bf16.msrb.mxu2 %v943_v42  ;;  %483 = vmatpush.bf16.msrb.mxu1 %v935_v43  ;;  %v1270_v42 = vld [vmem:[%s1342_s2] ss:$0 sm:$0xff] }
  0x33   :  { %550 = vmatmul.bf16.gmra.mxu3 %v711_v52  ;;  %v1279_v52 = vld [vmem:[%s1344_s3] ss:$0 sm:$0xff] }
  0x34   :  { %900 = vmatmul.msk.bf16.vlgmr.msrb.gmra.mxu0 %vm437_vm0, %v695_v51 }
  0x36   :  { %513 = vmatpush.bf16.msrb.mxu2 %v942_v49  ;;  %484 = vmatpush.bf16.msrb.mxu1 %v934_v50  ;;  %v961_v50 = vld [vmem:[%s1345_s4] sm:$0xff]  }
  0x37   :  { %v963_v5 = vunpack.c.h.bf16 %v961_v50 }
  0x3a   :  { %514 = vmatpush.bf16.msrb.mxu2 %v941_v53  ;;  %485 = vmatpush.bf16.msrb.mxu1 %v933_v54 }
  0x3e   :  { %515 = vmatpush.bf16.msrb.mxu2 %v940_v55  ;;  %486 = vmatpush.bf16.msrb.mxu1 %v932_v56  ;;  %v962_v55 = vunpack.c.l.bf16 %v961_v50 }
  0x41   :  { %516 = vmatmul.bf16.vlgmr.msrb.gmra.mxu2 %v687_v59  ;;  %487 = vmatmul.bf16.vlgmr.msrb.gmra.mxu1 %v683_v63 }
  0x43   :  { %555 = vmatmul.bf16.gmra.mxu3 %v731_v4 }
  0x44   :  { %901 = vmatmul.msk.bf16.gmra.mxu0 %vm437_vm0, %v715_v3 }
  0x51   :  { %521 = vmatmul.bf16.gmra.mxu2 %v707_v7  ;;  %492 = vmatmul.bf16.gmra.mxu1 %v703_v11 }
  0x53   :  { %560 = vmatmul.bf16.gmra.mxu3 %v751_v16 }
  0x54   :  { %902 = vmatmul.msk.bf16.gmra.mxu0 %vm437_vm0, %v735_v15 }
  0x61   :  { %526 = vmatmul.bf16.gmra.mxu2 %v727_v19  ;;  %497 = vmatmul.bf16.gmra.mxu1 %v723_v22 }
  0x64   :  { %903 = vmatmul.msk.bf16.gmra.mxu0 %vm437_vm0, %v755_v25 }
  0x71   :  { %531 = vmatmul.bf16.gmra.mxu2 %v747_v28  ;;  %502 = vmatmul.bf16.gmra.mxu1 %v743_v31 }
  0x9e   :  { %v464_v32 = vpop.f32.mrf.mxu1 }
  0x9f   :  { %v465_v2 = vadd.f32 %v1270_v42, %v464_v32 }
  0xa1   :  { %v459_v33 = vpop.f32.mrf.mxu0 }
  0xa2   :  { %v460_v43 = vadd.f32 %v1270_v42, %v459_v33 }
  0xa4   :  { %v1261_v37 = vpop.f32.mrf.mxu2 }
  0xa6   :  { %v466_v34 = vpop.f32.mrf.mxu1  ;;  %v546_v38 = vpop.f32.mrf.mxu3 }
  0xa7   :  { %v467_v17 = vadd.f32 %v1270_v42, %v466_v34 }
  0xa9   :  { %v461_v35 = vpop.f32.mrf.mxu0 }
  0xaa   :  { %v462_v53 = vadd.f32 %v1270_v42, %v461_v35 }
  0xac   :  { %v1265_v41 = vpop.f32.mrf.mxu2 }
  0xae   :  { %v1259_v36 = vpop.f32.mrf.mxu1  ;;  %v548_v46 = vpop.f32.mrf.mxu3 }
  0xaf   :  { %v470_v31 = vadd.f32 %v1270_v42, %v1259_v36 }
  0xb1   :  { %v575_v40 = vpop.f32.mrf.mxu0 }
  0xb6   :  { %v1263_v39 = vpop.f32.mrf.mxu1  ;;  %v551_v60 = vpop.f32.mrf.mxu3 }
  0xb9   :  { %v577_v48 = vpop.f32.mrf.mxu0 }
  0xbe   :  { %v488_v44 = vpop.f32.mrf.mxu1  ;;  %v553_v14 = vpop.f32.mrf.mxu3 }
  0xbf   :  { %v489_v45 = vadd.f32 %v488_v44, %v460_v43 }
  0xc1   :  { %v580_v63 = vpop.f32.mrf.mxu0 }
  0xc4   :  { %v517_v47 = vpop.f32.mrf.mxu2 }
  0xc5   :  { %v518_v49 = vadd.f32 %v517_v47, %v489_v45 }
  0xc6   :  { %v490_v56 = vpop.f32.mrf.mxu1  ;;  %v556_v32 = vpop.f32.mrf.mxu3 }
  0xc7   :  { %v547_v51 = vadd.f32 %v546_v38, %v518_v49  ;;  %v491_v57 = vadd.f32 %v490_v56, %v462_v53 }
  0xc9   :  { %v576_v54 = vadd.f32 %v575_v40, %v547_v51  ;;  %v582_v18 = vpop.f32.mrf.mxu0  ;;  %v472_v51 = vadd.f32 %v1270_v42, %v1263_v39 }
  0xcb   :  { %v599_v58 = vmul.f32 %v1279_v52, %v576_v54 }
  0xcc   :  { %v519_v59 = vpop.f32.mrf.mxu2 }
  0xcd   :  { %v623_v61 = vadd.f32 %v962_v55, %v599_v58  ;;  %v520_v62 = vadd.f32 %v519_v59, %v491_v57 }
  0xce   :  { %v493_v6 = vpop.f32.mrf.mxu1  ;;  %v558_v58 = vpop.f32.mrf.mxu3 }
  0xcf   :  { %vm631_vm1 = vcmp.ge.f32.partialorder %v623_v61, 0.0  ;;  %v639_v0 = vmul.f32 0.2, %v623_v61  ;;  %v549_v1 = vadd.f32 %v548_v46, %v520_v62  ;;  %v494_v8 = vadd.f32 %v493_v6, %v465_v2 }
  0xd0   :  { %v475_v2 = vadd.f32 %v1270_v42, %v1261_v37 }
  0xd1   :  { %v647_v3 = vsel %vm631_vm1, %v623_v61, %v639_v0  ;;  %v578_v4 = vadd.f32 %v577_v48, %v549_v1  ;;  %v585_v43 = vpop.f32.mrf.mxu0 }
  0xd2   :  { %v655_v7 = vpack.c.bf16 %v647_v3, %v647_v3 }
  0xd3   :  { %v600_v9 = vmul.f32 %v1279_v52, %v578_v4 }
  0xd4   :  { %664 = vst.msk [vmem:[%s1346_s5] sm:$0xf] %vm663_vm2, %v655_v7  ;;  %v522_v10 = vpop.f32.mrf.mxu2 }
  0xd5   :  { %v624_v11 = vadd.f32 %v963_v5, %v600_v9  ;;  %v523_v12 = vadd.f32 %v522_v10, %v494_v8 }
  0xd6   :  { %v495_v22 = vpop.f32.mrf.mxu1  ;;  %v561_v10 = vpop.f32.mrf.mxu3 }
  0xd7   :  { %vm632_vm3 = vcmp.ge.f32.partialorder %v624_v11, 0.0  ;;  %v640_v15 = vmul.f32 0.2, %v624_v11  ;;  %v552_v16 = vadd.f32 %v551_v60, %v523_v12  ;;  %v496_v24 = vadd.f32 %v495_v22, %v467_v17 }
  0xd8   :  { %v477_v17 = vadd.f32 %v1270_v42, %v1265_v41 }
  0xd9   :  { %v648_v19 = vsel %vm632_vm3, %v624_v11, %v640_v15  ;;  %v581_v20 = vadd.f32 %v580_v63, %v552_v16  ;;  %v587_v61 = vpop.f32.mrf.mxu0 }
  0xda   :  { %v656_v23 = vpack.c.bf16 %v648_v19, %v648_v19 }
  0xdb   :  { %v976_v13 = vld [vmem:[%s1345_s4 + $0x8] sm:$0xff]   ;;  %v601_v25 = vmul.f32 %v1279_v52, %v581_v20 }
  0xdc   :  { %v966_v21 = vunpack.c.l.bf16 %v976_v13  ;;  %665 = vst.msk [vmem:[%s1346_s5 + $0x4] sm:$0xf] %vm663_vm2, %v656_v23  ;;  %v524_v26 = vpop.f32.mrf.mxu2  ;;  %v967_v35 = vunpack.c.h.bf16 %v976_v13 }
  0xdd   :  { %v525_v28 = vadd.f32 %v524_v26, %v496_v24 }
  0xde   :  { %v625_v27 = vadd.f32 %v966_v21, %v601_v25  ;;  %v498_v38 = vpop.f32.mrf.mxu1 }
  0xdf   :  { %v554_v30 = vadd.f32 %v553_v14, %v525_v28  ;;  %v499_v44 = vadd.f32 %v498_v38, %v470_v31  ;;  %v563_v28 = vpop.f32.mrf.mxu3 }
  0xe0   :  { %vm633_vm4 = vcmp.ge.f32.partialorder %v625_v27, 0.0  ;;  %v641_v29 = vmul.f32 0.2, %v625_v27 }
  0xe1   :  { %v583_v34 = vadd.f32 %v582_v18, %v554_v30  ;;  %v590_v14 = vpop.f32.mrf.mxu0 }
  0xe2   :  { %v649_v33 = vsel %vm633_vm4, %v625_v27, %v641_v29 }
  0xe3   :  { %v657_v40 = vpack.c.bf16 %v649_v33, %v649_v33  ;;  %v602_v45 = vmul.f32 %v1279_v52, %v583_v34 }
  0xe4   :  { %v527_v46 = vpop.f32.mrf.mxu2 }
  0xe5   :  { %666 = vst.msk [vmem:[%s1346_s5 + $0x8] sm:$0xf] %vm663_vm2, %v657_v40  ;;  %v626_v47 = vadd.f32 %v967_v35, %v602_v45  ;;  %v528_v48 = vadd.f32 %v527_v46, %v499_v44 }
  0xe6   :  { %v500_v56 = vpop.f32.mrf.mxu1 }
  0xe7   :  { %vm634_vm5 = vcmp.ge.f32.partialorder %v626_v47, 0.0  ;;  %v642_v49 = vmul.f32 0.2, %v626_v47  ;;  %v557_v50 = vadd.f32 %v556_v32, %v528_v48  ;;  %v501_v59 = vadd.f32 %v500_v56, %v472_v51 }
  0xe9   :  { %v650_v53 = vsel %vm634_vm5, %v626_v47, %v642_v49  ;;  %v586_v54 = vadd.f32 %v585_v43, %v557_v50  ;;  %v592_v42 = vpop.f32.mrf.mxu0 }
  0xea   :  { %v658_v57 = vpack.c.bf16 %v650_v53, %v650_v53 }
  0xeb   :  { %v603_v60 = vmul.f32 %v1279_v52, %v586_v54 }
  0xec   :  { %v977_v36 = vld [vmem:[%s1345_s4 + $0x10] sm:$0xff]   ;;  %v529_v62 = vpop.f32.mrf.mxu2 }
  0xed   :  { %v970_v55 = vunpack.c.l.bf16 %v977_v36  ;;  %667 = vst.msk [vmem:[%s1346_s5 + $0xc] sm:$0xf] %vm663_vm2, %v658_v57  ;;  %v530_v0 = vadd.f32 %v529_v62, %v501_v59  ;;  %v971_v5 = vunpack.c.h.bf16 %v977_v36 }
  0xee   :  { %v503_v6 = vpop.f32.mrf.mxu1 }
  0xef   :  { %v627_v63 = vadd.f32 %v970_v55, %v603_v60  ;;  %v559_v1 = vadd.f32 %v558_v58, %v530_v0  ;;  %v504_v8 = vadd.f32 %v503_v6, %v475_v2 }
  0xf1   :  { %vm635_vm6 = vcmp.ge.f32.partialorder %v627_v63, 0.0  ;;  %v643_v39 = vmul.f32 0.2, %v627_v63  ;;  %v588_v4 = vadd.f32 %v587_v61, %v559_v1 }
  0xf3   :  { %v651_v3 = vsel %vm635_vm6, %v627_v63, %v643_v39  ;;  %v604_v9 = vmul.f32 %v1279_v52, %v588_v4 }
  0xf4   :  { %v659_v7 = vpack.c.bf16 %v651_v3, %v651_v3  ;;  %v532_v11 = vpop.f32.mrf.mxu2 }
  0xf5   :  { %v628_v12 = vadd.f32 %v971_v5, %v604_v9  ;;  %v533_v13 = vadd.f32 %v532_v11, %v504_v8 }
  0xf6   :  { %668 = vst.msk [vmem:[%s1346_s5 + $0x10] sm:$0xf] %vm663_vm2, %v659_v7  ;;  %v505_v21 = vpop.f32.mrf.mxu1 }
  0xf7   :  { %vm636_vm7 = vcmp.ge.f32.partialorder %v628_v12, 0.0  ;;  %v644_v15 = vmul.f32 0.2, %v628_v12  ;;  %v562_v16 = vadd.f32 %v561_v10, %v533_v13  ;;  %v506_v23 = vadd.f32 %v505_v21, %v477_v17 }
  0xf9   :  { %v652_v18 = vsel %vm636_vm7, %v628_v12, %v644_v15  ;;  %v591_v19 = vadd.f32 %v590_v14, %v562_v16 }
  0xfa   :  { %v660_v22 = vpack.c.bf16 %v652_v18, %v652_v18 }
  0xfb   :  { %v605_v24 = vmul.f32 %v1279_v52, %v591_v19 }
  0xfc   :  { %v534_v25 = vpop.f32.mrf.mxu2 }
  0xfd   :  { %v978_v37 = vld [vmem:[%s1345_s4 + $0x18] sm:$0xff]   ;;  %v535_v27 = vadd.f32 %v534_v25, %v506_v23 }
  0xfe   :  { %v974_v20 = vunpack.c.l.bf16 %v978_v37  ;;  %669 = vst.msk [vmem:[%s1346_s5 + $0x14] sm:$0xf] %vm663_vm2, %v660_v22  ;;  %v975_v32 = vunpack.c.h.bf16 %v978_v37 }
  0xff   :  { %v564_v41 = vadd.f32 %v563_v28, %v535_v27 }
 0x100   :  { %v629_v26 = vadd.f32 %v974_v20, %v605_v24 }
 0x101   :  { %v593_v31 = vadd.f32 %v592_v42, %v564_v41 }
 0x102   :  { %vm637_vm8 = vcmp.ge.f32.partialorder %v629_v26, 0.0  ;;  %v645_v29 = vmul.f32 0.2, %v629_v26 }
 0x103   :  { %v606_v34 = vmul.f32 %v1279_v52, %v593_v31 }
 0x104   :  { %v653_v30 = vsel %vm637_vm8, %v629_v26, %v645_v29 }
 0x105   :  { %v661_v33 = vpack.c.bf16 %v653_v30, %v653_v30  ;;  %v630_v35 = vadd.f32 %v975_v32, %v606_v34 }
 0x107   :  { %670 = vst.msk [vmem:[%s1346_s5 + $0x18] sm:$0xf] %vm663_vm2, %v661_v33  ;;  %vm638_vm9 = vcmp.ge.f32.partialorder %v630_v35, 0.0  ;;  %v646_v38 = vmul.f32 0.2, %v630_v35 }
 0x109   :  { %v654_v40 = vsel %vm638_vm9, %v630_v35, %v646_v38 }
 0x10a   :  { %v662_v43 = vpack.c.bf16 %v654_v40, %v654_v40 }
 0x10c   :  { %671 = vst.msk [vmem:[%s1346_s5 + $0x1c] sm:$0xf] %vm663_vm2, %v662_v43 }

// kernel: ifnet_forward.88
= control target key start
LH: loop header
LB: loop body
LE: loop exit
PB: predicated region body
PF: predicated region fallthrough
CT: control target
= control target key end

     0   :  { %vm431_vm0 = vcmask 523264   ;;  %vm589_vm1 = vcmask 785408   ;;  %s1206_s1 = inlined_call_operand.vmem [shape: bf16[576,96], index: 1, kind: input, shape index: {}]   ;;  %s1207_s2 = inlined_call_operand.vmem [shape: f32[1,96], index: 2, kind: input, shape index: {}]   ;;  %s1208_s0 = inlined_call_operand.vmem [shape: bf16[64,576], index: 0, kind: input, shape index: {}]   ;;  %s1209_s3 = inlined_call_operand.vmem [shape: f32[64,96], index: 3, kind: output, shape index: {}]  }
   0x1   :  { %v857_v0 = vld [vmem:[%s1206_s1 + $0x38] sm:$0xff]  ;;  %v856_v1 = vld [vmem:[%s1206_s1 + $0x30] sm:$0xff]  ;;  %v855_v4 = vld [vmem:[%s1206_s1 + $0x28] sm:$0xff] }
   0x2   :  { %886 = vmatpush.bf16.msra.mxu1 %v857_v0  ;;  %887 = vmatpush.bf16.msra.mxu2 %v857_v0  ;;  %v881_v2 = vld [vmem:[%s1206_s1 + $0xf8] sm:$0xff]  ;;  %v880_v3 = vld [vmem:[%s1206_s1 + $0xf0] sm:$0xff]  ;;  %v879_v5 = vld [vmem:[%s1206_s1 + $0xe8] sm:$0xff] }
   0x3   :  { %444 = vmatpush.bf16.msra.mxu0 %v857_v0  ;;  %531 = vmatpush.bf16.msra.mxu3 %v881_v2  ;;  %v854_v6 = vld [vmem:[%s1206_s1 + $0x20] sm:$0xff]  ;;  %v853_v8 = vld [vmem:[%s1206_s1 + $0x18] sm:$0xff]  ;;  %v852_v10 = vld [vmem:[%s1206_s1 + $0x10] sm:$0xff] }
   0x4   :  { %v878_v7 = vld [vmem:[%s1206_s1 + $0xe0] sm:$0xff]  ;;  %v877_v9 = vld [vmem:[%s1206_s1 + $0xd8] sm:$0xff]  ;;  %v876_v11 = vld [vmem:[%s1206_s1 + $0xd0] sm:$0xff] }
   0x5   :  { %v851_v12 = vld [vmem:[%s1206_s1 + $0x8] sm:$0xff]  ;;  %v850_v14 = vld [vmem:[%s1206_s1] sm:$0xff]  ;;  %v837_v16 = vld [vmem:[%s1208_s0 + $0x38] sm:$0xf0] }
   0x6   :  { %888 = vmatpush.bf16.msra.mxu1 %v856_v1  ;;  %889 = vmatpush.bf16.msra.mxu2 %v856_v1  ;;  %v875_v13 = vld [vmem:[%s1206_s1 + $0xc8] sm:$0xff]  ;;  %v664_v17 = vld [vmem:[%s1208_s0 + $0x78] sm:$0xf]  ;;  %v604_v21 = vld [vmem:[%s1208_s0] sm:$0xf] }
   0x7   :  { %445 = vmatpush.bf16.msra.mxu0 %v856_v1  ;;  %532 = vmatpush.bf16.msra.mxu3 %v880_v3  ;;  %v624_v15 = vld [vmem:[%s1208_s0 + $0x28] sm:$0xf]  ;;  %v847_v18 = vld [vmem:[%s1208_s0 + $0x88] sm:$0xf0]  ;;  %v873_v19 = vld [vmem:[%s1206_s1 + $0xb8] sm:$0xff] }
   0x8   :  { %v865_v20 = vld [vmem:[%s1206_s1 + $0x78] sm:$0xff]  ;;  %v874_v22 = vld [vmem:[%s1206_s1 + $0xc0] sm:$0xff]  ;;  %v625_v23 = vor.u32 %v837_v16, %v624_v15  ;;  %v665_v24 = vor.u32 %v847_v18, %v664_v17  ;;  %v832_v25 = vld [vmem:[%s1208_s0 + $0x10] sm:$0xf0] }
   0x9   :  { %v831_v26 = vld [vmem:[%s1208_s0 + $0xc] sm:$0xf]  ;;  %v614_v27 = vld [vmem:[%s1208_s0 + $0x1c] sm:$0xf0]  ;;  %v885_v28 = vld [vmem:[%s1206_s1 + $0x118] sm:$0xff]  ;;  %v605_v31 = vor.u32 %v832_v25, %v604_v21 }
   0xa   :  { %890 = vmatpush.bf16.msra.mxu1 %v855_v4  ;;  %891 = vmatpush.bf16.msra.mxu2 %v855_v4  ;;  %v872_v29 = vld [vmem:[%s1206_s1 + $0xb0] sm:$0xff]  ;;  %v617_v32 = vor.u32 %v831_v26, %v614_v27  ;;  %v871_v34 = vld [vmem:[%s1206_s1 + $0xa8] sm:$0xff]  ;;  %v870_v37 = vld [vmem:[%s1206_s1 + $0xa0] sm:$0xff] }
   0xb   :  { %446 = vmatpush.bf16.msra.mxu0 %v855_v4  ;;  %533 = vmatpush.bf16.msra.mxu3 %v879_v5  ;;  %v864_v30 = vld [vmem:[%s1206_s1 + $0x70] sm:$0xff]  ;;  %v863_v35 = vld [vmem:[%s1206_s1 + $0x68] sm:$0xff]  ;;  %v862_v38 = vld [vmem:[%s1206_s1 + $0x60] sm:$0xff] }
   0xc   :  { %v884_v33 = vld [vmem:[%s1206_s1 + $0x110] sm:$0xff]  ;;  %v883_v36 = vld [vmem:[%s1206_s1 + $0x108] sm:$0xff]  ;;  %v842_v40 = vld [vmem:[%s1208_s0 + $0x60] sm:$0xf0] }
   0xd   :  { %v644_v39 = vld [vmem:[%s1208_s0 + $0x50] sm:$0xf]  ;;  %v882_v41 = vld [vmem:[%s1206_s1 + $0x100] sm:$0xff]  ;;  %v869_v42 = vld [vmem:[%s1206_s1 + $0x98] sm:$0xff] }
   0xe   :  { %892 = vmatpush.bf16.msra.mxu1 %v854_v6  ;;  %893 = vmatpush.bf16.msra.mxu2 %v854_v6  ;;  %v861_v43 = vld [vmem:[%s1206_s1 + $0x58] sm:$0xff]  ;;  %v620_v44 = vld [vmem:[%s1208_s0 + $0x10] sm:$0xf]  ;;  %v645_v45 = vor.u32 %v842_v40, %v644_v39  ;;  %v834_v46 = vld [vmem:[%s1208_s0 + $0x20] sm:$0xf0] }
   0xf   :  { %447 = vmatpush.bf16.msra.mxu0 %v854_v6  ;;  %534 = vmatpush.bf16.msra.mxu3 %v878_v7  ;;  %v836_v47 = vld [vmem:[%s1208_s0 + $0x34] sm:$0xf]  ;;  %v634_v48 = vld [vmem:[%s1208_s0 + $0x44] sm:$0xf0]  ;;  %v621_v51 = vor.u32 %v834_v46, %v620_v44  ;;  %v866_v55 = vld [vmem:[%s1206_s1 + $0x80] sm:$0xff] }
  0x10   :  { %v868_v49 = vld [vmem:[%s1206_s1 + $0x90] sm:$0xff]  ;;  %v637_v52 = vor.u32 %v836_v47, %v634_v48  ;;  %v867_v53 = vld [vmem:[%s1206_s1 + $0x88] sm:$0xff]  ;;  %v858_v56 = vld [vmem:[%s1206_s1 + $0x40] sm:$0xff] }
  0x11   :  { %v860_v50 = vld [vmem:[%s1206_s1 + $0x50] sm:$0xff]  ;;  %v859_v54 = vld [vmem:[%s1206_s1 + $0x48] sm:$0xff]  ;;  %v833_v58 = vld [vmem:[%s1208_s0 + $0x18] sm:$0xf0] }
  0x12   :  { %894 = vmatpush.bf16.msra.mxu1 %v853_v8  ;;  %895 = vmatpush.bf16.msra.mxu2 %v853_v8  ;;  %v612_v57 = vld [vmem:[%s1208_s0 + $0x8] sm:$0xf]  ;;  %v830_v60 = vld [vmem:[%s1208_s0 + $0x4] sm:$0xf]  ;;  %v606_v61 = vld [vmem:[%s1208_s0 + $0x14] sm:$0xf0] }
  0x13   :  { %448 = vmatpush.bf16.msra.mxu0 %v853_v8  ;;  %535 = vmatpush.bf16.msra.mxu3 %v877_v9  ;;  %v613_v59 = vor.u32 %v833_v58, %v612_v57  ;;  %v640_v62 = vld [vmem:[%s1208_s0 + $0x38] sm:$0xf]  ;;  %v609_v63 = vor.u32 %v830_v60, %v606_v61  ;;  %v839_v0 = vld [vmem:[%s1208_s0 + $0x48] sm:$0xf0]  ;;  %v841_v1 = vld [vmem:[%s1208_s0 + $0x5c] sm:$0xf] }
  0x14   :  { %v654_v2 = vld [vmem:[%s1208_s0 + $0x6c] sm:$0xf0]  ;;  %v641_v3 = vor.u32 %v839_v0, %v640_v62  ;;  %v838_v6 = vld [vmem:[%s1208_s0 + $0x40] sm:$0xf0]  ;;  %v835_v8 = vld [vmem:[%s1208_s0 + $0x2c] sm:$0xf] }
  0x15   :  { %v657_v4 = vor.u32 %v841_v1, %v654_v2  ;;  %v632_v5 = vld [vmem:[%s1208_s0 + $0x30] sm:$0xf]  ;;  %v626_v9 = vld [vmem:[%s1208_s0 + $0x3c] sm:$0xf0]  ;;  %v652_v17 = vld [vmem:[%s1208_s0 + $0x58] sm:$0xf] }
  0x16   :  { %896 = vmatpush.bf16.msra.mxu1 %v852_v10  ;;  %897 = vmatpush.bf16.msra.mxu2 %v852_v10  ;;  %v633_v7 = vor.u32 %v838_v6, %v632_v5  ;;  %v843_v18 = vld [vmem:[%s1208_s0 + $0x68] sm:$0xf0]  ;;  %v646_v21 = vld [vmem:[%s1208_s0 + $0x64] sm:$0xf0]  ;;  %v672_v26 = vld [vmem:[%s1208_s0 + $0x80] sm:$0xf] }
  0x17   :  { %449 = vmatpush.bf16.msra.mxu0 %v852_v10  ;;  %536 = vmatpush.bf16.msra.mxu3 %v876_v11  ;;  %v660_v10 = vld [vmem:[%s1208_s0 + $0x60] sm:$0xf]  ;;  %v629_v11 = vor.u32 %v835_v8, %v626_v9  ;;  %v848_v27 = vld [vmem:[%s1208_s0 + $0x90] sm:$0xf0] }
  0x1a   :  { %898 = vmatpush.bf16.msra.mxu1 %v851_v12  ;;  %899 = vmatpush.bf16.msra.mxu2 %v851_v12 }
  0x1b   :  { %450 = vmatpush.bf16.msra.mxu0 %v851_v12  ;;  %537 = vmatpush.bf16.msra.mxu3 %v875_v13  ;;  %v844_v12 = vld [vmem:[%s1208_s0 + $0x70] sm:$0xf0]  ;;  %v846_v13 = vld [vmem:[%s1208_s0 + $0x84] sm:$0xf] }
  0x1c   :  { %v661_v15 = vor.u32 %v844_v12, %v660_v10 }
  0x1e   :  { %900 = vmatpush.bf16.msra.mxu1 %v850_v14  ;;  %901 = vmatpush.bf16.msra.mxu2 %v850_v14 }
  0x1f   :  { %451 = vmatpush.bf16.msra.mxu0 %v850_v14  ;;  %538 = vmatpush.bf16.msra.mxu3 %v874_v22  ;;  %v674_v14 = vld [vmem:[%s1208_s0 + $0x94] sm:$0xf0] }
  0x20   :  { %v677_v16 = vor.u32 %v846_v13, %v674_v14 }
  0x21   :  { %457 = vmatmul.bf16.vlgmr.msra.gmra.mxu1 %v625_v23  ;;  %467 = vmatmul.bf16.vlgmr.msra.gmra.mxu2 %v665_v24  ;;  %v680_v23 = vld [vmem:[%s1208_s0 + $0x88] sm:$0xf]  ;;  %v849_v24 = vld [vmem:[%s1208_s0 + $0x98] sm:$0xf0] }
  0x22   :  { %502 = vmatpush.bf16.msrb.mxu2 %v873_v19  ;;  %473 = vmatpush.bf16.msrb.mxu1 %v865_v20  ;;  %v653_v19 = vor.u32 %v843_v18, %v652_v17  ;;  %v840_v20 = vld [vmem:[%s1208_s0 + $0x54] sm:$0xf]  ;;  %v681_v25 = vor.u32 %v849_v24, %v680_v23 }
  0x23   :  { %564 = vmatpush.bf16.msrb.mxu0 %v885_v28  ;;  %539 = vmatmul.bf16.vlgmr.msra.gmra.mxu3 %v617_v32  ;;  %v649_v22 = vor.u32 %v840_v20, %v646_v21  ;;  %v673_v28 = vor.u32 %v848_v27, %v672_v26 }
  0x24   :  { %452 = vmatmul.bf16.vlgmr.msra.gmra.mxu0 %v605_v31 }
  0x26   :  { %503 = vmatpush.bf16.msrb.mxu2 %v872_v29  ;;  %474 = vmatpush.bf16.msrb.mxu1 %v864_v30  ;;  %v845_v29 = vld [vmem:[%s1208_s0 + $0x7c] sm:$0xf]  ;;  %v666_v30 = vld [vmem:[%s1208_s0 + $0x8c] sm:$0xf0] }
  0x27   :  { %565 = vmatpush.bf16.msrb.mxu0 %v884_v33  ;;  %v669_v31 = vor.u32 %v845_v29, %v666_v30 }
  0x2a   :  { %504 = vmatpush.bf16.msrb.mxu2 %v871_v34  ;;  %475 = vmatpush.bf16.msrb.mxu1 %v863_v35 }
  0x2b   :  { %566 = vmatpush.bf16.msrb.mxu0 %v883_v36 }
  0x2e   :  { %505 = vmatpush.bf16.msrb.mxu2 %v870_v37  ;;  %476 = vmatpush.bf16.msrb.mxu1 %v862_v38 }
  0x2f   :  { %567 = vmatpush.bf16.msrb.mxu0 %v882_v41 }
  0x31   :  { %462 = vmatmul.bf16.gmra.mxu1 %v645_v45 }
  0x32   :  { %506 = vmatpush.bf16.msrb.mxu2 %v869_v42  ;;  %477 = vmatpush.bf16.msrb.mxu1 %v861_v43  ;;  %v1162_v42 = vld [vmem:[%s1207_s2] ss:$0 sm:$0xff] }
  0x33   :  { %544 = vmatmul.bf16.gmra.mxu3 %v637_v52 }
  0x34   :  { %826 = vmatmul.msk.bf16.vlgmr.msrb.gmra.mxu0 %vm431_vm0, %v621_v51 }
  0x36   :  { %507 = vmatpush.bf16.msrb.mxu2 %v868_v49  ;;  %478 = vmatpush.bf16.msrb.mxu1 %v860_v50 }
  0x3a   :  { %508 = vmatpush.bf16.msrb.mxu2 %v867_v53  ;;  %479 = vmatpush.bf16.msrb.mxu1 %v859_v54 }
  0x3e   :  { %509 = vmatpush.bf16.msrb.mxu2 %v866_v55  ;;  %480 = vmatpush.bf16.msrb.mxu1 %v858_v56 }
  0x41   :  { %510 = vmatmul.bf16.vlgmr.msrb.gmra.mxu2 %v613_v59  ;;  %481 = vmatmul.bf16.vlgmr.msrb.gmra.mxu1 %v609_v63 }
  0x43   :  { %549 = vmatmul.bf16.gmra.mxu3 %v657_v4 }
  0x44   :  { %827 = vmatmul.msk.bf16.gmra.mxu0 %vm431_vm0, %v641_v3 }
  0x51   :  { %515 = vmatmul.bf16.gmra.mxu2 %v633_v7  ;;  %486 = vmatmul.bf16.gmra.mxu1 %v629_v11 }
  0x53   :  { %554 = vmatmul.bf16.gmra.mxu3 %v677_v16 }
  0x54   :  { %828 = vmatmul.msk.bf16.gmra.mxu0 %vm431_vm0, %v661_v15 }
  0x61   :  { %520 = vmatmul.bf16.gmra.mxu2 %v653_v19  ;;  %491 = vmatmul.bf16.gmra.mxu1 %v649_v22 }
  0x64   :  { %829 = vmatmul.msk.bf16.gmra.mxu0 %vm431_vm0, %v681_v25 }
  0x71   :  { %525 = vmatmul.bf16.gmra.mxu2 %v673_v28  ;;  %496 = vmatmul.bf16.gmra.mxu1 %v669_v31 }
  0x9e   :  { %v458_v32 = vpop.f32.mrf.mxu1 }
  0x9f   :  { %v459_v60 = vadd.f32 %v1162_v42, %v458_v32 }
  0xa1   :  { %v453_v33 = vpop.f32.mrf.mxu0 }
  0xa2   :  { %v454_v43 = vadd.f32 %v1162_v42, %v453_v33 }
  0xa4   :  { %v1155_v37 = vpop.f32.mrf.mxu2 }
  0xa5   :  { %v469_v30 = vadd.f32 %v1162_v42, %v1155_v37 }
  0xa6   :  { %v460_v34 = vpop.f32.mrf.mxu1  ;;  %v540_v38 = vpop.f32.mrf.mxu3 }
  0xa7   :  { %v461_v4 = vadd.f32 %v1162_v42, %v460_v34 }
  0xa9   :  { %v455_v35 = vpop.f32.mrf.mxu0 }
  0xaa   :  { %v456_v51 = vadd.f32 %v1162_v42, %v455_v35 }
  0xac   :  { %v1157_v41 = vpop.f32.mrf.mxu2 }
  0xae   :  { %v463_v36 = vpop.f32.mrf.mxu1  ;;  %v542_v46 = vpop.f32.mrf.mxu3 }
  0xaf   :  { %v464_v12 = vadd.f32 %v1162_v42, %v463_v36 }
  0xb1   :  { %v569_v40 = vpop.f32.mrf.mxu0 }
  0xb6   :  { %v465_v39 = vpop.f32.mrf.mxu1  ;;  %v545_v56 = vpop.f32.mrf.mxu3 }
  0xb7   :  { %v466_v21 = vadd.f32 %v1162_v42, %v465_v39 }
  0xb9   :  { %v571_v48 = vpop.f32.mrf.mxu0 }
  0xbe   :  { %v482_v44 = vpop.f32.mrf.mxu1  ;;  %v547_v2 = vpop.f32.mrf.mxu3 }
  0xbf   :  { %v483_v45 = vadd.f32 %v482_v44, %v454_v43 }
  0xc1   :  { %v574_v58 = vpop.f32.mrf.mxu0 }
  0xc4   :  { %v511_v47 = vpop.f32.mrf.mxu2 }
  0xc5   :  { %v512_v49 = vadd.f32 %v511_v47, %v483_v45 }
  0xc6   :  { %v484_v53 = vpop.f32.mrf.mxu1  ;;  %v550_v13 = vpop.f32.mrf.mxu3 }
  0xc7   :  { %v541_v50 = vadd.f32 %v540_v38, %v512_v49  ;;  %v485_v54 = vadd.f32 %v484_v53, %v456_v51 }
  0xc9   :  { %v570_v52 = vadd.f32 %v569_v40, %v541_v50  ;;  %v576_v5 = vpop.f32.mrf.mxu0  ;;  %v471_v40 = vadd.f32 %v1162_v42, %v1157_v41 }
  0xcb   :  { %590 = vst.msk [vmem:[%s1209_s3] sm:$0xff] %vm589_vm1, %v570_v52 }
  0xcc   :  { %v513_v55 = vpop.f32.mrf.mxu2 }
  0xcd   :  { %v514_v57 = vadd.f32 %v513_v55, %v485_v54 }
  0xce   :  { %v487_v62 = vpop.f32.mrf.mxu1  ;;  %v552_v24 = vpop.f32.mrf.mxu3 }
  0xcf   :  { %v543_v59 = vadd.f32 %v542_v46, %v514_v57  ;;  %v488_v63 = vadd.f32 %v487_v62, %v459_v60 }
  0xd1   :  { %v572_v61 = vadd.f32 %v571_v48, %v543_v59  ;;  %v579_v16 = vpop.f32.mrf.mxu0 }
  0xd3   :  { %591 = vst.msk [vmem:[%s1209_s3 + $0x8] sm:$0xff] %vm589_vm1, %v572_v61 }
  0xd4   :  { %v516_v0 = vpop.f32.mrf.mxu2 }
  0xd5   :  { %v517_v1 = vadd.f32 %v516_v0, %v488_v63 }
  0xd6   :  { %v489_v7 = vpop.f32.mrf.mxu1  ;;  %v555_v34 = vpop.f32.mrf.mxu3 }
  0xd7   :  { %v546_v3 = vadd.f32 %v545_v56, %v517_v1  ;;  %v490_v8 = vadd.f32 %v489_v7, %v461_v4 }
  0xd9   :  { %v575_v6 = vadd.f32 %v574_v58, %v546_v3  ;;  %v581_v26 = vpop.f32.mrf.mxu0 }
  0xdb   :  { %592 = vst.msk [vmem:[%s1209_s3 + $0x10] sm:$0xff] %vm589_vm1, %v575_v6 }
  0xdc   :  { %v518_v9 = vpop.f32.mrf.mxu2 }
  0xdd   :  { %v519_v10 = vadd.f32 %v518_v9, %v490_v8 }
  0xde   :  { %v492_v15 = vpop.f32.mrf.mxu1  ;;  %v557_v47 = vpop.f32.mrf.mxu3 }
  0xdf   :  { %v548_v11 = vadd.f32 %v547_v2, %v519_v10  ;;  %v493_v17 = vadd.f32 %v492_v15, %v464_v12 }
  0xe1   :  { %v577_v14 = vadd.f32 %v576_v5, %v548_v11  ;;  %v584_v38 = vpop.f32.mrf.mxu0 }
  0xe3   :  { %593 = vst.msk [vmem:[%s1209_s3 + $0x18] sm:$0xff] %vm589_vm1, %v577_v14 }
  0xe4   :  { %v521_v18 = vpop.f32.mrf.mxu2 }
  0xe5   :  { %v522_v19 = vadd.f32 %v521_v18, %v493_v17 }
  0xe6   :  { %v494_v23 = vpop.f32.mrf.mxu1 }
  0xe7   :  { %v551_v20 = vadd.f32 %v550_v13, %v522_v19  ;;  %v495_v25 = vadd.f32 %v494_v23, %v466_v21 }
  0xe9   :  { %v580_v22 = vadd.f32 %v579_v16, %v551_v20  ;;  %v586_v49 = vpop.f32.mrf.mxu0 }
  0xeb   :  { %594 = vst.msk [vmem:[%s1209_s3 + $0x20] sm:$0xff] %vm589_vm1, %v580_v22 }
  0xec   :  { %v523_v27 = vpop.f32.mrf.mxu2 }
  0xed   :  { %v524_v28 = vadd.f32 %v523_v27, %v495_v25 }
  0xee   :  { %v497_v32 = vpop.f32.mrf.mxu1 }
  0xef   :  { %v553_v29 = vadd.f32 %v552_v24, %v524_v28  ;;  %v498_v33 = vadd.f32 %v497_v32, %v469_v30 }
  0xf1   :  { %v582_v31 = vadd.f32 %v581_v26, %v553_v29 }
  0xf3   :  { %595 = vst.msk [vmem:[%s1209_s3 + $0x28] sm:$0xff] %vm589_vm1, %v582_v31 }
  0xf4   :  { %v526_v35 = vpop.f32.mrf.mxu2 }
  0xf5   :  { %v527_v36 = vadd.f32 %v526_v35, %v498_v33 }
  0xf6   :  { %v499_v44 = vpop.f32.mrf.mxu1 }
  0xf7   :  { %v556_v39 = vadd.f32 %v555_v34, %v527_v36  ;;  %v500_v45 = vadd.f32 %v499_v44, %v471_v40 }
  0xf9   :  { %v585_v43 = vadd.f32 %v584_v38, %v556_v39 }
  0xfb   :  { %596 = vst.msk [vmem:[%s1209_s3 + $0x30] sm:$0xff] %vm589_vm1, %v585_v43 }
  0xfc   :  { %v528_v37 = vpop.f32.mrf.mxu2 }
  0xfd   :  { %v529_v46 = vadd.f32 %v528_v37, %v500_v45 }
  0xff   :  { %v558_v48 = vadd.f32 %v557_v47, %v529_v46 }
 0x101   :  { %v587_v50 = vadd.f32 %v586_v49, %v558_v48 }
 0x103   :  { %597 = vst.msk [vmem:[%s1209_s3 + $0x38] sm:$0xff] %vm589_vm1, %v587_v50 }

// kernel: ifnet_forward.89
= control target key start
LH: loop header
LB: loop body
LE: loop exit
PB: predicated region body
PF: predicated region fallthrough
CT: control target
= control target key end

     0   :  { %vm51_vm4 = vcmask 1043456   ;;  %s178_s2 = inlined_call_operand.vmem [shape: f32[1,1,1024], index: 2, kind: input, shape index: {}]   ;;  %s179_s0 = inlined_call_operand.vmem [shape: f32[1,3,1024], index: 0, kind: input, shape index: {}]   ;;  %s180_s1 = inlined_call_operand.vmem [shape: f32[1,3,1024], index: 1, kind: input, shape index: {}]   ;;  %s181_s3 = inlined_call_operand.vmem [shape: f32[1,3,1024], index: 3, kind: output, shape index: {}]  }
   0x1   :  { %v14_v0 = vld [vmem:[%s178_s2] sm:$0xff]  ;;  %v35_v28 = vld [vmem:[%s179_s0 + $0x8] sm:$0x77]  ;;  %v36_v35 = vld [vmem:[%s179_s0 + $0x10] sm:$0x77] }
   0x2   :  { %v106_v1 = vmul.f32 -1.442695, %v14_v0  ;;  %v34_v18 = vld [vmem:[%s179_s0] sm:$0x77]  ;;  %v65_v40 = vld [vmem:[%s180_s1 + $0x8] sm:$0x77] }
   0x3   :  { %v64_v24 = vld [vmem:[%s180_s1] sm:$0x77]  ;;  %v66_v45 = vld [vmem:[%s180_s1 + $0x10] sm:$0x77]  ;;  %v37_v53 = vld [vmem:[%s179_s0 + $0x18] sm:$0x77] }
   0x4   :  { %107 = vpow2.f32 %v106_v1  ;;  %v67_v60 = vld [vmem:[%s180_s1 + $0x18] sm:$0x77] }
   0xa   :  { %v108_v2 = vpop.eup %107 }
   0xb   :  { %v18_v3 = vadd.f32 1.0, %v108_v2 }
   0xd   :  { %109 = vrcp.f32 %v18_v3  ;;  %v30_v6 = vand.u32 2147483648, %v18_v3  ;;  %vm24_vm0 = vweird.f32 %v18_v3  ;;  %v28_v8 = vand.u32 2147483647, %v18_v3 }
   0xf   :  { %v31_v10 = vor.u32 1.1754944e-38, %v30_v6  ;;  %vm29_vm3 = vcmp.eq.f32.partialorder %v28_v8, 8.507059e+37 }
  0x13   :  { %v110_v4 = vpop.eup %109 }
  0x14   :  { %v20_v5 = vmul.f32 %v110_v4, %v18_v3  ;;  %vm25_vm1 = vweird.f32 %v110_v4 }
  0x15   :  { %vm26_vm2 = vmor %vm24_vm0, %vm25_vm1 }
  0x16   :  { %v21_v7 = vsub.f32 1.0, %v20_v5 }
  0x18   :  { %v22_v9 = vmul.f32 %v110_v4, %v21_v7 }
  0x1a   :  { %v23_v11 = vadd.f32 %v110_v4, %v22_v9 }
  0x1c   :  { %v27_v12 = vsel %vm26_vm2, %v110_v4, %v23_v11 }
  0x1d   :  { %v32_v13 = vsel %vm29_vm3, %v31_v10, %v27_v12 }
  0x1e   :  { %v39_v14 = vperm.slane %v32_v13, 0  ;;  %v40_v15 = vperm.slane %v32_v13, 1  ;;  %v68_v16 = vsub.f32 1.0, %v32_v13  ;;  %v41_v17 = vperm.slane %v32_v13, 2 }
  0x1f   :  { %v42_v19 = vperm.slane %v32_v13, 3  ;;  %v43_v20 = vperm.slane %v32_v13, 4  ;;  %v44_v21 = vperm.slane %v32_v13, 5  ;;  %v45_v22 = vperm.slane %v32_v13, 6 }
  0x20   :  { %v47_v23 = vrot.slane %v40_v15, 4  ;;  %v70_v25 = vperm.slane %v68_v16, 0  ;;  %v71_v26 = vperm.slane %v68_v16, 1  ;;  %v72_v27 = vperm.slane %v68_v16, 2 }
  0x21   :  { %v48_v29 = vrot.slane %v42_v19, 4  ;;  %v73_v30 = vperm.slane %v68_v16, 3  ;;  %v49_v31 = vrot.slane %v44_v21, 4  ;;  %v74_v32 = vperm.slane %v68_v16, 4 }
  0x22   :  { %v52_v33 = vsel %vm51_vm4, %v39_v14, %v47_v23  ;;  %v78_v34 = vrot.slane %v71_v26, 4  ;;  %v75_v36 = vperm.slane %v68_v16, 5  ;;  %v46_v37 = vperm.slane %v32_v13, 7 }
  0x23   :  { %v60_v38 = vmul.f32 %v52_v33, %v34_v18  ;;  %v53_v39 = vsel %vm51_vm4, %v41_v17, %v48_v29  ;;  %v79_v41 = vrot.slane %v73_v30, 4  ;;  %v54_v42 = vsel %vm51_vm4, %v43_v20, %v49_v31 }
  0x24   :  { %v82_v43 = vsel %vm51_vm4, %v70_v25, %v78_v34  ;;  %v61_v44 = vmul.f32 %v53_v39, %v35_v28  ;;  %v80_v46 = vrot.slane %v75_v36, 4  ;;  %v62_v49 = vmul.f32 %v54_v42, %v36_v35 }
  0x25   :  { %v90_v47 = vmul.f32 %v82_v43, %v64_v24  ;;  %v83_v48 = vsel %vm51_vm4, %v72_v27, %v79_v41  ;;  %v50_v50 = vrot.slane %v46_v37, 4  ;;  %v76_v54 = vperm.slane %v68_v16, 6 }
  0x26   :  { %v91_v51 = vmul.f32 %v83_v48, %v65_v40  ;;  %v84_v52 = vsel %vm51_vm4, %v74_v32, %v80_v46  ;;  %v77_v55 = vperm.slane %v68_v16, 7 }
  0x27   :  { %v94_v56 = vadd.f32 %v90_v47, %v60_v38  ;;  %v92_v57 = vmul.f32 %v84_v52, %v66_v45  ;;  %v55_v58 = vsel %vm51_vm4, %v45_v22, %v50_v50 }
  0x28   :  { %v95_v59 = vadd.f32 %v91_v51, %v61_v44  ;;  %v81_v61 = vrot.slane %v77_v55, 4  ;;  %v63_v63 = vmul.f32 %v55_v58, %v37_v53 }
  0x29   :  { %98 = vst [vmem:[%s181_s3] sm:$0x77] %v94_v56  ;;  %v96_v62 = vadd.f32 %v92_v57, %v62_v49 }
  0x2a   :  { %99 = vst [vmem:[%s181_s3 + $0x8] sm:$0x77] %v95_v59  ;;  %v85_v0 = vsel %vm51_vm4, %v76_v54, %v81_v61 }
  0x2b   :  { %100 = vst [vmem:[%s181_s3 + $0x10] sm:$0x77] %v96_v62  ;;  %v93_v1 = vmul.f32 %v85_v0, %v67_v60 }
  0x2d   :  { %v97_v2 = vadd.f32 %v93_v1, %v63_v63 }
  0x2f   :  { %101 = vst [vmem:[%s181_s3 + $0x18] sm:$0x77] %v97_v2 }

</bundles_post_ra>
